<compile_context>
chip_gen: v6e
topology: v6e:2x2x1
jax: 0.10.0
libtpu: 0.0.40
codegen_flags: <defaults>
</compile_context>

<pallas_src>
import math

import jax
import jax.numpy as jnp
import numpy as np
from jax import lax
from jax.experimental import pallas as pl
from jax.experimental.pallas import tpu as pltpu

C_PAD = 128      # lane-dense channel padding (one full 128-lane tile)
KH = KW = 3      # BasicBlock 3x3 convs


# ----------------------------------------------------------------------------
# Fused whole-stage kernel (all blocks, VMEM-resident intermediates)
# ----------------------------------------------------------------------------
def _make_stage_kernel(H, W, C, count, shortcut_flags):
    Hp, Wp = H + 2, W + 2          # pad=1 halo for the 3x3 convs
    HW = H * W

    def conv3x3(src_ref, w_ref, w_base, scale, bias):
        # Direct conv: 9 shifted (HW, C) x (C, C) bf16 MXU matmuls, f32 accumulate.
        acc = jnp.zeros((HW, C), jnp.float32)
        for dy in range(KH):
            for dx in range(KW):
                patch = src_ref[dy:dy + H, dx:dx + W, :].reshape(HW, C)
                acc = acc + jnp.dot(patch.astype(jnp.bfloat16),
                                    w_ref[w_base + dy * KW + dx],
                                    preferred_element_type=jnp.float32)
        # folded BatchNorm (inference): per-channel affine in f32
        return acc * scale + bias

    def kernel(x_ref, w2a_ref, s2a_ref, b2a_ref, w2b_ref, s2b_ref, b2b_ref,
               wsc_ref, ssc_ref, bsc_ref, o_ref, xpad_ref, apad_ref):
        # Zero the halos once; interiors are always fully overwritten below.
        xpad_ref[...] = jnp.zeros_like(xpad_ref)
        apad_ref[...] = jnp.zeros_like(apad_ref)
        xpad_ref[1:1 + H, 1:1 + W, :] = x_ref[0]

        for blk in range(count):                 # static unroll over blocks
            base = blk * KH * KW
            # branch2a: 3x3 conv + BN + ReLU
            a = conv3x3(xpad_ref, w2a_ref, base, s2a_ref[blk], b2a_ref[blk])
            apad_ref[1:1 + H, 1:1 + W, :] = jnp.maximum(a, 0.0).reshape(H, W, C)
            # branch2b: 3x3 conv + BN (no activation)
            y = conv3x3(apad_ref, w2b_ref, base, s2b_ref[blk], b2b_ref[blk])
            # shortcut: identity, or fused 1x1 conv + BN for the first block
            x_int = xpad_ref[1:1 + H, 1:1 + W, :].reshape(HW, C)
            if shortcut_flags[blk]:
                sc = x_int
            else:
                sc = jnp.dot(x_int.astype(jnp.bfloat16), wsc_ref[...],
                             preferred_element_type=jnp.float32)
                sc = sc * ssc_ref[...] + bsc_ref[...]
            out = jnp.maximum(y + sc, 0.0)
            if blk == count - 1:
                o_ref[0] = out.reshape(H, W, C).astype(o_ref.dtype)
            else:
                xpad_ref[1:1 + H, 1:1 + W, :] = out.reshape(H, W, C)

    return kernel


# ----------------------------------------------------------------------------
# Parameter packing: channel-pad to C_PAD, cast weights to bf16, flatten taps
# ----------------------------------------------------------------------------
def _pad_w(w, C):
    kh, kw, cin, cout = w.shape
    return jnp.zeros((kh, kw, C, C), jnp.float32).at[:, :, :cin, :cout].set(w)


def _pad_v(v, C):
    return jnp.zeros((C,), jnp.float32).at[:v.shape[0]].set(v)


def pack_stage_params(params, C=C_PAD):
    w2a = jnp.concatenate(
        [_pad_w(p["branch2a"]["w"], C).reshape(KH * KW, C, C) for p in params], 0)
    w2b = jnp.concatenate(
        [_pad_w(p["branch2b"]["w"], C).reshape(KH * KW, C, C) for p in params], 0)
    s2a = jnp.stack([_pad_v(p["branch2a"]["scale"], C).reshape(1, C) for p in params])
    b2a = jnp.stack([_pad_v(p["branch2a"]["bias"], C).reshape(1, C) for p in params])
    s2b = jnp.stack([_pad_v(p["branch2b"]["scale"], C).reshape(1, C) for p in params])
    b2b = jnp.stack([_pad_v(p["branch2b"]["bias"], C).reshape(1, C) for p in params])
    p0 = params[0]["short"]
    wsc = _pad_w(p0["w"], C)[0, 0]                       # (C, C)
    ssc = _pad_v(p0["scale"], C).reshape(1, C)
    bsc = _pad_v(p0["bias"], C).reshape(1, C)
    return {
        "w2a": w2a.astype(jnp.bfloat16), "w2b": w2b.astype(jnp.bfloat16),
        "wsc": wsc.astype(jnp.bfloat16),
        "s2a": s2a, "b2a": b2a, "s2b": s2b, "b2b": b2b, "ssc": ssc, "bsc": bsc,
        "shortcut": tuple(p["shortcut"] for p in params),
    }


# ----------------------------------------------------------------------------
# Forward pass: ONE pallas_call per stage
# ----------------------------------------------------------------------------
def blocks_fwd(x_nchw, params, C=C_PAD):
    N, cin, H, W = x_nchw.shape
    cout = params[-1]["branch2b"]["w"].shape[-1]
    count = len(params)
    packed = pack_stage_params(params, C)

    # NCHW -> NHWC, channel-pad once to a full lane tile (tiny, one-time)
    x = jnp.transpose(x_nchw, (0, 2, 3, 1))
    x = jnp.zeros((N, H, W, C), jnp.float32).at[..., :cin].set(x)

    kernel = _make_stage_kernel(H, W, C, count, packed["shortcut"])
    Hp, Wp = H + 2, W + 2

    out = pl.pallas_call(
        kernel,
        out_shape=jax.ShapeDtypeStruct((N, H, W, C), jnp.float32),
        grid=(N,),
        in_specs=[
            pl.BlockSpec((1, H, W, C), lambda n: (n, 0, 0, 0)),
            pl.BlockSpec((count * KH * KW, C, C), lambda n: (0, 0, 0)),
            pl.BlockSpec((count, 1, C), lambda n: (0, 0, 0)),
            pl.BlockSpec((count, 1, C), lambda n: (0, 0, 0)),
            pl.BlockSpec((count * KH * KW, C, C), lambda n: (0, 0, 0)),
            pl.BlockSpec((count, 1, C), lambda n: (0, 0, 0)),
            pl.BlockSpec((count, 1, C), lambda n: (0, 0, 0)),
            pl.BlockSpec((C, C), lambda n: (0, 0)),
            pl.BlockSpec((1, C), lambda n: (0, 0)),
            pl.BlockSpec((1, C), lambda n: (0, 0)),
        ],
        out_specs=pl.BlockSpec((1, H, W, C), lambda n: (n, 0, 0, 0)),
        scratch_shapes=[pltpu.VMEM((Hp, Wp, C), jnp.float32),   # padded block input
                        pltpu.VMEM((Hp, Wp, C), jnp.float32)],  # padded branch2a act
        compiler_params=pltpu.CompilerParams(
            dimension_semantics=("parallel",),
            vmem_limit_bytes=32 * 1024 * 1024),
    )(x, packed["w2a"], packed["s2a"], packed["b2a"],
      packed["w2b"], packed["s2b"], packed["b2b"],
      packed["wsc"], packed["ssc"], packed["bsc"])

    out = out[..., :cout]                       # drop channel padding
    return jnp.transpose(out, (0, 3, 1, 2))     # NHWC -> NCHW


# ----------------------------------------------------------------------------
# Parameter init (deterministic, synthetic) — mirrors Blocks.__init__ shapes
# ----------------------------------------------------------------------------
def _init_conv_norm(key, kh, kw, cin, cout):
    kw_, kg, kb, km, kv = jax.random.split(key, 5)
    fan_in = kh * kw * cin
    w = jax.random.normal(kw_, (kh, kw, cin, cout), jnp.float32) * math.sqrt(2.0 / fan_in)
    gamma = jax.random.uniform(kg, (cout,), jnp.float32, 0.5, 1.5)
    beta = jax.random.normal(kb, (cout,), jnp.float32) * 0.1
    mean = jax.random.normal(km, (cout,), jnp.float32) * 0.1
    var = jax.random.uniform(kv, (cout,), jnp.float32, 0.5, 1.5)
    eps = 1e-5
    scale = gamma / jnp.sqrt(var + eps)
    bias = beta - mean * scale
    return {"w": w, "scale": scale, "bias": bias}


def init_blocks_params(key, ch_in, ch_out, count, stage_num):
    assert stage_num == 2, "demo config: stride-1 everywhere"
    params = []
    cin = ch_in
    for i in range(count):
        k = jax.random.fold_in(key, i)
        ka, kb, ks = jax.random.split(k, 3)
        p = {
            "branch2a": _init_conv_norm(ka, 3, 3, cin, ch_out),
            "branch2b": _init_conv_norm(kb, 3, 3, ch_out, ch_out),
            "shortcut": i != 0,
        }
        if i == 0:
            p["short"] = _init_conv_norm(ks, 1, 1, cin, ch_out)
            cin = ch_out  # * BasicBlock.expansion (= 1)
        params.append(p)
    return params


# ----------------------------------------------------------------------------
# Pure-JAX reference (same folded-BN semantics) for a correctness check
# ----------------------------------------------------------------------------
def _ref_conv_bn(x, p, pad, act, residual=None):
    y = lax.conv_general_dilated(x, p["w"], (1, 1), [(pad, pad), (pad, pad)],
                                 dimension_numbers=("NHWC", "HWIO", "NHWC"))
    y = y * p["scale"] + p["bias"]
    if residual is not None:
        y = y + residual
    return jnp.maximum(y, 0.0) if act else y


def _ref_blocks(x_nchw, params):
    out = jnp.transpose(x_nchw, (0, 2, 3, 1))
    for p in params:
        a = _ref_conv_bn(out, p["branch2a"], 1, True)
        short = out if p["shortcut"] else _ref_conv_bn(out, p["short"], 0, False)
        out = _ref_conv_bn(a, p["branch2b"], 1, True, residual=short)
    return jnp.transpose(out, (0, 3, 1, 2))


if __name__ == "__main__":
    key = jax.random.PRNGKey(0)
    kx, kp = jax.random.split(key)

    N, CH_IN, CH_OUT, H, W = 2, 8, 16, 16, 16
    x = jax.random.normal(kx, (N, CH_IN, H, W), jnp.float32)  # PyTorch NCHW input
    params = init_blocks_params(kp, CH_IN, CH_OUT, count=2, stage_num=2)

    out = jax.block_until_ready(blocks_fwd(x, params))

    ref = _ref_blocks(x, params)
    assert out.shape == (N, CH_OUT, H, W)
    np.testing.assert_allclose(np.asarray(out), np.asarray(ref), rtol=5e-2, atol=5e-2)
    print("KERNEL_OK")
</pallas_src>

<mosaic_0001>
module attributes {stable_mosaic.version = 11 : i64} {
  func.func @kernel(%arg0: i32, %arg1: memref<1x16x16x128xf32, #tpu.memory_space<vmem>>, %arg2: memref<18x128x128xbf16, #tpu.memory_space<vmem>>, %arg3: memref<2x1x128xf32, #tpu.memory_space<vmem>>, %arg4: memref<2x1x128xf32, #tpu.memory_space<vmem>>, %arg5: memref<18x128x128xbf16, #tpu.memory_space<vmem>>, %arg6: memref<2x1x128xf32, #tpu.memory_space<vmem>>, %arg7: memref<2x1x128xf32, #tpu.memory_space<vmem>>, %arg8: memref<128x128xbf16, #tpu.memory_space<vmem>>, %arg9: memref<1x128xf32, #tpu.memory_space<vmem>>, %arg10: memref<1x128xf32, #tpu.memory_space<vmem>>, %arg11: memref<1x16x16x128xf32, #tpu.memory_space<vmem>>, %arg12: memref<18x18x128xf32, #tpu.memory_space<vmem>>, %arg13: memref<18x18x128xf32, #tpu.memory_space<vmem>>) attributes {dimension_semantics = [#tpu.dimension_semantics<parallel>], iteration_bounds = array<i64: 2>, scalar_prefetch = 0 : i64, scratch_operands = 2 : i64, tpu.core_type = #tpu.core_type<tc>, window_params = [{transform_indices = @transform_0, window_bounds = array<i64: 1, 16, 16, 128>}, {pipeline_mode = #tpu.pipeline_mode<synchronous>, transform_indices = @transform_1, window_bounds = array<i64: 18, 128, 128>}, {pipeline_mode = #tpu.pipeline_mode<synchronous>, transform_indices = @transform_2, window_bounds = array<i64: 2, 1, 128>}, {pipeline_mode = #tpu.pipeline_mode<synchronous>, transform_indices = @transform_3, window_bounds = array<i64: 2, 1, 128>}, {pipeline_mode = #tpu.pipeline_mode<synchronous>, transform_indices = @transform_4, window_bounds = array<i64: 18, 128, 128>}, {pipeline_mode = #tpu.pipeline_mode<synchronous>, transform_indices = @transform_5, window_bounds = array<i64: 2, 1, 128>}, {pipeline_mode = #tpu.pipeline_mode<synchronous>, transform_indices = @transform_6, window_bounds = array<i64: 2, 1, 128>}, {pipeline_mode = #tpu.pipeline_mode<synchronous>, transform_indices = @transform_7, window_bounds = array<i64: 128, 128>}, {pipeline_mode = #tpu.pipeline_mode<synchronous>, transform_indices = @transform_8, window_bounds = array<i64: 1, 128>}, {pipeline_mode = #tpu.pipeline_mode<synchronous>, transform_indices = @transform_9, window_bounds = array<i64: 1, 128>}, {transform_indices = @transform_10, window_bounds = array<i64: 1, 16, 16, 128>}]} {
    %cst = arith.constant 0.000000e+00 : f32
    %0 = vector.broadcast %cst : f32 to vector<18x18x128xf32>
    %c0 = arith.constant 0 : index
    %c0_0 = arith.constant 0 : index
    %c0_1 = arith.constant 0 : index
    %1 = vector.load %arg12[%c0, %c0_0, %c0_1] : memref<18x18x128xf32, #tpu.memory_space<vmem>>, vector<18x18x128xf32>
    tpu.vector_store %arg12[%c0, %c0_0, %c0_1], %0 {strides = array<i32>} : memref<18x18x128xf32, #tpu.memory_space<vmem>>, vector<18x18x128xf32>,
    %cst_2 = arith.constant 0.000000e+00 : f32
    %2 = vector.broadcast %cst_2 : f32 to vector<18x18x128xf32>
    %c0_3 = arith.constant 0 : index
    %c0_4 = arith.constant 0 : index
    %c0_5 = arith.constant 0 : index
    %3 = vector.load %arg13[%c0_3, %c0_4, %c0_5] : memref<18x18x128xf32, #tpu.memory_space<vmem>>, vector<18x18x128xf32>
    tpu.vector_store %arg13[%c0_3, %c0_4, %c0_5], %2 {strides = array<i32>} : memref<18x18x128xf32, #tpu.memory_space<vmem>>, vector<18x18x128xf32>,
    %c0_6 = arith.constant 0 : index
    %c0_7 = arith.constant 0 : index
    %c0_8 = arith.constant 0 : index
    %c0_9 = arith.constant 0 : index
    %4 = vector.load %arg1[%c0_6, %c0_7, %c0_8, %c0_9] : memref<1x16x16x128xf32, #tpu.memory_space<vmem>>, vector<1x16x16x128xf32>
    %5 = vector.shape_cast %4 : vector<1x16x16x128xf32> to vector<16x16x128xf32>
    %c1 = arith.constant 1 : index
    %c1_10 = arith.constant 1 : index
    %c0_11 = arith.constant 0 : index
    %6 = vector.load %arg12[%c1, %c1_10, %c0_11] : memref<18x18x128xf32, #tpu.memory_space<vmem>>, vector<16x16x128xf32>
    tpu.vector_store %arg12[%c1, %c1_10, %c0_11], %5 {strides = array<i32>} : memref<18x18x128xf32, #tpu.memory_space<vmem>>, vector<16x16x128xf32>,
    %c0_12 = arith.constant 0 : index
    %c0_13 = arith.constant 0 : index
    %c0_14 = arith.constant 0 : index
    %7 = vector.load %arg3[%c0_12, %c0_13, %c0_14] : memref<2x1x128xf32, #tpu.memory_space<vmem>>, vector<1x1x128xf32>
    %8 = vector.shape_cast %7 : vector<1x1x128xf32> to vector<1x128xf32>
    %c0_15 = arith.constant 0 : index
    %c0_16 = arith.constant 0 : index
    %c0_17 = arith.constant 0 : index
    %9 = vector.load %arg4[%c0_15, %c0_16, %c0_17] : memref<2x1x128xf32, #tpu.memory_space<vmem>>, vector<1x1x128xf32>
    %10 = vector.shape_cast %9 : vector<1x1x128xf32> to vector<1x128xf32>
    %cst_18 = arith.constant 0.000000e+00 : f32
    %11 = vector.broadcast %cst_18 : f32 to vector<256x128xf32>
    %c0_19 = arith.constant 0 : index
    %c0_20 = arith.constant 0 : index
    %c0_21 = arith.constant 0 : index
    %12 = vector.load %arg12[%c0_19, %c0_20, %c0_21] : memref<18x18x128xf32, #tpu.memory_space<vmem>>, vector<16x16x128xf32>
    %13 = vector.shape_cast %12 : vector<16x16x128xf32> to vector<256x128xf32>
    %14 = arith.truncf %13 : vector<256x128xf32> to vector<256x128xbf16>
    %c0_22 = arith.constant 0 : index
    %c0_23 = arith.constant 0 : index
    %c0_24 = arith.constant 0 : index
    %15 = vector.load %arg2[%c0_22, %c0_23, %c0_24] : memref<18x128x128xbf16, #tpu.memory_space<vmem>>, vector<1x128x128xbf16>
    %16 = vector.shape_cast %15 : vector<1x128x128xbf16> to vector<128x128xbf16>
    %cst_25 = arith.constant dense<0.000000e+00> : vector<256x128xf32>
    %17 = tpu.matmul %14, %16, %cst_25 {dimension_numbers = #tpu.dot_dimension_numbers<[1], [0], [0], [1], [0, 0, 1, 1], [], []>} : vector<256x128xbf16>, vector<128x128xbf16>, vector<256x128xf32> -> vector<256x128xf32>
    %18 = arith.addf %11, %17 : vector<256x128xf32>
    %c0_26 = arith.constant 0 : index
    %c1_27 = arith.constant 1 : index
    %c0_28 = arith.constant 0 : index
    %19 = vector.load %arg12[%c0_26, %c1_27, %c0_28] : memref<18x18x128xf32, #tpu.memory_space<vmem>>, vector<16x16x128xf32>
    %20 = vector.shape_cast %19 : vector<16x16x128xf32> to vector<256x128xf32>
    %21 = arith.truncf %20 : vector<256x128xf32> to vector<256x128xbf16>
    %c1_29 = arith.constant 1 : index
    %c0_30 = arith.constant 0 : index
    %c0_31 = arith.constant 0 : index
    %22 = vector.load %arg2[%c1_29, %c0_30, %c0_31] : memref<18x128x128xbf16, #tpu.memory_space<vmem>>, vector<1x128x128xbf16>
    %23 = vector.shape_cast %22 : vector<1x128x128xbf16> to vector<128x128xbf16>
    %cst_32 = arith.constant dense<0.000000e+00> : vector<256x128xf32>
    %24 = tpu.matmul %21, %23, %cst_32 {dimension_numbers = #tpu.dot_dimension_numbers<[1], [0], [0], [1], [0, 0, 1, 1], [], []>} : vector<256x128xbf16>, vector<128x128xbf16>, vector<256x128xf32> -> vector<256x128xf32>
    %25 = arith.addf %18, %24 : vector<256x128xf32>
    %c0_33 = arith.constant 0 : index
    %c2 = arith.constant 2 : index
    %c0_34 = arith.constant 0 : index
    %26 = vector.load %arg12[%c0_33, %c2, %c0_34] : memref<18x18x128xf32, #tpu.memory_space<vmem>>, vector<16x16x128xf32>
    %27 = vector.shape_cast %26 : vector<16x16x128xf32> to vector<256x128xf32>
    %28 = arith.truncf %27 : vector<256x128xf32> to vector<256x128xbf16>
    %c2_35 = arith.constant 2 : index
    %c0_36 = arith.constant 0 : index
    %c0_37 = arith.constant 0 : index
    %29 = vector.load %arg2[%c2_35, %c0_36, %c0_37] : memref<18x128x128xbf16, #tpu.memory_space<vmem>>, vector<1x128x128xbf16>
    %30 = vector.shape_cast %29 : vector<1x128x128xbf16> to vector<128x128xbf16>
    %cst_38 = arith.constant dense<0.000000e+00> : vector<256x128xf32>
    %31 = tpu.matmul %28, %30, %cst_38 {dimension_numbers = #tpu.dot_dimension_numbers<[1], [0], [0], [1], [0, 0, 1, 1], [], []>} : vector<256x128xbf16>, vector<128x128xbf16>, vector<256x128xf32> -> vector<256x128xf32>
    %32 = arith.addf %25, %31 : vector<256x128xf32>
    %c1_39 = arith.constant 1 : index
    %c0_40 = arith.constant 0 : index
    %c0_41 = arith.constant 0 : index
    %33 = vector.load %arg12[%c1_39, %c0_40, %c0_41] : memref<18x18x128xf32, #tpu.memory_space<vmem>>, vector<16x16x128xf32>
    %34 = vector.shape_cast %33 : vector<16x16x128xf32> to vector<256x128xf32>
    %35 = arith.truncf %34 : vector<256x128xf32> to vector<256x128xbf16>
    %c3 = arith.constant 3 : index
    %c0_42 = arith.constant 0 : index
    %c0_43 = arith.constant 0 : index
    %36 = vector.load %arg2[%c3, %c0_42, %c0_43] : memref<18x128x128xbf16, #tpu.memory_space<vmem>>, vector<1x128x128xbf16>
    %37 = vector.shape_cast %36 : vector<1x128x128xbf16> to vector<128x128xbf16>
    %cst_44 = arith.constant dense<0.000000e+00> : vector<256x128xf32>
    %38 = tpu.matmul %35, %37, %cst_44 {dimension_numbers = #tpu.dot_dimension_numbers<[1], [0], [0], [1], [0, 0, 1, 1], [], []>} : vector<256x128xbf16>, vector<128x128xbf16>, vector<256x128xf32> -> vector<256x128xf32>
    %39 = arith.addf %32, %38 : vector<256x128xf32>
    %c1_45 = arith.constant 1 : index
    %c1_46 = arith.constant 1 : index
    %c0_47 = arith.constant 0 : index
    %40 = vector.load %arg12[%c1_45, %c1_46, %c0_47] : memref<18x18x128xf32, #tpu.memory_space<vmem>>, vector<16x16x128xf32>
    %41 = vector.shape_cast %40 : vector<16x16x128xf32> to vector<256x128xf32>
    %42 = arith.truncf %41 : vector<256x128xf32> to vector<256x128xbf16>
    %c4 = arith.constant 4 : index
    %c0_48 = arith.constant 0 : index
    %c0_49 = arith.constant 0 : index
    %43 = vector.load %arg2[%c4, %c0_48, %c0_49] : memref<18x128x128xbf16, #tpu.memory_space<vmem>>, vector<1x128x128xbf16>
    %44 = vector.shape_cast %43 : vector<1x128x128xbf16> to vector<128x128xbf16>
    %cst_50 = arith.constant dense<0.000000e+00> : vector<256x128xf32>
    %45 = tpu.matmul %42, %44, %cst_50 {dimension_numbers = #tpu.dot_dimension_numbers<[1], [0], [0], [1], [0, 0, 1, 1], [], []>} : vector<256x128xbf16>, vector<128x128xbf16>, vector<256x128xf32> -> vector<256x128xf32>
    %46 = arith.addf %39, %45 : vector<256x128xf32>
    %c1_51 = arith.constant 1 : index
    %c2_52 = arith.constant 2 : index
    %c0_53 = arith.constant 0 : index
    %47 = vector.load %arg12[%c1_51, %c2_52, %c0_53] : memref<18x18x128xf32, #tpu.memory_space<vmem>>, vector<16x16x128xf32>
    %48 = vector.shape_cast %47 : vector<16x16x128xf32> to vector<256x128xf32>
    %49 = arith.truncf %48 : vector<256x128xf32> to vector<256x128xbf16>
    %c5 = arith.constant 5 : index
    %c0_54 = arith.constant 0 : index
    %c0_55 = arith.constant 0 : index
    %50 = vector.load %arg2[%c5, %c0_54, %c0_55] : memref<18x128x128xbf16, #tpu.memory_space<vmem>>, vector<1x128x128xbf16>
    %51 = vector.shape_cast %50 : vector<1x128x128xbf16> to vector<128x128xbf16>
    %cst_56 = arith.constant dense<0.000000e+00> : vector<256x128xf32>
    %52 = tpu.matmul %49, %51, %cst_56 {dimension_numbers = #tpu.dot_dimension_numbers<[1], [0], [0], [1], [0, 0, 1, 1], [], []>} : vector<256x128xbf16>, vector<128x128xbf16>, vector<256x128xf32> -> vector<256x128xf32>
    %53 = arith.addf %46, %52 : vector<256x128xf32>
    %c2_57 = arith.constant 2 : index
    %c0_58 = arith.constant 0 : index
    %c0_59 = arith.constant 0 : index
    %54 = vector.load %arg12[%c2_57, %c0_58, %c0_59] : memref<18x18x128xf32, #tpu.memory_space<vmem>>, vector<16x16x128xf32>
    %55 = vector.shape_cast %54 : vector<16x16x128xf32> to vector<256x128xf32>
    %56 = arith.truncf %55 : vector<256x128xf32> to vector<256x128xbf16>
    %c6 = arith.constant 6 : index
    %c0_60 = arith.constant 0 : index
    %c0_61 = arith.constant 0 : index
    %57 = vector.load %arg2[%c6, %c0_60, %c0_61] : memref<18x128x128xbf16, #tpu.memory_space<vmem>>, vector<1x128x128xbf16>
    %58 = vector.shape_cast %57 : vector<1x128x128xbf16> to vector<128x128xbf16>
    %cst_62 = arith.constant dense<0.000000e+00> : vector<256x128xf32>
    %59 = tpu.matmul %56, %58, %cst_62 {dimension_numbers = #tpu.dot_dimension_numbers<[1], [0], [0], [1], [0, 0, 1, 1], [], []>} : vector<256x128xbf16>, vector<128x128xbf16>, vector<256x128xf32> -> vector<256x128xf32>
    %60 = arith.addf %53, %59 : vector<256x128xf32>
    %c2_63 = arith.constant 2 : index
    %c1_64 = arith.constant 1 : index
    %c0_65 = arith.constant 0 : index
    %61 = vector.load %arg12[%c2_63, %c1_64, %c0_65] : memref<18x18x128xf32, #tpu.memory_space<vmem>>, vector<16x16x128xf32>
    %62 = vector.shape_cast %61 : vector<16x16x128xf32> to vector<256x128xf32>
    %63 = arith.truncf %62 : vector<256x128xf32> to vector<256x128xbf16>
    %c7 = arith.constant 7 : index
    %c0_66 = arith.constant 0 : index
    %c0_67 = arith.constant 0 : index
    %64 = vector.load %arg2[%c7, %c0_66, %c0_67] : memref<18x128x128xbf16, #tpu.memory_space<vmem>>, vector<1x128x128xbf16>
    %65 = vector.shape_cast %64 : vector<1x128x128xbf16> to vector<128x128xbf16>
    %cst_68 = arith.constant dense<0.000000e+00> : vector<256x128xf32>
    %66 = tpu.matmul %63, %65, %cst_68 {dimension_numbers = #tpu.dot_dimension_numbers<[1], [0], [0], [1], [0, 0, 1, 1], [], []>} : vector<256x128xbf16>, vector<128x128xbf16>, vector<256x128xf32> -> vector<256x128xf32>
    %67 = arith.addf %60, %66 : vector<256x128xf32>
    %c2_69 = arith.constant 2 : index
    %c2_70 = arith.constant 2 : index
    %c0_71 = arith.constant 0 : index
    %68 = vector.load %arg12[%c2_69, %c2_70, %c0_71] : memref<18x18x128xf32, #tpu.memory_space<vmem>>, vector<16x16x128xf32>
    %69 = vector.shape_cast %68 : vector<16x16x128xf32> to vector<256x128xf32>
    %70 = arith.truncf %69 : vector<256x128xf32> to vector<256x128xbf16>
    %c8 = arith.constant 8 : index
    %c0_72 = arith.constant 0 : index
    %c0_73 = arith.constant 0 : index
    %71 = vector.load %arg2[%c8, %c0_72, %c0_73] : memref<18x128x128xbf16, #tpu.memory_space<vmem>>, vector<1x128x128xbf16>
    %72 = vector.shape_cast %71 : vector<1x128x128xbf16> to vector<128x128xbf16>
    %cst_74 = arith.constant dense<0.000000e+00> : vector<256x128xf32>
    %73 = tpu.matmul %70, %72, %cst_74 {dimension_numbers = #tpu.dot_dimension_numbers<[1], [0], [0], [1], [0, 0, 1, 1], [], []>} : vector<256x128xbf16>, vector<128x128xbf16>, vector<256x128xf32> -> vector<256x128xf32>
    %74 = arith.addf %67, %73 : vector<256x128xf32>
    %75 = vector.broadcast %8 : vector<1x128xf32> to vector<256x128xf32>
    %76 = arith.mulf %74, %75 : vector<256x128xf32>
    %77 = vector.broadcast %10 : vector<1x128xf32> to vector<256x128xf32>
    %78 = arith.addf %76, %77 : vector<256x128xf32>
    %cst_75 = arith.constant 0.000000e+00 : f32
    %79 = vector.broadcast %cst_75 : f32 to vector<256x128xf32>
    %80 = arith.maximumf %78, %79 : vector<256x128xf32>
    %81 = vector.shape_cast %80 : vector<256x128xf32> to vector<16x16x128xf32>
    %c1_76 = arith.constant 1 : index
    %c1_77 = arith.constant 1 : index
    %c0_78 = arith.constant 0 : index
    %82 = vector.load %arg13[%c1_76, %c1_77, %c0_78] : memref<18x18x128xf32, #tpu.memory_space<vmem>>, vector<16x16x128xf32>
    tpu.vector_store %arg13[%c1_76, %c1_77, %c0_78], %81 {strides = array<i32>} : memref<18x18x128xf32, #tpu.memory_space<vmem>>, vector<16x16x128xf32>,
    %c0_79 = arith.constant 0 : index
    %c0_80 = arith.constant 0 : index
    %c0_81 = arith.constant 0 : index
    %83 = vector.load %arg6[%c0_79, %c0_80, %c0_81] : memref<2x1x128xf32, #tpu.memory_space<vmem>>, vector<1x1x128xf32>
    %84 = vector.shape_cast %83 : vector<1x1x128xf32> to vector<1x128xf32>
    %c0_82 = arith.constant 0 : index
    %c0_83 = arith.constant 0 : index
    %c0_84 = arith.constant 0 : index
    %85 = vector.load %arg7[%c0_82, %c0_83, %c0_84] : memref<2x1x128xf32, #tpu.memory_space<vmem>>, vector<1x1x128xf32>
    %86 = vector.shape_cast %85 : vector<1x1x128xf32> to vector<1x128xf32>
    %cst_85 = arith.constant 0.000000e+00 : f32
    %87 = vector.broadcast %cst_85 : f32 to vector<256x128xf32>
    %c0_86 = arith.constant 0 : index
    %c0_87 = arith.constant 0 : index
    %c0_88 = arith.constant 0 : index
    %88 = vector.load %arg13[%c0_86, %c0_87, %c0_88] : memref<18x18x128xf32, #tpu.memory_space<vmem>>, vector<16x16x128xf32>
    %89 = vector.shape_cast %88 : vector<16x16x128xf32> to vector<256x128xf32>
    %90 = arith.truncf %89 : vector<256x128xf32> to vector<256x128xbf16>
    %c0_89 = arith.constant 0 : index
    %c0_90 = arith.constant 0 : index
    %c0_91 = arith.constant 0 : index
    %91 = vector.load %arg5[%c0_89, %c0_90, %c0_91] : memref<18x128x128xbf16, #tpu.memory_space<vmem>>, vector<1x128x128xbf16>
    %92 = vector.shape_cast %91 : vector<1x128x128xbf16> to vector<128x128xbf16>
    %cst_92 = arith.constant dense<0.000000e+00> : vector<256x128xf32>
    %93 = tpu.matmul %90, %92, %cst_92 {dimension_numbers = #tpu.dot_dimension_numbers<[1], [0], [0], [1], [0, 0, 1, 1], [], []>} : vector<256x128xbf16>, vector<128x128xbf16>, vector<256x128xf32> -> vector<256x128xf32>
    %94 = arith.addf %87, %93 : vector<256x128xf32>
    %c0_93 = arith.constant 0 : index
    %c1_94 = arith.constant 1 : index
    %c0_95 = arith.constant 0 : index
    %95 = vector.load %arg13[%c0_93, %c1_94, %c0_95] : memref<18x18x128xf32, #tpu.memory_space<vmem>>, vector<16x16x128xf32>
    %96 = vector.shape_cast %95 : vector<16x16x128xf32> to vector<256x128xf32>
    %97 = arith.truncf %96 : vector<256x128xf32> to vector<256x128xbf16>
    %c1_96 = arith.constant 1 : index
    %c0_97 = arith.constant 0 : index
    %c0_98 = arith.constant 0 : index
    %98 = vector.load %arg5[%c1_96, %c0_97, %c0_98] : memref<18x128x128xbf16, #tpu.memory_space<vmem>>, vector<1x128x128xbf16>
    %99 = vector.shape_cast %98 : vector<1x128x128xbf16> to vector<128x128xbf16>
    %cst_99 = arith.constant dense<0.000000e+00> : vector<256x128xf32>
    %100 = tpu.matmul %97, %99, %cst_99 {dimension_numbers = #tpu.dot_dimension_numbers<[1], [0], [0], [1], [0, 0, 1, 1], [], []>} : vector<256x128xbf16>, vector<128x128xbf16>, vector<256x128xf32> -> vector<256x128xf32>
    %101 = arith.addf %94, %100 : vector<256x128xf32>
    %c0_100 = arith.constant 0 : index
    %c2_101 = arith.constant 2 : index
    %c0_102 = arith.constant 0 : index
    %102 = vector.load %arg13[%c0_100, %c2_101, %c0_102] : memref<18x18x128xf32, #tpu.memory_space<vmem>>, vector<16x16x128xf32>
    %103 = vector.shape_cast %102 : vector<16x16x128xf32> to vector<256x128xf32>
    %104 = arith.truncf %103 : vector<256x128xf32> to vector<256x128xbf16>
    %c2_103 = arith.constant 2 : index
    %c0_104 = arith.constant 0 : index
    %c0_105 = arith.constant 0 : index
    %105 = vector.load %arg5[%c2_103, %c0_104, %c0_105] : memref<18x128x128xbf16, #tpu.memory_space<vmem>>, vector<1x128x128xbf16>
    %106 = vector.shape_cast %105 : vector<1x128x128xbf16> to vector<128x128xbf16>
    %cst_106 = arith.constant dense<0.000000e+00> : vector<256x128xf32>
    %107 = tpu.matmul %104, %106, %cst_106 {dimension_numbers = #tpu.dot_dimension_numbers<[1], [0], [0], [1], [0, 0, 1, 1], [], []>} : vector<256x128xbf16>, vector<128x128xbf16>, vector<256x128xf32> -> vector<256x128xf32>
    %108 = arith.addf %101, %107 : vector<256x128xf32>
    %c1_107 = arith.constant 1 : index
    %c0_108 = arith.constant 0 : index
    %c0_109 = arith.constant 0 : index
    %109 = vector.load %arg13[%c1_107, %c0_108, %c0_109] : memref<18x18x128xf32, #tpu.memory_space<vmem>>, vector<16x16x128xf32>
    %110 = vector.shape_cast %109 : vector<16x16x128xf32> to vector<256x128xf32>
    %111 = arith.truncf %110 : vector<256x128xf32> to vector<256x128xbf16>
    %c3_110 = arith.constant 3 : index
    %c0_111 = arith.constant 0 : index
    %c0_112 = arith.constant 0 : index
    %112 = vector.load %arg5[%c3_110, %c0_111, %c0_112] : memref<18x128x128xbf16, #tpu.memory_space<vmem>>, vector<1x128x128xbf16>
    %113 = vector.shape_cast %112 : vector<1x128x128xbf16> to vector<128x128xbf16>
    %cst_113 = arith.constant dense<0.000000e+00> : vector<256x128xf32>
    %114 = tpu.matmul %111, %113, %cst_113 {dimension_numbers = #tpu.dot_dimension_numbers<[1], [0], [0], [1], [0, 0, 1, 1], [], []>} : vector<256x128xbf16>, vector<128x128xbf16>, vector<256x128xf32> -> vector<256x128xf32>
    %115 = arith.addf %108, %114 : vector<256x128xf32>
    %c1_114 = arith.constant 1 : index
    %c1_115 = arith.constant 1 : index
    %c0_116 = arith.constant 0 : index
    %116 = vector.load %arg13[%c1_114, %c1_115, %c0_116] : memref<18x18x128xf32, #tpu.memory_space<vmem>>, vector<16x16x128xf32>
    %117 = vector.shape_cast %116 : vector<16x16x128xf32> to vector<256x128xf32>
    %118 = arith.truncf %117 : vector<256x128xf32> to vector<256x128xbf16>
    %c4_117 = arith.constant 4 : index
    %c0_118 = arith.constant 0 : index
    %c0_119 = arith.constant 0 : index
    %119 = vector.load %arg5[%c4_117, %c0_118, %c0_119] : memref<18x128x128xbf16, #tpu.memory_space<vmem>>, vector<1x128x128xbf16>
    %120 = vector.shape_cast %119 : vector<1x128x128xbf16> to vector<128x128xbf16>
    %cst_120 = arith.constant dense<0.000000e+00> : vector<256x128xf32>
    %121 = tpu.matmul %118, %120, %cst_120 {dimension_numbers = #tpu.dot_dimension_numbers<[1], [0], [0], [1], [0, 0, 1, 1], [], []>} : vector<256x128xbf16>, vector<128x128xbf16>, vector<256x128xf32> -> vector<256x128xf32>
    %122 = arith.addf %115, %121 : vector<256x128xf32>
    %c1_121 = arith.constant 1 : index
    %c2_122 = arith.constant 2 : index
    %c0_123 = arith.constant 0 : index
    %123 = vector.load %arg13[%c1_121, %c2_122, %c0_123] : memref<18x18x128xf32, #tpu.memory_space<vmem>>, vector<16x16x128xf32>
    %124 = vector.shape_cast %123 : vector<16x16x128xf32> to vector<256x128xf32>
    %125 = arith.truncf %124 : vector<256x128xf32> to vector<256x128xbf16>
    %c5_124 = arith.constant 5 : index
    %c0_125 = arith.constant 0 : index
    %c0_126 = arith.constant 0 : index
    %126 = vector.load %arg5[%c5_124, %c0_125, %c0_126] : memref<18x128x128xbf16, #tpu.memory_space<vmem>>, vector<1x128x128xbf16>
    %127 = vector.shape_cast %126 : vector<1x128x128xbf16> to vector<128x128xbf16>
    %cst_127 = arith.constant dense<0.000000e+00> : vector<256x128xf32>
    %128 = tpu.matmul %125, %127, %cst_127 {dimension_numbers = #tpu.dot_dimension_numbers<[1], [0], [0], [1], [0, 0, 1, 1], [], []>} : vector<256x128xbf16>, vector<128x128xbf16>, vector<256x128xf32> -> vector<256x128xf32>
    %129 = arith.addf %122, %128 : vector<256x128xf32>
    %c2_128 = arith.constant 2 : index
    %c0_129 = arith.constant 0 : index
    %c0_130 = arith.constant 0 : index
    %130 = vector.load %arg13[%c2_128, %c0_129, %c0_130] : memref<18x18x128xf32, #tpu.memory_space<vmem>>, vector<16x16x128xf32>
    %131 = vector.shape_cast %130 : vector<16x16x128xf32> to vector<256x128xf32>
    %132 = arith.truncf %131 : vector<256x128xf32> to vector<256x128xbf16>
    %c6_131 = arith.constant 6 : index
    %c0_132 = arith.constant 0 : index
    %c0_133 = arith.constant 0 : index
    %133 = vector.load %arg5[%c6_131, %c0_132, %c0_133] : memref<18x128x128xbf16, #tpu.memory_space<vmem>>, vector<1x128x128xbf16>
    %134 = vector.shape_cast %133 : vector<1x128x128xbf16> to vector<128x128xbf16>
    %cst_134 = arith.constant dense<0.000000e+00> : vector<256x128xf32>
    %135 = tpu.matmul %132, %134, %cst_134 {dimension_numbers = #tpu.dot_dimension_numbers<[1], [0], [0], [1], [0, 0, 1, 1], [], []>} : vector<256x128xbf16>, vector<128x128xbf16>, vector<256x128xf32> -> vector<256x128xf32>
    %136 = arith.addf %129, %135 : vector<256x128xf32>
    %c2_135 = arith.constant 2 : index
    %c1_136 = arith.constant 1 : index
    %c0_137 = arith.constant 0 : index
    %137 = vector.load %arg13[%c2_135, %c1_136, %c0_137] : memref<18x18x128xf32, #tpu.memory_space<vmem>>, vector<16x16x128xf32>
    %138 = vector.shape_cast %137 : vector<16x16x128xf32> to vector<256x128xf32>
    %139 = arith.truncf %138 : vector<256x128xf32> to vector<256x128xbf16>
    %c7_138 = arith.constant 7 : index
    %c0_139 = arith.constant 0 : index
    %c0_140 = arith.constant 0 : index
    %140 = vector.load %arg5[%c7_138, %c0_139, %c0_140] : memref<18x128x128xbf16, #tpu.memory_space<vmem>>, vector<1x128x128xbf16>
    %141 = vector.shape_cast %140 : vector<1x128x128xbf16> to vector<128x128xbf16>
    %cst_141 = arith.constant dense<0.000000e+00> : vector<256x128xf32>
    %142 = tpu.matmul %139, %141, %cst_141 {dimension_numbers = #tpu.dot_dimension_numbers<[1], [0], [0], [1], [0, 0, 1, 1], [], []>} : vector<256x128xbf16>, vector<128x128xbf16>, vector<256x128xf32> -> vector<256x128xf32>
    %143 = arith.addf %136, %142 : vector<256x128xf32>
    %c2_142 = arith.constant 2 : index
    %c2_143 = arith.constant 2 : index
    %c0_144 = arith.constant 0 : index
    %144 = vector.load %arg13[%c2_142, %c2_143, %c0_144] : memref<18x18x128xf32, #tpu.memory_space<vmem>>, vector<16x16x128xf32>
    %145 = vector.shape_cast %144 : vector<16x16x128xf32> to vector<256x128xf32>
    %146 = arith.truncf %145 : vector<256x128xf32> to vector<256x128xbf16>
    %c8_145 = arith.constant 8 : index
    %c0_146 = arith.constant 0 : index
    %c0_147 = arith.constant 0 : index
    %147 = vector.load %arg5[%c8_145, %c0_146, %c0_147] : memref<18x128x128xbf16, #tpu.memory_space<vmem>>, vector<1x128x128xbf16>
    %148 = vector.shape_cast %147 : vector<1x128x128xbf16> to vector<128x128xbf16>
    %cst_148 = arith.constant dense<0.000000e+00> : vector<256x128xf32>
    %149 = tpu.matmul %146, %148, %cst_148 {dimension_numbers = #tpu.dot_dimension_numbers<[1], [0], [0], [1], [0, 0, 1, 1], [], []>} : vector<256x128xbf16>, vector<128x128xbf16>, vector<256x128xf32> -> vector<256x128xf32>
    %150 = arith.addf %143, %149 : vector<256x128xf32>
    %151 = vector.broadcast %84 : vector<1x128xf32> to vector<256x128xf32>
    %152 = arith.mulf %150, %151 : vector<256x128xf32>
    %153 = vector.broadcast %86 : vector<1x128xf32> to vector<256x128xf32>
    %154 = arith.addf %152, %153 : vector<256x128xf32>
    %c1_149 = arith.constant 1 : index
    %c1_150 = arith.constant 1 : index
    %c0_151 = arith.constant 0 : index
    %155 = vector.load %arg12[%c1_149, %c1_150, %c0_151] : memref<18x18x128xf32, #tpu.memory_space<vmem>>, vector<16x16x128xf32>
    %156 = vector.shape_cast %155 : vector<16x16x128xf32> to vector<256x128xf32>
    %157 = arith.truncf %156 : vector<256x128xf32> to vector<256x128xbf16>
    %c0_152 = arith.constant 0 : index
    %c0_153 = arith.constant 0 : index
    %158 = vector.load %arg8[%c0_152, %c0_153] : memref<128x128xbf16, #tpu.memory_space<vmem>>, vector<128x128xbf16>
    %cst_154 = arith.constant dense<0.000000e+00> : vector<256x128xf32>
    %159 = tpu.matmul %157, %158, %cst_154 {dimension_numbers = #tpu.dot_dimension_numbers<[1], [0], [0], [1], [0, 0, 1, 1], [], []>} : vector<256x128xbf16>, vector<128x128xbf16>, vector<256x128xf32> -> vector<256x128xf32>
    %c0_155 = arith.constant 0 : index
    %c0_156 = arith.constant 0 : index
    %160 = vector.load %arg9[%c0_155, %c0_156] : memref<1x128xf32, #tpu.memory_space<vmem>>, vector<1x128xf32>
    %161 = vector.broadcast %160 : vector<1x128xf32> to vector<256x128xf32>
    %162 = arith.mulf %159, %161 : vector<256x128xf32>
    %c0_157 = arith.constant 0 : index
    %c0_158 = arith.constant 0 : index
    %163 = vector.load %arg10[%c0_157, %c0_158] : memref<1x128xf32, #tpu.memory_space<vmem>>, vector<1x128xf32>
    %164 = vector.broadcast %163 : vector<1x128xf32> to vector<256x128xf32>
    %165 = arith.addf %162, %164 : vector<256x128xf32>
    %166 = arith.addf %154, %165 : vector<256x128xf32>
    %cst_159 = arith.constant 0.000000e+00 : f32
    %167 = vector.broadcast %cst_159 : f32 to vector<256x128xf32>
    %168 = arith.maximumf %166, %167 : vector<256x128xf32>
    %169 = vector.shape_cast %168 : vector<256x128xf32> to vector<16x16x128xf32>
    %c1_160 = arith.constant 1 : index
    %c1_161 = arith.constant 1 : index
    %c0_162 = arith.constant 0 : index
    %170 = vector.load %arg12[%c1_160, %c1_161, %c0_162] : memref<18x18x128xf32, #tpu.memory_space<vmem>>, vector<16x16x128xf32>
    tpu.vector_store %arg12[%c1_160, %c1_161, %c0_162], %169 {strides = array<i32>} : memref<18x18x128xf32, #tpu.memory_space<vmem>>, vector<16x16x128xf32>,
    %c1_163 = arith.constant 1 : index
    %c0_164 = arith.constant 0 : index
    %c0_165 = arith.constant 0 : index
    %171 = vector.load %arg3[%c1_163, %c0_164, %c0_165] : memref<2x1x128xf32, #tpu.memory_space<vmem>>, vector<1x1x128xf32>
    %172 = vector.shape_cast %171 : vector<1x1x128xf32> to vector<1x128xf32>
    %c1_166 = arith.constant 1 : index
    %c0_167 = arith.constant 0 : index
    %c0_168 = arith.constant 0 : index
    %173 = vector.load %arg4[%c1_166, %c0_167, %c0_168] : memref<2x1x128xf32, #tpu.memory_space<vmem>>, vector<1x1x128xf32>
    %174 = vector.shape_cast %173 : vector<1x1x128xf32> to vector<1x128xf32>
    %cst_169 = arith.constant 0.000000e+00 : f32
    %175 = vector.broadcast %cst_169 : f32 to vector<256x128xf32>
    %c0_170 = arith.constant 0 : index
    %c0_171 = arith.constant 0 : index
    %c0_172 = arith.constant 0 : index
    %176 = vector.load %arg12[%c0_170, %c0_171, %c0_172] : memref<18x18x128xf32, #tpu.memory_space<vmem>>, vector<16x16x128xf32>
    %177 = vector.shape_cast %176 : vector<16x16x128xf32> to vector<256x128xf32>
    %178 = arith.truncf %177 : vector<256x128xf32> to vector<256x128xbf16>
    %c9 = arith.constant 9 : index
    %c0_173 = arith.constant 0 : index
    %c0_174 = arith.constant 0 : index
    %179 = vector.load %arg2[%c9, %c0_173, %c0_174] : memref<18x128x128xbf16, #tpu.memory_space<vmem>>, vector<1x128x128xbf16>
    %180 = vector.shape_cast %179 : vector<1x128x128xbf16> to vector<128x128xbf16>
    %cst_175 = arith.constant dense<0.000000e+00> : vector<256x128xf32>
    %181 = tpu.matmul %178, %180, %cst_175 {dimension_numbers = #tpu.dot_dimension_numbers<[1], [0], [0], [1], [0, 0, 1, 1], [], []>} : vector<256x128xbf16>, vector<128x128xbf16>, vector<256x128xf32> -> vector<256x128xf32>
    %182 = arith.addf %175, %181 : vector<256x128xf32>
    %c0_176 = arith.constant 0 : index
    %c1_177 = arith.constant 1 : index
    %c0_178 = arith.constant 0 : index
    %183 = vector.load %arg12[%c0_176, %c1_177, %c0_178] : memref<18x18x128xf32, #tpu.memory_space<vmem>>, vector<16x16x128xf32>
    %184 = vector.shape_cast %183 : vector<16x16x128xf32> to vector<256x128xf32>
    %185 = arith.truncf %184 : vector<256x128xf32> to vector<256x128xbf16>
    %c10 = arith.constant 10 : index
    %c0_179 = arith.constant 0 : index
    %c0_180 = arith.constant 0 : index
    %186 = vector.load %arg2[%c10, %c0_179, %c0_180] : memref<18x128x128xbf16, #tpu.memory_space<vmem>>, vector<1x128x128xbf16>
    %187 = vector.shape_cast %186 : vector<1x128x128xbf16> to vector<128x128xbf16>
    %cst_181 = arith.constant dense<0.000000e+00> : vector<256x128xf32>
    %188 = tpu.matmul %185, %187, %cst_181 {dimension_numbers = #tpu.dot_dimension_numbers<[1], [0], [0], [1], [0, 0, 1, 1], [], []>} : vector<256x128xbf16>, vector<128x128xbf16>, vector<256x128xf32> -> vector<256x128xf32>
    %189 = arith.addf %182, %188 : vector<256x128xf32>
    %c0_182 = arith.constant 0 : index
    %c2_183 = arith.constant 2 : index
    %c0_184 = arith.constant 0 : index
    %190 = vector.load %arg12[%c0_182, %c2_183, %c0_184] : memref<18x18x128xf32, #tpu.memory_space<vmem>>, vector<16x16x128xf32>
    %191 = vector.shape_cast %190 : vector<16x16x128xf32> to vector<256x128xf32>
    %192 = arith.truncf %191 : vector<256x128xf32> to vector<256x128xbf16>
    %c11 = arith.constant 11 : index
    %c0_185 = arith.constant 0 : index
    %c0_186 = arith.constant 0 : index
    %193 = vector.load %arg2[%c11, %c0_185, %c0_186] : memref<18x128x128xbf16, #tpu.memory_space<vmem>>, vector<1x128x128xbf16>
    %194 = vector.shape_cast %193 : vector<1x128x128xbf16> to vector<128x128xbf16>
    %cst_187 = arith.constant dense<0.000000e+00> : vector<256x128xf32>
    %195 = tpu.matmul %192, %194, %cst_187 {dimension_numbers = #tpu.dot_dimension_numbers<[1], [0], [0], [1], [0, 0, 1, 1], [], []>} : vector<256x128xbf16>, vector<128x128xbf16>, vector<256x128xf32> -> vector<256x128xf32>
    %196 = arith.addf %189, %195 : vector<256x128xf32>
    %c1_188 = arith.constant 1 : index
    %c0_189 = arith.constant 0 : index
    %c0_190 = arith.constant 0 : index
    %197 = vector.load %arg12[%c1_188, %c0_189, %c0_190] : memref<18x18x128xf32, #tpu.memory_space<vmem>>, vector<16x16x128xf32>
    %198 = vector.shape_cast %197 : vector<16x16x128xf32> to vector<256x128xf32>
    %199 = arith.truncf %198 : vector<256x128xf32> to vector<256x128xbf16>
    %c12 = arith.constant 12 : index
    %c0_191 = arith.constant 0 : index
    %c0_192 = arith.constant 0 : index
    %200 = vector.load %arg2[%c12, %c0_191, %c0_192] : memref<18x128x128xbf16, #tpu.memory_space<vmem>>, vector<1x128x128xbf16>
    %201 = vector.shape_cast %200 : vector<1x128x128xbf16> to vector<128x128xbf16>
    %cst_193 = arith.constant dense<0.000000e+00> : vector<256x128xf32>
    %202 = tpu.matmul %199, %201, %cst_193 {dimension_numbers = #tpu.dot_dimension_numbers<[1], [0], [0], [1], [0, 0, 1, 1], [], []>} : vector<256x128xbf16>, vector<128x128xbf16>, vector<256x128xf32> -> vector<256x128xf32>
    %203 = arith.addf %196, %202 : vector<256x128xf32>
    %c1_194 = arith.constant 1 : index
    %c1_195 = arith.constant 1 : index
    %c0_196 = arith.constant 0 : index
    %204 = vector.load %arg12[%c1_194, %c1_195, %c0_196] : memref<18x18x128xf32, #tpu.memory_space<vmem>>, vector<16x16x128xf32>
    %205 = vector.shape_cast %204 : vector<16x16x128xf32> to vector<256x128xf32>
    %206 = arith.truncf %205 : vector<256x128xf32> to vector<256x128xbf16>
    %c13 = arith.constant 13 : index
    %c0_197 = arith.constant 0 : index
    %c0_198 = arith.constant 0 : index
    %207 = vector.load %arg2[%c13, %c0_197, %c0_198] : memref<18x128x128xbf16, #tpu.memory_space<vmem>>, vector<1x128x128xbf16>
    %208 = vector.shape_cast %207 : vector<1x128x128xbf16> to vector<128x128xbf16>
    %cst_199 = arith.constant dense<0.000000e+00> : vector<256x128xf32>
    %209 = tpu.matmul %206, %208, %cst_199 {dimension_numbers = #tpu.dot_dimension_numbers<[1], [0], [0], [1], [0, 0, 1, 1], [], []>} : vector<256x128xbf16>, vector<128x128xbf16>, vector<256x128xf32> -> vector<256x128xf32>
    %210 = arith.addf %203, %209 : vector<256x128xf32>
    %c1_200 = arith.constant 1 : index
    %c2_201 = arith.constant 2 : index
    %c0_202 = arith.constant 0 : index
    %211 = vector.load %arg12[%c1_200, %c2_201, %c0_202] : memref<18x18x128xf32, #tpu.memory_space<vmem>>, vector<16x16x128xf32>
    %212 = vector.shape_cast %211 : vector<16x16x128xf32> to vector<256x128xf32>
    %213 = arith.truncf %212 : vector<256x128xf32> to vector<256x128xbf16>
    %c14 = arith.constant 14 : index
    %c0_203 = arith.constant 0 : index
    %c0_204 = arith.constant 0 : index
    %214 = vector.load %arg2[%c14, %c0_203, %c0_204] : memref<18x128x128xbf16, #tpu.memory_space<vmem>>, vector<1x128x128xbf16>
    %215 = vector.shape_cast %214 : vector<1x128x128xbf16> to vector<128x128xbf16>
    %cst_205 = arith.constant dense<0.000000e+00> : vector<256x128xf32>
    %216 = tpu.matmul %213, %215, %cst_205 {dimension_numbers = #tpu.dot_dimension_numbers<[1], [0], [0], [1], [0, 0, 1, 1], [], []>} : vector<256x128xbf16>, vector<128x128xbf16>, vector<256x128xf32> -> vector<256x128xf32>
    %217 = arith.addf %210, %216 : vector<256x128xf32>
    %c2_206 = arith.constant 2 : index
    %c0_207 = arith.constant 0 : index
    %c0_208 = arith.constant 0 : index
    %218 = vector.load %arg12[%c2_206, %c0_207, %c0_208] : memref<18x18x128xf32, #tpu.memory_space<vmem>>, vector<16x16x128xf32>
    %219 = vector.shape_cast %218 : vector<16x16x128xf32> to vector<256x128xf32>
    %220 = arith.truncf %219 : vector<256x128xf32> to vector<256x128xbf16>
    %c15 = arith.constant 15 : index
    %c0_209 = arith.constant 0 : index
    %c0_210 = arith.constant 0 : index
    %221 = vector.load %arg2[%c15, %c0_209, %c0_210] : memref<18x128x128xbf16, #tpu.memory_space<vmem>>, vector<1x128x128xbf16>
    %222 = vector.shape_cast %221 : vector<1x128x128xbf16> to vector<128x128xbf16>
    %cst_211 = arith.constant dense<0.000000e+00> : vector<256x128xf32>
    %223 = tpu.matmul %220, %222, %cst_211 {dimension_numbers = #tpu.dot_dimension_numbers<[1], [0], [0], [1], [0, 0, 1, 1], [], []>} : vector<256x128xbf16>, vector<128x128xbf16>, vector<256x128xf32> -> vector<256x128xf32>
    %224 = arith.addf %217, %223 : vector<256x128xf32>
    %c2_212 = arith.constant 2 : index
    %c1_213 = arith.constant 1 : index
    %c0_214 = arith.constant 0 : index
    %225 = vector.load %arg12[%c2_212, %c1_213, %c0_214] : memref<18x18x128xf32, #tpu.memory_space<vmem>>, vector<16x16x128xf32>
    %226 = vector.shape_cast %225 : vector<16x16x128xf32> to vector<256x128xf32>
    %227 = arith.truncf %226 : vector<256x128xf32> to vector<256x128xbf16>
    %c16 = arith.constant 16 : index
    %c0_215 = arith.constant 0 : index
    %c0_216 = arith.constant 0 : index
    %228 = vector.load %arg2[%c16, %c0_215, %c0_216] : memref<18x128x128xbf16, #tpu.memory_space<vmem>>, vector<1x128x128xbf16>
    %229 = vector.shape_cast %228 : vector<1x128x128xbf16> to vector<128x128xbf16>
    %cst_217 = arith.constant dense<0.000000e+00> : vector<256x128xf32>
    %230 = tpu.matmul %227, %229, %cst_217 {dimension_numbers = #tpu.dot_dimension_numbers<[1], [0], [0], [1], [0, 0, 1, 1], [], []>} : vector<256x128xbf16>, vector<128x128xbf16>, vector<256x128xf32> -> vector<256x128xf32>
    %231 = arith.addf %224, %230 : vector<256x128xf32>
    %c2_218 = arith.constant 2 : index
    %c2_219 = arith.constant 2 : index
    %c0_220 = arith.constant 0 : index
    %232 = vector.load %arg12[%c2_218, %c2_219, %c0_220] : memref<18x18x128xf32, #tpu.memory_space<vmem>>, vector<16x16x128xf32>
    %233 = vector.shape_cast %232 : vector<16x16x128xf32> to vector<256x128xf32>
    %234 = arith.truncf %233 : vector<256x128xf32> to vector<256x128xbf16>
    %c17 = arith.constant 17 : index
    %c0_221 = arith.constant 0 : index
    %c0_222 = arith.constant 0 : index
    %235 = vector.load %arg2[%c17, %c0_221, %c0_222] : memref<18x128x128xbf16, #tpu.memory_space<vmem>>, vector<1x128x128xbf16>
    %236 = vector.shape_cast %235 : vector<1x128x128xbf16> to vector<128x128xbf16>
    %cst_223 = arith.constant dense<0.000000e+00> : vector<256x128xf32>
    %237 = tpu.matmul %234, %236, %cst_223 {dimension_numbers = #tpu.dot_dimension_numbers<[1], [0], [0], [1], [0, 0, 1, 1], [], []>} : vector<256x128xbf16>, vector<128x128xbf16>, vector<256x128xf32> -> vector<256x128xf32>
    %238 = arith.addf %231, %237 : vector<256x128xf32>
    %239 = vector.broadcast %172 : vector<1x128xf32> to vector<256x128xf32>
    %240 = arith.mulf %238, %239 : vector<256x128xf32>
    %241 = vector.broadcast %174 : vector<1x128xf32> to vector<256x128xf32>
    %242 = arith.addf %240, %241 : vector<256x128xf32>
    %cst_224 = arith.constant 0.000000e+00 : f32
    %243 = vector.broadcast %cst_224 : f32 to vector<256x128xf32>
    %244 = arith.maximumf %242, %243 : vector<256x128xf32>
    %245 = vector.shape_cast %244 : vector<256x128xf32> to vector<16x16x128xf32>
    %c1_225 = arith.constant 1 : index
    %c1_226 = arith.constant 1 : index
    %c0_227 = arith.constant 0 : index
    %246 = vector.load %arg13[%c1_225, %c1_226, %c0_227] : memref<18x18x128xf32, #tpu.memory_space<vmem>>, vector<16x16x128xf32>
    tpu.vector_store %arg13[%c1_225, %c1_226, %c0_227], %245 {strides = array<i32>} : memref<18x18x128xf32, #tpu.memory_space<vmem>>, vector<16x16x128xf32>,
    %c1_228 = arith.constant 1 : index
    %c0_229 = arith.constant 0 : index
    %c0_230 = arith.constant 0 : index
    %247 = vector.load %arg6[%c1_228, %c0_229, %c0_230] : memref<2x1x128xf32, #tpu.memory_space<vmem>>, vector<1x1x128xf32>
    %248 = vector.shape_cast %247 : vector<1x1x128xf32> to vector<1x128xf32>
    %c1_231 = arith.constant 1 : index
    %c0_232 = arith.constant 0 : index
    %c0_233 = arith.constant 0 : index
    %249 = vector.load %arg7[%c1_231, %c0_232, %c0_233] : memref<2x1x128xf32, #tpu.memory_space<vmem>>, vector<1x1x128xf32>
    %250 = vector.shape_cast %249 : vector<1x1x128xf32> to vector<1x128xf32>
    %cst_234 = arith.constant 0.000000e+00 : f32
    %251 = vector.broadcast %cst_234 : f32 to vector<256x128xf32>
    %c0_235 = arith.constant 0 : index
    %c0_236 = arith.constant 0 : index
    %c0_237 = arith.constant 0 : index
    %252 = vector.load %arg13[%c0_235, %c0_236, %c0_237] : memref<18x18x128xf32, #tpu.memory_space<vmem>>, vector<16x16x128xf32>
    %253 = vector.shape_cast %252 : vector<16x16x128xf32> to vector<256x128xf32>
    %254 = arith.truncf %253 : vector<256x128xf32> to vector<256x128xbf16>
    %c9_238 = arith.constant 9 : index
    %c0_239 = arith.constant 0 : index
    %c0_240 = arith.constant 0 : index
    %255 = vector.load %arg5[%c9_238, %c0_239, %c0_240] : memref<18x128x128xbf16, #tpu.memory_space<vmem>>, vector<1x128x128xbf16>
    %256 = vector.shape_cast %255 : vector<1x128x128xbf16> to vector<128x128xbf16>
    %cst_241 = arith.constant dense<0.000000e+00> : vector<256x128xf32>
    %257 = tpu.matmul %254, %256, %cst_241 {dimension_numbers = #tpu.dot_dimension_numbers<[1], [0], [0], [1], [0, 0, 1, 1], [], []>} : vector<256x128xbf16>, vector<128x128xbf16>, vector<256x128xf32> -> vector<256x128xf32>
    %258 = arith.addf %251, %257 : vector<256x128xf32>
    %c0_242 = arith.constant 0 : index
    %c1_243 = arith.constant 1 : index
    %c0_244 = arith.constant 0 : index
    %259 = vector.load %arg13[%c0_242, %c1_243, %c0_244] : memref<18x18x128xf32, #tpu.memory_space<vmem>>, vector<16x16x128xf32>
    %260 = vector.shape_cast %259 : vector<16x16x128xf32> to vector<256x128xf32>
    %261 = arith.truncf %260 : vector<256x128xf32> to vector<256x128xbf16>
    %c10_245 = arith.constant 10 : index
    %c0_246 = arith.constant 0 : index
    %c0_247 = arith.constant 0 : index
    %262 = vector.load %arg5[%c10_245, %c0_246, %c0_247] : memref<18x128x128xbf16, #tpu.memory_space<vmem>>, vector<1x128x128xbf16>
    %263 = vector.shape_cast %262 : vector<1x128x128xbf16> to vector<128x128xbf16>
    %cst_248 = arith.constant dense<0.000000e+00> : vector<256x128xf32>
    %264 = tpu.matmul %261, %263, %cst_248 {dimension_numbers = #tpu.dot_dimension_numbers<[1], [0], [0], [1], [0, 0, 1, 1], [], []>} : vector<256x128xbf16>, vector<128x128xbf16>, vector<256x128xf32> -> vector<256x128xf32>
    %265 = arith.addf %258, %264 : vector<256x128xf32>
    %c0_249 = arith.constant 0 : index
    %c2_250 = arith.constant 2 : index
    %c0_251 = arith.constant 0 : index
    %266 = vector.load %arg13[%c0_249, %c2_250, %c0_251] : memref<18x18x128xf32, #tpu.memory_space<vmem>>, vector<16x16x128xf32>
    %267 = vector.shape_cast %266 : vector<16x16x128xf32> to vector<256x128xf32>
    %268 = arith.truncf %267 : vector<256x128xf32> to vector<256x128xbf16>
    %c11_252 = arith.constant 11 : index
    %c0_253 = arith.constant 0 : index
    %c0_254 = arith.constant 0 : index
    %269 = vector.load %arg5[%c11_252, %c0_253, %c0_254] : memref<18x128x128xbf16, #tpu.memory_space<vmem>>, vector<1x128x128xbf16>
    %270 = vector.shape_cast %269 : vector<1x128x128xbf16> to vector<128x128xbf16>
    %cst_255 = arith.constant dense<0.000000e+00> : vector<256x128xf32>
    %271 = tpu.matmul %268, %270, %cst_255 {dimension_numbers = #tpu.dot_dimension_numbers<[1], [0], [0], [1], [0, 0, 1, 1], [], []>} : vector<256x128xbf16>, vector<128x128xbf16>, vector<256x128xf32> -> vector<256x128xf32>
    %272 = arith.addf %265, %271 : vector<256x128xf32>
    %c1_256 = arith.constant 1 : index
    %c0_257 = arith.constant 0 : index
    %c0_258 = arith.constant 0 : index
    %273 = vector.load %arg13[%c1_256, %c0_257, %c0_258] : memref<18x18x128xf32, #tpu.memory_space<vmem>>, vector<16x16x128xf32>
    %274 = vector.shape_cast %273 : vector<16x16x128xf32> to vector<256x128xf32>
    %275 = arith.truncf %274 : vector<256x128xf32> to vector<256x128xbf16>
    %c12_259 = arith.constant 12 : index
    %c0_260 = arith.constant 0 : index
    %c0_261 = arith.constant 0 : index
    %276 = vector.load %arg5[%c12_259, %c0_260, %c0_261] : memref<18x128x128xbf16, #tpu.memory_space<vmem>>, vector<1x128x128xbf16>
    %277 = vector.shape_cast %276 : vector<1x128x128xbf16> to vector<128x128xbf16>
    %cst_262 = arith.constant dense<0.000000e+00> : vector<256x128xf32>
    %278 = tpu.matmul %275, %277, %cst_262 {dimension_numbers = #tpu.dot_dimension_numbers<[1], [0], [0], [1], [0, 0, 1, 1], [], []>} : vector<256x128xbf16>, vector<128x128xbf16>, vector<256x128xf32> -> vector<256x128xf32>
    %279 = arith.addf %272, %278 : vector<256x128xf32>
    %c1_263 = arith.constant 1 : index
    %c1_264 = arith.constant 1 : index
    %c0_265 = arith.constant 0 : index
    %280 = vector.load %arg13[%c1_263, %c1_264, %c0_265] : memref<18x18x128xf32, #tpu.memory_space<vmem>>, vector<16x16x128xf32>
    %281 = vector.shape_cast %280 : vector<16x16x128xf32> to vector<256x128xf32>
    %282 = arith.truncf %281 : vector<256x128xf32> to vector<256x128xbf16>
    %c13_266 = arith.constant 13 : index
    %c0_267 = arith.constant 0 : index
    %c0_268 = arith.constant 0 : index
    %283 = vector.load %arg5[%c13_266, %c0_267, %c0_268] : memref<18x128x128xbf16, #tpu.memory_space<vmem>>, vector<1x128x128xbf16>
    %284 = vector.shape_cast %283 : vector<1x128x128xbf16> to vector<128x128xbf16>
    %cst_269 = arith.constant dense<0.000000e+00> : vector<256x128xf32>
    %285 = tpu.matmul %282, %284, %cst_269 {dimension_numbers = #tpu.dot_dimension_numbers<[1], [0], [0], [1], [0, 0, 1, 1], [], []>} : vector<256x128xbf16>, vector<128x128xbf16>, vector<256x128xf32> -> vector<256x128xf32>
    %286 = arith.addf %279, %285 : vector<256x128xf32>
    %c1_270 = arith.constant 1 : index
    %c2_271 = arith.constant 2 : index
    %c0_272 = arith.constant 0 : index
    %287 = vector.load %arg13[%c1_270, %c2_271, %c0_272] : memref<18x18x128xf32, #tpu.memory_space<vmem>>, vector<16x16x128xf32>
    %288 = vector.shape_cast %287 : vector<16x16x128xf32> to vector<256x128xf32>
    %289 = arith.truncf %288 : vector<256x128xf32> to vector<256x128xbf16>
    %c14_273 = arith.constant 14 : index
    %c0_274 = arith.constant 0 : index
    %c0_275 = arith.constant 0 : index
    %290 = vector.load %arg5[%c14_273, %c0_274, %c0_275] : memref<18x128x128xbf16, #tpu.memory_space<vmem>>, vector<1x128x128xbf16>
    %291 = vector.shape_cast %290 : vector<1x128x128xbf16> to vector<128x128xbf16>
    %cst_276 = arith.constant dense<0.000000e+00> : vector<256x128xf32>
    %292 = tpu.matmul %289, %291, %cst_276 {dimension_numbers = #tpu.dot_dimension_numbers<[1], [0], [0], [1], [0, 0, 1, 1], [], []>} : vector<256x128xbf16>, vector<128x128xbf16>, vector<256x128xf32> -> vector<256x128xf32>
    %293 = arith.addf %286, %292 : vector<256x128xf32>
    %c2_277 = arith.constant 2 : index
    %c0_278 = arith.constant 0 : index
    %c0_279 = arith.constant 0 : index
    %294 = vector.load %arg13[%c2_277, %c0_278, %c0_279] : memref<18x18x128xf32, #tpu.memory_space<vmem>>, vector<16x16x128xf32>
    %295 = vector.shape_cast %294 : vector<16x16x128xf32> to vector<256x128xf32>
    %296 = arith.truncf %295 : vector<256x128xf32> to vector<256x128xbf16>
    %c15_280 = arith.constant 15 : index
    %c0_281 = arith.constant 0 : index
    %c0_282 = arith.constant 0 : index
    %297 = vector.load %arg5[%c15_280, %c0_281, %c0_282] : memref<18x128x128xbf16, #tpu.memory_space<vmem>>, vector<1x128x128xbf16>
    %298 = vector.shape_cast %297 : vector<1x128x128xbf16> to vector<128x128xbf16>
    %cst_283 = arith.constant dense<0.000000e+00> : vector<256x128xf32>
    %299 = tpu.matmul %296, %298, %cst_283 {dimension_numbers = #tpu.dot_dimension_numbers<[1], [0], [0], [1], [0, 0, 1, 1], [], []>} : vector<256x128xbf16>, vector<128x128xbf16>, vector<256x128xf32> -> vector<256x128xf32>
    %300 = arith.addf %293, %299 : vector<256x128xf32>
    %c2_284 = arith.constant 2 : index
    %c1_285 = arith.constant 1 : index
    %c0_286 = arith.constant 0 : index
    %301 = vector.load %arg13[%c2_284, %c1_285, %c0_286] : memref<18x18x128xf32, #tpu.memory_space<vmem>>, vector<16x16x128xf32>
    %302 = vector.shape_cast %301 : vector<16x16x128xf32> to vector<256x128xf32>
    %303 = arith.truncf %302 : vector<256x128xf32> to vector<256x128xbf16>
    %c16_287 = arith.constant 16 : index
    %c0_288 = arith.constant 0 : index
    %c0_289 = arith.constant 0 : index
    %304 = vector.load %arg5[%c16_287, %c0_288, %c0_289] : memref<18x128x128xbf16, #tpu.memory_space<vmem>>, vector<1x128x128xbf16>
    %305 = vector.shape_cast %304 : vector<1x128x128xbf16> to vector<128x128xbf16>
    %cst_290 = arith.constant dense<0.000000e+00> : vector<256x128xf32>
    %306 = tpu.matmul %303, %305, %cst_290 {dimension_numbers = #tpu.dot_dimension_numbers<[1], [0], [0], [1], [0, 0, 1, 1], [], []>} : vector<256x128xbf16>, vector<128x128xbf16>, vector<256x128xf32> -> vector<256x128xf32>
    %307 = arith.addf %300, %306 : vector<256x128xf32>
    %c2_291 = arith.constant 2 : index
    %c2_292 = arith.constant 2 : index
    %c0_293 = arith.constant 0 : index
    %308 = vector.load %arg13[%c2_291, %c2_292, %c0_293] : memref<18x18x128xf32, #tpu.memory_space<vmem>>, vector<16x16x128xf32>
    %309 = vector.shape_cast %308 : vector<16x16x128xf32> to vector<256x128xf32>
    %310 = arith.truncf %309 : vector<256x128xf32> to vector<256x128xbf16>
    %c17_294 = arith.constant 17 : index
    %c0_295 = arith.constant 0 : index
    %c0_296 = arith.constant 0 : index
    %311 = vector.load %arg5[%c17_294, %c0_295, %c0_296] : memref<18x128x128xbf16, #tpu.memory_space<vmem>>, vector<1x128x128xbf16>
    %312 = vector.shape_cast %311 : vector<1x128x128xbf16> to vector<128x128xbf16>
    %cst_297 = arith.constant dense<0.000000e+00> : vector<256x128xf32>
    %313 = tpu.matmul %310, %312, %cst_297 {dimension_numbers = #tpu.dot_dimension_numbers<[1], [0], [0], [1], [0, 0, 1, 1], [], []>} : vector<256x128xbf16>, vector<128x128xbf16>, vector<256x128xf32> -> vector<256x128xf32>
    %314 = arith.addf %307, %313 : vector<256x128xf32>
    %315 = vector.broadcast %248 : vector<1x128xf32> to vector<256x128xf32>
    %316 = arith.mulf %314, %315 : vector<256x128xf32>
    %317 = vector.broadcast %250 : vector<1x128xf32> to vector<256x128xf32>
    %318 = arith.addf %316, %317 : vector<256x128xf32>
    %c1_298 = arith.constant 1 : index
    %c1_299 = arith.constant 1 : index
    %c0_300 = arith.constant 0 : index
    %319 = vector.load %arg12[%c1_298, %c1_299, %c0_300] : memref<18x18x128xf32, #tpu.memory_space<vmem>>, vector<16x16x128xf32>
    %320 = vector.shape_cast %319 : vector<16x16x128xf32> to vector<256x128xf32>
    %321 = arith.addf %318, %320 : vector<256x128xf32>
    %cst_301 = arith.constant 0.000000e+00 : f32
    %322 = vector.broadcast %cst_301 : f32 to vector<256x128xf32>
    %323 = arith.maximumf %321, %322 : vector<256x128xf32>
    %324 = vector.shape_cast %323 : vector<256x128xf32> to vector<16x16x128xf32>
    %c0_302 = arith.constant 0 : index
    %c0_303 = arith.constant 0 : index
    %c0_304 = arith.constant 0 : index
    %c0_305 = arith.constant 0 : index
    %325 = vector.load %arg11[%c0_302, %c0_303, %c0_304, %c0_305] : memref<1x16x16x128xf32, #tpu.memory_space<vmem>>, vector<1x16x16x128xf32>
    %326 = vector.shape_cast %325 : vector<1x16x16x128xf32> to vector<16x16x128xf32>
    %327 = vector.shape_cast %324 : vector<16x16x128xf32> to vector<1x16x16x128xf32>
    tpu.vector_store %arg11[%c0_302, %c0_303, %c0_304, %c0_305], %327 {strides = array<i32>} : memref<1x16x16x128xf32, #tpu.memory_space<vmem>>, vector<1x16x16x128xf32>,
    return
  }
  func.func @transform_0(%arg0: i32) -> (i32, i32, i32, i32) {
    %c0_i32 = arith.constant 0 : i32
    %c0_i32_0 = arith.constant 0 : i32
    %c0_i32_1 = arith.constant 0 : i32
    %c0_i32_2 = arith.constant 0 : i32
    return %arg0, %c0_i32, %c0_i32_0, %c0_i32_1 : i32, i32, i32, i32
  }
  func.func @transform_1(%arg0: i32) -> (i32, i32, i32) {
    %c0_i32 = arith.constant 0 : i32
    %c0_i32_0 = arith.constant 0 : i32
    %c0_i32_1 = arith.constant 0 : i32
    %c0_i32_2 = arith.constant 0 : i32
    return %c0_i32, %c0_i32_0, %c0_i32_1 : i32, i32, i32
  }
  func.func @transform_2(%arg0: i32) -> (i32, i32, i32) {
    %c0_i32 = arith.constant 0 : i32
    %c0_i32_0 = arith.constant 0 : i32
    %c0_i32_1 = arith.constant 0 : i32
    %c0_i32_2 = arith.constant 0 : i32
    return %c0_i32, %c0_i32_0, %c0_i32_1 : i32, i32, i32
  }
  func.func @transform_3(%arg0: i32) -> (i32, i32, i32) {
    %c0_i32 = arith.constant 0 : i32
    %c0_i32_0 = arith.constant 0 : i32
    %c0_i32_1 = arith.constant 0 : i32
    %c0_i32_2 = arith.constant 0 : i32
    return %c0_i32, %c0_i32_0, %c0_i32_1 : i32, i32, i32
  }
  func.func @transform_4(%arg0: i32) -> (i32, i32, i32) {
    %c0_i32 = arith.constant 0 : i32
    %c0_i32_0 = arith.constant 0 : i32
    %c0_i32_1 = arith.constant 0 : i32
    %c0_i32_2 = arith.constant 0 : i32
    return %c0_i32, %c0_i32_0, %c0_i32_1 : i32, i32, i32
  }
  func.func @transform_5(%arg0: i32) -> (i32, i32, i32) {
    %c0_i32 = arith.constant 0 : i32
    %c0_i32_0 = arith.constant 0 : i32
    %c0_i32_1 = arith.constant 0 : i32
    %c0_i32_2 = arith.constant 0 : i32
    return %c0_i32, %c0_i32_0, %c0_i32_1 : i32, i32, i32
  }
  func.func @transform_6(%arg0: i32) -> (i32, i32, i32) {
    %c0_i32 = arith.constant 0 : i32
    %c0_i32_0 = arith.constant 0 : i32
    %c0_i32_1 = arith.constant 0 : i32
    %c0_i32_2 = arith.constant 0 : i32
    return %c0_i32, %c0_i32_0, %c0_i32_1 : i32, i32, i32
  }
  func.func @transform_7(%arg0: i32) -> (i32, i32) {
    %c0_i32 = arith.constant 0 : i32
    %c0_i32_0 = arith.constant 0 : i32
    %c0_i32_1 = arith.constant 0 : i32
    return %c0_i32, %c0_i32_0 : i32, i32
  }
  func.func @transform_8(%arg0: i32) -> (i32, i32) {
    %c0_i32 = arith.constant 0 : i32
    %c0_i32_0 = arith.constant 0 : i32
    %c0_i32_1 = arith.constant 0 : i32
    return %c0_i32, %c0_i32_0 : i32, i32
  }
  func.func @transform_9(%arg0: i32) -> (i32, i32) {
    %c0_i32 = arith.constant 0 : i32
    %c0_i32_0 = arith.constant 0 : i32
    %c0_i32_1 = arith.constant 0 : i32
    return %c0_i32, %c0_i32_0 : i32, i32
  }
  func.func @transform_10(%arg0: i32) -> (i32, i32, i32, i32) {
    %c0_i32 = arith.constant 0 : i32
    %c0_i32_0 = arith.constant 0 : i32
    %c0_i32_1 = arith.constant 0 : i32
    %c0_i32_2 = arith.constant 0 : i32
    return %arg0, %c0_i32, %c0_i32_0, %c0_i32_1 : i32, i32, i32, i32
  }
}

</mosaic_0001>

<bundles_post_ra>
// kernel: tpu_custom_call.1
= control target key start
LH: loop header
LB: loop body
LE: loop exit
PB: predicated region body
PF: predicated region fallthrough
CT: control target
= control target key end

     0   :  { %s20429_s0 = inlined_call_operand.hbm [shape: f32[2,16,16,128], index: 0, kind: input, shape index: {}]   ;;  %s20430_s1 = inlined_call_operand.hbm [shape: bf16[18,128,128], index: 1, kind: input, shape index: {}]   ;;  %s20431_s2 = inlined_call_operand.vmem [shape: f32[2,1,128], index: 2, kind: input, shape index: {}]   ;;  %s20432_s3 = inlined_call_operand.vmem [shape: f32[2,1,128], index: 3, kind: input, shape index: {}]   ;;  %s20433_s4 = inlined_call_operand.hbm [shape: bf16[18,128,128], index: 4, kind: input, shape index: {}]   ;;  %s20434_s5 = inlined_call_operand.vmem [shape: f32[2,1,128], index: 5, kind: input, shape index: {}]   ;;  %s20435_s6 = inlined_call_operand.vmem [shape: f32[2,1,128], index: 6, kind: input, shape index: {}]   ;;  %s20436_s7 = inlined_call_operand.hbm [shape: bf16[128,128], index: 7, kind: input, shape index: {}]   ;;  %s20437_s8 = inlined_call_operand.vmem [shape: f32[1,128], index: 8, kind: input, shape index: {}]   ;;  %s20438_s9 = inlined_call_operand.vmem [shape: f32[1,128], index: 9, kind: input, shape index: {}]   ;;  %s20439_s10 = inlined_call_operand.hbm [shape: f32[2,16,16,128], index: 10, kind: output, shape index: {}]  }
   0x1   :  { %20450 = sst [smem:[#allocation95_spill]] %s20430_s1 }
   0x2   :  { %20451 = sst [smem:[#allocation96_spill]] %s20433_s4 }
   0x3   :  { %20452 = sst [smem:[#allocation97_spill]] %s20436_s7 }
   0x4   :  { %15 = vsyncpa [#allocation5], 0 }
   0x5   :  { %17 = vsyncpa [#allocation5 + $0x1], 0 }
   0x6   :  { %18 = vsyncpa [#allocation8], 0 }
   0x7   :  { %19 = vsyncpa [#allocation11], 0 }
   0x8   :  { %20 = vsyncpa [#allocation6], 0 }
   0x9   :  { %22 = vsyncpa [#allocation6 + $0x1], 0  ;;  %s16136_s13 = smov 0   ;;  %s16138_s14 = smov 0  }
   0xa   :  { %s16140_s15 = smov 0   ;;  %s16142_s16 = smov 0  }
   0xb LB: > { %s16157_s17 = sadd.s32 4294967295, %s16066_s16   ;;  %s12492_s18 = sadd.s32 4294967294, %s16066_s16   ;;  %s16066_s16 = sphi %s16142_s16, %s20969_s16   ;;  %s16062_s15 = sphi %s16140_s15, %s20968_s15   ;;  %s16058_s14 = sphi %s16138_s14, %s20967_s14   ;;  %s16054_s13 = sphi %s16136_s13, %s20966_s13  }
   0xc   : > { %p48_p0 = scmp.ne.s32.totalorder %s16058_s14, %s16054_s13  ;;  %p20440_p1 = scmp.eq.s32.totalorder %s16157_s17, 0 }
   0xd   : > { %p267_p3 = scmp.eq.s32.totalorder %s12492_s18, 1  ;;  %p12493_p5 = scmp.ge.s32.totalorder %s16066_s16, 1 }
   0xe   : > { %p16166_p4 = por %p20440_p1, %p48_p0  ;;  %p274_p7 = scmp.lt.s32.totalorder %s16066_s16, 3 }
   0xf   : > { %p16171_p6 = por %p267_p3, %p48_p0  ;;  %s16068_s22 = smov [#allocation7]  }
  0x10   : > { %s20453_s19 = scalar_select %p16166_p4, 1, 0 }
  0x11   : > { %s20454_s20 = scalar_select %p16171_p6, 1, 0 }
  0x12   : > { %p16176_p8 = pnand %p12493_p5, %p274_p7  ;;  %s286_s23 = sshll.u32 %s16068_s22, 4  ;;  %s287_s23 = int_to_ptr.vmem [resolvable:$true] %s286_s23 }
  0x13   : > { %s16069_s25 = smov [#allocation9]   ;;  %s16070_s27 = smov [#allocation10]  }
  0x14   : > { %s20455_s21 = scalar_select %p16176_p8, 1, 0 }
  0x15   : > { %p15520_p9 = pneg %p16176_p8  ;;  %s305_s26 = sshll.u32 %s16069_s25, 4  ;;  %s306_s26 = int_to_ptr.vmem [resolvable:$true] %s305_s26 }
  0x16   : > { %s324_s28 = sshll.u32 %s16070_s27, 4  ;;  %s15899_s29 = scalar_lea.vmem %s287_s23, 18432  ;;  %s325_s28 = int_to_ptr.vmem [resolvable:$true] %s324_s28 }
  0x17   : > { %p16185_p11 = pnand %p15520_p9, %p20440_p1  ;;  %p15900_p13 = scmp.ne.s32.totalorder %s287_s23, %s15899_s29 }
  0x18   : > { %p15907_p5 = scmp.lt.s32.totalorder %s287_s23, %s287_s23  ;;  %p15908_p7 = scmp.lt.s32.totalorder %s15899_s29, %s15899_s29 }
  0x19   : > { %p15890_p12 = pneg %p16185_p11 }
  0x1a   : > { %p15909_p9 = por %p15908_p7, %p15907_p5 }
  0x1b   : > { %p15902_p0 = pnand %p15900_p13, %p15890_p12 }
  0x1d   : > { %p15903_p3 = pneg %p15902_p0 }
  0x1f   : > { %p15910_p10 = pnand %p15909_p9, %p15903_p3 }
  0x21   : > { %15913 = shalt.err (!%p15910_p10)
}
  0x22   : > { %s16071_s30 = smov 64   ;;  %s16072_s11 = smov 4  }
  0x23   : > { %s20457_s1 = sld [smem:[#allocation95_spill]]  ;;  %s15925_s22 = scalar_lea.vmem %s306_s26, 18432 }
  0x24   : > { %p15926_p1 = scmp.ne.s32.totalorder %s306_s26, %s15925_s22  ;;  %p15933_p2 = scmp.lt.s32.totalorder %s306_s26, %s306_s26 }
  0x25   : > { %p15934_p6 = scmp.lt.s32.totalorder %s15925_s22, %s15925_s22 }
  0x26   : > { %p15928_p13 = pnand %p15926_p1, %p15890_p12 }
  0x27   : > { %p15935_p5 = por %p15934_p6, %p15933_p2 }
  0x28   : > { %p15929_p0 = pneg %p15928_p13 }
  0x29   : > { %15523 = dma.hbm_to_vmem [thread:$0]  (!%p16185_p11), %s20457_s1, 18432, %s287_s23, [#allocation8], %s16071_s30, %s16071_s30, %s16072_s11  }
  0x2a   : > { %p15936_p3 = pnand %p15935_p5, %p15929_p0 }
  0x2c   : > { %15939 = shalt.err (!%p15936_p3)
}
  0x2d   : > { %s20458_s4 = sld [smem:[#allocation96_spill]]  ;;  %s15951_s23 = scalar_lea.vmem %s325_s28, 1024 }
  0x2e   : > { %p15952_p10 = scmp.ne.s32.totalorder %s325_s28, %s15951_s23  ;;  %p15959_p9 = scmp.lt.s32.totalorder %s325_s28, %s325_s28 }
  0x2f   : > { %p15960_p13 = scmp.lt.s32.totalorder %s15951_s23, %s15951_s23 }
  0x30   : > { %p15954_p7 = pnand %p15952_p10, %p15890_p12 }
  0x31   : > { %p15961_p4 = por %p15960_p13, %p15959_p9 }
  0x32   : > { %p15955_p1 = pneg %p15954_p7 }
  0x33   : > { %15526 = dma.hbm_to_vmem [thread:$0]  (!%p16185_p11), %s20458_s4, 18432, %s306_s26, [#allocation8], %s16071_s30, %s16071_s30, %s16072_s11  }
  0x34   : > { %p15962_p2 = pnand %p15961_p4, %p15955_p1 }
  0x36   : > { %15965 = shalt.err (!%p15962_p2)
}
  0x37   : > { %s20459_s7 = sld [smem:[#allocation97_spill]]  ;;  %s16216_s26 = sadd.s32 1, %s16066_s16  }
  0x38   : > { %s32_s18 = ssub.s32 %s16066_s16, %s16216_s26  ;;  %s35_s24 = sadd.s32 1, %s16062_s15 }
  0x39   : > { %p33_p4 = scmp.eq.s32.totalorder %s32_s18, 0  ;;  %p42_p6 = scmp.ne.s32.totalorder %s16062_s15, %s16058_s14 }
  0x3a   : > { %p43_p12 = scmp.eq.s32.totalorder %s16066_s16, 0  ;;  %p15541_p0 = scmp.lt.s32.totalorder %s16066_s16, 2 }
  0x3b   : > { %s16226_s22 = scalar_select %p33_p4, %s16062_s15, %s35_s24  }
  0x3c   : > { %p44_p5 = por %p43_p12, %p42_p6  ;;  %p20461_p3 = scmp.eq.s32.totalorder %s16157_s17, 1 }
  0x3d   : > { %15529 = dma.hbm_to_vmem [thread:$0]  (!%p16185_p11), %s20459_s7, 1024, %s325_s28, [#allocation11], %s16071_s30, %s16071_s30, %s16072_s11  }
  0x3e   : > { %20460 = sst [smem:[#allocation17_spill]] %s16226_s22  ;;  %p16230_p10 = por %p20461_p3, %p42_p6 }
  0x3f   : > { %s344_s27 = sand.u32 1, %s16062_s15   ;;  %s12822_s23 = sshll.u32 %s16066_s16, 12 }
  0x40   : > { %s20462_s25 = scalar_select %p16230_p10, 1, 0 }
  0x41   : > { %s12498_s28 = sshll.u32 %s344_s27, 8  ;;  %s16239_s29 = scalar_lea.hbm %s20429_s0, %s12822_s23 }
  0x42   : > { %s348_s12 = scalar_lea.vmem [#allocation4], %s12498_s28  ;;  %p16241_p11 = pnand %p15541_p0, %p44_p5 }
  0x43   : > { %s355_s18 = sshll.u32 %s348_s12, 4  ;;  %s16247_s1 = scalar_lea.sflag [#allocation5], %s344_s27  ;;  %s16245_s18 = int_to_ptr.vmem [resolvable:$true] %s355_s18 }
  0x44   : > { %s15966_s4 = scalar_lea.hbm %s16239_s29, 4096  ;;  %p15968_p1 = pneg %p16241_p11 }
  0x45   : > { %p15967_p7 = scmp.ne.s32.totalorder %s16239_s29, %s15966_s4  ;;  %s15971_s28 = scalar_lea.hbm %s20429_s0, 8192 }
  0x46   : > { %p15972_p2 = scmp.lt.s32.totalorder %s16239_s29, %s20429_s0  ;;  %p15973_p4 = scmp.lt.s32.totalorder %s15971_s28, %s15966_s4 }
  0x47   : > { %p15969_p9 = pnand %p15968_p1, %p15967_p7 }
  0x48   : > { %p15974_p6 = por %p15973_p4, %p15972_p2 }
  0x49   : > { %p15970_p13 = pneg %p15969_p9 }
  0x4b   : > { %p15975_p12 = pnand %p15974_p6, %p15970_p13 }
  0x4d   : > { %15978 = shalt.err (!%p15975_p12)
}
  0x4e   : > { %s15979_s27 = scalar_lea.vmem %s16245_s18, 4096  ;;  %s16073_s7 = smov [#allocation4]  }
  0x4f   : > { %p15980_p0 = scmp.ne.s32.totalorder %s16245_s18, %s15979_s27  ;;  %s15984_s22 = sshll.u32 %s16073_s7, 4  ;;  %s15985_s22 = int_to_ptr.vmem [resolvable:$false] %s15984_s22 }
  0x50   : > { %s15986_s23 = scalar_lea.vmem %s15985_s22, 8192  ;;  %p15987_p7 = scmp.lt.s32.totalorder %s16245_s18, %s15985_s22 }
  0x51   : > { %p15982_p5 = pnand %p15980_p0, %p15968_p1  ;;  %p15988_p9 = scmp.lt.s32.totalorder %s15986_s23, %s15979_s27 }
  0x53   : > { %p15983_p3 = pneg %p15982_p5  ;;  %p15989_p10 = por %p15988_p9, %p15987_p7 }
  0x55   : > { %p15990_p8 = pnand %p15989_p10, %p15983_p3 }
  0x57   : > { %15993 = shalt.err (!%p15990_p8)
}
  0x58   : > { %s16074_s4 = smov 128   ;;  %s16075_s30 = smov 8  }
  0x59   : > { %15533 = dma.hbm_to_vmem [thread:$0]  (!%p16241_p11), %s16239_s29, 4096, %s16245_s18, %s16247_s1, %s16074_s4, %s16074_s4, %s16075_s30  }
  0x5a   : > { %p20464_p1 = scmp.ne.s32.totalorder %s20455_s21, 0 }
  0x5c   : > { %367 = sbr.rel (%p20464_p1) target bundleno = 2061 (0x80d), region = 60 }
  0x61   : > { %s16271_s7 = sand.u32 1, %s16058_s14   ;;  %p20465_p8 = scmp.ne.s32.totalorder %s20453_s19, 0 }
  0x62   : > { %s12502_s22 = sshll.u32 %s16271_s7, 8  ;;  %s370_s28 = scalar_lea.sflag [#allocation5], %s16271_s7 }
  0x63   : > { %s16277_s11 = scalar_lea.vmem [#allocation4], %s12502_s22 }
  0x64   : > { %16037 = dma.done.wait (%p20465_p8), %s370_s28, 4096  }
  0x65   : > { %16039 = vsyncadd (%p20465_p8), %s370_s28, 4294963200  ;;  %p20466_p10 = scmp.eq.s32.totalorder %s16157_s17, 0 }
  0x67   : > { %16041 = dma.done.wait (%p20466_p10), [#allocation8], 36864   ;;  %p20467_p11 = pmov %p20466_p10 }
  0x68   : > { %p20468_p13 = pmov %p20466_p10 }
  0x69   : > { %16043 = vsyncadd (%p20467_p11), [#allocation8], 4294930432 }
  0x6a   : > { %16045 = dma.done.wait (%p20468_p13), [#allocation11], 1024   ;;  %p20469_p2 = pmov %p20466_p10 }
  0x6b   : > { %v16076_v0 = vmov 0.0   ;;  %v15588_v1 = vld [vmem:[#allocation7 + $0x78] sm:$0xff]   ;;  %v15589_v2 = vld [vmem:[#allocation7 + $0x70] sm:$0xff]   ;;  %v15590_v3 = vld [vmem:[#allocation7 + $0x68] sm:$0xff]   ;;  %s20178_s27 = scalar_lea.vmem [#allocation12], %s12502_s22  ;;  %s12823_s22 = sshll.u32 %s16157_s17, 12 }
  0x6c   : > { %16047 = vsyncadd (%p20469_p2), [#allocation11], 4294966272  ;;  %423 = vst [vmem:[#allocation2] sm:$0xff] %v16076_v0  ;;  %13712 = vmatprep.subr.bf16.mxu0 %v15588_v1  ;;  %15488 = vmatprep.subr.bf16.mxu1 %v15588_v1  ;;  %v15591_v4 = vld [vmem:[#allocation7 + $0x60] sm:$0xff]   ;;  %v545_v7 = vld [vmem:[%s16277_s11 + $0x70] sm:$0xff]  ;;  %s12390_s23 = sshll.u32 %s20178_s27, 4  ;;  %s20382_s28 = scalar_lea.hbm %s20439_s10, %s12823_s22  ;;  %s20384_s23 = int_to_ptr.vmem [resolvable:$true] %s12390_s23 }
  0x6d   : > { %424 = vst [vmem:[#allocation2 + $0x8] sm:$0xff] %v16076_v0  ;;  %425 = vst [vmem:[#allocation2 + $0x10] sm:$0x3] %v16076_v0  ;;  %13713 = vmatpush3.bf16.msra.mxu0 %v15588_v1  ;;  %15496 = vmatpush3.bf16.msra.mxu1 %v15588_v1  ;;  %v546_v9 = vld [vmem:[%s16277_s11 + $0x78] sm:$0xff]  ;;  %v16402_v10 = vld [vmem:[%s16277_s11] sm:$0xff]  ;;  %s12377_s17 = scalar_lea.sflag [#allocation6], %s16271_s7 }
  0x6e   : > { %426 = vst [vmem:[#allocation2 + $0x18] sm:$0xff] %v16076_v0  ;;  %427 = vst [vmem:[#allocation2 + $0x20] sm:$0xff] %v16076_v0  ;;  %13714 = vmatprep.subr.bf16.mxu0 %v15589_v2  ;;  %15489 = vmatprep.subr.bf16.mxu1 %v15589_v2  ;;  %v16405_v11 = vld [vmem:[%s16277_s11 + $0x8] sm:$0xff]  ;;  %v16407_v12 = vpack.c.bf16 %v546_v9, %v545_v7  ;;  %v16412_v13 = vld [vmem:[%s16277_s11 + $0x80] sm:$0xff]  ;;  %p20962_p6 = scmp.ne.s32.totalorder %s20462_s25, 0  ;;  %s16078_s1 = smov [#allocation12]  }
  0x6f   : > { %428 = vst [vmem:[#allocation2 + $0x28] sm:$0x3] %v16076_v0  ;;  %429 = vst [vmem:[#allocation2 + $0x30] sm:$0xff] %v16076_v0  ;;  %v16415_v14 = vld [vmem:[%s16277_s11 + $0x88] sm:$0xff]  ;;  %v15592_v15 = vld [vmem:[#allocation7 + $0x58] sm:$0xff]   ;;  %v16505_v43 = vpack.c.bf16 %v16405_v11, %v16402_v10  ;;  %s15998_s19 = sshll.u32 %s16078_s1, 4  ;;  %s15999_s19 = int_to_ptr.vmem [resolvable:$false] %s15998_s19 }
  0x70   : > { %430 = vst [vmem:[#allocation2 + $0x38] sm:$0xff] %v16076_v0  ;;  %431 = vst [vmem:[#allocation2 + $0x40] sm:$0x3] %v16076_v0  ;;  %13744 = vmatprep.mubr.bf16.mxu1 %v16407_v12  ;;  %v15593_v16 = vld [vmem:[#allocation7 + $0x50] sm:$0xff]   ;;  %v16424_v18 = vld [vmem:[%s16277_s11 + $0x18] sm:$0xff]  ;;  %v16509_v44 = vpack.c.bf16 %v16415_v14, %v16412_v13  ;;  %s16000_s21 = scalar_lea.vmem %s15999_s19, 8192  ;;  %p16001_p5 = scmp.lt.s32.totalorder %s20384_s23, %s15999_s19 }
  0x71   : > { %432 = vst [vmem:[#allocation2 + $0x48] sm:$0xff] %v16076_v0  ;;  %433 = vst [vmem:[#allocation2 + $0x50] sm:$0xff] %v16076_v0  ;;  %13715 = vmatpush3.bf16.msra.mxu0 %v15589_v2  ;;  %15497 = vmatpush3.bf16.msra.mxu1 %v15589_v2  ;;  %v16421_v17 = vld [vmem:[%s16277_s11 + $0x10] sm:$0xff]  ;;  %v16431_v20 = vld [vmem:[%s16277_s11 + $0x98] sm:$0xff] }
  0x72   : > { %434 = vst [vmem:[#allocation2 + $0x58] sm:$0x3] %v16076_v0  ;;  %435 = vst [vmem:[#allocation2 + $0x60] sm:$0xff] %v16076_v0  ;;  %13716 = vmatprep.subr.bf16.mxu0 %v15590_v3  ;;  %15490 = vmatprep.subr.bf16.mxu1 %v15590_v3  ;;  %v16428_v19 = vld [vmem:[%s16277_s11 + $0x90] sm:$0xff]  ;;  %v16437_v21 = vld [vmem:[%s16277_s11 + $0x20] sm:$0xff]  ;;  %v16520_v49 = vpack.c.bf16 %v16424_v18, %v16421_v17 }
  0x73   : > { %436 = vst [vmem:[#allocation2 + $0x68] sm:$0xff] %v16076_v0  ;;  %437 = vst [vmem:[#allocation2 + $0x70] sm:$0x3] %v16076_v0  ;;  %v16440_v22 = vld [vmem:[%s16277_s11 + $0x28] sm:$0xff]  ;;  %v16443_v23 = vld [vmem:[%s16277_s11 + $0xa0] sm:$0xff]  ;;  %v16524_v50 = vpack.c.bf16 %v16431_v20, %v16428_v19 }
  0x74   : > { %438 = vst [vmem:[#allocation2 + $0x78] sm:$0xff] %v16076_v0  ;;  %439 = vst [vmem:[#allocation2 + $0x80] sm:$0xff] %v16076_v0  ;;  %v662_v5 = vld [vmem:[#allocation2 + $0x1] sm:$0xff]  ;;  %v663_v6 = vld [vmem:[#allocation2 + $0x9] sm:$0xff]  ;;  %v16532_v53 = vpack.c.bf16 %v16440_v22, %v16437_v21 }
  0x75   : > { %440 = vst [vmem:[#allocation2 + $0x88] sm:$0x3] %v16076_v0  ;;  %441 = vst [vmem:[#allocation2 + $0x90] sm:$0xff] %v16076_v0  ;;  %v694_v8 = vpack.c.bf16 %v663_v6, %v662_v5  ;;  %13717 = vmatpush3.bf16.msra.mxu0 %v15590_v3  ;;  %15498 = vmatpush3.bf16.msra.mxu1 %v15590_v3  ;;  %v16448_v24 = vld [vmem:[%s16277_s11 + $0xa8] sm:$0xff]  ;;  %v16453_v26 = vld [vmem:[%s16277_s11 + $0x30] sm:$0xff] }
  0x76   : > { %442 = vst [vmem:[#allocation2 + $0x98] sm:$0xff] %v16076_v0  ;;  %443 = vst [vmem:[#allocation2 + $0xa0] sm:$0x3] %v16076_v0  ;;  %13718 = vmatprep.subr.bf16.mxu0 %v15591_v4  ;;  %15491 = vmatprep.subr.bf16.mxu1 %v15591_v4  ;;  %v15594_v25 = vld [vmem:[#allocation7 + $0x48] sm:$0xff]   ;;  %v16456_v27 = vld [vmem:[%s16277_s11 + $0x38] sm:$0xff]  ;;  %v16536_v54 = vpack.c.bf16 %v16448_v24, %v16443_v23 }
  0x77   : > { %444 = vst [vmem:[#allocation2 + $0xa8] sm:$0xff] %v16076_v0  ;;  %445 = vst [vmem:[#allocation2 + $0xb0] sm:$0xff] %v16076_v0  ;;  %13728 = vmatprep.mubr.bf16.mxu0 %v694_v8  ;;  %v16461_v28 = vld [vmem:[%s16277_s11 + $0xb0] sm:$0xff]  ;;  %v16464_v29 = vld [vmem:[%s16277_s11 + $0xb8] sm:$0xff]  ;;  %v16540_v57 = vpack.c.bf16 %v16456_v27, %v16453_v26 }
  0x78   : > { %446 = vst [vmem:[#allocation2 + $0xb8] sm:$0x3] %v16076_v0  ;;  %447 = vst [vmem:[#allocation2 + $0xc0] sm:$0xff] %v16076_v0  ;;  %v16467_v30 = vld [vmem:[%s16277_s11 + $0x40] sm:$0xff]  ;;  %v16472_v31 = vld [vmem:[%s16277_s11 + $0x48] sm:$0xff]  ;;  %v16544_v58 = vpack.c.bf16 %v16464_v29, %v16461_v28 }
  0x79   : > { %448 = vst [vmem:[#allocation2 + $0xc8] sm:$0xff] %v16076_v0  ;;  %449 = vst [vmem:[#allocation2 + $0xd0] sm:$0x3] %v16076_v0  ;;  %13719 = vmatpush3.bf16.msra.mxu0 %v15591_v4  ;;  %15499 = vmatpush3.bf16.msra.mxu1 %v15591_v4  ;;  %v16476_v32 = vld [vmem:[%s16277_s11 + $0xc0] sm:$0xff]  ;;  %v16479_v33 = vld [vmem:[%s16277_s11 + $0xc8] sm:$0xff]  ;;  %v16552_v61 = vpack.c.bf16 %v16472_v31, %v16467_v30 }
  0x7a   : > { %450 = vst [vmem:[#allocation2 + $0xd8] sm:$0xff] %v16076_v0  ;;  %451 = vst [vmem:[#allocation2 + $0xe0] sm:$0xff] %v16076_v0  ;;  %13720 = vmatprep.subr.bf16.mxu0 %v15592_v15  ;;  %15492 = vmatprep.subr.bf16.mxu1 %v15592_v15  ;;  %v15595_v34 = vld [vmem:[#allocation7 + $0x40] sm:$0xff]   ;;  %v15596_v35 = vld [vmem:[#allocation7 + $0x38] sm:$0xff]   ;;  %v16556_v62 = vpack.c.bf16 %v16479_v33, %v16476_v32 }
  0x7b   : > { %452 = vst [vmem:[#allocation2 + $0xe8] sm:$0x3] %v16076_v0  ;;  %453 = vst [vmem:[#allocation2 + $0xf0] sm:$0xff] %v16076_v0  ;;  %v15597_v36 = vld [vmem:[#allocation7 + $0xb8] sm:$0xff]   ;;  %v16485_v37 = vld [vmem:[%s16277_s11 + $0x50] sm:$0xff] }
  0x7c   : > { %454 = vst [vmem:[#allocation2 + $0xf8] sm:$0xff] %v16076_v0  ;;  %455 = vst [vmem:[#allocation2 + $0x100] sm:$0x3] %v16076_v0  ;;  %v16488_v38 = vld [vmem:[%s16277_s11 + $0x58] sm:$0xff]  ;;  %v16491_v39 = vld [vmem:[%s16277_s11 + $0xd0] sm:$0xff] }
  0x7d   : > { %456 = vst [vmem:[#allocation2 + $0x108] sm:$0xff] %v16076_v0  ;;  %457 = vst [vmem:[#allocation2 + $0x110] sm:$0xff] %v16076_v0  ;;  %13721 = vmatpush3.bf16.msra.mxu0 %v15592_v15  ;;  %15500 = vmatpush3.bf16.msra.mxu1 %v15592_v15  ;;  %v558_v40 = vld [vmem:[%s16277_s11 + $0xd8] sm:$0xff]  ;;  %v16498_v41 = vld [vmem:[%s16277_s11 + $0x60] sm:$0xff]  ;;  %v16560_v1 = vpack.c.bf16 %v16488_v38, %v16485_v37 }
  0x7e   : > { %458 = vst [vmem:[#allocation2 + $0x118] sm:$0x3] %v16076_v0  ;;  %459 = vst [vmem:[#allocation2 + $0x120] sm:$0xff] %v16076_v0  ;;  %13722 = vmatprep.subr.bf16.mxu0 %v15593_v16  ;;  %15493 = vmatprep.subr.bf16.mxu1 %v15593_v16  ;;  %v16501_v42 = vld [vmem:[%s16277_s11 + $0x68] sm:$0xff]  ;;  %v16514_v45 = vld [vmem:[%s16277_s11 + $0xe0] sm:$0xff]  ;;  %v16563_v2 = vpack.c.bf16 %v558_v40, %v16491_v39 }
  0x7f   : > { %460 = vst [vmem:[#allocation2 + $0x128] sm:$0xff] %v16076_v0  ;;  %461 = vst [vmem:[#allocation2 + $0x130] sm:$0x3] %v16076_v0  ;;  %v560_v46 = vld [vmem:[%s16277_s11 + $0xe8] sm:$0xff]  ;;  %v15598_v47 = vld [vmem:[#allocation7 + $0x30] sm:$0xff]   ;;  %v16571_v5 = vpack.c.bf16 %v16501_v42, %v16498_v41 }
  0x80   : > { %462 = vst [vmem:[#allocation2 + $0x138] sm:$0xff] %v16076_v0  ;;  %463 = vst [vmem:[#allocation2 + $0x140] sm:$0xff] %v16076_v0  ;;  %v15599_v48 = vld [vmem:[#allocation7 + $0xb0] sm:$0xff]   ;;  %v15600_v51 = vld [vmem:[#allocation7 + $0x28] sm:$0xff]   ;;  %v16574_v6 = vpack.c.bf16 %v560_v46, %v16514_v45 }
  0x81   : > { %464 = vst [vmem:[#allocation2 + $0x148] sm:$0x3] %v16076_v0  ;;  %465 = vst [vmem:[#allocation2 + $0x150] sm:$0xff] %v16076_v0  ;;  %13723 = vmatpush3.bf16.msra.mxu0 %v15593_v16  ;;  %15501 = vmatpush3.bf16.msra.mxu1 %v15593_v16  ;;  %v15601_v52 = vld [vmem:[#allocation7 + $0xa8] sm:$0xff]   ;;  %v15602_v55 = vld [vmem:[#allocation7 + $0x20] sm:$0xff]  }
  0x82   : > { %466 = vst [vmem:[#allocation2 + $0x158] sm:$0xff] %v16076_v0  ;;  %467 = vst [vmem:[#allocation2 + $0x160] sm:$0x3] %v16076_v0  ;;  %13724 = vmatprep.subr.bf16.mxu0 %v15594_v25  ;;  %15494 = vmatprep.subr.bf16.mxu1 %v15594_v25  ;;  %v15603_v56 = vld [vmem:[#allocation7 + $0xa0] sm:$0xff]   ;;  %v15604_v59 = vld [vmem:[#allocation7 + $0x18] sm:$0xff]  }
  0x83   : > { %468 = vst [vmem:[#allocation2 + $0x168] sm:$0xff] %v16076_v0  ;;  %469 = vst [vmem:[#allocation2 + $0x170] sm:$0xff] %v16076_v0  ;;  %v15605_v60 = vld [vmem:[#allocation7 + $0x98] sm:$0xff]   ;;  %v15606_v63 = vld [vmem:[#allocation7 + $0x10] sm:$0xff]  }
  0x84   : > { %470 = vst [vmem:[#allocation2 + $0x178] sm:$0x3] %v16076_v0  ;;  %471 = vst [vmem:[#allocation2 + $0x180] sm:$0xff] %v16076_v0  ;;  %v15608_v3 = vld [vmem:[#allocation7 + $0x8] sm:$0xff]  }
  0x85   : > { %472 = vst [vmem:[#allocation2 + $0x188] sm:$0xff] %v16076_v0  ;;  %473 = vst [vmem:[#allocation2 + $0x190] sm:$0x3] %v16076_v0  ;;  %13725 = vmatpush3.bf16.msra.mxu0 %v15594_v25  ;;  %15502 = vmatpush3.bf16.msra.mxu1 %v15594_v25  ;;  %v15609_v4 = vld [vmem:[#allocation7 + $0x88] sm:$0xff]  }
  0x86   : > { %474 = vst [vmem:[#allocation2 + $0x198] sm:$0xff] %v16076_v0  ;;  %475 = vst [vmem:[#allocation2 + $0x1a0] sm:$0xff] %v16076_v0  ;;  %13726 = vmatprep.subr.bf16.mxu0 %v15595_v34  ;;  %15495 = vmatprep.subr.bf16.mxu1 %v15595_v34  ;;  %v1146_v8 = vld [vmem:[#allocation2 + $0xa] sm:$0xff] }
  0x87   : > { %476 = vst [vmem:[#allocation2 + $0x1a8] sm:$0x3] %v16076_v0  ;;  %477 = vst [vmem:[#allocation3] sm:$0xff] %v16076_v0 }
  0x88   : > { %478 = vst [vmem:[#allocation3 + $0x8] sm:$0xff] %v16076_v0  ;;  %479 = vst [vmem:[#allocation3 + $0x10] sm:$0x3] %v16076_v0 }
  0x89   : > { %480 = vst [vmem:[#allocation3 + $0x18] sm:$0xff] %v16076_v0  ;;  %481 = vst [vmem:[#allocation3 + $0x20] sm:$0xff] %v16076_v0  ;;  %13727 = vmatpush3.bf16.msra.mxu0 %v15595_v34  ;;  %15503 = vmatpush3.bf16.msra.mxu1 %v15595_v34 }
  0x8a   : > { %482 = vst [vmem:[#allocation3 + $0x28] sm:$0x3] %v16076_v0  ;;  %483 = vst [vmem:[#allocation3 + $0x30] sm:$0xff] %v16076_v0  ;;  %13760 = vmatprep.subr.bf16.mxu1 %v15596_v35  ;;  %13808 = vmatprep.subr.bf16.mxu0 %v15597_v36 }
  0x8b   : > { %484 = vst [vmem:[#allocation3 + $0x38] sm:$0xff] %v16076_v0  ;;  %485 = vst [vmem:[#allocation3 + $0x40] sm:$0x3] %v16076_v0 }
  0x8c   : > { %486 = vst [vmem:[#allocation3 + $0x48] sm:$0xff] %v16076_v0  ;;  %487 = vst [vmem:[#allocation3 + $0x50] sm:$0xff] %v16076_v0  ;;  %13729 = vmatmul.mubr.bf16.vlgmr.msra.gmra.mxu0 %v16505_v43  ;;  %13745 = vmatmul.mubr.bf16.vlgmr.msra.gmra.mxu1 %v16509_v44 }
  0x8d   : > { %488 = vst [vmem:[#allocation3 + $0x58] sm:$0x3] %v16076_v0  ;;  %489 = vst [vmem:[#allocation3 + $0x60] sm:$0xff] %v16076_v0  ;;  %13761 = vmatpush3.bf16.msra.mxu1 %v15596_v35  ;;  %13809 = vmatpush3.bf16.msra.mxu0 %v15597_v36 }
  0x8e   : > { %490 = vst [vmem:[#allocation3 + $0x68] sm:$0xff] %v16076_v0  ;;  %491 = vst [vmem:[#allocation3 + $0x70] sm:$0x3] %v16076_v0  ;;  %13762 = vmatprep.subr.bf16.mxu1 %v15598_v47  ;;  %13810 = vmatprep.subr.bf16.mxu0 %v15599_v48 }
  0x8f   : > { %492 = vst [vmem:[#allocation3 + $0x78] sm:$0xff] %v16076_v0  ;;  %493 = vst [vmem:[#allocation3 + $0x80] sm:$0xff] %v16076_v0  ;;  %13732 = vmatprep.mubr.bf16.mxu0 %v16520_v49  ;;  %13748 = vmatprep.mubr.bf16.mxu1 %v16524_v50 }
  0x90   : > { %494 = vst [vmem:[#allocation3 + $0x88] sm:$0x3] %v16076_v0  ;;  %495 = vst [vmem:[#allocation3 + $0x90] sm:$0xff] %v16076_v0 }
  0x91   : > { %496 = vst [vmem:[#allocation3 + $0x98] sm:$0xff] %v16076_v0  ;;  %497 = vst [vmem:[#allocation3 + $0xa0] sm:$0x3] %v16076_v0  ;;  %13763 = vmatpush3.bf16.msra.mxu1 %v15598_v47  ;;  %13811 = vmatpush3.bf16.msra.mxu0 %v15599_v48 }
  0x92   : > { %498 = vst [vmem:[#allocation3 + $0xa8] sm:$0xff] %v16076_v0  ;;  %499 = vst [vmem:[#allocation3 + $0xb0] sm:$0xff] %v16076_v0  ;;  %13764 = vmatprep.subr.bf16.mxu1 %v15600_v51  ;;  %13812 = vmatprep.subr.bf16.mxu0 %v15601_v52 }
  0x93   : > { %500 = vst [vmem:[#allocation3 + $0xb8] sm:$0x3] %v16076_v0  ;;  %501 = vst [vmem:[#allocation3 + $0xc0] sm:$0xff] %v16076_v0 }
  0x94   : > { %502 = vst [vmem:[#allocation3 + $0xc8] sm:$0xff] %v16076_v0  ;;  %503 = vst [vmem:[#allocation3 + $0xd0] sm:$0x3] %v16076_v0  ;;  %13733 = vmatmul.mubr.bf16.gmra.mxu0 %v16532_v53  ;;  %13749 = vmatmul.mubr.bf16.gmra.mxu1 %v16536_v54 }
  0x95   : > { %504 = vst [vmem:[#allocation3 + $0xd8] sm:$0xff] %v16076_v0  ;;  %505 = vst [vmem:[#allocation3 + $0xe0] sm:$0xff] %v16076_v0  ;;  %13765 = vmatpush3.bf16.msra.mxu1 %v15600_v51  ;;  %13813 = vmatpush3.bf16.msra.mxu0 %v15601_v52 }
  0x96   : > { %506 = vst [vmem:[#allocation3 + $0xe8] sm:$0x3] %v16076_v0  ;;  %507 = vst [vmem:[#allocation3 + $0xf0] sm:$0xff] %v16076_v0  ;;  %13766 = vmatprep.subr.bf16.mxu1 %v15602_v55  ;;  %13814 = vmatprep.subr.bf16.mxu0 %v15603_v56 }
  0x97   : > { %508 = vst [vmem:[#allocation3 + $0xf8] sm:$0xff] %v16076_v0  ;;  %509 = vst [vmem:[#allocation3 + $0x100] sm:$0x3] %v16076_v0  ;;  %13736 = vmatprep.mubr.bf16.mxu0 %v16540_v57  ;;  %13752 = vmatprep.mubr.bf16.mxu1 %v16544_v58 }
  0x98   : > { %510 = vst [vmem:[#allocation3 + $0x108] sm:$0xff] %v16076_v0  ;;  %511 = vst [vmem:[#allocation3 + $0x110] sm:$0xff] %v16076_v0 }
  0x99   : > { %512 = vst [vmem:[#allocation3 + $0x118] sm:$0x3] %v16076_v0  ;;  %513 = vst [vmem:[#allocation3 + $0x120] sm:$0xff] %v16076_v0  ;;  %13767 = vmatpush3.bf16.msra.mxu1 %v15602_v55  ;;  %13815 = vmatpush3.bf16.msra.mxu0 %v15603_v56  ;;  %v15619_v55 = vld [vmem:[#allocation7 + $0x120] sm:$0xff]  }
  0x9a   : > { %514 = vst [vmem:[#allocation3 + $0x128] sm:$0xff] %v16076_v0  ;;  %515 = vst [vmem:[#allocation3 + $0x130] sm:$0x3] %v16076_v0  ;;  %13768 = vmatprep.subr.bf16.mxu1 %v15604_v59  ;;  %13816 = vmatprep.subr.bf16.mxu0 %v15605_v60 }
  0x9b   : > { %516 = vst [vmem:[#allocation3 + $0x138] sm:$0xff] %v16076_v0  ;;  %517 = vst [vmem:[#allocation3 + $0x140] sm:$0xff] %v16076_v0 }
  0x9c   : > { %518 = vst [vmem:[#allocation3 + $0x148] sm:$0x3] %v16076_v0  ;;  %519 = vst [vmem:[#allocation3 + $0x150] sm:$0xff] %v16076_v0  ;;  %13737 = vmatmul.mubr.bf16.gmra.mxu0 %v16552_v61  ;;  %13753 = vmatmul.mubr.bf16.gmra.mxu1 %v16556_v62 }
  0x9d   : > { %520 = vst [vmem:[#allocation3 + $0x158] sm:$0xff] %v16076_v0  ;;  %521 = vst [vmem:[#allocation3 + $0x160] sm:$0x3] %v16076_v0  ;;  %13769 = vmatpush3.bf16.msra.mxu1 %v15604_v59  ;;  %13817 = vmatpush3.bf16.msra.mxu0 %v15605_v60 }
  0x9e   : > { %522 = vst [vmem:[#allocation3 + $0x168] sm:$0xff] %v16076_v0  ;;  %523 = vst [vmem:[#allocation3 + $0x170] sm:$0xff] %v16076_v0  ;;  %13770 = vmatprep.subr.bf16.mxu1 %v15606_v63  ;;  %13740 = vmatprep.mubr.bf16.mxu0 %v16560_v1 }
  0x9f   : > { %524 = vst [vmem:[#allocation3 + $0x178] sm:$0x3] %v16076_v0  ;;  %525 = vst [vmem:[#allocation3 + $0x180] sm:$0xff] %v16076_v0  ;;  %13756 = vmatprep.mubr.bf16.mxu1 %v16563_v2 }
  0xa0   : > { %526 = vst [vmem:[#allocation3 + $0x188] sm:$0xff] %v16076_v0  ;;  %527 = vst [vmem:[#allocation3 + $0x190] sm:$0x3] %v16076_v0 }
  0xa1   : > { %528 = vst [vmem:[#allocation3 + $0x198] sm:$0xff] %v16076_v0  ;;  %529 = vst [vmem:[#allocation3 + $0x1a0] sm:$0xff] %v16076_v0  ;;  %13771 = vmatpush3.bf16.msra.mxu1 %v15606_v63 }
  0xa2   : > { %530 = vst [vmem:[#allocation3 + $0x1a8] sm:$0x3] %v16076_v0  ;;  %578 = vst [vmem:[#allocation2 + $0xc1] sm:$0xff] %v545_v7  ;;  %v15607_v0 = vld [vmem:[#allocation7 + $0x90] sm:$0xff]   ;;  %v1145_v7 = vld [vmem:[#allocation2 + $0x2] sm:$0xff]  ;;  %13772 = vmatprep.subr.bf16.mxu1 %v15608_v3 }
  0xa3   : > { %579 = vst [vmem:[#allocation2 + $0xc9] sm:$0xff] %v546_v9  ;;  %564 = vst [vmem:[#allocation2 + $0x19] sm:$0xff] %v16402_v10  ;;  %13818 = vmatprep.subr.bf16.mxu0 %v15607_v0  ;;  %v15610_v9 = vld [vmem:[#allocation7] sm:$0xff]  }
  0xa4   : > { %565 = vst [vmem:[#allocation2 + $0x21] sm:$0xff] %v16405_v11  ;;  %580 = vst [vmem:[#allocation2 + $0xd9] sm:$0xff] %v16412_v13  ;;  %13819 = vmatpush3.bf16.msra.mxu0 %v15607_v0  ;;  %v15611_v10 = vld [vmem:[#allocation7 + $0x80] sm:$0xff]   ;;  %v1177_v11 = vpack.c.bf16 %v1146_v8, %v1145_v7  ;;  %13757 = vmatmul.mubr.bf16.gmra.mxu1 %v16574_v6  ;;  %v15620_v0 = vld [vmem:[#allocation7 + $0xd8] sm:$0xff]  }
  0xa5   : > { %581 = vst [vmem:[#allocation2 + $0xe1] sm:$0xff] %v16415_v14  ;;  %566 = vst [vmem:[#allocation2 + $0x31] sm:$0xff] %v16421_v17  ;;  %13820 = vmatprep.subr.bf16.mxu0 %v15609_v4  ;;  %13741 = vmatmul.mubr.bf16.gmra.mxu0 %v16571_v5  ;;  %v15612_v17 = vld [vmem:[#allocation7 + $0xf8] sm:$0xff]  }
  0xa6   : > { %567 = vst [vmem:[#allocation2 + $0x39] sm:$0xff] %v16424_v18  ;;  %582 = vst [vmem:[#allocation2 + $0xf1] sm:$0xff] %v16428_v19  ;;  %13773 = vmatpush3.bf16.msra.mxu1 %v15608_v3  ;;  %v15613_v18 = vld [vmem:[#allocation7 + $0x138] sm:$0xff]   ;;  %13824 = vmatprep.mubr.bf16.mxu0 %v1177_v11 }
  0xa7   : > { %583 = vst [vmem:[#allocation2 + $0xf9] sm:$0xff] %v16431_v20  ;;  %568 = vst [vmem:[#allocation2 + $0x49] sm:$0xff] %v16437_v21  ;;  %13774 = vmatprep.subr.bf16.mxu1 %v15610_v9  ;;  %v15621_v3 = vld [vmem:[#allocation7 + $0x118] sm:$0xff]  }
  0xa8   : > { %569 = vst [vmem:[#allocation2 + $0x51] sm:$0xff] %v16440_v22  ;;  %584 = vst [vmem:[#allocation2 + $0x109] sm:$0xff] %v16443_v23  ;;  %13821 = vmatpush3.bf16.msra.mxu0 %v15609_v4  ;;  %v16077_v22 = vmov 0.0|0.0  }
  0xa9   : > { %585 = vst [vmem:[#allocation2 + $0x111] sm:$0xff] %v16448_v24  ;;  %570 = vst [vmem:[#allocation2 + $0x61] sm:$0xff] %v16453_v26  ;;  %13822 = vmatprep.subr.bf16.mxu0 %v15611_v10  ;;  %13776 = vmatprep.mubr.bf16.mxu1 %v16077_v22  ;;  %v15625_v22 = vld [vmem:[#allocation7 + $0x108] sm:$0xff]  }
  0xaa   : > { %571 = vst [vmem:[#allocation2 + $0x69] sm:$0xff] %v16456_v27  ;;  %586 = vst [vmem:[#allocation2 + $0x121] sm:$0xff] %v16461_v28  ;;  %v600_v13 = vld [vmem:[#allocation2 + $0x18] sm:$0xff]  ;;  %13775 = vmatpush3.bf16.msra.mxu1 %v15610_v9  ;;  %v15614_v28 = vld [vmem:[#allocation7 + $0xf0] sm:$0xff]  }
  0xab   : > { %587 = vst [vmem:[#allocation2 + $0x129] sm:$0xff] %v16464_v29  ;;  %572 = vst [vmem:[#allocation2 + $0x79] sm:$0xff] %v16467_v30  ;;  %v601_v14 = vld [vmem:[#allocation2 + $0x20] sm:$0xff]  ;;  %13856 = vmatprep.subr.bf16.mxu1 %v15612_v17 }
  0xac   : > { %573 = vst [vmem:[#allocation2 + $0x81] sm:$0xff] %v16472_v31  ;;  %588 = vst [vmem:[#allocation2 + $0x139] sm:$0xff] %v16476_v32  ;;  %v1147_v15 = vld [vmem:[#allocation2 + $0x1a] sm:$0xff]  ;;  %v1148_v16 = vld [vmem:[#allocation2 + $0x22] sm:$0xff]  ;;  %v16578_v24 = vpack.c.bf16 %v601_v14, %v600_v13  ;;  %13823 = vmatpush3.bf16.msra.mxu0 %v15611_v10 }
  0xad   : > { %589 = vst [vmem:[#allocation2 + $0x141] sm:$0xff] %v16479_v33  ;;  %574 = vst [vmem:[#allocation2 + $0x91] sm:$0xff] %v16485_v37  ;;  %v602_v19 = vld [vmem:[#allocation2 + $0x30] sm:$0xff]  ;;  %v603_v20 = vld [vmem:[#allocation2 + $0x38] sm:$0xff]  ;;  %v16580_v25 = vpack.c.bf16 %v1148_v16, %v1147_v15  ;;  %13904 = vmatprep.subr.bf16.mxu0 %v15613_v18 }
  0xae   : > { %575 = vst [vmem:[#allocation2 + $0x99] sm:$0xff] %v16488_v38  ;;  %590 = vst [vmem:[#allocation2 + $0x151] sm:$0xff] %v16491_v39  ;;  %v1149_v21 = vld [vmem:[#allocation2 + $0x32] sm:$0xff]  ;;  %v1150_v23 = vld [vmem:[#allocation2 + $0x3a] sm:$0xff]  ;;  %v16582_v26 = vpack.c.bf16 %v603_v20, %v602_v19  ;;  %13777 = vmatmul.mubr.bf16.vlgmr.msra.gmra.mxu1 %v16578_v24 }
  0xaf   : > { %591 = vst [vmem:[#allocation2 + $0x159] sm:$0xff] %v558_v40  ;;  %576 = vst [vmem:[#allocation2 + $0xa9] sm:$0xff] %v16498_v41  ;;  %v16584_v27 = vpack.c.bf16 %v1150_v23, %v1149_v21  ;;  %v604_v29 = vld [vmem:[#allocation2 + $0x48] sm:$0xff]  ;;  %v605_v30 = vld [vmem:[#allocation2 + $0x50] sm:$0xff]  ;;  %13825 = vmatmul.mubr.bf16.vlgmr.msra.gmra.mxu0 %v16580_v25  ;;  %13857 = vmatpush3.bf16.msra.mxu1 %v15612_v17 }
  0xb0   : > { %577 = vst [vmem:[#allocation2 + $0xb1] sm:$0xff] %v16501_v42  ;;  %592 = vst [vmem:[#allocation2 + $0x169] sm:$0xff] %v16514_v45  ;;  %v15615_v31 = vld [vmem:[#allocation7 + $0x130] sm:$0xff]   ;;  %13905 = vmatpush3.bf16.msra.mxu0 %v15613_v18  ;;  %v606_v34 = vld [vmem:[#allocation2 + $0x60] sm:$0xff]  ;;  %13780 = vmatprep.mubr.bf16.mxu1 %v16582_v26  ;;  %v16590_v40 = vpack.c.bf16 %v605_v30, %v604_v29 }
  0xb1   : > { %593 = vst [vmem:[#allocation2 + $0x171] sm:$0xff] %v560_v46  ;;  %v1151_v32 = vld [vmem:[#allocation2 + $0x4a] sm:$0xff]  ;;  %v1152_v33 = vld [vmem:[#allocation2 + $0x52] sm:$0xff]  ;;  %v1153_v36 = vld [vmem:[#allocation2 + $0x62] sm:$0xff]  ;;  %13828 = vmatprep.mubr.bf16.mxu0 %v16584_v27  ;;  %13858 = vmatprep.subr.bf16.mxu1 %v15614_v28 }
  0xb2   : > { %v607_v35 = vld [vmem:[#allocation2 + $0x68] sm:$0xff]  ;;  %13906 = vmatprep.subr.bf16.mxu0 %v15615_v31  ;;  %v16592_v41 = vpack.c.bf16 %v1152_v33, %v1151_v32  ;;  %v15618_v46 = vld [vmem:[#allocation7 + $0xe0] sm:$0xff]   ;;  %v608_v47 = vld [vmem:[#allocation2 + $0x78] sm:$0xff] }
  0xb3   : > { %v1154_v37 = vld [vmem:[#allocation2 + $0x6a] sm:$0xff]  ;;  %13859 = vmatpush3.bf16.msra.mxu1 %v15614_v28  ;;  %v16594_v42 = vpack.c.bf16 %v607_v35, %v606_v34  ;;  %v609_v48 = vld [vmem:[#allocation2 + $0x80] sm:$0xff]  ;;  %v562_v28 = vld [vmem:[%s16277_s11 + $0xf8] sm:$0xff] }
  0xb4   : > { %v15616_v38 = vld [vmem:[#allocation7 + $0xe8] sm:$0xff]   ;;  %13907 = vmatpush3.bf16.msra.mxu0 %v15615_v31  ;;  %v16596_v45 = vpack.c.bf16 %v1154_v37, %v1153_v36  ;;  %v1155_v51 = vld [vmem:[#allocation2 + $0x7a] sm:$0xff]  ;;  %v610_v56 = vld [vmem:[#allocation2 + $0x90] sm:$0xff]  ;;  %v16602_v4 = vpack.c.bf16 %v609_v48, %v608_v47  ;;  %595 = vst [vmem:[#allocation2 + $0x189] sm:$0xff] %v562_v28 }
  0xb5   : > { %v15617_v39 = vld [vmem:[#allocation7 + $0x128] sm:$0xff]   ;;  %13860 = vmatprep.subr.bf16.mxu1 %v15616_v38  ;;  %v611_v59 = vld [vmem:[#allocation2 + $0x98] sm:$0xff]  ;;  %v15622_v10 = vld [vmem:[#allocation7 + $0xd0] sm:$0xff]  }
  0xb6   : > { %13908 = vmatprep.subr.bf16.mxu0 %v15617_v39  ;;  %v1156_v52 = vld [vmem:[#allocation2 + $0x82] sm:$0xff]  ;;  %13781 = vmatmul.mubr.bf16.gmra.mxu1 %v16590_v40  ;;  %v1157_v60 = vld [vmem:[#allocation2 + $0x92] sm:$0xff]  ;;  %v1158_v63 = vld [vmem:[#allocation2 + $0x9a] sm:$0xff]  ;;  %v16606_v8 = vpack.c.bf16 %v611_v59, %v610_v56 }
  0xb7   : > { %13829 = vmatmul.mubr.bf16.gmra.mxu0 %v16592_v41  ;;  %13784 = vmatprep.mubr.bf16.mxu1 %v16594_v42  ;;  %v16604_v7 = vpack.c.bf16 %v1156_v52, %v1155_v51  ;;  %v16608_v9 = vpack.c.bf16 %v1158_v63, %v1157_v60  ;;  %v612_v11 = vld [vmem:[#allocation2 + $0xa8] sm:$0xff]  ;;  %v613_v13 = vld [vmem:[#allocation2 + $0xb0] sm:$0xff]  ;;  %v614_v17 = vld [vmem:[#allocation2 + $0xc0] sm:$0xff] }
  0xb8   : > { %13832 = vmatprep.mubr.bf16.mxu0 %v16596_v45  ;;  %13861 = vmatpush3.bf16.msra.mxu1 %v15616_v38  ;;  %v1159_v14 = vld [vmem:[#allocation2 + $0xaa] sm:$0xff]  ;;  %v1160_v15 = vld [vmem:[#allocation2 + $0xb2] sm:$0xff]  ;;  %v1161_v19 = vld [vmem:[#allocation2 + $0xc2] sm:$0xff]  ;;  %v16616_v29 = vpack.c.bf16 %v613_v13, %v612_v11 }
  0xb9   : > { %13909 = vmatpush3.bf16.msra.mxu0 %v15617_v39  ;;  %13862 = vmatprep.subr.bf16.mxu1 %v15618_v46  ;;  %v15623_v16 = vld [vmem:[#allocation7 + $0x110] sm:$0xff]   ;;  %v615_v18 = vld [vmem:[#allocation2 + $0xc8] sm:$0xff]  ;;  %v16618_v30 = vpack.c.bf16 %v1160_v15, %v1159_v14  ;;  %v15626_v34 = vld [vmem:[#allocation7 + $0xc0] sm:$0xff]  }
  0xba   : > { %13910 = vmatprep.subr.bf16.mxu0 %v15619_v55  ;;  %v1162_v20 = vld [vmem:[#allocation2 + $0xca] sm:$0xff]  ;;  %v16622_v32 = vpack.c.bf16 %v615_v18, %v614_v17  ;;  %v616_v35 = vld [vmem:[#allocation2 + $0xd8] sm:$0xff]  ;;  %v617_v36 = vld [vmem:[#allocation2 + $0xe0] sm:$0xff] }
  0xbb   : > { %v15624_v21 = vld [vmem:[#allocation7 + $0xc8] sm:$0xff]   ;;  %v561_v23 = vld [vmem:[%s16277_s11 + $0xf0] sm:$0xff]  ;;  %v16624_v33 = vpack.c.bf16 %v1162_v20, %v1161_v19  ;;  %v1163_v37 = vld [vmem:[#allocation2 + $0xda] sm:$0xff]  ;;  %v16630_v56 = vpack.c.bf16 %v617_v36, %v616_v35  ;;  %s15994_s11 = scalar_lea.vmem %s20384_s23, 4096 }
  0xbc   : > { %13863 = vmatpush3.bf16.msra.mxu1 %v15618_v46  ;;  %594 = vst [vmem:[#allocation2 + $0x181] sm:$0xff] %v561_v23  ;;  %v16620_v31 = vpack.c.bf16 %v562_v28, %v561_v23  ;;  %v1164_v38 = vld [vmem:[#allocation2 + $0xe2] sm:$0xff]  ;;  %v618_v46 = vld [vmem:[#allocation2 + $0xf0] sm:$0xff]  ;;  %v619_v47 = vld [vmem:[#allocation2 + $0xf8] sm:$0xff]  ;;  %p15995_p4 = scmp.ne.s32.totalorder %s20384_s23, %s15994_s11  ;;  %p16002_p3 = scmp.lt.s32.totalorder %s16000_s21, %s15994_s11 }
  0xbd   : > { %13911 = vmatpush3.bf16.msra.mxu0 %v15619_v55  ;;  %13864 = vmatprep.subr.bf16.mxu1 %v15620_v0  ;;  %v15627_v39 = vld [vmem:[#allocation7 + $0x100] sm:$0xff]   ;;  %v1165_v48 = vld [vmem:[#allocation2 + $0xf2] sm:$0xff]  ;;  %v16632_v59 = vpack.c.bf16 %v1164_v38, %v1163_v37  ;;  %v16634_v60 = vpack.c.bf16 %v619_v47, %v618_v46  ;;  %v623_v14 = vld [vmem:[#allocation2 + $0x128] sm:$0xff] }
  0xbe   : > { %13912 = vmatprep.subr.bf16.mxu0 %v15621_v3  ;;  %13785 = vmatmul.mubr.bf16.gmra.mxu1 %v16602_v4  ;;  %v1166_v51 = vld [vmem:[#allocation2 + $0xfa] sm:$0xff]  ;;  %v1168_v11 = vld [vmem:[#allocation2 + $0x112] sm:$0xff]  ;;  %v1169_v15 = vld [vmem:[#allocation2 + $0x122] sm:$0xff]  ;;  %p15996_p12 = pnand %p15995_p4, %p20962_p6  ;;  %p16003_p7 = por %p16002_p3, %p16001_p5 }
  0xbf   : > { %13833 = vmatmul.mubr.bf16.gmra.mxu0 %v16604_v7  ;;  %13788 = vmatprep.mubr.bf16.mxu1 %v16606_v8  ;;  %v15628_v52 = vld [vmem:[#allocation7 + $0x178] sm:$0xff]   ;;  %v16636_v63 = vpack.c.bf16 %v1166_v51, %v1165_v48  ;;  %v622_v13 = vld [vmem:[#allocation2 + $0x120] sm:$0xff]  ;;  %v628_v48 = vld [vmem:[#allocation2 + $0x168] sm:$0xff] }
  0xc0   : > { %13836 = vmatprep.mubr.bf16.mxu0 %v16608_v9  ;;  %13865 = vmatpush3.bf16.msra.mxu1 %v15620_v0  ;;  %v15629_v55 = vld [vmem:[#allocation7 + $0x1b8] sm:$0xff]   ;;  %v620_v0 = vld [vmem:[#allocation2 + $0x108] sm:$0xff]  ;;  %v16646_v19 = vpack.c.bf16 %v623_v14, %v622_v13  ;;  %v629_v51 = vld [vmem:[#allocation2 + $0x170] sm:$0xff]  ;;  %p15997_p0 = pneg %p15996_p12 }
  0xc1   : > { %13913 = vmatpush3.bf16.msra.mxu0 %v15621_v3  ;;  %13866 = vmatprep.subr.bf16.mxu1 %v15622_v10  ;;  %v621_v3 = vld [vmem:[#allocation2 + $0x110] sm:$0xff]  ;;  %v1171_v23 = vld [vmem:[#allocation2 + $0x13a] sm:$0xff]  ;;  %v1172_v28 = vld [vmem:[#allocation2 + $0x142] sm:$0xff] }
  0xc2   : > { %13914 = vmatprep.subr.bf16.mxu0 %v15623_v16  ;;  %v16642_v17 = vpack.c.bf16 %v621_v3, %v620_v0  ;;  %v627_v35 = vld [vmem:[#allocation2 + $0x158] sm:$0xff]  ;;  %v1175_v0 = vld [vmem:[#allocation2 + $0x16a] sm:$0xff]  ;;  %p16004_p9 = pnand %p16003_p7, %p15997_p0 }
  0xc3   : > { %v1173_v36 = vld [vmem:[#allocation2 + $0x152] sm:$0xff]  ;;  %v1174_v37 = vld [vmem:[#allocation2 + $0x15a] sm:$0xff] }
  0xc4   : > { %13867 = vmatpush3.bf16.msra.mxu1 %v15622_v10  ;;  %v1167_v10 = vld [vmem:[#allocation2 + $0x10a] sm:$0xff]  ;;  %v16660_v47 = vpack.c.bf16 %v1174_v37, %v1173_v36  ;;  %v1176_v3 = vld [vmem:[#allocation2 + $0x172] sm:$0xff] }
  0xc5   : > { %13915 = vmatpush3.bf16.msra.mxu0 %v15623_v16  ;;  %13868 = vmatprep.subr.bf16.mxu1 %v15624_v21  ;;  %v1170_v16 = vld [vmem:[#allocation2 + $0x12a] sm:$0xff]  ;;  %v16644_v18 = vpack.c.bf16 %v1168_v11, %v1167_v10  ;;  %v16666_v10 = vpack.c.bf16 %v629_v51, %v628_v48  ;;  %v16668_v11 = vpack.c.bf16 %v1176_v3, %v1175_v0  ;;  %v2983_v48 = vld [vmem:[#allocation2 + $0x3a] sm:$0xff] }
  0xc6   : > { %13916 = vmatprep.subr.bf16.mxu0 %v15625_v22  ;;  %13789 = vmatmul.mubr.bf16.gmra.mxu1 %v16616_v29  ;;  %v16648_v20 = vpack.c.bf16 %v1170_v16, %v1169_v15  ;;  %v15630_v13 = vld [vmem:[#allocation7 + $0x170] sm:$0xff]   ;;  %v15632_v15 = vld [vmem:[#allocation7 + $0x168] sm:$0xff]  }
  0xc7   : > { %13837 = vmatmul.mubr.bf16.gmra.mxu0 %v16618_v30  ;;  %13792 = vmatprep.mubr.bf16.mxu1 %v16622_v32  ;;  %v15631_v14 = vld [vmem:[#allocation7 + $0x1b0] sm:$0xff]   ;;  %v15633_v16 = vld [vmem:[#allocation7 + $0x1a8] sm:$0xff]  }
  0xc8   : > { %13840 = vmatprep.mubr.bf16.mxu0 %v16624_v33  ;;  %13869 = vmatpush3.bf16.msra.mxu1 %v15624_v21  ;;  %v624_v21 = vld [vmem:[#allocation2 + $0x138] sm:$0xff] }
  0xc9   : > { %13917 = vmatpush3.bf16.msra.mxu0 %v15625_v22  ;;  %13870 = vmatprep.subr.bf16.mxu1 %v15626_v34  ;;  %v625_v22 = vld [vmem:[#allocation2 + $0x140] sm:$0xff] }
  0xca   : > { %13918 = vmatprep.subr.bf16.mxu0 %v15627_v39  ;;  %v16654_v38 = vpack.c.bf16 %v625_v22, %v624_v21  ;;  %v15642_v21 = vld [vmem:[#allocation7 + $0x140] sm:$0xff]  }
  0xcb   : > { %v15643_v22 = vld [vmem:[#allocation7 + $0x180] sm:$0xff]  }
  0xcc   : > { %13871 = vmatpush3.bf16.msra.mxu1 %v15626_v34  ;;  %v626_v34 = vld [vmem:[#allocation2 + $0x150] sm:$0xff] }
  0xcd   : > { %13919 = vmatpush3.bf16.msra.mxu0 %v15627_v39  ;;  %13952 = vmatprep.subr.bf16.mxu1 %v15628_v52  ;;  %v16656_v39 = vpack.c.bf16 %v1172_v28, %v1171_v23  ;;  %v16658_v46 = vpack.c.bf16 %v627_v35, %v626_v34  ;;  %v2093_v35 = vld [vmem:[#allocation2 + $0x182] sm:$0xff] }
  0xce   : > { %14000 = vmatprep.subr.bf16.mxu0 %v15629_v55  ;;  %13793 = vmatmul.mubr.bf16.gmra.mxu1 %v16630_v56 }
  0xcf   : > { %13841 = vmatmul.mubr.bf16.gmra.mxu0 %v16632_v59  ;;  %13796 = vmatprep.mubr.bf16.mxu1 %v16634_v60 }
  0xd0   : > { %13844 = vmatprep.mubr.bf16.mxu0 %v16636_v63 }
  0xd6   : > { %13797 = vmatmul.mubr.bf16.gmra.mxu1 %v16642_v17 }
  0xd7   : > { %13845 = vmatmul.mubr.bf16.gmra.mxu0 %v16644_v18  ;;  %13800 = vmatprep.mubr.bf16.mxu1 %v16646_v19 }
  0xd8   : > { %13848 = vmatprep.mubr.bf16.mxu0 %v16648_v20 }
  0xde   : > { %13801 = vmatmul.mubr.bf16.gmra.mxu1 %v16654_v38 }
  0xdf   : > { %13849 = vmatmul.mubr.bf16.gmra.mxu0 %v16656_v39  ;;  %13804 = vmatprep.mubr.bf16.mxu1 %v16658_v46 }
  0xe0   : > { %13852 = vmatprep.mubr.bf16.mxu0 %v16660_v47 }
  0xe6   : > { %13805 = vmatmul.mubr.bf16.gmra.mxu1 %v16666_v10 }
  0xe7   : > { %13853 = vmatmul.mubr.bf16.gmra.mxu0 %v16668_v11  ;;  %13872 = vmatprep.mubr.bf16.mxu1 %v16578_v24  ;;  %v15635_v24 = vld [vmem:[#allocation7 + $0x1a0] sm:$0xff]  }
  0xe8   : > { %13920 = vmatprep.mubr.bf16.mxu0 %v16505_v43  ;;  %v15634_v43 = vld [vmem:[#allocation7 + $0x160] sm:$0xff]  }
  0xee   : > { %13873 = vmatmul.mubr.bf16.vlgmr.msra.gmra.mxu1 %v16582_v26 }
  0xef   : > { %13921 = vmatmul.mubr.bf16.vlgmr.msra.gmra.mxu0 %v16520_v49  ;;  %13953 = vmatpush3.bf16.msra.mxu1 %v15628_v52  ;;  %v15636_v49 = vld [vmem:[#allocation7 + $0x158] sm:$0xff]  }
  0xf0   : > { %14001 = vmatpush3.bf16.msra.mxu0 %v15629_v55  ;;  %13876 = vmatprep.mubr.bf16.mxu1 %v16590_v40  ;;  %v15637_v52 = vld [vmem:[#allocation7 + $0x198] sm:$0xff]   ;;  %v15639_v55 = vld [vmem:[#allocation7 + $0x190] sm:$0xff]  }
  0xf1   : > { %13924 = vmatprep.mubr.bf16.mxu0 %v16532_v53  ;;  %13954 = vmatprep.subr.bf16.mxu1 %v15630_v13  ;;  %v15638_v53 = vld [vmem:[#allocation7 + $0x150] sm:$0xff]  }
  0xf2   : > { %14002 = vmatprep.subr.bf16.mxu0 %v15631_v14 }
  0xf3   : > { %13955 = vmatpush3.bf16.msra.mxu1 %v15630_v13 }
  0xf4   : > { %14003 = vmatpush3.bf16.msra.mxu0 %v15631_v14  ;;  %13956 = vmatprep.subr.bf16.mxu1 %v15632_v15 }
  0xf5   : > { %14004 = vmatprep.subr.bf16.mxu0 %v15633_v16 }
  0xf6   : > { %13877 = vmatmul.mubr.bf16.gmra.mxu1 %v16594_v42 }
  0xf7   : > { %13925 = vmatmul.mubr.bf16.gmra.mxu0 %v16540_v57  ;;  %13880 = vmatprep.mubr.bf16.mxu1 %v16602_v4  ;;  %v15640_v57 = vld [vmem:[#allocation7 + $0x148] sm:$0xff]  }
  0xf8   : > { %13928 = vmatprep.mubr.bf16.mxu0 %v16552_v61  ;;  %13957 = vmatpush3.bf16.msra.mxu1 %v15632_v15  ;;  %v15641_v61 = vld [vmem:[#allocation7 + $0x188] sm:$0xff]  }
  0xf9   : > { %14005 = vmatpush3.bf16.msra.mxu0 %v15633_v16  ;;  %13958 = vmatprep.subr.bf16.mxu1 %v15634_v43 }
  0xfa   : > { %14006 = vmatprep.subr.bf16.mxu0 %v15635_v24 }
  0xfc   : > { %13959 = vmatpush3.bf16.msra.mxu1 %v15634_v43 }
  0xfd   : > { %14007 = vmatpush3.bf16.msra.mxu0 %v15635_v24  ;;  %13960 = vmatprep.subr.bf16.mxu1 %v15636_v49  ;;  %v2678_v24 = vld [vmem:[#allocation2 + $0x49] sm:$0xff] }
  0xfe   : > { %14008 = vmatprep.subr.bf16.mxu0 %v15637_v52  ;;  %13881 = vmatmul.mubr.bf16.gmra.mxu1 %v16606_v8 }
  0xff   : > { %13929 = vmatmul.mubr.bf16.gmra.mxu0 %v16560_v1  ;;  %13884 = vmatprep.mubr.bf16.mxu1 %v16616_v29  ;;  %v15644_v1 = vld [vmem:[#allocation7 + $0x1f8] sm:$0xff]  }
 0x100   : > { %13932 = vmatprep.mubr.bf16.mxu0 %v16571_v5  ;;  %13961 = vmatpush3.bf16.msra.mxu1 %v15636_v49  ;;  %v15645_v5 = vld [vmem:[#allocation7 + $0x238] sm:$0xff]  }
 0x101   : > { %14009 = vmatpush3.bf16.msra.mxu0 %v15637_v52  ;;  %13962 = vmatprep.subr.bf16.mxu1 %v15638_v53  ;;  %v2679_v49 = vld [vmem:[#allocation2 + $0x51] sm:$0xff] }
 0x102   : > { %14010 = vmatprep.subr.bf16.mxu0 %v15639_v55  ;;  %v2984_v52 = vld [vmem:[#allocation2 + $0x4a] sm:$0xff] }
 0x104   : > { %13963 = vmatpush3.bf16.msra.mxu1 %v15638_v53  ;;  %v2985_v53 = vld [vmem:[#allocation2 + $0x52] sm:$0xff] }
 0x105   : > { %14011 = vmatpush3.bf16.msra.mxu0 %v15639_v55  ;;  %13964 = vmatprep.subr.bf16.mxu1 %v15640_v57 }
 0x106   : > { %14012 = vmatprep.subr.bf16.mxu0 %v15641_v61  ;;  %13885 = vmatmul.mubr.bf16.gmra.mxu1 %v16622_v32 }
 0x107   : > { %13933 = vmatmul.mubr.bf16.gmra.mxu0 %v16407_v12  ;;  %13888 = vmatprep.mubr.bf16.mxu1 %v16630_v56  ;;  %v1481_v12 = vld [vmem:[#allocation2 + $0x180] sm:$0xff] }
 0x108   : > { %13936 = vmatprep.mubr.bf16.mxu0 %v16509_v44  ;;  %13965 = vmatpush3.bf16.msra.mxu1 %v15640_v57  ;;  %v1482_v44 = vld [vmem:[#allocation2 + $0x188] sm:$0xff] }
 0x109   : > { %14013 = vmatpush3.bf16.msra.mxu0 %v15641_v61  ;;  %13966 = vmatprep.subr.bf16.mxu1 %v15642_v21  ;;  %v2680_v61 = vld [vmem:[#allocation2 + $0x61] sm:$0xff] }
 0x10a   : > { %14014 = vmatprep.subr.bf16.mxu0 %v15643_v22 }
 0x10c   : > { %13967 = vmatpush3.bf16.msra.mxu1 %v15642_v21  ;;  %v2681_v21 = vld [vmem:[#allocation2 + $0x69] sm:$0xff] }
 0x10d   : > { %14015 = vmatpush3.bf16.msra.mxu0 %v15643_v22  ;;  %14048 = vmatprep.subr.bf16.mxu1 %v15644_v1  ;;  %v2986_v22 = vld [vmem:[#allocation2 + $0x62] sm:$0xff] }
 0x10e   : > { %14096 = vmatprep.subr.bf16.mxu0 %v15645_v5  ;;  %13889 = vmatmul.mubr.bf16.gmra.mxu1 %v16634_v60 }
 0x10f   : > { %13937 = vmatmul.mubr.bf16.gmra.mxu0 %v16524_v50  ;;  %13892 = vmatprep.mubr.bf16.mxu1 %v16642_v17  ;;  %v16702_v50 = vpack.c.bf16 %v1482_v44, %v1481_v12 }
 0x110   : > { %13940 = vmatprep.mubr.bf16.mxu0 %v16536_v54  ;;  %v15646_v54 = vld [vmem:[#allocation7 + $0x1f0] sm:$0xff]  }
 0x116   : > { %13893 = vmatmul.mubr.bf16.gmra.mxu1 %v16646_v19 }
 0x117   : > { %13941 = vmatmul.mubr.bf16.gmra.mxu0 %v16544_v58  ;;  %13896 = vmatprep.mubr.bf16.mxu1 %v16654_v38  ;;  %v15647_v58 = vld [vmem:[#allocation7 + $0x230] sm:$0xff]  }
 0x118   : > { %13944 = vmatprep.mubr.bf16.mxu0 %v16556_v62  ;;  %v15648_v62 = vld [vmem:[#allocation7 + $0x1e8] sm:$0xff]  }
 0x11e   : > { %13897 = vmatmul.mubr.bf16.gmra.mxu1 %v16658_v46 }
 0x11f   : > { %13945 = vmatmul.mubr.bf16.gmra.mxu0 %v16563_v2  ;;  %13900 = vmatprep.mubr.bf16.mxu1 %v16666_v10  ;;  %v15649_v2 = vld [vmem:[#allocation7 + $0x228] sm:$0xff]  }
 0x120   : > { %13948 = vmatprep.mubr.bf16.mxu0 %v16574_v6  ;;  %v15650_v6 = vld [vmem:[#allocation7 + $0x1e0] sm:$0xff]  }
 0x126   : > { %13901 = vmatmul.mubr.bf16.gmra.mxu1 %v16702_v50 }
 0x127   : > { %13949 = vmatmul.mubr.bf16.gmra.mxu0 %v16620_v31  ;;  %13968 = vmatprep.mubr.bf16.mxu1 %v16580_v25  ;;  %v15651_v25 = vld [vmem:[#allocation7 + $0x220] sm:$0xff]  }
 0x128   : > { %14016 = vmatprep.mubr.bf16.mxu0 %v16582_v26  ;;  %v15652_v26 = vld [vmem:[#allocation7 + $0x1d8] sm:$0xff]  }
 0x12e   : > { %13969 = vmatmul.mubr.bf16.vlgmr.msra.gmra.mxu1 %v16584_v27  ;;  %v15653_v27 = vld [vmem:[#allocation7 + $0x218] sm:$0xff]  }
 0x12f   : > { %14017 = vmatmul.mubr.bf16.vlgmr.msra.gmra.mxu0 %v16590_v40  ;;  %14049 = vmatpush3.bf16.msra.mxu1 %v15644_v1  ;;  %v15654_v40 = vld [vmem:[#allocation7 + $0x1d0] sm:$0xff]  }
 0x130   : > { %14097 = vmatpush3.bf16.msra.mxu0 %v15645_v5  ;;  %13972 = vmatprep.mubr.bf16.mxu1 %v16592_v41  ;;  %v15655_v41 = vld [vmem:[#allocation7 + $0x210] sm:$0xff]  }
 0x131   : > { %14020 = vmatprep.mubr.bf16.mxu0 %v16594_v42  ;;  %14050 = vmatprep.subr.bf16.mxu1 %v15646_v54  ;;  %v15656_v42 = vld [vmem:[#allocation7 + $0x1c8] sm:$0xff]  }
 0x132   : > { %14098 = vmatprep.subr.bf16.mxu0 %v15647_v58  ;;  %v2987_v1 = vld [vmem:[#allocation2 + $0x6a] sm:$0xff] }
 0x133   : > { %14051 = vmatpush3.bf16.msra.mxu1 %v15646_v54  ;;  %v2709_v54 = vpack.c.bf16 %v2679_v49, %v2678_v24 }
 0x134   : > { %14099 = vmatpush3.bf16.msra.mxu0 %v15647_v58  ;;  %14052 = vmatprep.subr.bf16.mxu1 %v15648_v62  ;;  %v3015_v58 = vpack.c.bf16 %v2985_v53, %v2984_v52 }
 0x135   : > { %14100 = vmatprep.subr.bf16.mxu0 %v15649_v2 }
 0x136   : > { %13973 = vmatmul.mubr.bf16.gmra.mxu1 %v16596_v45  ;;  %v15657_v45 = vld [vmem:[#allocation7 + $0x208] sm:$0xff]  }
 0x137   : > { %14021 = vmatmul.mubr.bf16.gmra.mxu0 %v16602_v4  ;;  %13976 = vmatprep.mubr.bf16.mxu1 %v16604_v7  ;;  %v15658_v4 = vld [vmem:[#allocation7 + $0x1c0] sm:$0xff]  }
 0x138   : > { %14024 = vmatprep.mubr.bf16.mxu0 %v16606_v8  ;;  %14053 = vmatpush3.bf16.msra.mxu1 %v15648_v62  ;;  %v15659_v7 = vld [vmem:[#allocation7 + $0x200] sm:$0xff]   ;;  %v2710_v62 = vpack.c.bf16 %v2681_v21, %v2680_v61 }
 0x139   : > { %14101 = vmatpush3.bf16.msra.mxu0 %v15649_v2  ;;  %14054 = vmatprep.subr.bf16.mxu1 %v15650_v6  ;;  %v3016_v2 = vpack.c.bf16 %v2987_v1, %v2986_v22 }
 0x13a   : > { %14102 = vmatprep.subr.bf16.mxu0 %v15651_v25 }
 0x13c   : > { %14055 = vmatpush3.bf16.msra.mxu1 %v15650_v6 }
 0x13d   : > { %14103 = vmatpush3.bf16.msra.mxu0 %v15651_v25  ;;  %14056 = vmatprep.subr.bf16.mxu1 %v15652_v26 }
 0x13e   : > { %14104 = vmatprep.subr.bf16.mxu0 %v15653_v27  ;;  %13977 = vmatmul.mubr.bf16.gmra.mxu1 %v16608_v9 }
 0x13f   : > { %14025 = vmatmul.mubr.bf16.gmra.mxu0 %v16616_v29  ;;  %13980 = vmatprep.mubr.bf16.mxu1 %v16618_v30 }
 0x140   : > { %14028 = vmatprep.mubr.bf16.mxu0 %v16622_v32  ;;  %14057 = vmatpush3.bf16.msra.mxu1 %v15652_v26  ;;  %v2682_v26 = vld [vmem:[#allocation2 + $0x79] sm:$0xff] }
 0x141   : > { %14105 = vmatpush3.bf16.msra.mxu0 %v15653_v27  ;;  %14058 = vmatprep.subr.bf16.mxu1 %v15654_v40  ;;  %v2683_v27 = vld [vmem:[#allocation2 + $0x81] sm:$0xff] }
 0x142   : > { %14106 = vmatprep.subr.bf16.mxu0 %v15655_v41  ;;  %v2711_v24 = vpack.c.bf16 %v2683_v27, %v2682_v26  ;;  %v2688_v26 = vld [vmem:[#allocation2 + $0xc1] sm:$0xff]  ;;  %v2689_v27 = vld [vmem:[#allocation2 + $0xc9] sm:$0xff] }
 0x144   : > { %14059 = vmatpush3.bf16.msra.mxu1 %v15654_v40  ;;  %v2988_v40 = vld [vmem:[#allocation2 + $0x7a] sm:$0xff] }
 0x145   : > { %14107 = vmatpush3.bf16.msra.mxu0 %v15655_v41  ;;  %14060 = vmatprep.subr.bf16.mxu1 %v15656_v42  ;;  %v2989_v41 = vld [vmem:[#allocation2 + $0x82] sm:$0xff] }
 0x146   : > { %14108 = vmatprep.subr.bf16.mxu0 %v15657_v45  ;;  %13981 = vmatmul.mubr.bf16.gmra.mxu1 %v16624_v33  ;;  %v3017_v49 = vpack.c.bf16 %v2989_v41, %v2988_v40  ;;  %v2994_v40 = vld [vmem:[#allocation2 + $0xc2] sm:$0xff] }
 0x147   : > { %14029 = vmatmul.mubr.bf16.gmra.mxu0 %v16630_v56  ;;  %13984 = vmatprep.mubr.bf16.mxu1 %v16632_v59 }
 0x148   : > { %14032 = vmatprep.mubr.bf16.mxu0 %v16634_v60  ;;  %14061 = vmatpush3.bf16.msra.mxu1 %v15656_v42 }
 0x149   : > { %14109 = vmatpush3.bf16.msra.mxu0 %v15657_v45  ;;  %14062 = vmatprep.subr.bf16.mxu1 %v15658_v4 }
 0x14a   : > { %14110 = vmatprep.subr.bf16.mxu0 %v15659_v7 }
 0x14c   : > { %14063 = vmatpush3.bf16.msra.mxu1 %v15658_v4  ;;  %v16724_v8 = vpop.f32.mrf.mxu0  ;;  %v16726_v9 = vpop.f32.mrf.mxu1  ;;  %v2684_v4 = vld [vmem:[#allocation2 + $0x91] sm:$0xff] }
 0x14d   : > { %14111 = vmatpush3.bf16.msra.mxu0 %v15659_v7  ;;  %v2685_v7 = vld [vmem:[#allocation2 + $0x99] sm:$0xff] }
 0x14e   : > { %13985 = vmatmul.mubr.bf16.gmra.mxu1 %v16636_v63  ;;  %v16732_v29 = vpop.f32.mrf.mxu0  ;;  %v16734_v30 = vpop.f32.mrf.mxu1  ;;  %v2712_v61 = vpack.c.bf16 %v2685_v7, %v2684_v4 }
 0x14f   : > { %14033 = vmatmul.mubr.bf16.gmra.mxu0 %v16642_v17  ;;  %13988 = vmatprep.mubr.bf16.mxu1 %v16644_v18 }
 0x150   : > { %14036 = vmatprep.mubr.bf16.mxu0 %v16646_v19  ;;  %v16736_v32 = vpop.f32.mrf.mxu0  ;;  %v16738_v33 = vpop.f32.mrf.mxu1 }
 0x152   : > { %v16740_v56 = vpop.f32.mrf.mxu0  ;;  %v16742_v59 = vpop.f32.mrf.mxu1 }
 0x154   : > { %v16744_v60 = vpop.f32.mrf.mxu0  ;;  %v16746_v63 = vpop.f32.mrf.mxu1 }
 0x156   : > { %13989 = vmatmul.mubr.bf16.gmra.mxu1 %v16648_v20  ;;  %v16752_v17 = vpop.f32.mrf.mxu0  ;;  %v16754_v18 = vpop.f32.mrf.mxu1  ;;  %v2094_v20 = vld [vmem:[#allocation2 + $0x18a] sm:$0xff] }
 0x157   : > { %14037 = vmatmul.mubr.bf16.gmra.mxu0 %v16654_v38  ;;  %13992 = vmatprep.mubr.bf16.mxu1 %v16656_v39  ;;  %v2676_v38 = vld [vmem:[#allocation2 + $0x31] sm:$0xff]  ;;  %v2677_v39 = vld [vmem:[#allocation2 + $0x39] sm:$0xff]  ;;  %v16780_v14 = vpack.c.bf16 %v2094_v20, %v2093_v35 }
 0x158   : > { %14040 = vmatprep.mubr.bf16.mxu0 %v16658_v46  ;;  %v16756_v19 = vpop.f32.mrf.mxu0  ;;  %v16758_v23 = vpop.f32.mrf.mxu1  ;;  %v2982_v46 = vld [vmem:[#allocation2 + $0x32] sm:$0xff]  ;;  %v2708_v15 = vpack.c.bf16 %v2677_v39, %v2676_v38  ;;  %v2991_v20 = vld [vmem:[#allocation2 + $0x9a] sm:$0xff] }
 0x159   : > { %v3014_v16 = vpack.c.bf16 %v2983_v48, %v2982_v46  ;;  %v2990_v35 = vld [vmem:[#allocation2 + $0x92] sm:$0xff] }
 0x15a   : > { %v16760_v28 = vpop.f32.mrf.mxu0  ;;  %v16762_v34 = vpop.f32.mrf.mxu1  ;;  %v3018_v21 = vpack.c.bf16 %v2991_v20, %v2990_v35 }
 0x15c   : > { %v16764_v36 = vpop.f32.mrf.mxu0  ;;  %v16766_v37 = vpop.f32.mrf.mxu1 }
 0x15e   : > { %13993 = vmatmul.mubr.bf16.gmra.mxu1 %v16660_v47  ;;  %v16772_v51 = vpop.f32.mrf.mxu0  ;;  %v16774_v0 = vpop.f32.mrf.mxu1  ;;  %v15884_v47 = vld [vmem:[#allocation2] sm:$0xff] }
 0x15f   : > { %14041 = vmatmul.mubr.bf16.gmra.mxu0 %v16666_v10  ;;  %13996 = vmatprep.mubr.bf16.mxu1 %v16668_v11  ;;  %v16782_v10 = vpack.c.bf16 %v15884_v47, %v15884_v47 }
 0x160   : > { %14044 = vmatprep.mubr.bf16.mxu0 %v16702_v50  ;;  %v16776_v3 = vpop.f32.mrf.mxu0  ;;  %v16778_v13 = vpop.f32.mrf.mxu1 }
 0x162   : > { %v16784_v43 = vpop.f32.mrf.mxu0  ;;  %v16786_v11 = vpop.f32.mrf.mxu1 }
 0x164   : > { %v16790_v57 = vpop.f32.mrf.mxu1 }
 0x165   : > { %v16788_v55 = vpop.f32.mrf.mxu0 }
 0x166   : > { %13997 = vmatmul.mubr.bf16.gmra.mxu1 %v16780_v14  ;;  %v16796_v12 = vpop.f32.mrf.mxu1 }
 0x167   : > { %14045 = vmatmul.mubr.bf16.gmra.mxu0 %v16782_v10  ;;  %14064 = vmatprep.mubr.bf16.mxu1 %v2708_v15  ;;  %v16794_v5 = vpop.f32.mrf.mxu0 }
 0x168   : > { %14112 = vmatprep.mubr.bf16.mxu0 %v3014_v16  ;;  %v16800_v50 = vpop.f32.mrf.mxu1 }
 0x169   : > { %v16798_v44 = vpop.f32.mrf.mxu0 }
 0x16a   : > { %v16804_v25 = vpop.f32.mrf.mxu1 }
 0x16b   : > { %v16802_v6 = vpop.f32.mrf.mxu0 }
 0x16e   : > { %v13778_v42 = vpop.f32.mrf.mxu1  ;;  %14065 = vmatmul.mubr.bf16.vlgmr.msra.gmra.mxu1 %v2709_v54 }
 0x16f   : > { %v13826_v45 = vpop.f32.mrf.mxu0  ;;  %14113 = vmatmul.mubr.bf16.vlgmr.msra.gmra.mxu0 %v3015_v58  ;;  %v1027_v38 = vadd.f32 %v13778_v42, %v16724_v8  ;;  %14068 = vmatprep.mubr.bf16.mxu1 %v2710_v62  ;;  %v2686_v58 = vld [vmem:[#allocation2 + $0xa9] sm:$0xff]  ;;  %v2687_v62 = vld [vmem:[#allocation2 + $0xb1] sm:$0xff] }
 0x170   : > { %14116 = vmatprep.mubr.bf16.mxu0 %v3016_v2  ;;  %v1018_v39 = vpop.f32.mrf.mxu1  ;;  %v2992_v2 = vld [vmem:[#allocation2 + $0xaa] sm:$0xff] }
 0x171   : > { %v1292_v46 = vpop.f32.mrf.mxu0  ;;  %v16807_v48 = vadd.f32 %v13826_v45, %v1027_v38  ;;  %v1019_v47 = vadd.f32 %v1018_v39, %v16732_v29  ;;  %v2993_v29 = vld [vmem:[#allocation2 + $0xb2] sm:$0xff] }
 0x172   : > { %v13779_v15 = vpop.f32.mrf.mxu1 }
 0x173   : > { %v13827_v16 = vpop.f32.mrf.mxu0  ;;  %v16810_v52 = vadd.f32 %v1292_v46, %v1019_v47  ;;  %v1030_v53 = vadd.f32 %v13779_v15, %v16736_v32  ;;  %v2995_v32 = vld [vmem:[#allocation2 + $0xca] sm:$0xff]  ;;  %v2713_v46 = vpack.c.bf16 %v2687_v62, %v2686_v58  ;;  %v3019_v47 = vpack.c.bf16 %v2993_v29, %v2992_v2  ;;  %v2997_v2 = vld [vmem:[#allocation2 + $0xe2] sm:$0xff] }
 0x174   : > { %v1021_v22 = vpop.f32.mrf.mxu1  ;;  %v2692_v29 = vld [vmem:[#allocation2 + $0xf1] sm:$0xff] }
 0x175   : > { %v1295_v8 = vpop.f32.mrf.mxu0  ;;  %v16813_v1 = vadd.f32 %v13827_v16, %v1030_v53  ;;  %v1022_v54 = vadd.f32 %v1021_v22, %v16740_v56  ;;  %v2690_v22 = vld [vmem:[#allocation2 + $0xd9] sm:$0xff] }
 0x176   : > { %v13782_v42 = vpop.f32.mrf.mxu1  ;;  %14069 = vmatmul.mubr.bf16.gmra.mxu1 %v2711_v24  ;;  %v2714_v24 = vpack.c.bf16 %v2689_v27, %v2688_v26  ;;  %v2693_v26 = vld [vmem:[#allocation2 + $0xf9] sm:$0xff] }
 0x177   : > { %v13830_v45 = vpop.f32.mrf.mxu0  ;;  %14117 = vmatmul.mubr.bf16.gmra.mxu0 %v3017_v49  ;;  %v16816_v41 = vadd.f32 %v1295_v8, %v1022_v54  ;;  %v1043_v4 = vadd.f32 %v13782_v42, %v16744_v60  ;;  %14072 = vmatprep.mubr.bf16.mxu1 %v2712_v61  ;;  %v3020_v49 = vpack.c.bf16 %v2995_v32, %v2994_v40  ;;  %v2998_v27 = vld [vmem:[#allocation2 + $0xf2] sm:$0xff] }
 0x178   : > { %14120 = vmatprep.mubr.bf16.mxu0 %v3018_v21  ;;  %v1034_v7 = vpop.f32.mrf.mxu1 }
 0x179   : > { %v1308_v56 = vpop.f32.mrf.mxu0  ;;  %v16819_v35 = vadd.f32 %v13830_v45, %v1043_v4  ;;  %v1035_v20 = vadd.f32 %v1034_v7, %v16752_v17  ;;  %v2691_v17 = vld [vmem:[#allocation2 + $0xe1] sm:$0xff] }
 0x17a   : > { %v13783_v38 = vpop.f32.mrf.mxu1 }
 0x17b   : > { %v13831_v39 = vpop.f32.mrf.mxu0  ;;  %v16822_v15 = vadd.f32 %v1308_v56, %v1035_v20  ;;  %v1046_v16 = vadd.f32 %v13783_v38, %v16756_v19  ;;  %v2996_v19 = vld [vmem:[#allocation2 + $0xda] sm:$0xff]  ;;  %v2715_v56 = vpack.c.bf16 %v2691_v17, %v2690_v22 }
 0x17c   : > { %v1037_v53 = vpop.f32.mrf.mxu1  ;;  %v3021_v20 = vpack.c.bf16 %v2997_v2, %v2996_v19  ;;  %v2696_v17 = vld [vmem:[#allocation2 + $0x121] sm:$0xff]  ;;  %v2697_v2 = vld [vmem:[#allocation2 + $0x129] sm:$0xff] }
 0x17d   : > { %v1311_v60 = vpop.f32.mrf.mxu0  ;;  %v16825_v61 = vadd.f32 %v13831_v39, %v1046_v16  ;;  %v1038_v21 = vadd.f32 %v1037_v53, %v16760_v28  ;;  %v2999_v28 = vld [vmem:[#allocation2 + $0xfa] sm:$0xff]  ;;  %v2716_v39 = vpack.c.bf16 %v2693_v26, %v2692_v29  ;;  %v3002_v29 = vld [vmem:[#allocation2 + $0x122] sm:$0xff] }
 0x17e   : > { %v13786_v8 = vpop.f32.mrf.mxu1  ;;  %14073 = vmatmul.mubr.bf16.gmra.mxu1 %v2713_v46  ;;  %v3022_v46 = vpack.c.bf16 %v2999_v28, %v2998_v27 }
 0x17f   : > { %v13834_v54 = vpop.f32.mrf.mxu0  ;;  %14121 = vmatmul.mubr.bf16.gmra.mxu0 %v3019_v47  ;;  %v16828_v58 = vadd.f32 %v1311_v60, %v1038_v21  ;;  %v1059_v62 = vadd.f32 %v13786_v8, %v16764_v36  ;;  %14076 = vmatprep.mubr.bf16.mxu1 %v2714_v24  ;;  %v2695_v21 = vld [vmem:[#allocation2 + $0x111] sm:$0xff] }
 0x180   : > { %14124 = vmatprep.mubr.bf16.mxu0 %v3020_v49  ;;  %v1050_v42 = vpop.f32.mrf.mxu1 }
 0x181   : > { %v1324_v45 = vpop.f32.mrf.mxu0  ;;  %v16831_v40 = vadd.f32 %v13834_v54, %v1059_v62  ;;  %v1051_v32 = vadd.f32 %v1050_v42, %v16772_v51  ;;  %v2694_v51 = vld [vmem:[#allocation2 + $0x109] sm:$0xff]  ;;  %v3001_v54 = vld [vmem:[#allocation2 + $0x112] sm:$0xff] }
 0x182   : > { %v13787_v4 = vpop.f32.mrf.mxu1  ;;  %v2717_v28 = vpack.c.bf16 %v2695_v21, %v2694_v51  ;;  %v3004_v21 = vld [vmem:[#allocation2 + $0x13a] sm:$0xff] }
 0x183   : > { %v13835_v7 = vpop.f32.mrf.mxu0  ;;  %v16834_v38 = vadd.f32 %v1324_v45, %v1051_v32  ;;  %v1062_v36 = vadd.f32 %v13787_v4, %v16776_v3  ;;  %v3000_v3 = vld [vmem:[#allocation2 + $0x10a] sm:$0xff] }
 0x184   : > { %v1053_v47 = vpop.f32.mrf.mxu1  ;;  %v3023_v32 = vpack.c.bf16 %v3001_v54, %v3000_v3  ;;  %v2700_v3 = vld [vmem:[#allocation2 + $0x151] sm:$0xff] }
 0x185   : > { %v1327_v16 = vpop.f32.mrf.mxu0  ;;  %v16837_v24 = vadd.f32 %v13835_v7, %v1062_v36  ;;  %v1054_v49 = vadd.f32 %v1053_v47, %v16784_v43  ;;  %v3003_v43 = vld [vmem:[#allocation2 + $0x12a] sm:$0xff]  ;;  %v2718_v7 = vpack.c.bf16 %v2697_v2, %v2696_v17 }
 0x186   : > { %v13790_v53 = vpop.f32.mrf.mxu1  ;;  %14077 = vmatmul.mubr.bf16.gmra.mxu1 %v2715_v56  ;;  %v3024_v56 = vpack.c.bf16 %v3003_v43, %v3002_v29 }
 0x187   : > { %v13838_v60 = vpop.f32.mrf.mxu0  ;;  %14125 = vmatmul.mubr.bf16.gmra.mxu0 %v3021_v20  ;;  %v16840_v22 = vadd.f32 %v1327_v16, %v1054_v49  ;;  %v1075_v8 = vadd.f32 %v13790_v53, %v16788_v55  ;;  %14080 = vmatprep.mubr.bf16.mxu1 %v2716_v39  ;;  %v15660_v20 = vld [vmem:[#allocation9 + $0x78] sm:$0xff]  }
 0x188   : > { %14128 = vmatprep.mubr.bf16.mxu0 %v3022_v46  ;;  %v1066_v62 = vpop.f32.mrf.mxu1  ;;  %14144 = vmatprep.subr.bf16.mxu1 %v15660_v20  ;;  %v15661_v16 = vld [vmem:[#allocation9 + $0x38] sm:$0xff]  }
 0x189   : > { %v1340_v19 = vpop.f32.mrf.mxu0  ;;  %v16843_v42 = vadd.f32 %v13838_v60, %v1075_v8  ;;  %v1067_v45 = vadd.f32 %v1066_v62, %v16794_v5  ;;  %v2698_v53 = vld [vmem:[#allocation2 + $0x139] sm:$0xff]  ;;  %v2699_v60 = vld [vmem:[#allocation2 + $0x141] sm:$0xff]  ;;  %14145 = vmatpush3.bf16.msra.mxu1 %v15660_v20  ;;  %14192 = vmatprep.subr.bf16.mxu0 %v15661_v16 }
 0x18a   : > { %v13791_v26 = vpop.f32.mrf.mxu1  ;;  %v3005_v8 = vld [vmem:[#allocation2 + $0x142] sm:$0xff]  ;;  %v3006_v62 = vld [vmem:[#allocation2 + $0x152] sm:$0xff]  ;;  %14193 = vmatpush3.bf16.msra.mxu0 %v15661_v16 }
 0x18b   : > { %v13839_v27 = vpop.f32.mrf.mxu0  ;;  %v16846_v4 = vadd.f32 %v1340_v19, %v1067_v45  ;;  %v1078_v55 = vadd.f32 %v13791_v26, %v16798_v44  ;;  %v3007_v19 = vld [vmem:[#allocation2 + $0x15a] sm:$0xff]  ;;  %v3025_v26 = vpack.c.bf16 %v3005_v8, %v3004_v21  ;;  %v2702_v16 = vld [vmem:[#allocation2 + $0x169] sm:$0xff] }
 0x18c   : > { %v1069_v36 = vpop.f32.mrf.mxu1 }
 0x18d   : > { %v1343_v39 = vpop.f32.mrf.mxu0  ;;  %v16849_v46 = vadd.f32 %v13839_v27, %v1078_v55  ;;  %v1070_v47 = vadd.f32 %v1069_v36, %v16802_v6  ;;  %v2701_v6 = vld [vmem:[#allocation2 + $0x159] sm:$0xff]  ;;  %v3026_v55 = vpack.c.bf16 %v3007_v19, %v3006_v62  ;;  %v15664_v19 = vld [vmem:[#allocation9 + $0x68] sm:$0xff]  }
 0x18e   : > { %v13794_v5 = vpop.f32.mrf.mxu1  ;;  %14081 = vmatmul.mubr.bf16.gmra.mxu1 %v2717_v28 }
 0x18f   : > { %v13842_v49 = vpop.f32.mrf.mxu0  ;;  %14129 = vmatmul.mubr.bf16.gmra.mxu0 %v3023_v32  ;;  %v16852_v51 = vadd.f32 %v1343_v39, %v1070_v47  ;;  %v1091_v44 = vadd.f32 %v13794_v5, %v16726_v9  ;;  %14084 = vmatprep.mubr.bf16.mxu1 %v2718_v7  ;;  %v2719_v9 = vpack.c.bf16 %v2699_v60, %v2698_v53  ;;  %v15662_v7 = vld [vmem:[#allocation9 + $0x70] sm:$0xff]  }
 0x190   : > { %14132 = vmatprep.mubr.bf16.mxu0 %v3024_v56  ;;  %v1082_v54 = vpop.f32.mrf.mxu1  ;;  %v2720_v32 = vpack.c.bf16 %v2701_v6, %v2700_v3  ;;  %14146 = vmatprep.subr.bf16.mxu1 %v15662_v7  ;;  %v3009_v53 = vld [vmem:[#allocation2 + $0x172] sm:$0xff] }
 0x191   : > { %v1356_v17 = vpop.f32.mrf.mxu0  ;;  %v16855_v2 = vadd.f32 %v13842_v49, %v1091_v44  ;;  %v1083_v29 = vadd.f32 %v1082_v54, %v16734_v30  ;;  %v15663_v30 = vld [vmem:[#allocation9 + $0x30] sm:$0xff]   ;;  %14147 = vmatpush3.bf16.msra.mxu1 %v15662_v7  ;;  %v3013_v7 = vld [vmem:[#allocation2 + $0x1a2] sm:$0xff] }
 0x192   : > { %v13795_v43 = vpop.f32.mrf.mxu1  ;;  %v3008_v49 = vld [vmem:[#allocation2 + $0x16a] sm:$0xff]  ;;  %14194 = vmatprep.subr.bf16.mxu0 %v15663_v30  ;;  %14148 = vmatprep.subr.bf16.mxu1 %v15664_v19 }
 0x193   : > { %v13843_v45 = vpop.f32.mrf.mxu0  ;;  %v16858_v27 = vadd.f32 %v1356_v17, %v1083_v29  ;;  %v1094_v28 = vadd.f32 %v13795_v43, %v16738_v33  ;;  %v2703_v33 = vld [vmem:[#allocation2 + $0x171] sm:$0xff]  ;;  %14195 = vmatpush3.bf16.msra.mxu0 %v15663_v30  ;;  %v3027_v6 = vpack.c.bf16 %v3009_v53, %v3008_v49 }
 0x194   : > { %v16861_v56 = vpop.f32.mrf.mxu1  ;;  %v2721_v17 = vpack.c.bf16 %v2703_v33, %v2702_v16 }
 0x195   : > { %v16863_v20 = vpop.f32.mrf.mxu0  ;;  %v16865_v36 = vadd.f32 %v13843_v45, %v1094_v28  ;;  %v2706_v28 = vld [vmem:[#allocation2 + $0x199] sm:$0xff]  ;;  %14149 = vmatpush3.bf16.msra.mxu1 %v15664_v19 }
 0x196   : > { %v13798_v39 = vpop.f32.mrf.mxu1  ;;  %14085 = vmatmul.mubr.bf16.gmra.mxu1 %v2719_v9  ;;  %v15665_v9 = vld [vmem:[#allocation9 + $0x28] sm:$0xff]  }
 0x197   : > { %v13846_v47 = vpop.f32.mrf.mxu0  ;;  %14133 = vmatmul.mubr.bf16.gmra.mxu0 %v3025_v26  ;;  %v1107_v5 = vadd.f32 %v13798_v39, %v16746_v63  ;;  %14088 = vmatprep.mubr.bf16.mxu1 %v2720_v32 }
 0x198   : > { %14136 = vmatprep.mubr.bf16.mxu0 %v3026_v55  ;;  %v1098_v60 = vpop.f32.mrf.mxu1  ;;  %v3012_v55 = vld [vmem:[#allocation2 + $0x19a] sm:$0xff]  ;;  %14196 = vmatprep.subr.bf16.mxu0 %v15665_v9 }
 0x199   : > { %v1372_v44 = vpop.f32.mrf.mxu0  ;;  %v16868_v21 = vadd.f32 %v13846_v47, %v1107_v5  ;;  %v1099_v8 = vadd.f32 %v1098_v60, %v16754_v18  ;;  %14197 = vmatpush3.bf16.msra.mxu0 %v15665_v9 }
 0x19a   : > { %v13799_v3 = vpop.f32.mrf.mxu1 }
 0x19b   : > { %v13847_v54 = vpop.f32.mrf.mxu0  ;;  %v16871_v62 = vadd.f32 %v1372_v44, %v1099_v8  ;;  %v1110_v63 = vadd.f32 %v13799_v3, %v16758_v23  ;;  %v2707_v23 = vld [vmem:[#allocation2 + $0x1a1] sm:$0xff] }
 0x19c   : > { %v16874_v29 = vpop.f32.mrf.mxu1  ;;  %v2723_v49 = vpack.c.bf16 %v2707_v23, %v2706_v28  ;;  %v15667_v3 = vld [vmem:[#allocation9 + $0x20] sm:$0xff]  }
 0x19d   : > { %v16876_v43 = vpop.f32.mrf.mxu0  ;;  %v16878_v45 = vadd.f32 %v13847_v54, %v1110_v63  ;;  %14198 = vmatprep.subr.bf16.mxu0 %v15667_v3 }
 0x19e   : > { %v13802_v26 = vpop.f32.mrf.mxu1  ;;  %14089 = vmatmul.mubr.bf16.gmra.mxu1 %v2721_v17  ;;  %14199 = vmatpush3.bf16.msra.mxu0 %v15667_v3  ;;  %v15670_v3 = vld [vmem:[#allocation9 + $0x50] sm:$0xff]  }
 0x19f   : > { %v13850_v18 = vpop.f32.mrf.mxu0  ;;  %14137 = vmatmul.mubr.bf16.gmra.mxu0 %v3027_v6  ;;  %v1123_v32 = vadd.f32 %v13802_v26, %v16766_v37  ;;  %14092 = vmatprep.mubr.bf16.mxu1 %v16620_v31  ;;  %v3029_v37 = vpack.c.bf16 %v3013_v7, %v3012_v55  ;;  %v15669_v7 = vld [vmem:[#allocation9 + $0x18] sm:$0xff]  }
 0x1a0   : > { %14140 = vmatprep.mubr.bf16.mxu0 %v16780_v14  ;;  %v1114_v30 = vpop.f32.mrf.mxu1  ;;  %v15666_v14 = vld [vmem:[#allocation9 + $0x60] sm:$0xff]   ;;  %14200 = vmatprep.subr.bf16.mxu0 %v15669_v7 }
 0x1a1   : > { %v1388_v39 = vpop.f32.mrf.mxu0  ;;  %v16883_v47 = vadd.f32 %v13850_v18, %v1123_v32  ;;  %v1115_v16 = vadd.f32 %v1114_v30, %v16774_v0  ;;  %14150 = vmatprep.subr.bf16.mxu1 %v15666_v14  ;;  %v15668_v32 = vld [vmem:[#allocation9 + $0x58] sm:$0xff]  }
 0x1a2   : > { %v13803_v5 = vpop.f32.mrf.mxu1  ;;  %14151 = vmatpush3.bf16.msra.mxu1 %v15666_v14  ;;  %14201 = vmatpush3.bf16.msra.mxu0 %v15669_v7 }
 0x1a3   : > { %v13851_v33 = vpop.f32.mrf.mxu0  ;;  %v16886_v53 = vadd.f32 %v1388_v39, %v1115_v16  ;;  %v1126_v31 = vadd.f32 %v13803_v5, %v16778_v13  ;;  %14152 = vmatprep.subr.bf16.mxu1 %v15668_v32 }
 0x1a4   : > { %v16889_v60 = vpop.f32.mrf.mxu1 }
 0x1a5   : > { %v16891_v44 = vpop.f32.mrf.mxu0  ;;  %v16893_v8 = vadd.f32 %v13851_v33, %v1126_v31 }
 0x1a6   : > { %v13806_v54 = vpop.f32.mrf.mxu1  ;;  %14093 = vmatmul.mubr.bf16.gmra.mxu1 %v2723_v49 }
 0x1a7   : > { %v13854_v0 = vpop.f32.mrf.mxu0  ;;  %14141 = vmatmul.mubr.bf16.gmra.mxu0 %v3029_v37  ;;  %v1139_v17 = vadd.f32 %v13806_v54, %v16790_v57  ;;  %14153 = vmatpush3.bf16.msra.mxu1 %v15668_v32 }
 0x1a8   : > { %v1130_v6 = vpop.f32.mrf.mxu1  ;;  %14154 = vmatprep.subr.bf16.mxu1 %v15670_v3  ;;  %14208 = vmatprep.mubr.bf16.mxu0 %v16782_v10 }
 0x1a9   : > { %v1404_v63 = vpop.f32.mrf.mxu0  ;;  %v16896_v13 = vadd.f32 %v13854_v0, %v1139_v17  ;;  %v1131_v19 = vadd.f32 %v1130_v6, %v16796_v12 }
 0x1aa   : > { %v13807_v9 = vpop.f32.mrf.mxu1 }
 0x1ab   : > { %v13855_v26 = vpop.f32.mrf.mxu0  ;;  %v16899_v18 = vadd.f32 %v1404_v63, %v1131_v19  ;;  %v1142_v28 = vadd.f32 %v13807_v9, %v16800_v50  ;;  %14155 = vmatpush3.bf16.msra.mxu1 %v15670_v3  ;;  %v15672_v9 = vld [vmem:[#allocation9 + $0x48] sm:$0xff]  }
 0x1ac   : > { %v16902_v23 = vpop.f32.mrf.mxu1  ;;  %14156 = vmatprep.subr.bf16.mxu1 %v15672_v9 }
 0x1ad   : > { %v16904_v55 = vpop.f32.mrf.mxu0  ;;  %v16906_v57 = vadd.f32 %v13855_v26, %v1142_v28 }
 0x1ae   : > { %v13874_v30 = vpop.f32.mrf.mxu1 }
 0x1af   : > { %v13922_v39 = vpop.f32.mrf.mxu0  ;;  %v1727_v12 = vadd.f32 %v13874_v30, %v16807_v48  ;;  %14157 = vmatpush3.bf16.msra.mxu1 %v15672_v9 }
 0x1b0   : > { %v1598_v16 = vpop.f32.mrf.mxu1 }
 0x1b1   : > { %v1904_v5 = vpop.f32.mrf.mxu0  ;;  %v16909_v33 = vadd.f32 %v13922_v39, %v1727_v12  ;;  %v1725_v50 = vadd.f32 %v1598_v16, %v16810_v52  ;;  %v15671_v39 = vld [vmem:[#allocation9 + $0x10] sm:$0xff]  }
 0x1b2   : > { %v13875_v49 = vpop.f32.mrf.mxu1  ;;  %14202 = vmatprep.subr.bf16.mxu0 %v15671_v39 }
 0x1b3   : > { %v13923_v37 = vpop.f32.mrf.mxu0  ;;  %v16912_v31 = vadd.f32 %v1904_v5, %v1725_v50  ;;  %v1728_v14 = vadd.f32 %v13875_v49, %v16813_v1  ;;  %14203 = vmatpush3.bf16.msra.mxu0 %v15671_v39 }
 0x1b4   : > { %v16915_v54 = vpop.f32.mrf.mxu1 }
 0x1b5   : > { %v16917_v0 = vpop.f32.mrf.mxu0  ;;  %v16919_v48 = vadd.f32 %v13923_v37, %v1728_v14  ;;  %v3496_v37 = vld [vmem:[#allocation3 + $0x9] sm:$0xff] }
 0x1b6   : > { %v13878_v17 = vpop.f32.mrf.mxu1 }
 0x1b7   : > { %v13926_v6 = vpop.f32.mrf.mxu0  ;;  %v1731_v63 = vadd.f32 %v13878_v17, %v16819_v35  ;;  %v15674_v35 = vld [vmem:[#allocation9 + $0x40] sm:$0xff]  }
 0x1b8   : > { %v1614_v52 = vpop.f32.mrf.mxu1  ;;  %14158 = vmatprep.subr.bf16.mxu1 %v15674_v35 }
 0x1b9   : > { %v1920_v19 = vpop.f32.mrf.mxu0  ;;  %v16922_v26 = vadd.f32 %v13926_v6, %v1731_v63  ;;  %v1729_v1 = vadd.f32 %v1614_v52, %v16822_v15  ;;  %v3495_v15 = vld [vmem:[#allocation3 + $0x1] sm:$0xff]  ;;  %14159 = vmatpush3.bf16.msra.mxu1 %v15674_v35  ;;  %v15673_v6 = vld [vmem:[#allocation9 + $0x8] sm:$0xff]  }
 0x1ba   : > { %v13879_v28 = vpop.f32.mrf.mxu1  ;;  %14204 = vmatprep.subr.bf16.mxu0 %v15673_v6 }
 0x1bb   : > { %v13927_v32 = vpop.f32.mrf.mxu0  ;;  %v16925_v7 = vadd.f32 %v1920_v19, %v1729_v1  ;;  %v1732_v30 = vadd.f32 %v13879_v28, %v16825_v61  ;;  %v3527_v61 = vpack.c.bf16 %v3496_v37, %v3495_v15  ;;  %14205 = vmatpush3.bf16.msra.mxu0 %v15673_v6 }
 0x1bc   : > { %v16928_v12 = vpop.f32.mrf.mxu1 }
 0x1bd   : > { %v16930_v16 = vpop.f32.mrf.mxu0  ;;  %v16932_v5 = vadd.f32 %v13927_v32, %v1732_v30  ;;  %14160 = vmatprep.mubr.bf16.mxu1 %v3527_v61  ;;  %v15675_v30 = vld [vmem:[#allocation9] sm:$0xff]  }
 0x1be   : > { %v13882_v50 = vpop.f32.mrf.mxu1  ;;  %14206 = vmatprep.subr.bf16.mxu0 %v15675_v30 }
 0x1bf   : > { %v13930_v49 = vpop.f32.mrf.mxu0  ;;  %v1735_v14 = vadd.f32 %v13882_v50, %v16831_v40  ;;  %14207 = vmatpush3.bf16.msra.mxu0 %v15675_v30 }
 0x1c0   : > { %v1630_v3 = vpop.f32.mrf.mxu1 }
 0x1c1   : > { %v1936_v17 = vpop.f32.mrf.mxu0  ;;  %v16935_v63 = vadd.f32 %v13930_v49, %v1735_v14  ;;  %v1733_v52 = vadd.f32 %v1630_v3, %v16834_v38 }
 0x1c2   : > { %v13883_v19 = vpop.f32.mrf.mxu1 }
 0x1c3   : > { %v13931_v9 = vpop.f32.mrf.mxu0  ;;  %v16938_v1 = vadd.f32 %v1936_v17, %v1733_v52  ;;  %v1736_v28 = vadd.f32 %v13883_v19, %v16837_v24 }
 0x1c4   : > { %v16941_v32 = vpop.f32.mrf.mxu1 }
 0x1c5   : > { %20470 = vst [vmem:[#allocation18_spill] sm:$0xff] %v16938_v1  ;;  %v16943_v40 = vpop.f32.mrf.mxu0  ;;  %v16945_v39 = vadd.f32 %v13931_v9, %v1736_v28 }
 0x1c6   : > { %v13886_v35 = vpop.f32.mrf.mxu1 }
 0x1c7   : > { %20471 = vst [vmem:[#allocation19_spill] sm:$0xff] %v16945_v39  ;;  %v13934_v50 = vpop.f32.mrf.mxu0  ;;  %v1739_v38 = vadd.f32 %v13886_v35, %v16843_v42 }
 0x1c8   : > { %v1646_v49 = vpop.f32.mrf.mxu1 }
 0x1c9   : > { %v1952_v15 = vpop.f32.mrf.mxu0  ;;  %v16948_v37 = vadd.f32 %v13934_v50, %v1739_v38  ;;  %v1737_v24 = vadd.f32 %v1646_v49, %v16846_v4 }
 0x1ca   : > { %v13887_v14 = vpop.f32.mrf.mxu1 }
 0x1cb   : > { %20472 = vst [vmem:[#allocation20_spill] sm:$0xff] %v16948_v37  ;;  %v13935_v61 = vpop.f32.mrf.mxu0  ;;  %v16952_v3 = vadd.f32 %v1952_v15, %v1737_v24  ;;  %v1740_v17 = vadd.f32 %v13887_v14, %v16849_v46  ;;  %v16968_v15 = vld [vmem:[#allocation9 + $0xb8] sm:$0xff]  }
 0x1cc   : > { %v16955_v6 = vpop.f32.mrf.mxu1  ;;  %20477 = vst [vmem:[#allocation25_spill] sm:$0xff] %v16968_v15  ;;  %14240 = vmatprep.subr.bf16.mxu1 %v16968_v15 }
 0x1cd   : > { %20473 = vst [vmem:[#allocation21_spill] sm:$0xff] %v16952_v3  ;;  %v16957_v52 = vpop.f32.mrf.mxu0  ;;  %v16959_v42 = vadd.f32 %v13935_v61, %v1740_v17 }
 0x1ce   : > { %v13890_v19 = vpop.f32.mrf.mxu1 }
 0x1cf   : > { %20474 = vst [vmem:[#allocation22_spill] sm:$0xff] %v16959_v42  ;;  %v13938_v9 = vpop.f32.mrf.mxu0  ;;  %v1743_v28 = vadd.f32 %v13890_v19, %v16855_v2  ;;  %v16977_v19 = vld [vmem:[#allocation9 + $0xf8] sm:$0xff]  }
 0x1d0   : > { %v1662_v30 = vpop.f32.mrf.mxu1  ;;  %20479 = vst [vmem:[#allocation27_spill] sm:$0xff] %v16977_v19  ;;  %14288 = vmatprep.subr.bf16.mxu0 %v16977_v19 }
 0x1d1   : > { %v1968_v4 = vpop.f32.mrf.mxu0  ;;  %v16962_v35 = vadd.f32 %v13938_v9, %v1743_v28  ;;  %v1741_v10 = vadd.f32 %v1662_v30, %v16858_v27 }
 0x1d2   : > { %v13891_v50 = vpop.f32.mrf.mxu1 }
 0x1d3   : > { %20475 = vst [vmem:[#allocation23_spill] sm:$0xff] %v16962_v35  ;;  %v13939_v38 = vpop.f32.mrf.mxu0  ;;  %v16965_v49 = vadd.f32 %v1968_v4, %v1741_v10  ;;  %v1744_v46 = vadd.f32 %v13891_v50, %v16865_v36 }
 0x1d4   : > { %v16970_v24 = vpop.f32.mrf.mxu1 }
 0x1d5   : > { %20476 = vst [vmem:[#allocation24_spill] sm:$0xff] %v16965_v49  ;;  %v16972_v14 = vpop.f32.mrf.mxu0  ;;  %v16974_v61 = vadd.f32 %v13939_v38, %v1744_v46 }
 0x1d6   : > { %v13894_v2 = vpop.f32.mrf.mxu1 }
 0x1d7   : > { %20478 = vst [vmem:[#allocation26_spill] sm:$0xff] %v16974_v61  ;;  %v13942_v17 = vpop.f32.mrf.mxu0  ;;  %v1747_v27 = vadd.f32 %v13894_v2, %v16868_v21 }
 0x1d8   : > { %v1678_v9 = vpop.f32.mrf.mxu1 }
 0x1d9   : > { %v1984_v28 = vpop.f32.mrf.mxu0  ;;  %v16981_v36 = vadd.f32 %v13942_v17, %v1747_v27  ;;  %v1745_v30 = vadd.f32 %v1678_v9, %v16871_v62 }
 0x1da   : > { %v13895_v4 = vpop.f32.mrf.mxu1 }
 0x1db   : > { %20480 = vst [vmem:[#allocation28_spill] sm:$0xff] %v16981_v36  ;;  %v13943_v10 = vpop.f32.mrf.mxu0  ;;  %v16984_v50 = vadd.f32 %v1984_v28, %v1745_v30  ;;  %v1748_v38 = vadd.f32 %v13895_v4, %v16878_v45 }
 0x1dc   : > { %v16987_v46 = vpop.f32.mrf.mxu1 }
 0x1dd   : > { %20481 = vst [vmem:[#allocation29_spill] sm:$0xff] %v16984_v50  ;;  %v16989_v61 = vpop.f32.mrf.mxu0  ;;  %v16991_v15 = vadd.f32 %v13943_v10, %v1748_v38 }
 0x1de   : > { %v13898_v21 = vpop.f32.mrf.mxu1 }
 0x1df   : > { %20482 = vst [vmem:[#allocation30_spill] sm:$0xff] %v16991_v15  ;;  %v13946_v2 = vpop.f32.mrf.mxu0  ;;  %v1751_v19 = vadd.f32 %v13898_v21, %v16883_v47 }
 0x1e0   : > { %v1694_v17 = vpop.f32.mrf.mxu1 }
 0x1e1   : > { %v2000_v27 = vpop.f32.mrf.mxu0  ;;  %v16994_v36 = vadd.f32 %v13946_v2, %v1751_v19  ;;  %v1749_v62 = vadd.f32 %v1694_v17, %v16886_v53 }
 0x1e2   : > { %v13899_v9 = vpop.f32.mrf.mxu1 }
 0x1e3   : > { %20483 = vst [vmem:[#allocation31_spill] sm:$0xff] %v16994_v36  ;;  %v13947_v28 = vpop.f32.mrf.mxu0  ;;  %v16997_v30 = vadd.f32 %v2000_v27, %v1749_v62  ;;  %v1752_v45 = vadd.f32 %v13899_v9, %v16893_v8 }
 0x1e4   : > { %v17000_v4 = vpop.f32.mrf.mxu1 }
 0x1e5   : > { %20484 = vst [vmem:[#allocation32_spill] sm:$0xff] %v16997_v30  ;;  %v17002_v10 = vpop.f32.mrf.mxu0  ;;  %v17004_v38 = vadd.f32 %v13947_v28, %v1752_v45 }
 0x1e6   : > { %v13902_v15 = vpop.f32.mrf.mxu1 }
 0x1e7   : > { %20485 = vst [vmem:[#allocation33_spill] sm:$0xff] %v17004_v38  ;;  %v13950_v47 = vpop.f32.mrf.mxu0  ;;  %v1755_v21 = vadd.f32 %v13902_v15, %v16896_v13 }
 0x1e8   : > { %v1710_v19 = vpop.f32.mrf.mxu1 }
 0x1e9   : > { %v2016_v2 = vpop.f32.mrf.mxu0  ;;  %v17007_v36 = vadd.f32 %v13950_v47, %v1755_v21  ;;  %v1753_v53 = vadd.f32 %v1710_v19, %v16899_v18 }
 0x1ea   : > { %v13903_v17 = vpop.f32.mrf.mxu1 }
 0x1eb   : > { %20486 = vst [vmem:[#allocation34_spill] sm:$0xff] %v17007_v36  ;;  %v13951_v27 = vpop.f32.mrf.mxu0  ;;  %v17010_v62 = vadd.f32 %v2016_v2, %v1753_v53  ;;  %v1756_v8 = vadd.f32 %v13903_v17, %v16906_v57 }
 0x1ec   : > { %v17013_v9 = vpop.f32.mrf.mxu1 }
 0x1ed   : > { %20487 = vst [vmem:[#allocation35_spill] sm:$0xff] %v17010_v62  ;;  %v17015_v28 = vpop.f32.mrf.mxu0  ;;  %v17017_v45 = vadd.f32 %v13951_v27, %v1756_v8 }
 0x1ee   : > { %v17019_v38 = vpop.f32.mrf.mxu1 }
 0x1ef   : > { %20488 = vst [vmem:[#allocation36_spill] sm:$0xff] %v17017_v45  ;;  %v17021_v13 = vpop.f32.mrf.mxu0 }
 0x1f0   : > { %v17023_v15 = vpop.f32.mrf.mxu1 }
 0x1f1   : > { %v17025_v47 = vpop.f32.mrf.mxu0 }
 0x1f2   : > { %v17027_v18 = vpop.f32.mrf.mxu1 }
 0x1f3   : > { %v17029_v21 = vpop.f32.mrf.mxu0 }
 0x1f4   : > { %v17031_v19 = vpop.f32.mrf.mxu1 }
 0x1f5   : > { %v17033_v57 = vpop.f32.mrf.mxu0 }
 0x1f6   : > { %v17035_v2 = vpop.f32.mrf.mxu1 }
 0x1f7   : > { %v17037_v53 = vpop.f32.mrf.mxu0 }
 0x1f8   : > { %v17039_v17 = vpop.f32.mrf.mxu1 }
 0x1f9   : > { %v17041_v27 = vpop.f32.mrf.mxu0 }
 0x1fa   : > { %v17043_v8 = vpop.f32.mrf.mxu1 }
 0x1fb   : > { %v17045_v45 = vpop.f32.mrf.mxu0 }
 0x1fc   : > { %20489 = vst [vmem:[#allocation37_spill] sm:$0xff] %v17045_v45  ;;  %v17047_v62 = vpop.f32.mrf.mxu1 }
 0x1fd   : > { %v17049_v36 = vpop.f32.mrf.mxu0 }
 0x1fe   : > { %20490 = vst [vmem:[#allocation38_spill] sm:$0xff] %v17049_v36  ;;  %v17051_v30 = vpop.f32.mrf.mxu1 }
 0x1ff   : > { %20491 = vst [vmem:[#allocation39_spill] sm:$0xff] %v17051_v30  ;;  %v17053_v50 = vpop.f32.mrf.mxu0 }
 0x200   : > { %20492 = vst [vmem:[#allocation40_spill] sm:$0xff] %v17053_v50  ;;  %v17055_v49 = vpop.f32.mrf.mxu1 }
 0x201   : > { %20493 = vst [vmem:[#allocation41_spill] sm:$0xff] %v17055_v49  ;;  %v17057_v35 = vpop.f32.mrf.mxu0 }
 0x202   : > { %20494 = vst [vmem:[#allocation42_spill] sm:$0xff] %v17057_v35  ;;  %v17059_v42 = vpop.f32.mrf.mxu1 }
 0x203   : > { %20495 = vst [vmem:[#allocation43_spill] sm:$0xff] %v17059_v42  ;;  %v17061_v3 = vpop.f32.mrf.mxu0 }
 0x204   : > { %20496 = vst [vmem:[#allocation44_spill] sm:$0xff] %v17061_v3  ;;  %v17063_v37 = vpop.f32.mrf.mxu1 }
 0x205   : > { %20497 = vst [vmem:[#allocation45_spill] sm:$0xff] %v17063_v37  ;;  %v17065_v39 = vpop.f32.mrf.mxu0 }
 0x206   : > { %20498 = vst [vmem:[#allocation46_spill] sm:$0xff] %v17065_v39  ;;  %v17067_v45 = vpop.f32.mrf.mxu1 }
 0x207   : > { %20499 = vst [vmem:[#allocation47_spill] sm:$0xff] %v17067_v45  ;;  %v17069_v1 = vpop.f32.mrf.mxu0 }
 0x208   : > { %20500 = vst [vmem:[#allocation48_spill] sm:$0xff] %v17069_v1  ;;  %v17071_v36 = vpop.f32.mrf.mxu1 }
 0x209   : > { %20501 = vst [vmem:[#allocation49_spill] sm:$0xff] %v17071_v36  ;;  %v17073_v30 = vpop.f32.mrf.mxu0 }
 0x20a   : > { %20502 = vst [vmem:[#allocation50_spill] sm:$0xff] %v17073_v30  ;;  %v17075_v50 = vpop.f32.mrf.mxu1 }
 0x20b   : > { %20503 = vst [vmem:[#allocation51_spill] sm:$0xff] %v17075_v50  ;;  %v17077_v49 = vpop.f32.mrf.mxu0 }
 0x20c   : > { %20504 = vst [vmem:[#allocation52_spill] sm:$0xff] %v17077_v49  ;;  %v17079_v35 = vpop.f32.mrf.mxu1 }
 0x20d   : > { %20505 = vst [vmem:[#allocation53_spill] sm:$0xff] %v17079_v35  ;;  %v17081_v42 = vpop.f32.mrf.mxu0 }
 0x20e   : > { %20506 = vst [vmem:[#allocation54_spill] sm:$0xff] %v17081_v42  ;;  %v17083_v3 = vpop.f32.mrf.mxu1 }
 0x20f   : > { %20507 = vst [vmem:[#allocation55_spill] sm:$0xff] %v17083_v3  ;;  %v17085_v37 = vpop.f32.mrf.mxu0 }
 0x210   : > { %20508 = vst [vmem:[#allocation56_spill] sm:$0xff] %v17085_v37  ;;  %v17087_v39 = vpop.f32.mrf.mxu1 }
 0x211   : > { %20509 = vst [vmem:[#allocation57_spill] sm:$0xff] %v17087_v39  ;;  %v17089_v45 = vpop.f32.mrf.mxu0 }
 0x212   : > { %20510 = vst [vmem:[#allocation58_spill] sm:$0xff] %v17089_v45  ;;  %v17091_v1 = vpop.f32.mrf.mxu1 }
 0x213   : > { %20511 = vst [vmem:[#allocation59_spill] sm:$0xff] %v17091_v1  ;;  %v17093_v36 = vpop.f32.mrf.mxu0 }
 0x214   : > { %20512 = vst [vmem:[#allocation60_spill] sm:$0xff] %v17093_v36  ;;  %v17095_v30 = vpop.f32.mrf.mxu1 }
 0x215   : > { %20513 = vst [vmem:[#allocation61_spill] sm:$0xff] %v17095_v30  ;;  %v17097_v50 = vpop.f32.mrf.mxu0 }
 0x216   : > { %20514 = vst [vmem:[#allocation62_spill] sm:$0xff] %v17097_v50  ;;  %v17099_v49 = vpop.f32.mrf.mxu1 }
 0x217   : > { %20515 = vst [vmem:[#allocation63_spill] sm:$0xff] %v17099_v49  ;;  %v17101_v35 = vpop.f32.mrf.mxu0 }
 0x218   : > { %20516 = vst [vmem:[#allocation64_spill] sm:$0xff] %v17101_v35  ;;  %v17103_v42 = vpop.f32.mrf.mxu1 }
 0x219   : > { %20517 = vst [vmem:[#allocation65_spill] sm:$0xff] %v17103_v42  ;;  %v17105_v3 = vpop.f32.mrf.mxu0 }
 0x21a   : > { %20518 = vst [vmem:[#allocation66_spill] sm:$0xff] %v17105_v3  ;;  %v17107_v37 = vpop.f32.mrf.mxu1 }
 0x21b   : > { %20519 = vst [vmem:[#allocation67_spill] sm:$0xff] %v17107_v37  ;;  %v17109_v39 = vpop.f32.mrf.mxu0 }
 0x21c   : > { %20520 = vst [vmem:[#allocation68_spill] sm:$0xff] %v17109_v39  ;;  %v17111_v45 = vpop.f32.mrf.mxu1 }
 0x21d   : > { %20521 = vst [vmem:[#allocation69_spill] sm:$0xff] %v17111_v45  ;;  %v17113_v1 = vpop.f32.mrf.mxu0 }
 0x21e   : > { %20522 = vst [vmem:[#allocation70_spill] sm:$0xff] %v17113_v1  ;;  %v17115_v36 = vpop.f32.mrf.mxu1  ;;  %v1086_v1 = vadd.f32 %v16861_v56, %v16742_v59 }
 0x21f   : > { %v17117_v30 = vpop.f32.mrf.mxu0 }
 0x220   : > { %v17119_v50 = vpop.f32.mrf.mxu1 }
 0x221   : > { %20523 = vst [vmem:[#allocation71_spill] sm:$0xff] %v17119_v50  ;;  %v17121_v49 = vpop.f32.mrf.mxu0  ;;  %v1102_v50 = vadd.f32 %v16874_v29, %v16762_v34  ;;  %v1436_v34 = vadd.f32 %v16863_v20, %v1086_v1  ;;  %v1738_v20 = vadd.f32 %v16955_v6, %v16852_v51 }
 0x222   : > { %20524 = vst [vmem:[#allocation72_spill] sm:$0xff] %v17121_v49  ;;  %v17123_v35 = vpop.f32.mrf.mxu1  ;;  %v1118_v49 = vadd.f32 %v16889_v60, %v16786_v11  ;;  %v2337_v11 = vadd.f32 %v17023_v15, %v16912_v31 }
 0x223   : > { %20525 = vst [vmem:[#allocation73_spill] sm:$0xff] %v17123_v35  ;;  %v17125_v42 = vpop.f32.mrf.mxu0  ;;  %v1440_v29 = vadd.f32 %v16876_v43, %v1102_v50  ;;  %v2340_v43 = vadd.f32 %v17027_v18, %v16919_v48 }
 0x224   : > { %20526 = vst [vmem:[#allocation74_spill] sm:$0xff] %v17125_v42  ;;  %v17127_v3 = vpop.f32.mrf.mxu1  ;;  %v1444_v60 = vadd.f32 %v16891_v44, %v1118_v49  ;;  %v17188_v49 = vld [vmem:[%s20431_s2] ss:$0 sm:$0xff] }
 0x225   : > { %v17129_v37 = vpop.f32.mrf.mxu0 }
 0x226   : > { %20527 = vst [vmem:[#allocation75_spill] sm:$0xff] %v17129_v37  ;;  %v17131_v39 = vpop.f32.mrf.mxu1  ;;  %v1726_v37 = vadd.f32 %v16915_v54, %v16816_v41  ;;  %v1730_v41 = vadd.f32 %v16928_v12, %v16828_v58  ;;  %v1742_v58 = vadd.f32 %v16970_v24, %v1436_v34  ;;  %v1750_v12 = vadd.f32 %v17000_v4, %v1444_v60 }
 0x227   : > { %20528 = vst [vmem:[#allocation76_spill] sm:$0xff] %v17131_v39  ;;  %v17133_v45 = vpop.f32.mrf.mxu0  ;;  %v2339_v39 = vadd.f32 %v17019_v38, %v16909_v33  ;;  %v1734_v33 = vadd.f32 %v16941_v32, %v16840_v22  ;;  %v1746_v22 = vadd.f32 %v16987_v46, %v1440_v29  ;;  %v17191_v46 = vadd.f32 %v16957_v52, %v1738_v20  ;;  %v17208_v52 = vld [vmem:[%s20432_s3] ss:$0 sm:$0xff]  ;;  %v20533_v20 = vld [vmem:[#allocation19_spill] sm:$0xff] }
 0x228   : > { %20529 = vst [vmem:[#allocation77_spill] sm:$0xff] %v17133_v45  ;;  %v17141_v35 = vpop.f32.mrf.mxu1  ;;  %v1134_v45 = vadd.f32 %v16902_v23, %v16804_v25  ;;  %v2032_v54 = vadd.f32 %v16917_v0, %v1726_v37  ;;  %v2644_v0 = vadd.f32 %v17025_v47, %v2337_v11  ;;  %v2647_v4 = vadd.f32 %v17029_v21, %v2340_v43 }
 0x229   : > { %v17143_v42 = vpop.f32.mrf.mxu0  ;;  %v2646_v31 = vadd.f32 %v17021_v13, %v2339_v39  ;;  %v2036_v39 = vadd.f32 %v16930_v16, %v1730_v41  ;;  %v2040_v6 = vadd.f32 %v16943_v40, %v1734_v33  ;;  %v17195_v40 = vadd.f32 %v16972_v14, %v1742_v58  ;;  %v20531_v33 = vld [vmem:[#allocation18_spill] sm:$0xff] }
 0x22a   : > { %v17151_v59 = vpop.f32.mrf.mxu1  ;;  %v1448_v44 = vadd.f32 %v16904_v55, %v1134_v45  ;;  %v2338_v37 = vadd.f32 %v17031_v19, %v2032_v54  ;;  %v2343_v55 = vadd.f32 %v17035_v2, %v16922_v26  ;;  %v17201_v26 = vadd.f32 %v17002_v10, %v1750_v12  ;;  %v20535_v12 = vld [vmem:[#allocation37_spill] sm:$0xff] }
 0x22b   : > { %v17153_v56 = vpop.f32.mrf.mxu0  ;;  %v2341_v45 = vadd.f32 %v17039_v17, %v16925_v7  ;;  %v2344_v7 = vadd.f32 %v17043_v8, %v16932_v5  ;;  %v2342_v19 = vadd.f32 %v17047_v62, %v2036_v39  ;;  %v20534_v5 = vld [vmem:[#allocation43_spill] sm:$0xff] }
 0x22c   : > { %v17164_v25 = vpop.f32.mrf.mxu1  ;;  %v1754_v48 = vadd.f32 %v17013_v9, %v1448_v44  ;;  %v17198_v9 = vadd.f32 %v16989_v61, %v1746_v22  ;;  %v2645_v47 = vadd.f32 %v17033_v57, %v2338_v37  ;;  %v2650_v10 = vadd.f32 %v17037_v53, %v2343_v55  ;;  %v20532_v53 = vld [vmem:[#allocation41_spill] sm:$0xff] }
 0x22d   : > { %v17166_v23 = vpop.f32.mrf.mxu0  ;;  %v2648_v60 = vadd.f32 %v17041_v27, %v2341_v45  ;;  %v2345_v54 = vadd.f32 %v20532_v53, %v20531_v33  ;;  %v2348_v8 = vadd.f32 %v20534_v5, %v20533_v20  ;;  %v20536_v27 = vld [vmem:[#allocation38_spill] sm:$0xff] }
 0x22e   : > { %v14066_v1 = vpop.f32.mrf.mxu1  ;;  %v17213_v21 = vadd.f32 %v17015_v28, %v1754_v48  ;;  %v20530_v28 = vld [vmem:[#allocation39_spill] sm:$0xff] }
 0x22f   : > { %v14114_v32 = vpop.f32.mrf.mxu0  ;;  %v2952_v51 = vadd.f32 %v14066_v1, %v2646_v31  ;;  %v2347_v41 = vadd.f32 %v20530_v28, %v16935_v63  ;;  %v2651_v1 = vadd.f32 %v20535_v12, %v2344_v7 }
 0x230   : > { %v2823_v24 = vpop.f32.mrf.mxu1 }
 0x231   : > { %v3129_v50 = vpop.f32.mrf.mxu0  ;;  %v3258_v16 = vadd.f32 %v14114_v32, %v2952_v51  ;;  %v2950_v38 = vadd.f32 %v2823_v24, %v2644_v0  ;;  %v2649_v32 = vadd.f32 %v20536_v27, %v2342_v19  ;;  %v20537_v0 = vld [vmem:[#allocation45_spill] sm:$0xff]  ;;  %v20541_v19 = vld [vmem:[#allocation46_spill] sm:$0xff] }
 0x232   : > { %v14067_v13 = vpop.f32.mrf.mxu1  ;;  %v2346_v63 = vadd.f32 %v20537_v0, %v2040_v6 }
 0x233   : > { %v14115_v15 = vpop.f32.mrf.mxu0  ;;  %v3296_v14 = vmul.f32 %v17188_v49, %v3258_v16  ;;  %v3256_v18 = vadd.f32 %v3129_v50, %v2950_v38  ;;  %v2953_v61 = vadd.f32 %v14067_v13, %v2647_v4  ;;  %v20538_v4 = vld [vmem:[#allocation40_spill] sm:$0xff]  ;;  %v20539_v38 = vld [vmem:[#allocation42_spill] sm:$0xff] }
 0x234   : > { %v2826_v2 = vpop.f32.mrf.mxu1  ;;  %v2654_v16 = vadd.f32 %v20538_v4, %v2347_v41  ;;  %v2652_v45 = vadd.f32 %v20539_v38, %v2345_v54  ;;  %v20540_v13 = vld [vmem:[#allocation44_spill] sm:$0xff] }
 0x235   : > { %v3132_v17 = vpop.f32.mrf.mxu0  ;;  %v3334_v34 = vadd.f32 %v17208_v52, %v3296_v14  ;;  %v3294_v57 = vmul.f32 %v17188_v49, %v3256_v18  ;;  %v3259_v11 = vadd.f32 %v14115_v15, %v2953_v61  ;;  %v2951_v29 = vadd.f32 %v2826_v2, %v2645_v47 }
 0x236   : > { %v14070_v62 = vpop.f32.mrf.mxu1  ;;  %v2655_v15 = vadd.f32 %v20540_v13, %v2348_v8  ;;  %v2653_v2 = vadd.f32 %v20541_v19, %v2346_v63  ;;  %v20546_v8 = vld [vmem:[#allocation22_spill] sm:$0xff] }
 0x237   : > { %v14118_v31 = vpop.f32.mrf.mxu0  ;;  %v3366_v43 = vmax.f32 %v3334_v34, 0.0  ;;  %v3332_v44 = vadd.f32 %v17208_v52, %v3294_v57  ;;  %v3297_v58 = vmul.f32 %v17188_v49, %v3259_v11  ;;  %v3257_v22 = vadd.f32 %v3132_v17, %v2951_v29  ;;  %v20542_v17 = vld [vmem:[#allocation20_spill] sm:$0xff]  ;;  %v20543_v34 = vld [vmem:[#allocation47_spill] sm:$0xff]  ;;  %v20544_v11 = vld [vmem:[#allocation21_spill] sm:$0xff] }
 0x238   : > { %v2956_v37 = vadd.f32 %v14070_v62, %v2650_v10  ;;  %v2839_v51 = vpop.f32.mrf.mxu1  ;;  %v2351_v57 = vadd.f32 %v20543_v34, %v20542_v17  ;;  %v20545_v29 = vld [vmem:[#allocation49_spill] sm:$0xff]  ;;  %v20547_v62 = vld [vmem:[#allocation51_spill] sm:$0xff]  ;;  %v20555_v17 = vld [vmem:[#allocation52_spill] sm:$0xff] }
 0x239   : > { %v3145_v39 = vpop.f32.mrf.mxu0  ;;  %3399 = vst [vmem:[#allocation3 + $0x31] sm:$0xff] %v3366_v43  ;;  %v3364_v48 = vmax.f32 %v3332_v44, 0.0  ;;  %v3335_v55 = vadd.f32 %v17208_v52, %v3297_v58  ;;  %v3295_v24 = vmul.f32 %v17188_v49, %v3257_v22  ;;  %v2954_v50 = vadd.f32 %v2839_v51, %v2648_v60  ;;  %v20548_v44 = vld [vmem:[#allocation53_spill] sm:$0xff] }
 0x23a   : > { %v3262_v47 = vadd.f32 %v14118_v31, %v2956_v37  ;;  %v14071_v14 = vpop.f32.mrf.mxu1  ;;  %v2349_v60 = vadd.f32 %v20545_v29, %v20544_v11  ;;  %v2352_v31 = vadd.f32 %v20547_v62, %v20546_v8  ;;  %v2350_v58 = vadd.f32 %v20548_v44, %v17191_v46 }
 0x23b   : > { %v14119_v18 = vpop.f32.mrf.mxu0  ;;  %3397 = vst [vmem:[#allocation3 + $0x19] sm:$0xff] %v3364_v48  ;;  %v3367_v6 = vmax.f32 %v3335_v55, 0.0  ;;  %v3333_v61 = vadd.f32 %v17208_v52, %v3295_v24  ;;  %v3260_v10 = vadd.f32 %v3145_v39, %v2954_v50  ;;  %v2957_v7 = vadd.f32 %v14071_v14, %v2651_v1  ;;  %v20550_v39 = vld [vmem:[#allocation55_spill] sm:$0xff]  ;;  %v20551_v24 = vld [vmem:[#allocation24_spill] sm:$0xff]  ;;  %v20552_v50 = vld [vmem:[#allocation57_spill] sm:$0xff] }
 0x23c   : > { %v3300_v28 = vmul.f32 %v17188_v49, %v3262_v47  ;;  %v2842_v41 = vpop.f32.mrf.mxu1  ;;  %v2353_v4 = vadd.f32 %v20552_v50, %v20551_v24  ;;  %v15678_v14 = vld [vmem:[#allocation9 + $0xb0] sm:$0xff]   ;;  %v17265_v34 = vadd.f32 %v20555_v17, %v2352_v31 }
 0x23d   : > { %v3148_v33 = vpop.f32.mrf.mxu0  ;;  %3400 = vst [vmem:[#allocation3 + $0x39] sm:$0xff] %v3367_v6  ;;  %v3365_v53 = vmax.f32 %v3333_v61, 0.0  ;;  %v3298_v54 = vmul.f32 %v17188_v49, %v3260_v10  ;;  %v3263_v20 = vadd.f32 %v14119_v18, %v2957_v7  ;;  %v2955_v5 = vadd.f32 %v2842_v41, %v2649_v32  ;;  %v20549_v32 = vld [vmem:[#allocation23_spill] sm:$0xff]  ;;  %v20553_v10 = vld [vmem:[#allocation48_spill] sm:$0xff]  ;;  %v20554_v7 = vld [vmem:[#allocation50_spill] sm:$0xff] }
 0x23e   : > { %v3338_v22 = vadd.f32 %v17208_v52, %v3300_v28  ;;  %v14074_v12 = vpop.f32.mrf.mxu1  ;;  %v3529_v27 = vpack.c.bf16 %v3367_v6, %v3366_v43  ;;  %v2355_v55 = vadd.f32 %v20550_v39, %v20549_v32  ;;  %v2656_v19 = vadd.f32 %v20554_v7, %v2349_v60 }
 0x23f   : > { %v14122_v1 = vpop.f32.mrf.mxu0  ;;  %3398 = vst [vmem:[#allocation3 + $0x21] sm:$0xff] %v3365_v53  ;;  %v17252_v0 = vadd.f32 %v17208_v52, %v3298_v54  ;;  %v3301_v63 = vmul.f32 %v17188_v49, %v3263_v20  ;;  %v3261_v37 = vadd.f32 %v3148_v33, %v2955_v5  ;;  %v2960_v51 = vadd.f32 %v14074_v12, %v2654_v16  ;;  %v20556_v54 = vld [vmem:[#allocation25_spill] sm:$0xff]  ;;  %v20558_v20 = vld [vmem:[#allocation56_spill] sm:$0xff] }
 0x240   : > { %v3370_v46 = vmax.f32 %v3338_v22, 0.0  ;;  %v2855_v38 = vpop.f32.mrf.mxu1  ;;  %v3528_v47 = vpack.c.bf16 %v3365_v53, %v3364_v48  ;;  %v2658_v16 = vadd.f32 %v20553_v10, %v2351_v57  ;;  %v20557_v57 = vld [vmem:[#allocation54_spill] sm:$0xff]  ;;  %v17274_v5 = vadd.f32 %v20558_v20, %v2355_v55  ;;  %v17279_v22 = vld [vmem:[#allocation9 + $0xa8] sm:$0xff]  }
 0x241   : > { %v3161_v13 = vpop.f32.mrf.mxu0  ;;  %v3368_v43 = vmax.f32 %v17252_v0, 0.0  ;;  %v3339_v18 = vadd.f32 %v17208_v52, %v3301_v63  ;;  %v3299_v6 = vmul.f32 %v17188_v49, %v3261_v37  ;;  %v3266_v61 = vadd.f32 %v14122_v1, %v2960_v51  ;;  %v20560_v0 = vld [vmem:[#allocation26_spill] sm:$0xff]  ;;  %v20561_v63 = vld [vmem:[#allocation59_spill] sm:$0xff]  ;;  %v20562_v51 = vld [vmem:[#allocation61_spill] sm:$0xff] }
 0x242   : > { %3403 = vst [vmem:[#allocation3 + $0x61] sm:$0xff] %v3370_v46  ;;  %v2958_v11 = vadd.f32 %v2855_v38, %v2652_v45  ;;  %v14075_v29 = vpop.f32.mrf.mxu1  ;;  %14161 = vmatmul.mubr.bf16.vlgmr.msra.gmra.mxu1 %v3528_v47  ;;  %v17271_v60 = vadd.f32 %v20557_v57, %v2350_v58  ;;  %v20559_v45 = vld [vmem:[#allocation58_spill] sm:$0xff]  ;;  %v2356_v37 = vadd.f32 %v20561_v63, %v20560_v0  ;;  %v20566_v57 = vld [vmem:[#allocation63_spill] sm:$0xff] }
 0x243   : > { %v14123_v28 = vpop.f32.mrf.mxu0  ;;  %3401 = vst [vmem:[#allocation3 + $0x49] sm:$0xff] %v3368_v43  ;;  %v3371_v48 = vmax.f32 %v3339_v18, 0.0  ;;  %v3337_v41 = vadd.f32 %v17208_v52, %v3299_v6  ;;  %v3304_v33 = vmul.f32 %v17188_v49, %v3266_v61  ;;  %v2961_v53 = vadd.f32 %v14075_v29, %v2655_v15  ;;  %14164 = vmatprep.mubr.bf16.mxu1 %v3529_v27  ;;  %v3433_v18 = vld [vmem:[#allocation3 + $0x18] sm:$0xff]  ;;  %v3435_v6 = vld [vmem:[#allocation3 + $0x30] sm:$0xff] }
 0x244   : > { %14241 = vmatpush3.bf16.msra.mxu1 %v20556_v54  ;;  %v17277_v8 = vadd.f32 %v20559_v45, %v2353_v4  ;;  %v3264_v62 = vadd.f32 %v3161_v13, %v2958_v11  ;;  %v2858_v31 = vpop.f32.mrf.mxu1  ;;  %v3436_v27 = vld [vmem:[#allocation3 + $0x38] sm:$0xff]  ;;  %v2354_v32 = vadd.f32 %v20562_v51, %v17195_v40  ;;  %v15679_v11 = vld [vmem:[#allocation9 + $0xf0] sm:$0xff]   ;;  %v20570_v63 = vld [vmem:[#allocation30_spill] sm:$0xff] }
 0x245   : > { %v3164_v44 = vpop.f32.mrf.mxu0  ;;  %14242 = vmatprep.subr.bf16.mxu1 %v15678_v14  ;;  %3404 = vst [vmem:[#allocation3 + $0x69] sm:$0xff] %v3371_v48  ;;  %v3369_v15 = vmax.f32 %v3337_v41, 0.0  ;;  %v17282_v12 = vadd.f32 %v17208_v52, %v3304_v33  ;;  %v3267_v1 = vadd.f32 %v14123_v28, %v2961_v53  ;;  %v2959_v58 = vadd.f32 %v2858_v31, %v2653_v2  ;;  %v20564_v33 = vld [vmem:[#allocation62_spill] sm:$0xff]  ;;  %v20565_v54 = vld [vmem:[#allocation28_spill] sm:$0xff] }
 0x246   : > { %v3302_v39 = vmul.f32 %v17188_v49, %v3264_v62  ;;  %v14078_v55 = vpop.f32.mrf.mxu1  ;;  %v3434_v50 = vld [vmem:[#allocation3 + $0x20] sm:$0xff]  ;;  %v3531_v4 = vpack.c.bf16 %v3371_v48, %v3370_v46  ;;  %v17296_v17 = vpack.c.bf16 %v3436_v27, %v3435_v6  ;;  %v17305_v53 = vadd.f32 %v20564_v33, %v2354_v32  ;;  %v15682_v31 = vld [vmem:[#allocation9 + $0xa0] sm:$0xff]   ;;  %v20569_v27 = vld [vmem:[#allocation65_spill] sm:$0xff] }
 0x247   : > { %v14126_v24 = vpop.f32.mrf.mxu0  ;;  %3402 = vst [vmem:[#allocation3 + $0x51] sm:$0xff] %v3369_v15  ;;  %v3374_v38 = vmax.f32 %v17282_v12, 0.0  ;;  %v3305_v13 = vmul.f32 %v17188_v49, %v3267_v1  ;;  %v3265_v47 = vadd.f32 %v3164_v44, %v2959_v58  ;;  %v2964_v2 = vadd.f32 %v14078_v55, %v2658_v16  ;;  %v20563_v48 = vld [vmem:[#allocation60_spill] sm:$0xff]  ;;  %v20567_v1 = vld [vmem:[#allocation27_spill] sm:$0xff]  ;;  %v20568_v58 = vld [vmem:[#allocation29_spill] sm:$0xff] }
 0x248   : > { %14243 = vmatpush3.bf16.msra.mxu1 %v15678_v14  ;;  %v17292_v61 = vadd.f32 %v17208_v52, %v3302_v39  ;;  %v2871_v40 = vpop.f32.mrf.mxu1  ;;  %v17294_v7 = vpack.c.bf16 %v3434_v50, %v3433_v18  ;;  %v3530_v46 = vpack.c.bf16 %v3369_v15, %v3368_v43  ;;  %v17302_v41 = vadd.f32 %v20563_v48, %v2356_v37  ;;  %v20571_v37 = vld [vmem:[#allocation67_spill] sm:$0xff]  ;;  %v20572_v6 = vld [vmem:[#allocation69_spill] sm:$0xff] }
 0x249   : > { %v3177_v10 = vpop.f32.mrf.mxu0  ;;  %14244 = vmatprep.subr.bf16.mxu1 %v17279_v22  ;;  %3407 = vst [vmem:[#allocation3 + $0x91] sm:$0xff] %v3374_v38  ;;  %v3343_v29 = vadd.f32 %v17208_v52, %v3305_v13  ;;  %v3303_v16 = vmul.f32 %v17188_v49, %v3265_v47  ;;  %v3270_v28 = vadd.f32 %v14126_v24, %v2964_v2  ;;  %v15681_v24 = vld [vmem:[#allocation9 + $0xe8] sm:$0xff]  }
 0x24a   : > { %v2962_v14 = vadd.f32 %v2871_v40, %v2656_v19  ;;  %v2359_v20 = vadd.f32 %v20566_v57, %v20565_v54  ;;  %v3372_v43 = vmax.f32 %v17292_v61, 0.0  ;;  %14209 = vmatmul.mubr.bf16.vlgmr.msra.gmra.mxu0 %v17294_v7  ;;  %v14079_v45 = vpop.f32.mrf.mxu1  ;;  %14165 = vmatmul.mubr.bf16.gmra.mxu1 %v3530_v46  ;;  %v2357_v0 = vadd.f32 %v20569_v27, %v20568_v58  ;;  %v20573_v61 = vld [vmem:[#allocation31_spill] sm:$0xff]  ;;  %v3437_v48 = vld [vmem:[#allocation3 + $0x48] sm:$0xff]  ;;  %v20575_v58 = vld [vmem:[#allocation66_spill] sm:$0xff] }
 0x24b   : > { %v14127_v62 = vpop.f32.mrf.mxu0  ;;  %v3375_v44 = vmax.f32 %v3343_v29, 0.0  ;;  %v3341_v19 = vadd.f32 %v17208_v52, %v3303_v16  ;;  %v3308_v15 = vmul.f32 %v17188_v49, %v3270_v28  ;;  %14212 = vmatprep.mubr.bf16.mxu0 %v17296_v17  ;;  %14289 = vmatpush3.bf16.msra.mxu0 %v20567_v1  ;;  %v2360_v51 = vadd.f32 %v20571_v37, %v20570_v63 }
 0x24c   : > { %v3268_v12 = vadd.f32 %v3177_v10, %v2962_v14  ;;  %3405 = vst [vmem:[#allocation3 + $0x79] sm:$0xff] %v3372_v43  ;;  %v2965_v32 = vadd.f32 %v14079_v45, %v17265_v34  ;;  %v2874_v39 = vpop.f32.mrf.mxu1  ;;  %14168 = vmatprep.mubr.bf16.mxu1 %v3531_v4  ;;  %14290 = vmatprep.subr.bf16.mxu0 %v15679_v11  ;;  %v3440_v18 = vld [vmem:[#allocation3 + $0x68] sm:$0xff] }
 0x24d   : > { %v3180_v55 = vpop.f32.mrf.mxu0  ;;  %3408 = vst [vmem:[#allocation3 + $0x99] sm:$0xff] %v3375_v44  ;;  %v3373_v50 = vmax.f32 %v3341_v19, 0.0  ;;  %v17321_v13 = vadd.f32 %v17208_v52, %v3308_v15  ;;  %v2963_v2 = vadd.f32 %v2874_v39, %v17271_v60  ;;  %14245 = vmatpush3.bf16.msra.mxu1 %v17279_v22  ;;  %v2358_v34 = vadd.f32 %v20572_v6, %v17198_v9  ;;  %v3439_v9 = vld [vmem:[#allocation3 + $0x60] sm:$0xff]  ;;  %v15684_v15 = vld [vmem:[#allocation9 + $0x98] sm:$0xff]  }
 0x24e   : > { %v3306_v47 = vmul.f32 %v17188_v49, %v3268_v12  ;;  %v2363_v4 = vadd.f32 %v17115_v36, %v20573_v61  ;;  %v3271_v40 = vadd.f32 %v14127_v62, %v2965_v32  ;;  %v14082_v10 = vpop.f32.mrf.mxu1  ;;  %v3438_v29 = vld [vmem:[#allocation3 + $0x50] sm:$0xff]  ;;  %v3533_v16 = vpack.c.bf16 %v3375_v44, %v3374_v38  ;;  %14246 = vmatprep.subr.bf16.mxu1 %v15682_v31  ;;  %v20574_v12 = vld [vmem:[#allocation64_spill] sm:$0xff] }
 0x24f   : > { %v14130_v46 = vpop.f32.mrf.mxu0  ;;  %3406 = vst [vmem:[#allocation3 + $0x81] sm:$0xff] %v3373_v50  ;;  %v3378_v28 = vmax.f32 %v17321_v13, 0.0  ;;  %v3269_v14 = vadd.f32 %v3180_v55, %v2963_v2  ;;  %v2968_v22 = vadd.f32 %v14082_v10, %v17274_v5  ;;  %14291 = vmatpush3.bf16.msra.mxu0 %v15679_v11  ;;  %v17336_v57 = vpack.c.bf16 %v3438_v29, %v3437_v48  ;;  %v15683_v11 = vld [vmem:[#allocation9 + $0xe0] sm:$0xff]   ;;  %v20579_v29 = vld [vmem:[#allocation71_spill] sm:$0xff] }
 0x250   : > { %v17332_v60 = vadd.f32 %v17208_v52, %v3306_v47  ;;  %v3309_v36 = vmul.f32 %v17188_v49, %v3271_v40  ;;  %v2887_v33 = vpop.f32.mrf.mxu1  ;;  %v17338_v38 = vpack.c.bf16 %v3440_v18, %v3439_v9  ;;  %v3532_v45 = vpack.c.bf16 %v3373_v50, %v3372_v43  ;;  %14292 = vmatprep.subr.bf16.mxu0 %v15681_v24  ;;  %v20577_v50 = vld [vmem:[#allocation70_spill] sm:$0xff] }
 0x251   : > { %v3193_v54 = vpop.f32.mrf.mxu0  ;;  %3411 = vst [vmem:[#allocation3 + $0xc1] sm:$0xff] %v3378_v28  ;;  %v3307_v44 = vmul.f32 %v17188_v49, %v3269_v14  ;;  %v3274_v19 = vadd.f32 %v14130_v46, %v2968_v22  ;;  %v2966_v5 = vadd.f32 %v2887_v33, %v17277_v8  ;;  %14247 = vmatpush3.bf16.msra.mxu1 %v15682_v31 }
 0x252   : > { %v3376_v62 = vmax.f32 %v17332_v60, 0.0  ;;  %v2666_v1 = vadd.f32 %v20574_v12, %v2359_v20  ;;  %v2664_v27 = vadd.f32 %v20575_v58, %v2357_v0  ;;  %v3347_v63 = vadd.f32 %v17208_v52, %v3309_v36  ;;  %14213 = vmatmul.mubr.bf16.gmra.mxu0 %v17336_v57  ;;  %v14083_v43 = vpop.f32.mrf.mxu1  ;;  %14169 = vmatmul.mubr.bf16.gmra.mxu1 %v3532_v45  ;;  %v17351_v20 = vld [vmem:[#allocation9 + $0x90] sm:$0xff]   ;;  %v20581_v60 = vld [vmem:[#allocation73_spill] sm:$0xff] }
 0x253   : > { %v14131_v37 = vpop.f32.mrf.mxu0  ;;  %v3345_v32 = vadd.f32 %v17208_v52, %v3307_v44  ;;  %v3312_v39 = vmul.f32 %v17188_v49, %v3274_v19  ;;  %v3272_v8 = vadd.f32 %v3193_v54, %v2966_v5  ;;  %v2969_v31 = vadd.f32 %v14083_v43, %v17302_v41  ;;  %14216 = vmatprep.mubr.bf16.mxu0 %v17338_v38  ;;  %v20576_v0 = vld [vmem:[#allocation68_spill] sm:$0xff]  ;;  %v3441_v44 = vld [vmem:[#allocation3 + $0x78] sm:$0xff]  ;;  %v3443_v19 = vld [vmem:[#allocation3 + $0x90] sm:$0xff] }
 0x254   : > { %3409 = vst [vmem:[#allocation3 + $0xa9] sm:$0xff] %v3376_v62  ;;  %v2667_v55 = vadd.f32 %v20576_v0, %v2360_v51  ;;  %v17355_v13 = vadd.f32 %v20577_v50, %v2358_v34  ;;  %v17358_v47 = vadd.f32 %v17117_v30, %v2363_v4  ;;  %v3379_v2 = vmax.f32 %v3347_v63, 0.0  ;;  %v2890_v18 = vpop.f32.mrf.mxu1  ;;  %14172 = vmatprep.mubr.bf16.mxu1 %v3533_v16  ;;  %v3444_v46 = vld [vmem:[#allocation3 + $0x98] sm:$0xff]  ;;  %v15685_v51 = vld [vmem:[#allocation9 + $0xd8] sm:$0xff]   ;;  %v20578_v34 = vld [vmem:[#allocation32_spill] sm:$0xff] }
 0x255   : > { %v3196_v6 = vpop.f32.mrf.mxu0  ;;  %14293 = vmatpush3.bf16.msra.mxu0 %v15681_v24  ;;  %v3377_v61 = vmax.f32 %v3345_v32, 0.0  ;;  %v17361_v41 = vadd.f32 %v17208_v52, %v3312_v39  ;;  %v3310_v40 = vmul.f32 %v17188_v49, %v3272_v8  ;;  %v3275_v10 = vadd.f32 %v14131_v37, %v2969_v31  ;;  %14248 = vmatprep.subr.bf16.mxu1 %v15684_v15  ;;  %v20580_v4 = vld [vmem:[#allocation33_spill] sm:$0xff]  ;;  %v15687_v32 = vld [vmem:[#allocation9 + $0xd0] sm:$0xff]   ;;  %v20583_v31 = vld [vmem:[#allocation74_spill] sm:$0xff] }
 0x256   : > { %14294 = vmatprep.subr.bf16.mxu0 %v15683_v11  ;;  %v2361_v30 = vadd.f32 %v20579_v29, %v20578_v34  ;;  %v2364_v14 = vadd.f32 %v20581_v60, %v20580_v4  ;;  %3412 = vst [vmem:[#allocation3 + $0xc9] sm:$0xff] %v3379_v2  ;;  %v2967_v24 = vadd.f32 %v2890_v18, %v17305_v53  ;;  %v14086_v16 = vpop.f32.mrf.mxu1  ;;  %v3442_v48 = vld [vmem:[#allocation3 + $0x80] sm:$0xff]  ;;  %v15689_v4 = vld [vmem:[#allocation9 + $0xc8] sm:$0xff]  }
 0x257   : > { %v14134_v22 = vpop.f32.mrf.mxu0  ;;  %v3535_v9 = vpack.c.bf16 %v3379_v2, %v3378_v28  ;;  %14249 = vmatpush3.bf16.msra.mxu1 %v15684_v15  ;;  %3410 = vst [vmem:[#allocation3 + $0xb1] sm:$0xff] %v3377_v61  ;;  %v3382_v36 = vmax.f32 %v17361_v41, 0.0  ;;  %v17371_v33 = vadd.f32 %v17208_v52, %v3310_v40  ;;  %v3313_v54 = vmul.f32 %v17188_v49, %v3275_v10  ;;  %v20582_v39 = vld [vmem:[#allocation72_spill] sm:$0xff]  ;;  %v15688_v2 = vld [vmem:[#allocation9 + $0x88] sm:$0xff]   ;;  %v20584_v40 = vld [vmem:[#allocation34_spill] sm:$0xff] }
 0x258   : > { %v2972_v45 = vadd.f32 %v14086_v16, %v2666_v1  ;;  %14250 = vmatprep.subr.bf16.mxu1 %v17351_v20  ;;  %v3273_v5 = vadd.f32 %v3196_v6, %v2967_v24  ;;  %v2903_v53 = vpop.f32.mrf.mxu1  ;;  %v17375_v58 = vpack.c.bf16 %v3442_v48, %v3441_v44  ;;  %v17377_v28 = vpack.c.bf16 %v3444_v46, %v3443_v19  ;;  %v20585_v10 = vld [vmem:[#allocation76_spill] sm:$0xff]  ;;  %v15690_v16 = vld [vmem:[#allocation9 + $0x80] sm:$0xff]  }
 0x259   : > { %v3209_v12 = vpop.f32.mrf.mxu0  ;;  %v3534_v15 = vpack.c.bf16 %v3377_v61, %v3376_v62  ;;  %14295 = vmatpush3.bf16.msra.mxu0 %v15683_v11  ;;  %3415 = vst [vmem:[#allocation3 + $0xf1] sm:$0xff] %v3382_v36  ;;  %v3380_v63 = vmax.f32 %v17371_v33, 0.0  ;;  %v3351_v43 = vadd.f32 %v17208_v52, %v3313_v54  ;;  %v2970_v1 = vadd.f32 %v2903_v53, %v2664_v27 }
 0x25a   : > { %v3278_v37 = vadd.f32 %v14134_v22, %v2972_v45  ;;  %14296 = vmatprep.subr.bf16.mxu0 %v15685_v51  ;;  %v2668_v8 = vadd.f32 %v20582_v39, %v2361_v30  ;;  %v17383_v0 = vadd.f32 %v20583_v31, %v2364_v14  ;;  %v3311_v50 = vmul.f32 %v17188_v49, %v3273_v5  ;;  %v14087_v62 = vpop.f32.mrf.mxu1  ;;  %v20586_v22 = vld [vmem:[#allocation35_spill] sm:$0xff] }
 0x25b   : > { %14217 = vmatmul.mubr.bf16.gmra.mxu0 %v17375_v58  ;;  %v14135_v11 = vpop.f32.mrf.mxu0  ;;  %14173 = vmatmul.mubr.bf16.gmra.mxu1 %v3534_v15  ;;  %3413 = vst [vmem:[#allocation3 + $0xd9] sm:$0xff] %v3380_v63  ;;  %v3383_v18 = vmax.f32 %v3351_v43, 0.0  ;;  %v3276_v27 = vadd.f32 %v3209_v12, %v2970_v1  ;;  %v2973_v61 = vadd.f32 %v14087_v62, %v2667_v55  ;;  %v3445_v53 = vld [vmem:[#allocation3 + $0xa8] sm:$0xff] }
 0x25c   : > { %v3316_v6 = vmul.f32 %v17188_v49, %v3278_v37  ;;  %14220 = vmatprep.mubr.bf16.mxu0 %v17377_v28  ;;  %14176 = vmatprep.mubr.bf16.mxu1 %v3535_v9  ;;  %v2362_v41 = vadd.f32 %v17127_v3, %v17201_v26  ;;  %v2367_v46 = vadd.f32 %v20585_v10, %v20584_v40  ;;  %v2906_v29 = vpop.f32.mrf.mxu1  ;;  %v3447_v26 = vld [vmem:[#allocation3 + $0xc0] sm:$0xff]  ;;  %v17415_v62 = vld [vmem:[#allocation9 + $0x138] sm:$0xff]  }
 0x25d   : > { %v3349_v34 = vadd.f32 %v17208_v52, %v3311_v50  ;;  %v3212_v30 = vpop.f32.mrf.mxu0  ;;  %14297 = vmatpush3.bf16.msra.mxu0 %v15685_v51  ;;  %14251 = vmatpush3.bf16.msra.mxu1 %v17351_v20  ;;  %3416 = vst [vmem:[#allocation3 + $0xf9] sm:$0xff] %v3383_v18  ;;  %v3314_v60 = vmul.f32 %v17188_v49, %v3276_v27  ;;  %v3448_v24 = vld [vmem:[#allocation3 + $0xc8] sm:$0xff]  ;;  %v15691_v50 = vld [vmem:[#allocation9 + $0xc0] sm:$0xff]  }
 0x25e   : > { %v17396_v55 = vadd.f32 %v17208_v52, %v3316_v6  ;;  %v3279_v14 = vadd.f32 %v14135_v11, %v2973_v61  ;;  %v2971_v3 = vadd.f32 %v2906_v29, %v17355_v13  ;;  %14298 = vmatprep.subr.bf16.mxu0 %v15687_v32  ;;  %v2365_v48 = vadd.f32 %v17141_v35, %v20586_v22  ;;  %v14090_v9 = vpop.f32.mrf.mxu1  ;;  %v3446_v33 = vld [vmem:[#allocation3 + $0xb0] sm:$0xff] }
 0x25f   : > { %v3381_v51 = vmax.f32 %v3349_v34, 0.0  ;;  %v14138_v20 = vpop.f32.mrf.mxu0  ;;  %v17402_v54 = vpack.c.bf16 %v3448_v24, %v3447_v26  ;;  %v3537_v45 = vpack.c.bf16 %v3383_v18, %v3382_v36  ;;  %14252 = vmatprep.subr.bf16.mxu1 %v15688_v2  ;;  %v17406_v19 = vadd.f32 %v17208_v52, %v3314_v60  ;;  %v20588_v18 = vld [vmem:[#allocation36_spill] sm:$0xff]  ;;  %v17429_v26 = vld [vmem:[#allocation9 + $0x178] sm:$0xff]  }
 0x260   : > { %v3386_v44 = vmax.f32 %v17396_v55, 0.0  ;;  %v3317_v13 = vmul.f32 %v17188_v49, %v3279_v14  ;;  %v3277_v5 = vadd.f32 %v3212_v30, %v2971_v3  ;;  %v2976_v35 = vadd.f32 %v14090_v9, %v17358_v47  ;;  %v2919_v12 = vpop.f32.mrf.mxu1  ;;  %v20587_v47 = vld [vmem:[#allocation75_spill] sm:$0xff] }
 0x261   : > { %3414 = vst [vmem:[#allocation3 + $0xe1] sm:$0xff] %v3381_v51  ;;  %v3225_v15 = vpop.f32.mrf.mxu0  ;;  %v17410_v43 = vpack.c.bf16 %v3446_v33, %v3445_v53  ;;  %v3536_v37 = vpack.c.bf16 %v3381_v51, %v3380_v63  ;;  %14299 = vmatpush3.bf16.msra.mxu0 %v15687_v32  ;;  %14253 = vmatpush3.bf16.msra.mxu1 %v15688_v2  ;;  %v3384_v36 = vmax.f32 %v17406_v19, 0.0  ;;  %v3451_v19 = vld [vmem:[#allocation3 + $0xf0] sm:$0xff] }
 0x262   : > { %3419 = vst [vmem:[#allocation3 + $0x121] sm:$0xff] %v3386_v44  ;;  %v3355_v1 = vadd.f32 %v17208_v52, %v3317_v13  ;;  %v3315_v39 = vmul.f32 %v17188_v49, %v3277_v5  ;;  %v2974_v31 = vadd.f32 %v2919_v12, %v2668_v8  ;;  %14300 = vmatprep.subr.bf16.mxu0 %v15689_v4  ;;  %v14091_v2 = vpop.f32.mrf.mxu1  ;;  %v3449_v33 = vld [vmem:[#allocation3 + $0xd8] sm:$0xff] }
 0x263   : > { %14254 = vmatprep.subr.bf16.mxu1 %v15690_v16  ;;  %v2669_v11 = vadd.f32 %v20587_v47, %v2362_v41  ;;  %v2368_v63 = vadd.f32 %v17151_v59, %v20588_v18  ;;  %v3282_v32 = vadd.f32 %v14138_v20, %v2976_v35  ;;  %14221 = vmatmul.mubr.bf16.gmra.mxu0 %v17410_v43  ;;  %v14139_v6 = vpop.f32.mrf.mxu0  ;;  %v20589_v41 = vld [vmem:[#allocation77_spill] sm:$0xff] }
 0x264   : > { %14177 = vmatmul.mubr.bf16.gmra.mxu1 %v3536_v37  ;;  %3417 = vst [vmem:[#allocation3 + $0x109] sm:$0xff] %v3384_v36  ;;  %v3387_v27 = vmax.f32 %v3355_v1, 0.0  ;;  %v3353_v8 = vadd.f32 %v17208_v52, %v3315_v39  ;;  %v3280_v61 = vadd.f32 %v3225_v15, %v2974_v31  ;;  %v2977_v40 = vadd.f32 %v14091_v2, %v17383_v0  ;;  %v2922_v29 = vpop.f32.mrf.mxu1  ;;  %v3452_v0 = vld [vmem:[#allocation3 + $0xf8] sm:$0xff] }
 0x265   : > { %14224 = vmatprep.mubr.bf16.mxu0 %v17402_v54  ;;  %14180 = vmatprep.mubr.bf16.mxu1 %v3537_v45  ;;  %v2674_v10 = vadd.f32 %v20589_v41, %v2367_v46  ;;  %v2672_v59 = vadd.f32 %v17143_v42, %v2365_v48  ;;  %v3320_v34 = vmul.f32 %v17188_v49, %v3282_v32  ;;  %v3228_v30 = vpop.f32.mrf.mxu0 }
 0x266   : > { %14301 = vmatpush3.bf16.msra.mxu0 %v15689_v4  ;;  %14255 = vmatpush3.bf16.msra.mxu1 %v15690_v16  ;;  %3420 = vst [vmem:[#allocation3 + $0x129] sm:$0xff] %v3387_v27  ;;  %v3385_v55 = vmax.f32 %v3353_v8, 0.0  ;;  %v3318_v60 = vmul.f32 %v17188_v49, %v3280_v61  ;;  %v3283_v14 = vadd.f32 %v14139_v6, %v2977_v40  ;;  %v14094_v24 = vpop.f32.mrf.mxu1 }
 0x267   : > { %v2975_v3 = vadd.f32 %v2922_v29, %v2669_v11  ;;  %14302 = vmatprep.subr.bf16.mxu0 %v15691_v50  ;;  %14336 = vmatprep.subr.bf16.mxu1 %v17415_v62  ;;  %v2675_v42 = vadd.f32 %v17153_v56, %v2368_v63  ;;  %v2366_v46 = vadd.f32 %v17164_v25, %v17213_v21  ;;  %v14142_v16 = vpop.f32.mrf.mxu0 }
 0x268   : > { %v3358_v4 = vadd.f32 %v17208_v52, %v3320_v34  ;;  %v3539_v22 = vpack.c.bf16 %v3387_v27, %v3386_v44  ;;  %3418 = vst [vmem:[#allocation3 + $0x111] sm:$0xff] %v3385_v55  ;;  %v3356_v48 = vadd.f32 %v17208_v52, %v3318_v60  ;;  %v3321_v51 = vmul.f32 %v17188_v49, %v3283_v14  ;;  %v3450_v45 = vld [vmem:[#allocation3 + $0xe0] sm:$0xff]  ;;  %v2935_v56 = vpop.f32.mrf.mxu1 }
 0x269   : > { %v3281_v9 = vadd.f32 %v3228_v30, %v2975_v3  ;;  %v2980_v20 = vadd.f32 %v14094_v24, %v2674_v10  ;;  %v3241_v5 = vpop.f32.mrf.mxu0  ;;  %v17437_v53 = vpack.c.bf16 %v3450_v45, %v3449_v33  ;;  %v17439_v25 = vpack.c.bf16 %v3452_v0, %v3451_v19  ;;  %v3455_v60 = vld [vmem:[#allocation3 + $0x120] sm:$0xff] }
 0x26a   : > { %v3390_v13 = vmax.f32 %v3358_v4, 0.0  ;;  %v3538_v21 = vpack.c.bf16 %v3385_v55, %v3384_v36  ;;  %14303 = vmatpush3.bf16.msra.mxu0 %v15691_v50  ;;  %v3388_v44 = vmax.f32 %v3356_v48, 0.0  ;;  %v3359_v35 = vadd.f32 %v17208_v52, %v3321_v51  ;;  %v14095_v39 = vpop.f32.mrf.mxu1 }
 0x26b   : > { %v3319_v12 = vmul.f32 %v17188_v49, %v3281_v9  ;;  %v3286_v15 = vadd.f32 %v14142_v16, %v2980_v20  ;;  %14384 = vmatprep.subr.bf16.mxu0 %v17429_v26  ;;  %v2673_v37 = vadd.f32 %v17166_v23, %v2366_v46  ;;  %v2978_v1 = vadd.f32 %v2935_v56, %v2672_v59  ;;  %v14143_v31 = vpop.f32.mrf.mxu0  ;;  %v3453_v61 = vld [vmem:[#allocation3 + $0x108] sm:$0xff] }
 0x26c   : > { %3423 = vst [vmem:[#allocation3 + $0x151] sm:$0xff] %v3390_v13  ;;  %14225 = vmatmul.mubr.bf16.gmra.mxu0 %v17437_v53  ;;  %14181 = vmatmul.mubr.bf16.gmra.mxu1 %v3538_v21  ;;  %3421 = vst [vmem:[#allocation3 + $0x139] sm:$0xff] %v3388_v44  ;;  %v3391_v36 = vmax.f32 %v3359_v35, 0.0  ;;  %v2981_v11 = vadd.f32 %v14095_v39, %v2675_v42  ;;  %v2938_v63 = vpop.f32.mrf.mxu1  ;;  %v3978_v16 = vld [vmem:[#allocation3 + $0x2] sm:$0xff]  ;;  %v3983_v35 = vld [vmem:[#allocation3 + $0x3a] sm:$0xff] }
 0x26d   : > { %v3357_v50 = vadd.f32 %v17208_v52, %v3319_v12  ;;  %v3324_v47 = vmul.f32 %v17188_v49, %v3286_v15  ;;  %14228 = vmatprep.mubr.bf16.mxu0 %v17439_v25  ;;  %14184 = vmatprep.mubr.bf16.mxu1 %v3539_v22  ;;  %v3284_v18 = vadd.f32 %v3241_v5, %v2978_v1  ;;  %v3244_v8 = vpop.f32.mrf.mxu0  ;;  %v3456_v41 = vld [vmem:[#allocation3 + $0x128] sm:$0xff]  ;;  %v3982_v5 = vld [vmem:[#allocation3 + $0x32] sm:$0xff]  ;;  %v15694_v1 = vld [vmem:[#allocation9 + $0x130] sm:$0xff]  }
 0x26e   : > { %3424 = vst [vmem:[#allocation3 + $0x159] sm:$0xff] %v3391_v36  ;;  %v3287_v2 = vadd.f32 %v14143_v31, %v2981_v11  ;;  %v2979_v6 = vadd.f32 %v2938_v63, %v2673_v37  ;;  %v3541_v10 = vpack.c.bf16 %v3391_v36, %v3390_v13  ;;  %v17463_v42 = vpack.c.bf16 %v3456_v41, %v3455_v60  ;;  %v3979_v22 = vld [vmem:[#allocation3 + $0xa] sm:$0xff]  ;;  %v3980_v13 = vld [vmem:[#allocation3 + $0x1a] sm:$0xff]  ;;  %v3981_v56 = vld [vmem:[#allocation3 + $0x22] sm:$0xff] }
 0x26f   : > { %v17449_v23 = vmax.f32 %v3357_v50, 0.0  ;;  %v3362_v32 = vadd.f32 %v17208_v52, %v3324_v47  ;;  %v3322_v27 = vmul.f32 %v17188_v49, %v3284_v18  ;;  %v3454_v40 = vld [vmem:[#allocation3 + $0x110] sm:$0xff]  ;;  %v4010_v45 = vpack.c.bf16 %v3979_v22, %v3978_v16  ;;  %v15696_v36 = vld [vmem:[#allocation9 + $0x128] sm:$0xff]   ;;  %v3986_v50 = vld [vmem:[#allocation3 + $0x62] sm:$0xff] }
 0x270   : > { %v3325_v34 = vmul.f32 %v17188_v49, %v3287_v2  ;;  %v3285_v29 = vadd.f32 %v3244_v8, %v2979_v6  ;;  %v17455_v30 = vpack.c.bf16 %v3454_v40, %v3453_v61  ;;  %v17482_v15 = vpack.c.bf16 %v3981_v56, %v3980_v13  ;;  %v3984_v39 = vld [vmem:[#allocation3 + $0x4a] sm:$0xff]  ;;  %v3985_v31 = vld [vmem:[#allocation3 + $0x52] sm:$0xff]  ;;  %v15695_v18 = vld [vmem:[#allocation9 + $0x170] sm:$0xff]  }
 0x271   : > { %3422 = vst [vmem:[#allocation3 + $0x141] sm:$0xff] %v17449_v23  ;;  %v3394_v59 = vmax.f32 %v3362_v32, 0.0  ;;  %v3360_v55 = vadd.f32 %v17208_v52, %v3322_v27  ;;  %v3540_v14 = vpack.c.bf16 %v17449_v23, %v3388_v44  ;;  %v17484_v37 = vpack.c.bf16 %v3983_v35, %v3982_v5  ;;  %v3987_v47 = vld [vmem:[#allocation3 + $0x6a] sm:$0xff]  ;;  %v3988_v32 = vld [vmem:[#allocation3 + $0x7a] sm:$0xff]  ;;  %v3989_v2 = vld [vmem:[#allocation3 + $0x82] sm:$0xff] }
 0x272   : > { %v17460_v3 = vadd.f32 %v17208_v52, %v3325_v34  ;;  %v3323_v0 = vmul.f32 %v17188_v49, %v3285_v29  ;;  %v17491_v11 = vpack.c.bf16 %v3985_v31, %v3984_v39  ;;  %v15698_v63 = vld [vmem:[#allocation9 + $0x120] sm:$0xff]   ;;  %v3991_v27 = vld [vmem:[#allocation3 + $0x9a] sm:$0xff]  ;;  %v15700_v8 = vld [vmem:[#allocation9 + $0x118] sm:$0xff]  }
 0x273   : > { %3427 = vst [vmem:[#allocation3 + $0x181] sm:$0xff] %v3394_v59  ;;  %v3392_v46 = vmax.f32 %v3360_v55, 0.0  ;;  %v3457_v48 = vld [vmem:[#allocation3 + $0x138] sm:$0xff]  ;;  %v3992_v40 = vld [vmem:[#allocation3 + $0xaa] sm:$0xff]  ;;  %v3994_v59 = vld [vmem:[#allocation3 + $0xc2] sm:$0xff] }
 0x274   : > { %14229 = vmatmul.mubr.bf16.gmra.mxu0 %v17455_v30  ;;  %14185 = vmatmul.mubr.bf16.gmra.mxu1 %v3540_v14  ;;  %v3395_v4 = vmax.f32 %v17460_v3, 0.0  ;;  %v3361_v24 = vadd.f32 %v17208_v52, %v3323_v0  ;;  %v3459_v52 = vld [vmem:[#allocation3 + $0x150] sm:$0xff]  ;;  %v3996_v14 = vld [vmem:[#allocation3 + $0xda] sm:$0xff]  ;;  %v3997_v0 = vld [vmem:[#allocation3 + $0xe2] sm:$0xff] }
 0x275   : > { %14232 = vmatprep.mubr.bf16.mxu0 %v17463_v42  ;;  %14188 = vmatprep.mubr.bf16.mxu1 %v3541_v10  ;;  %3425 = vst [vmem:[#allocation3 + $0x169] sm:$0xff] %v3392_v46  ;;  %v3460_v9 = vld [vmem:[#allocation3 + $0x158] sm:$0xff]  ;;  %v15701_v10 = vld [vmem:[#allocation9 + $0x158] sm:$0xff]   ;;  %v15706_v60 = vld [vmem:[#allocation9 + $0x100] sm:$0xff]   ;;  %v17516_v22 = vpack.c.bf16 %v3997_v0, %v3996_v14 }
 0x276   : > { %3428 = vst [vmem:[#allocation3 + $0x189] sm:$0xff] %v3395_v4  ;;  %v3393_v49 = vmax.f32 %v3361_v24, 0.0  ;;  %v17475_v19 = vpack.c.bf16 %v3460_v9, %v3459_v52  ;;  %v3990_v6 = vld [vmem:[#allocation3 + $0x92] sm:$0xff]  ;;  %v3995_v34 = vld [vmem:[#allocation3 + $0xca] sm:$0xff]  ;;  %v3999_v16 = vld [vmem:[#allocation3 + $0xfa] sm:$0xff] }
 0x277   : > { %v17502_v61 = vpack.c.bf16 %v3991_v27, %v3990_v6  ;;  %v3993_v41 = vld [vmem:[#allocation3 + $0xb2] sm:$0xff]  ;;  %v17510_v55 = vpack.c.bf16 %v3995_v34, %v3994_v59  ;;  %v15709_v9 = vld [vmem:[#allocation9 + $0x1f8] sm:$0xff]   ;;  %v15710_v6 = vld [vmem:[#allocation9 + $0x1b0] sm:$0xff]  }
 0x278   : > { %v3458_v51 = vld [vmem:[#allocation3 + $0x140] sm:$0xff]  ;;  %3426 = vst [vmem:[#allocation3 + $0x171] sm:$0xff] %v3393_v49  ;;  %v17473_v33 = vpack.c.bf16 %v3393_v49, %v3392_v46  ;;  %v17508_v29 = vpack.c.bf16 %v3993_v41, %v3992_v40  ;;  %v15705_v46 = vld [vmem:[#allocation9 + $0x148] sm:$0xff]   ;;  %v4003_v52 = vld [vmem:[#allocation3 + $0x12a] sm:$0xff] }
 0x279   : > { %v17471_v20 = vpack.c.bf16 %v3458_v51, %v3457_v48  ;;  %v3998_v24 = vld [vmem:[#allocation3 + $0xf2] sm:$0xff]  ;;  %v4000_v48 = vld [vmem:[#allocation3 + $0x10a] sm:$0xff]  ;;  %v4596_v27 = vld [vmem:[#allocation3 + $0x61] sm:$0xff] }
 0x27a   : > { %v17518_v49 = vpack.c.bf16 %v3999_v16, %v3998_v24  ;;  %v4001_v51 = vld [vmem:[#allocation3 + $0x112] sm:$0xff]  ;;  %v15718_v0 = vld [vmem:[#allocation9 + $0x190] sm:$0xff]   ;;  %v15717_v24 = vld [vmem:[#allocation9 + $0x1d8] sm:$0xff]  }
 0x27b   : > { %v17524_v13 = vpack.c.bf16 %v4001_v51, %v4000_v48  ;;  %v4006_v5 = vld [vmem:[#allocation3 + $0x152] sm:$0xff]  ;;  %v4607_v16 = vld [vmem:[#allocation3 + $0xe1] sm:$0xff] }
 0x27c   : > { %14233 = vmatmul.mubr.bf16.gmra.mxu0 %v17471_v20  ;;  %14189 = vmatmul.mubr.bf16.gmra.mxu1 %v17473_v33  ;;  %v3461_v21 = vld [vmem:[#allocation3 + $0x168] sm:$0xff]  ;;  %v4590_v31 = vld [vmem:[#allocation3 + $0x19] sm:$0xff]  ;;  %v4603_v34 = vld [vmem:[#allocation3 + $0xb1] sm:$0xff] }
 0x27d   : > { %14236 = vmatprep.mubr.bf16.mxu0 %v17475_v19  ;;  %14256 = vmatprep.mubr.bf16.mxu1 %v4010_v45  ;;  %v4002_v45 = vld [vmem:[#allocation3 + $0x122] sm:$0xff]  ;;  %v4598_v40 = vld [vmem:[#allocation3 + $0x79] sm:$0xff] }
 0x27e   : > { %v17526_v56 = vpack.c.bf16 %v4003_v52, %v4002_v45  ;;  %v4601_v59 = vld [vmem:[#allocation3 + $0x99] sm:$0xff] }
 0x27f   : > { %v3462_v44 = vld [vmem:[#allocation3 + $0x170] sm:$0xff]  ;;  %v4606_v48 = vld [vmem:[#allocation3 + $0xd9] sm:$0xff] }
 0x280   : > { %v17480_v12 = vpack.c.bf16 %v3462_v44, %v3461_v21  ;;  %v4007_v21 = vld [vmem:[#allocation3 + $0x15a] sm:$0xff]  ;;  %v17573_v51 = vpack.c.bf16 %v4607_v16, %v4606_v48 }
 0x281   : > { %v17534_v35 = vpack.c.bf16 %v4007_v21, %v4006_v5  ;;  %v4609_v45 = vld [vmem:[#allocation3 + $0xf9] sm:$0xff]  ;;  %v4610_v21 = vld [vmem:[#allocation3 + $0x109] sm:$0xff] }
 0x282   : > { %v15721_v52 = vld [vmem:[#allocation9 + $0x1c8] sm:$0xff]  }
 0x284   : > { %14237 = vmatmul.mubr.bf16.gmra.mxu0 %v17480_v12  ;;  %14257 = vmatmul.mubr.bf16.vlgmr.msra.gmra.mxu1 %v17482_v15 }
 0x285   : > { %14304 = vmatprep.mubr.bf16.mxu0 %v17294_v7  ;;  %14260 = vmatprep.mubr.bf16.mxu1 %v17484_v37  ;;  %v17495_v7 = vpack.c.bf16 %v3987_v47, %v3986_v50  ;;  %v4593_v50 = vld [vmem:[#allocation3 + $0x39] sm:$0xff]  ;;  %v4595_v47 = vld [vmem:[#allocation3 + $0x51] sm:$0xff] }
 0x286   : > { %14337 = vmatpush3.bf16.msra.mxu1 %v17415_v62  ;;  %v15697_v62 = vld [vmem:[#allocation9 + $0x168] sm:$0xff]  }
 0x287   : > { %14338 = vmatprep.subr.bf16.mxu1 %v15694_v1 }
 0x28a   : > { %14339 = vmatpush3.bf16.msra.mxu1 %v15694_v1  ;;  %v4591_v1 = vld [vmem:[#allocation3 + $0x21] sm:$0xff] }
 0x28b   : > { %14340 = vmatprep.subr.bf16.mxu1 %v15696_v36 }
 0x28c   : > { %14305 = vmatmul.mubr.bf16.vlgmr.msra.gmra.mxu0 %v17296_v17  ;;  %14261 = vmatmul.mubr.bf16.gmra.mxu1 %v17491_v11  ;;  %v17500_v17 = vpack.c.bf16 %v3989_v2, %v3988_v32  ;;  %v4594_v32 = vld [vmem:[#allocation3 + $0x49] sm:$0xff] }
 0x28d   : > { %14308 = vmatprep.mubr.bf16.mxu0 %v17336_v57  ;;  %14385 = vmatpush3.bf16.msra.mxu0 %v17429_v26  ;;  %v15699_v57 = vld [vmem:[#allocation9 + $0x160] sm:$0xff]   ;;  %v15702_v26 = vld [vmem:[#allocation9 + $0x110] sm:$0xff]   ;;  %v17549_v2 = vpack.c.bf16 %v4595_v47, %v4594_v32 }
 0x28e   : > { %14264 = vmatprep.mubr.bf16.mxu1 %v17495_v7  ;;  %14386 = vmatprep.subr.bf16.mxu0 %v15695_v18  ;;  %v4927_v32 = vld [vmem:[#allocation3 + $0x18a] sm:$0xff] }
 0x28f   : > { %14341 = vmatpush3.bf16.msra.mxu1 %v15696_v36  ;;  %v4622_v36 = vpack.c.bf16 %v4591_v1, %v4590_v31  ;;  %v17587_v1 = vld [vmem:[#allocation10 + $0x38] sm:$0xff]   ;;  %v17589_v31 = vld [vmem:[#allocation3 + $0x139] sm:$0xff] }
 0x290   : > { %14342 = vmatprep.subr.bf16.mxu1 %v15698_v63 }
 0x291   : > { %14387 = vmatpush3.bf16.msra.mxu0 %v15695_v18  ;;  %v4592_v18 = vld [vmem:[#allocation3 + $0x31] sm:$0xff] }
 0x292   : > { %14388 = vmatprep.subr.bf16.mxu0 %v15697_v62 }
 0x293   : > { %14343 = vmatpush3.bf16.msra.mxu1 %v15698_v63 }
 0x294   : > { %14309 = vmatmul.mubr.bf16.gmra.mxu0 %v17338_v38  ;;  %14265 = vmatmul.mubr.bf16.gmra.mxu1 %v17500_v17  ;;  %v15704_v38 = vld [vmem:[#allocation9 + $0x108] sm:$0xff]  }
 0x295   : > { %14312 = vmatprep.mubr.bf16.mxu0 %v17375_v58  ;;  %14268 = vmatprep.mubr.bf16.mxu1 %v17502_v61  ;;  %v15703_v58 = vld [vmem:[#allocation9 + $0x150] sm:$0xff]  }
 0x296   : > { %14389 = vmatpush3.bf16.msra.mxu0 %v15697_v62  ;;  %14344 = vmatprep.subr.bf16.mxu1 %v15700_v8  ;;  %v17547_v62 = vpack.c.bf16 %v4593_v50, %v4592_v18  ;;  %v4616_v50 = vld [vmem:[#allocation3 + $0x151] sm:$0xff] }
 0x297   : > { %14390 = vmatprep.subr.bf16.mxu0 %v15699_v57  ;;  %14345 = vmatpush3.bf16.msra.mxu1 %v15700_v8  ;;  %v4599_v8 = vld [vmem:[#allocation3 + $0x81] sm:$0xff] }
 0x298   : > { %14346 = vmatprep.subr.bf16.mxu1 %v15702_v26  ;;  %v17559_v41 = vpack.c.bf16 %v4599_v8, %v4598_v40 }
 0x29a   : > { %14391 = vmatpush3.bf16.msra.mxu0 %v15699_v57 }
 0x29b   : > { %14392 = vmatprep.subr.bf16.mxu0 %v15701_v10  ;;  %14347 = vmatpush3.bf16.msra.mxu1 %v15702_v26  ;;  %v15711_v26 = vld [vmem:[#allocation9 + $0x1f0] sm:$0xff]  }
 0x29c   : > { %14313 = vmatmul.mubr.bf16.gmra.mxu0 %v17377_v28  ;;  %14269 = vmatmul.mubr.bf16.gmra.mxu1 %v17508_v29  ;;  %v15708_v28 = vld [vmem:[#allocation9 + $0x1b8] sm:$0xff]  }
 0x29d   : > { %14316 = vmatprep.mubr.bf16.mxu0 %v17410_v43  ;;  %14272 = vmatprep.mubr.bf16.mxu1 %v17510_v55  ;;  %v15707_v43 = vld [vmem:[#allocation9 + $0x140] sm:$0xff]  }
 0x29e   : > { %14393 = vmatpush3.bf16.msra.mxu0 %v15701_v10  ;;  %14348 = vmatprep.subr.bf16.mxu1 %v15704_v38  ;;  %v15713_v10 = vld [vmem:[#allocation9 + $0x1e8] sm:$0xff]  }
 0x29f   : > { %14394 = vmatprep.subr.bf16.mxu0 %v15703_v58  ;;  %14349 = vmatpush3.bf16.msra.mxu1 %v15704_v38  ;;  %v4600_v38 = vld [vmem:[#allocation3 + $0x91] sm:$0xff] }
 0x2a0   : > { %14350 = vmatprep.subr.bf16.mxu1 %v15706_v60 }
 0x2a2   : > { %14395 = vmatpush3.bf16.msra.mxu0 %v15703_v58  ;;  %v17563_v58 = vpack.c.bf16 %v4601_v59, %v4600_v38  ;;  %v15727_v38 = vld [vmem:[#allocation10 + $0x30] sm:$0xff]  }
 0x2a3   : > { %14396 = vmatprep.subr.bf16.mxu0 %v15705_v46  ;;  %14351 = vmatpush3.bf16.msra.mxu1 %v15706_v60  ;;  %v15716_v60 = vld [vmem:[#allocation9 + $0x198] sm:$0xff]  }
 0x2a4   : > { %14317 = vmatmul.mubr.bf16.gmra.mxu0 %v17402_v54  ;;  %14273 = vmatmul.mubr.bf16.gmra.mxu1 %v17516_v22  ;;  %v4004_v54 = vld [vmem:[#allocation3 + $0x13a] sm:$0xff] }
 0x2a5   : > { %14320 = vmatprep.mubr.bf16.mxu0 %v17437_v53  ;;  %14276 = vmatprep.mubr.bf16.mxu1 %v17518_v49  ;;  %v4005_v53 = vld [vmem:[#allocation3 + $0x142] sm:$0xff] }
 0x2a6   : > { %14397 = vmatpush3.bf16.msra.mxu0 %v15705_v46  ;;  %14432 = vmatprep.subr.bf16.mxu1 %v15708_v28  ;;  %v17532_v44 = vpack.c.bf16 %v4005_v53, %v4004_v54  ;;  %v4605_v46 = vld [vmem:[#allocation3 + $0xc9] sm:$0xff]  ;;  %v4611_v54 = vld [vmem:[#allocation3 + $0x111] sm:$0xff] }
 0x2a7   : > { %14398 = vmatprep.subr.bf16.mxu0 %v15707_v43  ;;  %v4608_v53 = vld [vmem:[#allocation3 + $0xf1] sm:$0xff] }
 0x2a8   : > { %v17579_v5 = vpack.c.bf16 %v4609_v45, %v4608_v53 }
 0x2aa   : > { %14399 = vmatpush3.bf16.msra.mxu0 %v15707_v43 }
 0x2ab   : > { %14480 = vmatprep.subr.bf16.mxu0 %v15709_v9 }
 0x2ac   : > { %14321 = vmatmul.mubr.bf16.gmra.mxu0 %v17439_v25  ;;  %14277 = vmatmul.mubr.bf16.gmra.mxu1 %v17524_v13  ;;  %v4008_v25 = vld [vmem:[#allocation3 + $0x16a] sm:$0xff] }
 0x2ad   : > { %14324 = vmatprep.mubr.bf16.mxu0 %v17455_v30  ;;  %14280 = vmatprep.mubr.bf16.mxu1 %v17526_v56  ;;  %v4009_v30 = vld [vmem:[#allocation3 + $0x172] sm:$0xff] }
 0x2ae   : > { %v17540_v39 = vpack.c.bf16 %v4009_v30, %v4008_v25  ;;  %v17581_v25 = vpack.c.bf16 %v4611_v54, %v4610_v21  ;;  %v4613_v30 = vld [vmem:[#allocation3 + $0x129] sm:$0xff]  ;;  %v5215_v21 = vld [vmem:[#allocation3 + $0xc0] sm:$0xff] }
 0x2b4   : > { %14325 = vmatmul.mubr.bf16.gmra.mxu0 %v17463_v42  ;;  %14281 = vmatmul.mubr.bf16.gmra.mxu1 %v17532_v44  ;;  %v4315_v42 = vld [vmem:[#allocation3 + $0x188] sm:$0xff] }
 0x2b5   : > { %14328 = vmatprep.mubr.bf16.mxu0 %v17471_v20  ;;  %14284 = vmatprep.mubr.bf16.mxu1 %v17534_v35  ;;  %v4314_v20 = vld [vmem:[#allocation3 + $0x180] sm:$0xff] }
 0x2b6   : > { %v17545_v63 = vpack.c.bf16 %v4315_v42, %v4314_v20  ;;  %v5203_v20 = vld [vmem:[#allocation3 + $0x30] sm:$0xff] }
 0x2bc   : > { %14329 = vmatmul.mubr.bf16.gmra.mxu0 %v17475_v19  ;;  %14285 = vmatmul.mubr.bf16.gmra.mxu1 %v17540_v39  ;;  %v4597_v19 = vld [vmem:[#allocation3 + $0x69] sm:$0xff] }
 0x2bd   : > { %14332 = vmatprep.mubr.bf16.mxu0 %v17480_v12  ;;  %14352 = vmatprep.mubr.bf16.mxu1 %v4622_v36  ;;  %v15712_v12 = vld [vmem:[#allocation9 + $0x1a8] sm:$0xff]   ;;  %v17555_v57 = vpack.c.bf16 %v4597_v19, %v4596_v27  ;;  %v4612_v36 = vld [vmem:[#allocation3 + $0x121] sm:$0xff] }
 0x2be   : > { %v17591_v42 = vpack.c.bf16 %v4613_v30, %v4612_v36  ;;  %v5207_v27 = vld [vmem:[#allocation3 + $0x60] sm:$0xff] }
 0x2c4   : > { %14333 = vmatmul.mubr.bf16.gmra.mxu0 %v17545_v63  ;;  %14353 = vmatmul.mubr.bf16.vlgmr.msra.gmra.mxu1 %v17547_v62 }
 0x2c5   : > { %14400 = vmatprep.mubr.bf16.mxu0 %v17482_v15  ;;  %14356 = vmatprep.mubr.bf16.mxu1 %v17549_v2  ;;  %v15714_v15 = vld [vmem:[#allocation9 + $0x1a0] sm:$0xff]  }
 0x2c6   : > { %14433 = vmatpush3.bf16.msra.mxu1 %v15708_v28  ;;  %v4604_v28 = vld [vmem:[#allocation3 + $0xc1] sm:$0xff] }
 0x2c7   : > { %14434 = vmatprep.subr.bf16.mxu1 %v15710_v6  ;;  %v17571_v43 = vpack.c.bf16 %v4605_v46, %v4604_v28  ;;  %v15729_v28 = vld [vmem:[#allocation10 + $0x28] sm:$0xff]  }
 0x2ca   : > { %14435 = vmatpush3.bf16.msra.mxu1 %v15710_v6  ;;  %v5208_v6 = vld [vmem:[#allocation3 + $0x68] sm:$0xff] }
 0x2cb   : > { %14436 = vmatprep.subr.bf16.mxu1 %v15712_v12  ;;  %v5237_v8 = vpack.c.bf16 %v5208_v6, %v5207_v27  ;;  %v5219_v27 = vld [vmem:[#allocation3 + $0xf0] sm:$0xff] }
 0x2cc   : > { %14401 = vmatmul.mubr.bf16.vlgmr.msra.gmra.mxu0 %v17484_v37  ;;  %14357 = vmatmul.mubr.bf16.gmra.mxu1 %v17555_v57  ;;  %v4602_v37 = vld [vmem:[#allocation3 + $0xa9] sm:$0xff] }
 0x2cd   : > { %14404 = vmatprep.mubr.bf16.mxu0 %v17491_v11  ;;  %14481 = vmatpush3.bf16.msra.mxu0 %v15709_v9  ;;  %v17565_v14 = vpack.c.bf16 %v4603_v34, %v4602_v37  ;;  %v15715_v11 = vld [vmem:[#allocation9 + $0x1e0] sm:$0xff]  }
 0x2ce   : > { %14360 = vmatprep.mubr.bf16.mxu1 %v17559_v41  ;;  %14482 = vmatprep.subr.bf16.mxu0 %v15711_v26  ;;  %v15722_v9 = vld [vmem:[#allocation9 + $0x180] sm:$0xff]  }
 0x2cf   : > { %14437 = vmatpush3.bf16.msra.mxu1 %v15712_v12  ;;  %v5211_v37 = vld [vmem:[#allocation3 + $0x90] sm:$0xff] }
 0x2d0   : > { %14438 = vmatprep.subr.bf16.mxu1 %v15714_v15 }
 0x2d1   : > { %14483 = vmatpush3.bf16.msra.mxu0 %v15711_v26  ;;  %v15726_v26 = vld [vmem:[#allocation9 + $0x230] sm:$0xff]  }
 0x2d2   : > { %14484 = vmatprep.subr.bf16.mxu0 %v15713_v10 }
 0x2d3   : > { %14439 = vmatpush3.bf16.msra.mxu1 %v15714_v15  ;;  %v5209_v15 = vld [vmem:[#allocation3 + $0x78] sm:$0xff] }
 0x2d4   : > { %14405 = vmatmul.mubr.bf16.gmra.mxu0 %v17495_v7  ;;  %14361 = vmatmul.mubr.bf16.gmra.mxu1 %v17563_v58  ;;  %v15720_v7 = vld [vmem:[#allocation9 + $0x188] sm:$0xff]  }
 0x2d5   : > { %14408 = vmatprep.mubr.bf16.mxu0 %v17500_v17  ;;  %14364 = vmatprep.mubr.bf16.mxu1 %v17565_v14  ;;  %v15719_v17 = vld [vmem:[#allocation9 + $0x1d0] sm:$0xff]  }
 0x2d6   : > { %14485 = vmatpush3.bf16.msra.mxu0 %v15713_v10  ;;  %14440 = vmatprep.subr.bf16.mxu1 %v15716_v60  ;;  %v5212_v10 = vld [vmem:[#allocation3 + $0x98] sm:$0xff] }
 0x2d7   : > { %14486 = vmatprep.subr.bf16.mxu0 %v15715_v11  ;;  %14441 = vmatpush3.bf16.msra.mxu1 %v15716_v60 }
 0x2d8   : > { %14442 = vmatprep.subr.bf16.mxu1 %v15718_v0 }
 0x2da   : > { %14487 = vmatpush3.bf16.msra.mxu0 %v15715_v11 }
 0x2db   : > { %14488 = vmatprep.subr.bf16.mxu0 %v15717_v24  ;;  %14443 = vmatpush3.bf16.msra.mxu1 %v15718_v0  ;;  %v15730_v0 = vld [vmem:[#allocation9 + $0x220] sm:$0xff]  }
 0x2dc   : > { %14409 = vmatmul.mubr.bf16.gmra.mxu0 %v17502_v61  ;;  %14365 = vmatmul.mubr.bf16.gmra.mxu1 %v17571_v43  ;;  %v15724_v61 = vld [vmem:[#allocation9 + $0x238] sm:$0xff]  }
 0x2dd   : > { %14412 = vmatprep.mubr.bf16.mxu0 %v17508_v29  ;;  %14368 = vmatprep.mubr.bf16.mxu1 %v17573_v51  ;;  %v15723_v29 = vld [vmem:[#allocation9 + $0x1c0] sm:$0xff]  }
 0x2de   : > { %14489 = vmatpush3.bf16.msra.mxu0 %v15717_v24  ;;  %14444 = vmatprep.subr.bf16.mxu1 %v15720_v7 }
 0x2df   : > { %14490 = vmatprep.subr.bf16.mxu0 %v15719_v17  ;;  %14445 = vmatpush3.bf16.msra.mxu1 %v15720_v7  ;;  %v5214_v7 = vld [vmem:[#allocation3 + $0xb0] sm:$0xff] }
 0x2e0   : > { %14446 = vmatprep.subr.bf16.mxu1 %v15722_v9 }
 0x2e2   : > { %14491 = vmatpush3.bf16.msra.mxu0 %v15719_v17 }
 0x2e3   : > { %14492 = vmatprep.subr.bf16.mxu0 %v15721_v52  ;;  %14447 = vmatpush3.bf16.msra.mxu1 %v15722_v9  ;;  %v5216_v9 = vld [vmem:[#allocation3 + $0xc8] sm:$0xff] }
 0x2e4   : > { %14413 = vmatmul.mubr.bf16.gmra.mxu0 %v17510_v55  ;;  %14369 = vmatmul.mubr.bf16.gmra.mxu1 %v17579_v5  ;;  %v4634_v55 = vpack.c.bf16 %v17449_v23, %v17589_v31  ;;  %v17605_v23 = vld [vmem:[#allocation3 + $0x181] sm:$0xff]  ;;  %v5241_v30 = vpack.c.bf16 %v5216_v9, %v5215_v21 }
 0x2e5   : > { %14416 = vmatprep.mubr.bf16.mxu0 %v17516_v22  ;;  %14372 = vmatprep.mubr.bf16.mxu1 %v17581_v25  ;;  %v4617_v22 = vld [vmem:[#allocation3 + $0x159] sm:$0xff] }
 0x2e6   : > { %14493 = vmatpush3.bf16.msra.mxu0 %v15721_v52  ;;  %14528 = vmatprep.subr.bf16.mxu1 %v15724_v61  ;;  %v17599_v47 = vpack.c.bf16 %v4617_v22, %v4616_v50  ;;  %v5213_v52 = vld [vmem:[#allocation3 + $0xa8] sm:$0xff]  ;;  %v15734_v22 = vld [vmem:[#allocation9 + $0x210] sm:$0xff]  }
 0x2e7   : > { %14494 = vmatprep.subr.bf16.mxu0 %v15723_v29  ;;  %v5240_v53 = vpack.c.bf16 %v5214_v7, %v5213_v52 }
 0x2ea   : > { %14495 = vmatpush3.bf16.msra.mxu0 %v15723_v29 }
 0x2eb   : > { %14576 = vmatprep.subr.bf16.mxu0 %v17587_v1 }
 0x2ec   : > { %14417 = vmatmul.mubr.bf16.gmra.mxu0 %v17518_v49  ;;  %14373 = vmatmul.mubr.bf16.gmra.mxu1 %v17591_v42  ;;  %v5204_v49 = vld [vmem:[#allocation3 + $0x38] sm:$0xff] }
 0x2ed   : > { %14420 = vmatprep.mubr.bf16.mxu0 %v17524_v13  ;;  %14376 = vmatprep.mubr.bf16.mxu1 %v4634_v55  ;;  %v4637_v13 = vpack.c.bf16 %v3395_v4, %v17605_v23  ;;  %v5235_v18 = vpack.c.bf16 %v5204_v49, %v5203_v20 }
 0x2f4   : > { %14421 = vmatmul.mubr.bf16.gmra.mxu0 %v17526_v56  ;;  %14377 = vmatmul.mubr.bf16.gmra.mxu1 %v17599_v47  ;;  %v4926_v56 = vld [vmem:[#allocation3 + $0x182] sm:$0xff] }
 0x2f5   : > { %14424 = vmatprep.mubr.bf16.mxu0 %v17532_v44  ;;  %14380 = vmatprep.mubr.bf16.mxu1 %v17473_v33  ;;  %v5206_v44 = vld [vmem:[#allocation3 + $0x50] sm:$0xff]  ;;  %v5205_v33 = vld [vmem:[#allocation3 + $0x48] sm:$0xff]  ;;  %v4943_v19 = vpack.c.bf16 %v4927_v32, %v4926_v56 }
 0x2f6   : > { %v5236_v12 = vpack.c.bf16 %v5206_v44, %v5205_v33  ;;  %v15733_v56 = vld [vmem:[#allocation10 + $0x18] sm:$0xff]   ;;  %v5220_v44 = vld [vmem:[#allocation3 + $0xf8] sm:$0xff] }
 0x2f7   : > { %v5217_v33 = vld [vmem:[#allocation3 + $0xd8] sm:$0xff] }
 0x2fc   : > { %14425 = vmatmul.mubr.bf16.gmra.mxu0 %v17534_v35  ;;  %14381 = vmatmul.mubr.bf16.gmra.mxu1 %v4637_v13  ;;  %v5210_v35 = vld [vmem:[#allocation3 + $0x80] sm:$0xff] }
 0x2fd   : > { %14428 = vmatprep.mubr.bf16.mxu0 %v17540_v39  ;;  %14448 = vmatprep.mubr.bf16.mxu1 %v5235_v18  ;;  %v15728_v39 = vld [vmem:[#allocation9 + $0x228] sm:$0xff]   ;;  %v5238_v34 = vpack.c.bf16 %v5210_v35, %v5209_v15  ;;  %v5218_v18 = vld [vmem:[#allocation3 + $0xe0] sm:$0xff] }
 0x302   : > { %v14162_v3 = vpop.f32.mrf.mxu1 }
 0x304   : > { %14429 = vmatmul.mubr.bf16.gmra.mxu0 %v4943_v19  ;;  %14449 = vmatmul.mubr.bf16.vlgmr.msra.gmra.mxu1 %v5236_v12  ;;  %v3642_v4 = vpop.f32.mrf.mxu1  ;;  %v5242_v12 = vpack.c.bf16 %v5218_v18, %v5217_v33  ;;  %v5227_v18 = vld [vmem:[#allocation3 + $0x150] sm:$0xff] }
 0x305   : > { %14496 = vmatprep.mubr.bf16.mxu0 %v17547_v62  ;;  %14452 = vmatprep.mubr.bf16.mxu1 %v5237_v8  ;;  %v5239_v62 = vpack.c.bf16 %v5212_v10, %v5211_v37  ;;  %v15736_v8 = vld [vmem:[#allocation9 + $0x208] sm:$0xff]  }
 0x306   : > { %14529 = vmatpush3.bf16.msra.mxu1 %v15724_v61  ;;  %v14163_v40 = vpop.f32.mrf.mxu1  ;;  %v15732_v61 = vld [vmem:[#allocation9 + $0x218] sm:$0xff]   ;;  %v15737_v37 = vld [vmem:[#allocation10 + $0x8] sm:$0xff]  }
 0x307   : > { %14530 = vmatprep.subr.bf16.mxu1 %v15726_v26 }
 0x308   : > { %v3645_v59 = vpop.f32.mrf.mxu1 }
 0x30a   : > { %14531 = vmatpush3.bf16.msra.mxu1 %v15726_v26  ;;  %v14210_v60 = vpop.f32.mrf.mxu0  ;;  %v14166_v11 = vpop.f32.mrf.mxu1 }
 0x30b   : > { %14532 = vmatprep.subr.bf16.mxu1 %v15728_v39  ;;  %v17614_v46 = vadd.f32 %v14210_v60, %v14162_v3  ;;  %v5243_v3 = vpack.c.bf16 %v5220_v44, %v5219_v27  ;;  %v5230_v27 = vld [vmem:[#allocation3 + $0x170] sm:$0xff] }
 0x30c   : > { %14497 = vmatmul.mubr.bf16.vlgmr.msra.gmra.mxu0 %v17549_v2  ;;  %14453 = vmatmul.mubr.bf16.gmra.mxu1 %v5238_v34  ;;  %v3851_v24 = vpop.f32.mrf.mxu0  ;;  %v3658_v16 = vpop.f32.mrf.mxu1 }
 0x30d   : > { %14500 = vmatprep.mubr.bf16.mxu0 %v17555_v57  ;;  %14577 = vmatpush3.bf16.msra.mxu0 %v17587_v1  ;;  %v17618_v48 = vadd.f32 %v3851_v24, %v3642_v4  ;;  %v15731_v1 = vld [vmem:[#allocation10 + $0x20] sm:$0xff]   ;;  %v15735_v4 = vld [vmem:[#allocation10 + $0x10] sm:$0xff]  }
 0x30e   : > { %14456 = vmatprep.mubr.bf16.mxu1 %v5239_v62  ;;  %14578 = vmatprep.subr.bf16.mxu0 %v15727_v38  ;;  %v14211_v2 = vpop.f32.mrf.mxu0  ;;  %v14167_v17 = vpop.f32.mrf.mxu1 }
 0x30f   : > { %14533 = vmatpush3.bf16.msra.mxu1 %v15728_v39  ;;  %v17620_v45 = vadd.f32 %v14211_v2, %v14163_v40  ;;  %v15738_v40 = vld [vmem:[#allocation9 + $0x200] sm:$0xff]  }
 0x310   : > { %14534 = vmatprep.subr.bf16.mxu1 %v15730_v0  ;;  %v3854_v57 = vpop.f32.mrf.mxu0  ;;  %v3661_v54 = vpop.f32.mrf.mxu1 }
 0x311   : > { %14579 = vmatpush3.bf16.msra.mxu0 %v15727_v38  ;;  %v17622_v29 = vadd.f32 %v3854_v57, %v3645_v59  ;;  %v5222_v38 = vld [vmem:[#allocation3 + $0x110] sm:$0xff] }
 0x312   : > { %14580 = vmatprep.subr.bf16.mxu0 %v15729_v28  ;;  %v14214_v36 = vpop.f32.mrf.mxu0  ;;  %v14170_v55 = vpop.f32.mrf.mxu1 }
 0x313   : > { %14535 = vmatpush3.bf16.msra.mxu1 %v15730_v0  ;;  %v17625_v50 = vadd.f32 %v14214_v36, %v14166_v11  ;;  %v5224_v11 = vld [vmem:[#allocation3 + $0x128] sm:$0xff]  ;;  %v5228_v36 = vld [vmem:[#allocation3 + $0x158] sm:$0xff] }
 0x314   : > { %14501 = vmatmul.mubr.bf16.gmra.mxu0 %v17559_v41  ;;  %14457 = vmatmul.mubr.bf16.gmra.mxu1 %v5240_v53  ;;  %v3867_v49 = vpop.f32.mrf.mxu0  ;;  %v3674_v13 = vpop.f32.mrf.mxu1  ;;  %v5221_v0 = vld [vmem:[#allocation3 + $0x108] sm:$0xff] }
 0x315   : > { %14504 = vmatprep.mubr.bf16.mxu0 %v17563_v58  ;;  %14460 = vmatprep.mubr.bf16.mxu1 %v5241_v30  ;;  %v17628_v20 = vadd.f32 %v3867_v49, %v3658_v16  ;;  %v5244_v16 = vpack.c.bf16 %v5222_v38, %v5221_v0  ;;  %v5536_v0 = vld [vmem:[#allocation3 + $0x171] sm:$0xff] }
 0x316   : > { %14581 = vmatpush3.bf16.msra.mxu0 %v15729_v28  ;;  %14536 = vmatprep.subr.bf16.mxu1 %v15732_v61  ;;  %v14215_v32 = vpop.f32.mrf.mxu0  ;;  %v14171_v41 = vpop.f32.mrf.mxu1  ;;  %v5223_v28 = vld [vmem:[#allocation3 + $0x120] sm:$0xff] }
 0x317   : > { %14582 = vmatprep.subr.bf16.mxu0 %v15731_v1  ;;  %14537 = vmatpush3.bf16.msra.mxu1 %v15732_v61  ;;  %v17630_v6 = vadd.f32 %v14215_v32, %v14167_v17  ;;  %v5245_v2 = vpack.c.bf16 %v5224_v11, %v5223_v28  ;;  %v15739_v17 = vld [vmem:[#allocation10] sm:$0xff]   ;;  %v5226_v61 = vld [vmem:[#allocation3 + $0x140] sm:$0xff] }
 0x318   : > { %14538 = vmatprep.subr.bf16.mxu1 %v15734_v22  ;;  %v3870_v19 = vpop.f32.mrf.mxu0  ;;  %v3677_v58 = vpop.f32.mrf.mxu1 }
 0x319   : > { %v17632_v26 = vadd.f32 %v3870_v19, %v3661_v54 }
 0x31a   : > { %14583 = vmatpush3.bf16.msra.mxu0 %v15731_v1 }
 0x31b   : > { %14584 = vmatprep.subr.bf16.mxu0 %v15733_v56  ;;  %14539 = vmatpush3.bf16.msra.mxu1 %v15734_v22  ;;  %v14218_v35 = vpop.f32.mrf.mxu0  ;;  %v14174_v39 = vpop.f32.mrf.mxu1 }
 0x31c   : > { %14505 = vmatmul.mubr.bf16.gmra.mxu0 %v17565_v14  ;;  %14461 = vmatmul.mubr.bf16.gmra.mxu1 %v5242_v12  ;;  %v17635_v15 = vadd.f32 %v14218_v35, %v14170_v55  ;;  %v5532_v12 = vld [vmem:[#allocation3 + $0x141] sm:$0xff] }
 0x31d   : > { %14508 = vmatprep.mubr.bf16.mxu0 %v17571_v43  ;;  %14464 = vmatprep.mubr.bf16.mxu1 %v5243_v3  ;;  %v3883_v10 = vpop.f32.mrf.mxu0  ;;  %v3690_v59 = vpop.f32.mrf.mxu1  ;;  %v5229_v35 = vld [vmem:[#allocation3 + $0x168] sm:$0xff] }
 0x31e   : > { %14585 = vmatpush3.bf16.msra.mxu0 %v15733_v56  ;;  %14540 = vmatprep.subr.bf16.mxu1 %v15736_v8  ;;  %v17638_v34 = vadd.f32 %v3883_v10, %v3674_v13  ;;  %v5247_v56 = vpack.c.bf16 %v5228_v36, %v5227_v18  ;;  %v5248_v10 = vpack.c.bf16 %v5230_v27, %v5229_v35 }
 0x31f   : > { %14586 = vmatprep.subr.bf16.mxu0 %v15735_v4  ;;  %14541 = vmatpush3.bf16.msra.mxu1 %v15736_v8  ;;  %v14219_v60 = vpop.f32.mrf.mxu0  ;;  %v14175_v14 = vpop.f32.mrf.mxu1 }
 0x320   : > { %14542 = vmatprep.subr.bf16.mxu1 %v15738_v40  ;;  %v17640_v62 = vadd.f32 %v14219_v60, %v14171_v41 }
 0x321   : > { %v3886_v24 = vpop.f32.mrf.mxu0  ;;  %v3693_v43 = vpop.f32.mrf.mxu1 }
 0x322   : > { %14587 = vmatpush3.bf16.msra.mxu0 %v15735_v4  ;;  %v17642_v7 = vadd.f32 %v3886_v24, %v3677_v58  ;;  %v5538_v24 = vld [vmem:[#allocation3 + $0x189] sm:$0xff] }
 0x323   : > { %14588 = vmatprep.subr.bf16.mxu0 %v15737_v37  ;;  %14543 = vmatpush3.bf16.msra.mxu1 %v15738_v40  ;;  %v14222_v9 = vpop.f32.mrf.mxu0 }
 0x324   : > { %14509 = vmatmul.mubr.bf16.gmra.mxu0 %v17573_v51  ;;  %v14178_v52 = vpop.f32.mrf.mxu1  ;;  %14465 = vmatmul.mubr.bf16.gmra.mxu1 %v5244_v16  ;;  %v17645_v57 = vadd.f32 %v14222_v9, %v14174_v39  ;;  %v5225_v51 = vld [vmem:[#allocation3 + $0x138] sm:$0xff]  ;;  %v15885_v16 = vld [vmem:[#allocation2] sm:$0xff] }
 0x325   : > { %14512 = vmatprep.mubr.bf16.mxu0 %v17579_v5  ;;  %14468 = vmatprep.mubr.bf16.mxu1 %v5245_v2  ;;  %v3899_v54 = vpop.f32.mrf.mxu0  ;;  %v5246_v13 = vpack.c.bf16 %v5226_v61, %v5225_v51  ;;  %v17671_v28 = vpack.c.bf16 %v15885_v16, %v15885_v16  ;;  %v5815_v2 = vld [vmem:[#allocation3 + $0x32] sm:$0xff]  ;;  %v5555_v61 = vpack.c.bf16 %v5538_v24, %v17605_v23  ;;  %v6199_v24 = vld [vmem:[#allocation2 + $0x31] sm:$0xff]  ;;  %v6200_v16 = vld [vmem:[#allocation2 + $0x39] sm:$0xff] }
 0x326   : > { %v3706_v53 = vpop.f32.mrf.mxu1  ;;  %14589 = vmatpush3.bf16.msra.mxu0 %v15737_v37  ;;  %v17648_v21 = vadd.f32 %v3899_v54, %v3690_v59  ;;  %v5818_v23 = vld [vmem:[#allocation3 + $0x52] sm:$0xff] }
 0x327   : > { %14590 = vmatprep.subr.bf16.mxu0 %v15739_v17  ;;  %v14223_v30 = vpop.f32.mrf.mxu0 }
 0x328   : > { %v14179_v1 = vpop.f32.mrf.mxu1  ;;  %v17650_v55 = vadd.f32 %v14223_v30, %v14175_v14 }
 0x329   : > { %v3902_v22 = vpop.f32.mrf.mxu0 }
 0x32a   : > { %v3709_v49 = vpop.f32.mrf.mxu1  ;;  %14591 = vmatpush3.bf16.msra.mxu0 %v15739_v17  ;;  %v17652_v5 = vadd.f32 %v3902_v22, %v3693_v43  ;;  %v5816_v17 = vld [vmem:[#allocation3 + $0x3a] sm:$0xff] }
 0x32b   : > { %v5847_v30 = vpack.c.bf16 %v5816_v17, %v5815_v2  ;;  %v5539_v22 = vld [vmem:[#allocation3 + $0x199] sm:$0xff] }
 0x32c   : > { %v14226_v32 = vpop.f32.mrf.mxu0  ;;  %14513 = vmatmul.mubr.bf16.gmra.mxu0 %v17581_v25  ;;  %v14182_v41 = vpop.f32.mrf.mxu1  ;;  %14469 = vmatmul.mubr.bf16.gmra.mxu1 %v5246_v13  ;;  %v5552_v25 = vpack.c.bf16 %v5532_v12, %v17589_v31  ;;  %v6201_v17 = vld [vmem:[#allocation2 + $0x49] sm:$0xff] }
 0x32d   : > { %v17655_v44 = vadd.f32 %v14226_v32, %v14178_v52  ;;  %14516 = vmatprep.mubr.bf16.mxu0 %v17591_v42  ;;  %14472 = vmatprep.mubr.bf16.mxu1 %v5247_v56  ;;  %v5535_v52 = vld [vmem:[#allocation3 + $0x169] sm:$0xff]  ;;  %v6198_v32 = vld [vmem:[#allocation2 + $0x21] sm:$0xff] }
 0x32e   : > { %v3915_v33 = vpop.f32.mrf.mxu0  ;;  %v3722_v19 = vpop.f32.mrf.mxu1  ;;  %v6197_v56 = vld [vmem:[#allocation2 + $0x19] sm:$0xff] }
 0x32f   : > { %v17658_v58 = vadd.f32 %v3915_v33, %v3706_v53  ;;  %v5817_v33 = vld [vmem:[#allocation3 + $0x4a] sm:$0xff] }
 0x330   : > { %v14227_v8 = vpop.f32.mrf.mxu0  ;;  %v14183_v3 = vpop.f32.mrf.mxu1 }
 0x331   : > { %v17660_v4 = vadd.f32 %v14227_v8, %v14179_v1  ;;  %v5819_v8 = vld [vmem:[#allocation3 + $0x62] sm:$0xff] }
 0x332   : > { %v3918_v39 = vpop.f32.mrf.mxu0  ;;  %v3725_v40 = vpop.f32.mrf.mxu1 }
 0x333   : > { %v17663_v59 = vadd.f32 %v3918_v39, %v3709_v49  ;;  %v5540_v49 = vld [vmem:[#allocation3 + $0x1a1] sm:$0xff]  ;;  %v6229_v39 = vpack.c.bf16 %v6198_v32, %v6197_v56 }
 0x334   : > { %v14230_v42 = vpop.f32.mrf.mxu0  ;;  %14517 = vmatmul.mubr.bf16.gmra.mxu0 %v5552_v25  ;;  %v14186_v38 = vpop.f32.mrf.mxu1  ;;  %14473 = vmatmul.mubr.bf16.gmra.mxu1 %v5248_v10  ;;  %v5556_v12 = vpack.c.bf16 %v5540_v49, %v5539_v22  ;;  %v5848_v10 = vpack.c.bf16 %v5818_v23, %v5817_v33  ;;  %v5823_v22 = vld [vmem:[#allocation3 + $0x92] sm:$0xff]  ;;  %v5824_v49 = vld [vmem:[#allocation3 + $0x9a] sm:$0xff] }
 0x335   : > { %v17665_v37 = vadd.f32 %v14230_v42, %v14182_v41  ;;  %14520 = vmatprep.mubr.bf16.mxu0 %v17599_v47  ;;  %14476 = vmatprep.mubr.bf16.mxu1 %v17545_v63  ;;  %v5554_v47 = vpack.c.bf16 %v5536_v0, %v5535_v52  ;;  %v6202_v52 = vld [vmem:[#allocation2 + $0x51] sm:$0xff] }
 0x336   : > { %v3931_v60 = vpop.f32.mrf.mxu0  ;;  %v3738_v14 = vpop.f32.mrf.mxu1  ;;  %v6231_v56 = vpack.c.bf16 %v6202_v52, %v6201_v17  ;;  %v5828_v17 = vld [vmem:[#allocation3 + $0xca] sm:$0xff] }
 0x337   : > { %v17669_v11 = vadd.f32 %v3931_v60, %v3722_v19 }
 0x338   : > { %v14231_v31 = vpop.f32.mrf.mxu0  ;;  %v14187_v43 = vpop.f32.mrf.mxu1 }
 0x339   : > { %v17673_v9 = vadd.f32 %v14231_v31, %v14183_v3  ;;  %v5820_v3 = vld [vmem:[#allocation3 + $0x6a] sm:$0xff] }
 0x33a   : > { %v3934_v54 = vpop.f32.mrf.mxu0  ;;  %v3741_v53 = vpop.f32.mrf.mxu1 }
 0x33b   : > { %v17675_v63 = vadd.f32 %v3934_v54, %v3725_v40 }
 0x33c   : > { %v14234_v1 = vpop.f32.mrf.mxu0  ;;  %14521 = vmatmul.mubr.bf16.gmra.mxu0 %v5554_v47  ;;  %v14190_v36 = vpop.f32.mrf.mxu1  ;;  %14477 = vmatmul.mubr.bf16.gmra.mxu1 %v17671_v28 }
 0x33d   : > { %v17679_v51 = vadd.f32 %v14234_v1, %v14186_v38  ;;  %14524 = vmatprep.mubr.bf16.mxu0 %v5555_v61  ;;  %14544 = vmatprep.mubr.bf16.mxu1 %v5847_v30  ;;  %v5849_v38 = vpack.c.bf16 %v5820_v3, %v5819_v8  ;;  %v5822_v61 = vld [vmem:[#allocation3 + $0x82] sm:$0xff]  ;;  %v6230_v1 = vpack.c.bf16 %v6200_v16, %v6199_v24  ;;  %v5826_v24 = vld [vmem:[#allocation3 + $0xb2] sm:$0xff] }
 0x33e   : > { %v3947_v13 = vpop.f32.mrf.mxu0  ;;  %v3754_v18 = vpop.f32.mrf.mxu1 }
 0x33f   : > { %v17681_v41 = vadd.f32 %v3947_v13, %v3738_v14 }
 0x340   : > { %v14235_v19 = vpop.f32.mrf.mxu0  ;;  %v14191_v27 = vpop.f32.mrf.mxu1 }
 0x341   : > { %v17683_v35 = vadd.f32 %v14235_v19, %v14187_v43 }
 0x342   : > { %v3950_v25 = vpop.f32.mrf.mxu0  ;;  %v3757_v40 = vpop.f32.mrf.mxu1 }
 0x343   : > { %v17685_v42 = vadd.f32 %v3950_v25, %v3741_v53  ;;  %v5821_v53 = vld [vmem:[#allocation3 + $0x7a] sm:$0xff] }
 0x344   : > { %v14238_v60 = vpop.f32.mrf.mxu0  ;;  %14525 = vmatmul.mubr.bf16.gmra.mxu0 %v5556_v12  ;;  %v14258_v14 = vpop.f32.mrf.mxu1  ;;  %14545 = vmatmul.mubr.bf16.vlgmr.msra.gmra.mxu1 %v5848_v10  ;;  %v5850_v23 = vpack.c.bf16 %v5822_v61, %v5821_v53 }
 0x345   : > { %v17687_v0 = vadd.f32 %v14238_v60, %v14190_v36  ;;  %14592 = vmatprep.mubr.bf16.mxu0 %v6229_v39  ;;  %v4254_v31 = vadd.f32 %v14258_v14, %v17614_v46  ;;  %14548 = vmatprep.mubr.bf16.mxu1 %v5849_v38  ;;  %v6203_v39 = vld [vmem:[#allocation2 + $0x61] sm:$0xff]  ;;  %v6205_v38 = vld [vmem:[#allocation2 + $0x79] sm:$0xff] }
 0x346   : > { %v3963_v43 = vpop.f32.mrf.mxu0  ;;  %v4125_v2 = vpop.f32.mrf.mxu1  ;;  %v5825_v14 = vld [vmem:[#allocation3 + $0xaa] sm:$0xff] }
 0x347   : > { %v17690_v54 = vadd.f32 %v3963_v43, %v3754_v18  ;;  %v4252_v47 = vadd.f32 %v4125_v2, %v17618_v48  ;;  %v5851_v48 = vpack.c.bf16 %v5824_v49, %v5823_v22  ;;  %v5827_v2 = vld [vmem:[#allocation3 + $0xc2] sm:$0xff] }
 0x348   : > { %v14239_v30 = vpop.f32.mrf.mxu0  ;;  %v14259_v36 = vpop.f32.mrf.mxu1 }
 0x349   : > { %v17693_v13 = vadd.f32 %v14239_v30, %v14191_v27  ;;  %v4255_v46 = vadd.f32 %v14259_v36, %v17620_v45  ;;  %v6204_v45 = vld [vmem:[#allocation2 + $0x69] sm:$0xff] }
 0x34a   : > { %v3966_v32 = vpop.f32.mrf.mxu0  ;;  %v4128_v33 = vpop.f32.mrf.mxu1  ;;  %v6232_v43 = vpack.c.bf16 %v6204_v45, %v6203_v39  ;;  %v5830_v39 = vld [vmem:[#allocation3 + $0xe2] sm:$0xff] }
 0x34b   : > { %v17696_v19 = vadd.f32 %v3966_v32, %v3757_v40  ;;  %v4253_v18 = vadd.f32 %v4128_v33, %v17622_v29  ;;  %v6206_v40 = vld [vmem:[#allocation2 + $0x81] sm:$0xff]  ;;  %v6207_v32 = vld [vmem:[#allocation2 + $0x91] sm:$0xff] }
 0x34c   : > { %v14306_v12 = vpop.f32.mrf.mxu0  ;;  %14593 = vmatmul.mubr.bf16.vlgmr.msra.gmra.mxu0 %v6230_v1  ;;  %v14262_v8 = vpop.f32.mrf.mxu1  ;;  %14549 = vmatmul.mubr.bf16.gmra.mxu1 %v5850_v23  ;;  %v6233_v53 = vpack.c.bf16 %v6206_v40, %v6205_v38  ;;  %v5852_v1 = vpack.c.bf16 %v5826_v24, %v5825_v14  ;;  %v5832_v38 = vld [vmem:[#allocation3 + $0xfa] sm:$0xff] }
 0x34d   : > { %v17699_v3 = vadd.f32 %v14306_v12, %v4254_v31  ;;  %14596 = vmatprep.mubr.bf16.mxu0 %v6231_v56  ;;  %v4258_v27 = vadd.f32 %v14262_v8, %v17625_v50  ;;  %14552 = vmatprep.mubr.bf16.mxu1 %v5851_v48  ;;  %v6209_v48 = vld [vmem:[#allocation2 + $0xa9] sm:$0xff] }
 0x34e   : > { %v4431_v25 = vpop.f32.mrf.mxu0  ;;  %v4141_v10 = vpop.f32.mrf.mxu1  ;;  %v5829_v8 = vld [vmem:[#allocation3 + $0xda] sm:$0xff] }
 0x34f   : > { %v17702_v60 = vadd.f32 %v4431_v25, %v4252_v47  ;;  %v4256_v29 = vadd.f32 %v4141_v10, %v17628_v20  ;;  %v5853_v20 = vpack.c.bf16 %v5828_v17, %v5827_v2  ;;  %v5831_v10 = vld [vmem:[#allocation3 + $0xf2] sm:$0xff] }
 0x350   : > { %v14307_v16 = vpop.f32.mrf.mxu0  ;;  %v14263_v31 = vpop.f32.mrf.mxu1 }
 0x351   : > { %v17705_v52 = vadd.f32 %v14307_v16, %v4255_v46  ;;  %v4259_v50 = vadd.f32 %v14263_v31, %v17630_v6  ;;  %v6208_v6 = vld [vmem:[#allocation2 + $0x99] sm:$0xff] }
 0x352   : > { %v4434_v61 = vpop.f32.mrf.mxu0  ;;  %v4144_v30 = vpop.f32.mrf.mxu1  ;;  %v6234_v25 = vpack.c.bf16 %v6208_v6, %v6207_v32  ;;  %v5834_v32 = vld [vmem:[#allocation3 + $0x112] sm:$0xff] }
 0x353   : > { %v17708_v36 = vadd.f32 %v4434_v61, %v4253_v18  ;;  %v4257_v47 = vadd.f32 %v4144_v30, %v17632_v26  ;;  %v6210_v18 = vld [vmem:[#allocation2 + $0xb1] sm:$0xff]  ;;  %v6211_v61 = vld [vmem:[#allocation2 + $0xc1] sm:$0xff] }
 0x354   : > { %v14310_v22 = vpop.f32.mrf.mxu0  ;;  %14597 = vmatmul.mubr.bf16.gmra.mxu0 %v6232_v43  ;;  %v14266_v49 = vpop.f32.mrf.mxu1  ;;  %14553 = vmatmul.mubr.bf16.gmra.mxu1 %v5852_v1  ;;  %v6235_v14 = vpack.c.bf16 %v6210_v18, %v6209_v48  ;;  %v5854_v43 = vpack.c.bf16 %v5830_v39, %v5829_v8  ;;  %v5836_v48 = vld [vmem:[#allocation3 + $0x12a] sm:$0xff] }
 0x355   : > { %v17711_v56 = vadd.f32 %v14310_v22, %v4258_v27  ;;  %14600 = vmatprep.mubr.bf16.mxu0 %v6233_v53  ;;  %v4262_v46 = vadd.f32 %v14266_v49, %v17635_v15  ;;  %14556 = vmatprep.mubr.bf16.mxu1 %v5853_v20  ;;  %v6213_v20 = vld [vmem:[#allocation2 + $0xd9] sm:$0xff] }
 0x356   : > { %v4447_v33 = vpop.f32.mrf.mxu0  ;;  %v4157_v23 = vpop.f32.mrf.mxu1  ;;  %v5833_v49 = vld [vmem:[#allocation3 + $0x10a] sm:$0xff] }
 0x357   : > { %v17714_v12 = vadd.f32 %v4447_v33, %v4256_v29  ;;  %v4260_v26 = vadd.f32 %v4157_v23, %v17638_v34  ;;  %v5855_v34 = vpack.c.bf16 %v5832_v38, %v5831_v10  ;;  %v5835_v23 = vld [vmem:[#allocation3 + $0x122] sm:$0xff] }
 0x358   : > { %v14311_v45 = vpop.f32.mrf.mxu0  ;;  %v14267_v27 = vpop.f32.mrf.mxu1 }
 0x359   : > { %v17717_v40 = vadd.f32 %v14311_v45, %v4259_v50  ;;  %v4263_v15 = vadd.f32 %v14267_v27, %v17640_v62  ;;  %v6212_v62 = vld [vmem:[#allocation2 + $0xc9] sm:$0xff] }
 0x35a   : > { %v4450_v24 = vpop.f32.mrf.mxu0  ;;  %v4160_v16 = vpop.f32.mrf.mxu1  ;;  %v6236_v33 = vpack.c.bf16 %v6212_v62, %v6211_v61  ;;  %v5838_v61 = vld [vmem:[#allocation3 + $0x142] sm:$0xff] }
 0x35b   : > { %v17720_v31 = vadd.f32 %v4450_v24, %v4257_v47  ;;  %v4261_v29 = vadd.f32 %v4160_v16, %v17642_v7  ;;  %v6214_v47 = vld [vmem:[#allocation2 + $0xe1] sm:$0xff]  ;;  %v6215_v24 = vld [vmem:[#allocation2 + $0xf1] sm:$0xff] }
 0x35c   : > { %v14314_v2 = vpop.f32.mrf.mxu0  ;;  %14601 = vmatmul.mubr.bf16.gmra.mxu0 %v6234_v25  ;;  %v14270_v17 = vpop.f32.mrf.mxu1  ;;  %14557 = vmatmul.mubr.bf16.gmra.mxu1 %v5854_v43  ;;  %v6237_v8 = vpack.c.bf16 %v6214_v47, %v6213_v20  ;;  %v5856_v25 = vpack.c.bf16 %v5834_v32, %v5833_v49  ;;  %v15740_v62 = vld [vmem:[#allocation7 + $0x2b8] sm:$0xff]   ;;  %v5839_v20 = vld [vmem:[#allocation3 + $0x152] sm:$0xff]  ;;  %v5840_v47 = vld [vmem:[#allocation3 + $0x15a] sm:$0xff] }
 0x35d   : > { %v17723_v53 = vadd.f32 %v14314_v2, %v4262_v46  ;;  %14604 = vmatprep.mubr.bf16.mxu0 %v6235_v14  ;;  %v4266_v50 = vadd.f32 %v14270_v17, %v17645_v57  ;;  %14560 = vmatprep.mubr.bf16.mxu1 %v5855_v34  ;;  %v6217_v34 = vld [vmem:[#allocation2 + $0x109] sm:$0xff] }
 0x35e   : > { %v4463_v30 = vpop.f32.mrf.mxu0  ;;  %v4173_v1 = vpop.f32.mrf.mxu1  ;;  %v5837_v17 = vld [vmem:[#allocation3 + $0x13a] sm:$0xff]  ;;  %14624 = vmatprep.subr.bf16.mxu1 %v15740_v62 }
 0x35f   : > { %v17726_v22 = vadd.f32 %v4463_v30, %v4260_v26  ;;  %v4264_v7 = vadd.f32 %v4173_v1, %v17648_v21  ;;  %v5857_v21 = vpack.c.bf16 %v5836_v48, %v5835_v23  ;;  %14625 = vmatpush3.bf16.msra.mxu1 %v15740_v62 }
 0x360   : > { %v14315_v6 = vpop.f32.mrf.mxu0  ;;  %v14271_v46 = vpop.f32.mrf.mxu1 }
 0x361   : > { %v17729_v18 = vadd.f32 %v14315_v6, %v4263_v15  ;;  %v4267_v57 = vadd.f32 %v14271_v46, %v17650_v55  ;;  %v6216_v55 = vld [vmem:[#allocation2 + $0xf9] sm:$0xff]  ;;  %v5859_v46 = vpack.c.bf16 %v5840_v47, %v5839_v20  ;;  %v6223_v47 = vld [vmem:[#allocation2 + $0x151] sm:$0xff] }
 0x362   : > { %v4466_v39 = vpop.f32.mrf.mxu0  ;;  %v4176_v45 = vpop.f32.mrf.mxu1 }
 0x363   : > { %v17732_v27 = vadd.f32 %v4466_v39, %v4261_v29  ;;  %v4265_v26 = vadd.f32 %v4176_v45, %v17652_v5  ;;  %v6218_v29 = vld [vmem:[#allocation2 + $0x111] sm:$0xff]  ;;  %v6220_v39 = vld [vmem:[#allocation2 + $0x129] sm:$0xff] }
 0x364   : > { %v14318_v10 = vpop.f32.mrf.mxu0  ;;  %14605 = vmatmul.mubr.bf16.gmra.mxu0 %v6236_v33  ;;  %v14274_v38 = vpop.f32.mrf.mxu1  ;;  %14561 = vmatmul.mubr.bf16.gmra.mxu1 %v5856_v25  ;;  %v6239_v32 = vpack.c.bf16 %v6218_v29, %v6217_v34  ;;  %v5843_v29 = vld [vmem:[#allocation3 + $0x182] sm:$0xff] }
 0x365   : > { %v17735_v14 = vadd.f32 %v14318_v10, %v4266_v50  ;;  %14608 = vmatprep.mubr.bf16.mxu0 %v6237_v8  ;;  %v4270_v15 = vadd.f32 %v14274_v38, %v17655_v44  ;;  %14564 = vmatprep.mubr.bf16.mxu1 %v5857_v21  ;;  %v6238_v50 = vpack.c.bf16 %v6216_v55, %v6215_v24  ;;  %v6221_v21 = vld [vmem:[#allocation2 + $0x139] sm:$0xff]  ;;  %v6222_v10 = vld [vmem:[#allocation2 + $0x141] sm:$0xff] }
 0x366   : > { %v4479_v16 = vpop.f32.mrf.mxu0  ;;  %v4189_v43 = vpop.f32.mrf.mxu1  ;;  %v5841_v24 = vld [vmem:[#allocation3 + $0x16a] sm:$0xff]  ;;  %v5842_v55 = vld [vmem:[#allocation3 + $0x172] sm:$0xff]  ;;  %v6241_v62 = vpack.c.bf16 %v6222_v10, %v6221_v21 }
 0x367   : > { %v17738_v2 = vadd.f32 %v4479_v16, %v4264_v7  ;;  %v4268_v5 = vadd.f32 %v4189_v43, %v17658_v58  ;;  %v5858_v7 = vpack.c.bf16 %v5838_v61, %v5837_v17  ;;  %v15741_v16 = vld [vmem:[#allocation7 + $0x2b0] sm:$0xff]   ;;  %v5844_v17 = vld [vmem:[#allocation3 + $0x18a] sm:$0xff] }
 0x368   : > { %v14319_v30 = vpop.f32.mrf.mxu0  ;;  %v14275_v1 = vpop.f32.mrf.mxu1  ;;  %14626 = vmatprep.subr.bf16.mxu1 %v15741_v16 }
 0x369   : > { %v17741_v44 = vadd.f32 %v14319_v30, %v4267_v57  ;;  %v4271_v49 = vadd.f32 %v14275_v1, %v17660_v4  ;;  %v6219_v4 = vld [vmem:[#allocation2 + $0x121] sm:$0xff]  ;;  %14627 = vmatpush3.bf16.msra.mxu1 %v15741_v16 }
 0x36a   : > { %v4482_v6 = vpop.f32.mrf.mxu0  ;;  %v17744_v33 = vpop.f32.mrf.mxu1 }
 0x36b   : > { %v17746_v58 = vadd.f32 %v4482_v6, %v4265_v26  ;;  %v5845_v6 = vld [vmem:[#allocation3 + $0x19a] sm:$0xff] }
 0x36c   : > { %v14322_v23 = vpop.f32.mrf.mxu0  ;;  %14609 = vmatmul.mubr.bf16.gmra.mxu0 %v6238_v50  ;;  %v14278_v48 = vpop.f32.mrf.mxu1  ;;  %14565 = vmatmul.mubr.bf16.gmra.mxu1 %v5858_v7  ;;  %v5860_v50 = vpack.c.bf16 %v5842_v55, %v5841_v24  ;;  %v5846_v7 = vld [vmem:[#allocation3 + $0x1a2] sm:$0xff] }
 0x36d   : > { %v17748_v8 = vadd.f32 %v14322_v23, %v4270_v15  ;;  %14612 = vmatprep.mubr.bf16.mxu0 %v6239_v32  ;;  %v4274_v57 = vadd.f32 %v14278_v48, %v17665_v37  ;;  %14568 = vmatprep.mubr.bf16.mxu1 %v5859_v46  ;;  %v6240_v15 = vpack.c.bf16 %v6220_v39, %v6219_v4  ;;  %v6225_v48 = vld [vmem:[#allocation2 + $0x169] sm:$0xff]  ;;  %v6226_v4 = vld [vmem:[#allocation2 + $0x171] sm:$0xff] }
 0x36e   : > { %v4495_v45 = vpop.f32.mrf.mxu0  ;;  %v4205_v25 = vpop.f32.mrf.mxu1  ;;  %v5862_v24 = vpack.c.bf16 %v5846_v7, %v5845_v6  ;;  %v6243_v16 = vpack.c.bf16 %v6226_v4, %v6225_v48 }
 0x36f   : > { %v17751_v38 = vadd.f32 %v4495_v45, %v4268_v5  ;;  %v4272_v26 = vadd.f32 %v4205_v25, %v17669_v11  ;;  %v5861_v11 = vpack.c.bf16 %v5844_v17, %v5843_v29  ;;  %v15742_v25 = vld [vmem:[#allocation7 + $0x2a8] sm:$0xff]  }
 0x370   : > { %v14323_v43 = vpop.f32.mrf.mxu0  ;;  %v14279_v34 = vpop.f32.mrf.mxu1  ;;  %14628 = vmatprep.subr.bf16.mxu1 %v15742_v25  ;;  %v6227_v17 = vld [vmem:[#allocation2 + $0x181] sm:$0xff] }
 0x371   : > { %v17754_v37 = vadd.f32 %v14323_v43, %v4271_v49  ;;  %v4275_v61 = vadd.f32 %v14279_v34, %v17673_v9  ;;  %v6224_v9 = vld [vmem:[#allocation2 + $0x159] sm:$0xff]  ;;  %14629 = vmatpush3.bf16.msra.mxu1 %v15742_v25 }
 0x372   : > { %v17757_v30 = vpop.f32.mrf.mxu0  ;;  %v17759_v5 = vpop.f32.mrf.mxu1  ;;  %v6242_v10 = vpack.c.bf16 %v6224_v9, %v6223_v47 }
 0x374   : > { %v14326_v1 = vpop.f32.mrf.mxu0  ;;  %14613 = vmatmul.mubr.bf16.gmra.mxu0 %v6240_v15  ;;  %v14282_v20 = vpop.f32.mrf.mxu1  ;;  %14569 = vmatmul.mubr.bf16.gmra.mxu1 %v5860_v50 }
 0x375   : > { %v17761_v32 = vadd.f32 %v14326_v1, %v4274_v57  ;;  %14616 = vmatprep.mubr.bf16.mxu0 %v6241_v62  ;;  %v4278_v49 = vadd.f32 %v14282_v20, %v17679_v51  ;;  %14572 = vmatprep.mubr.bf16.mxu1 %v5861_v11  ;;  %v15743_v1 = vld [vmem:[#allocation7 + $0x2a0] sm:$0xff]  }
 0x376   : > { %v4511_v46 = vpop.f32.mrf.mxu0  ;;  %v4221_v23 = vpop.f32.mrf.mxu1  ;;  %14630 = vmatprep.subr.bf16.mxu1 %v15743_v1 }
 0x377   : > { %v17764_v39 = vadd.f32 %v4511_v46, %v4272_v26  ;;  %v4276_v45 = vadd.f32 %v4221_v23, %v17681_v41  ;;  %14631 = vmatpush3.bf16.msra.mxu1 %v15743_v1 }
 0x378   : > { %v14327_v21 = vpop.f32.mrf.mxu0  ;;  %v14283_v57 = vpop.f32.mrf.mxu1 }
 0x379   : > { %v17767_v55 = vadd.f32 %v14327_v21, %v4275_v61  ;;  %v4279_v51 = vadd.f32 %v14283_v57, %v17683_v35  ;;  %v6228_v61 = vld [vmem:[#allocation2 + $0x189] sm:$0xff] }
 0x37a   : > { %v17770_v43 = vpop.f32.mrf.mxu0  ;;  %v17772_v15 = vpop.f32.mrf.mxu1  ;;  %v6244_v47 = vpack.c.bf16 %v6228_v61, %v6227_v17 }
 0x37c   : > { %v14330_v26 = vpop.f32.mrf.mxu0  ;;  %14617 = vmatmul.mubr.bf16.gmra.mxu0 %v6242_v10  ;;  %v14286_v34 = vpop.f32.mrf.mxu1  ;;  %14573 = vmatmul.mubr.bf16.gmra.mxu1 %v5862_v24  ;;  %v15745_v10 = vld [vmem:[#allocation7 + $0x278] sm:$0xff]  }
 0x37d   : > { %v17774_v41 = vadd.f32 %v14330_v26, %v4278_v49  ;;  %14620 = vmatprep.mubr.bf16.mxu0 %v6243_v16  ;;  %v4282_v29 = vadd.f32 %v14286_v34, %v17687_v0  ;;  %14672 = vmatprep.subr.bf16.mxu0 %v15745_v10 }
 0x37e   : > { %v4527_v62 = vpop.f32.mrf.mxu0  ;;  %v4237_v35 = vpop.f32.mrf.mxu1  ;;  %14673 = vmatpush3.bf16.msra.mxu0 %v15745_v10  ;;  %v15747_v10 = vld [vmem:[#allocation7 + $0x290] sm:$0xff]  }
 0x37f   : > { %v17777_v50 = vadd.f32 %v4527_v62, %v4276_v45  ;;  %v4280_v11 = vadd.f32 %v4237_v35, %v17690_v54 }
 0x380   : > { %v14331_v20 = vpop.f32.mrf.mxu0  ;;  %v14287_v9 = vpop.f32.mrf.mxu1 }
 0x381   : > { %v17780_v6 = vadd.f32 %v14331_v20, %v4279_v51  ;;  %v4283_v49 = vadd.f32 %v14287_v9, %v17693_v13  ;;  %v15744_v13 = vld [vmem:[#allocation7 + $0x298] sm:$0xff]  }
 0x382   : > { %v17783_v7 = vpop.f32.mrf.mxu0  ;;  %v17785_v0 = vpop.f32.mrf.mxu1  ;;  %14632 = vmatprep.subr.bf16.mxu1 %v15744_v13 }
 0x383   : > { %14633 = vmatpush3.bf16.msra.mxu1 %v15744_v13 }
 0x384   : > { %v14334_v46 = vpop.f32.mrf.mxu0  ;;  %14621 = vmatmul.mubr.bf16.gmra.mxu0 %v6244_v47  ;;  %v14354_v23 = vpop.f32.mrf.mxu1  ;;  %14634 = vmatprep.subr.bf16.mxu1 %v15747_v10 }
 0x385   : > { %v17787_v48 = vadd.f32 %v14334_v46, %v4282_v29  ;;  %v4866_v54 = vadd.f32 %v14354_v23, %v17699_v3  ;;  %v15746_v3 = vld [vmem:[#allocation7 + $0x270] sm:$0xff]   ;;  %14688 = vmatprep.mubr.bf16.mxu0 %v17671_v28 }
 0x386   : > { %v4543_v4 = vpop.f32.mrf.mxu0  ;;  %v4737_v45 = vpop.f32.mrf.mxu1  ;;  %14674 = vmatprep.subr.bf16.mxu0 %v15746_v3 }
 0x387   : > { %v17790_v25 = vadd.f32 %v4543_v4, %v4280_v11  ;;  %v4864_v21 = vadd.f32 %v4737_v45, %v17702_v60  ;;  %14675 = vmatpush3.bf16.msra.mxu0 %v15746_v3  ;;  %14635 = vmatpush3.bf16.msra.mxu1 %v15747_v10 }
 0x388   : > { %v14335_v57 = vpop.f32.mrf.mxu0  ;;  %v14355_v24 = vpop.f32.mrf.mxu1 }
 0x389   : > { %v17793_v51 = vadd.f32 %v14335_v57, %v4283_v49  ;;  %v4867_v16 = vadd.f32 %v14355_v24, %v17705_v52  ;;  %v15748_v57 = vld [vmem:[#allocation7 + $0x268] sm:$0xff]  }
 0x38a   : > { %v17796_v26 = vpop.f32.mrf.mxu0  ;;  %v17798_v34 = vpop.f32.mrf.mxu1  ;;  %14676 = vmatprep.subr.bf16.mxu0 %v15748_v57 }
 0x38b   : > { %14677 = vmatpush3.bf16.msra.mxu0 %v15748_v57 }
 0x38c   : > { %v14402_v29 = vpop.f32.mrf.mxu0  ;;  %v14358_v17 = vpop.f32.mrf.mxu1 }
 0x38d   : > { %v17800_v60 = vadd.f32 %v14402_v29, %v4866_v54  ;;  %v4870_v61 = vadd.f32 %v14358_v17, %v17711_v56 }
 0x38e   : > { %v5043_v62 = vpop.f32.mrf.mxu0  ;;  %v4753_v35 = vpop.f32.mrf.mxu1 }
 0x38f   : > { %v17803_v52 = vadd.f32 %v5043_v62, %v4864_v21  ;;  %v4868_v11 = vadd.f32 %v4753_v35, %v17714_v12 }
 0x390   : > { %v14403_v1 = vpop.f32.mrf.mxu0  ;;  %v14359_v20 = vpop.f32.mrf.mxu1 }
 0x391   : > { %v17806_v47 = vadd.f32 %v14403_v1, %v4867_v16  ;;  %v4871_v9 = vadd.f32 %v14359_v20, %v17717_v40 }
 0x392   : > { %v17809_v49 = vpop.f32.mrf.mxu0  ;;  %v17811_v46 = vpop.f32.mrf.mxu1 }
 0x394   : > { %v14406_v23 = vpop.f32.mrf.mxu0  ;;  %v14362_v56 = vpop.f32.mrf.mxu1 }
 0x395   : > { %v17813_v54 = vadd.f32 %v14406_v23, %v4870_v61  ;;  %v4874_v4 = vadd.f32 %v14362_v56, %v17723_v53  ;;  %v15749_v53 = vld [vmem:[#allocation7 + $0x260] sm:$0xff]   ;;  %v15751_v23 = vld [vmem:[#allocation7 + $0x258] sm:$0xff]  }
 0x396   : > { %v5059_v45 = vpop.f32.mrf.mxu0  ;;  %v4769_v21 = vpop.f32.mrf.mxu1  ;;  %14678 = vmatprep.subr.bf16.mxu0 %v15749_v53 }
 0x397   : > { %v17816_v13 = vadd.f32 %v5059_v45, %v4868_v11  ;;  %v4872_v12 = vadd.f32 %v4769_v21, %v17726_v22  ;;  %14679 = vmatpush3.bf16.msra.mxu0 %v15749_v53 }
 0x398   : > { %v14407_v24 = vpop.f32.mrf.mxu0  ;;  %v14363_v40 = vpop.f32.mrf.mxu1  ;;  %14680 = vmatprep.subr.bf16.mxu0 %v15751_v23 }
 0x399   : > { %v17819_v16 = vadd.f32 %v14407_v24, %v4871_v9  ;;  %v4875_v3 = vadd.f32 %v14363_v40, %v17729_v18  ;;  %v15750_v9 = vld [vmem:[#allocation7 + $0x288] sm:$0xff]  }
 0x39a   : > { %v17822_v29 = vpop.f32.mrf.mxu0  ;;  %v17824_v17 = vpop.f32.mrf.mxu1  ;;  %14636 = vmatprep.subr.bf16.mxu1 %v15750_v9 }
 0x39b   : > { %14637 = vmatpush3.bf16.msra.mxu1 %v15750_v9  ;;  %14681 = vmatpush3.bf16.msra.mxu0 %v15751_v23 }
 0x39c   : > { %v14410_v61 = vpop.f32.mrf.mxu0  ;;  %v14366_v62 = vpop.f32.mrf.mxu1 }
 0x39d   : > { %v17826_v22 = vadd.f32 %v14410_v61, %v4874_v4  ;;  %v4878_v35 = vadd.f32 %v14366_v62, %v17735_v14  ;;  %v15753_v62 = vld [vmem:[#allocation7 + $0x280] sm:$0xff]  }
 0x39e   : > { %v5075_v11 = vpop.f32.mrf.mxu0  ;;  %v4785_v1 = vpop.f32.mrf.mxu1  ;;  %14638 = vmatprep.subr.bf16.mxu1 %v15753_v62 }
 0x39f   : > { %v17829_v18 = vadd.f32 %v5075_v11, %v4872_v12  ;;  %v4876_v20 = vadd.f32 %v4785_v1, %v17738_v2  ;;  %v15752_v12 = vld [vmem:[#allocation7 + $0x250] sm:$0xff]   ;;  %v15754_v11 = vld [vmem:[#allocation7 + $0x248] sm:$0xff]   ;;  %14639 = vmatpush3.bf16.msra.mxu1 %v15753_v62 }
 0x3a0   : > { %v14411_v56 = vpop.f32.mrf.mxu0  ;;  %v14367_v45 = vpop.f32.mrf.mxu1  ;;  %14682 = vmatprep.subr.bf16.mxu0 %v15752_v12 }
 0x3a1   : > { %20590 = vst [vmem:[#allocation39_spill] sm:$0xff] %v17829_v18  ;;  %v17832_v21 = vadd.f32 %v14411_v56, %v4875_v3  ;;  %v4879_v10 = vadd.f32 %v14367_v45, %v17741_v44  ;;  %14683 = vmatpush3.bf16.msra.mxu0 %v15752_v12 }
 0x3a2   : > { %v17835_v4 = vpop.f32.mrf.mxu0  ;;  %v17837_v14 = vpop.f32.mrf.mxu1  ;;  %14684 = vmatprep.subr.bf16.mxu0 %v15754_v11 }
 0x3a3   : > { %20591 = vst [vmem:[#allocation18_spill] sm:$0xff] %v17832_v21 }
 0x3a4   : > { %v14414_v57 = vpop.f32.mrf.mxu0  ;;  %v14370_v24 = vpop.f32.mrf.mxu1 }
 0x3a5   : > { %v17839_v2 = vadd.f32 %v14414_v57, %v4878_v35  ;;  %v4882_v40 = vadd.f32 %v14370_v24, %v17748_v8  ;;  %14685 = vmatpush3.bf16.msra.mxu0 %v15754_v11 }
 0x3a6   : > { %v5091_v3 = vpop.f32.mrf.mxu0  ;;  %v4801_v53 = vpop.f32.mrf.mxu1 }
 0x3a7   : > { %20592 = vst [vmem:[#allocation41_spill] sm:$0xff] %v17839_v2  ;;  %v17842_v44 = vadd.f32 %v5091_v3, %v4876_v20  ;;  %v4880_v61 = vadd.f32 %v4801_v53, %v17751_v38  ;;  %v15755_v20 = vld [vmem:[#allocation7 + $0x240] sm:$0xff]  }
 0x3a8   : > { %v14415_v1 = vpop.f32.mrf.mxu0  ;;  %v14371_v9 = vpop.f32.mrf.mxu1  ;;  %14686 = vmatprep.subr.bf16.mxu0 %v15755_v20  ;;  %v6713_v53 = vld [vmem:[#allocation2 + $0x1] sm:$0xff] }
 0x3a9   : > { %20593 = vst [vmem:[#allocation19_spill] sm:$0xff] %v17842_v44  ;;  %v17845_v23 = vadd.f32 %v14415_v1, %v4879_v10  ;;  %v4883_v56 = vadd.f32 %v14371_v9, %v17754_v37  ;;  %14687 = vmatpush3.bf16.msra.mxu0 %v15755_v20  ;;  %v6714_v1 = vld [vmem:[#allocation2 + $0x9] sm:$0xff]  ;;  %v17858_v9 = vld [vmem:[#allocation7 + $0x2f8] sm:$0xff]  }
 0x3aa   : > { %v17848_v35 = vpop.f32.mrf.mxu0  ;;  %v17850_v8 = vpop.f32.mrf.mxu1  ;;  %20597 = vst [vmem:[#allocation45_spill] sm:$0xff] %v17858_v9  ;;  %14720 = vmatprep.subr.bf16.mxu1 %v17858_v9 }
 0x3ab   : > { %20594 = vst [vmem:[#allocation43_spill] sm:$0xff] %v17845_v23  ;;  %v6745_v23 = vpack.c.bf16 %v6714_v1, %v6713_v53 }
 0x3ac   : > { %v14418_v45 = vpop.f32.mrf.mxu0  ;;  %v14374_v12 = vpop.f32.mrf.mxu1 }
 0x3ad   : > { %v17852_v38 = vadd.f32 %v14418_v45, %v4882_v40  ;;  %v4886_v57 = vadd.f32 %v14374_v12, %v17761_v32  ;;  %14640 = vmatprep.mubr.bf16.mxu1 %v6745_v23 }
 0x3ae   : > { %v5107_v10 = vpop.f32.mrf.mxu0  ;;  %v4817_v24 = vpop.f32.mrf.mxu1 }
 0x3af   : > { %20595 = vst [vmem:[#allocation37_spill] sm:$0xff] %v17852_v38  ;;  %v17855_v37 = vadd.f32 %v5107_v10, %v4880_v61  ;;  %v4884_v3 = vadd.f32 %v4817_v24, %v17764_v39 }
 0x3b0   : > { %v14419_v62 = vpop.f32.mrf.mxu0  ;;  %v14375_v11 = vpop.f32.mrf.mxu1 }
 0x3b1   : > { %20596 = vst [vmem:[#allocation38_spill] sm:$0xff] %v17855_v37  ;;  %v17860_v44 = vadd.f32 %v14419_v62, %v4883_v56  ;;  %v4887_v40 = vadd.f32 %v14375_v11, %v17767_v55 }
 0x3b2   : > { %v17865_v32 = vpop.f32.mrf.mxu0  ;;  %v17867_v61 = vpop.f32.mrf.mxu1 }
 0x3b3   : > { %20598 = vst [vmem:[#allocation40_spill] sm:$0xff] %v17860_v44 }
 0x3b4   : > { %v14422_v39 = vpop.f32.mrf.mxu0  ;;  %v14378_v20 = vpop.f32.mrf.mxu1 }
 0x3b5   : > { %v17869_v45 = vadd.f32 %v14422_v39, %v4886_v57  ;;  %v4890_v12 = vadd.f32 %v14378_v20, %v17774_v41 }
 0x3b6   : > { %v5123_v10 = vpop.f32.mrf.mxu0  ;;  %v4833_v56 = vpop.f32.mrf.mxu1 }
 0x3b7   : > { %20599 = vst [vmem:[#allocation42_spill] sm:$0xff] %v17869_v45  ;;  %v17872_v24 = vadd.f32 %v5123_v10, %v4884_v3  ;;  %v4888_v55 = vadd.f32 %v4833_v56, %v17777_v50 }
 0x3b8   : > { %v14423_v28 = vpop.f32.mrf.mxu0  ;;  %v14379_v53 = vpop.f32.mrf.mxu1 }
 0x3b9   : > { %20600 = vst [vmem:[#allocation44_spill] sm:$0xff] %v17872_v24  ;;  %v17875_v1 = vadd.f32 %v14423_v28, %v4887_v40  ;;  %v4891_v62 = vadd.f32 %v14379_v53, %v17780_v6 }
 0x3ba   : > { %v17878_v11 = vpop.f32.mrf.mxu0  ;;  %v17880_v23 = vpop.f32.mrf.mxu1 }
 0x3bb   : > { %20601 = vst [vmem:[#allocation46_spill] sm:$0xff] %v17875_v1 }
 0x3bc   : > { %v14426_v57 = vpop.f32.mrf.mxu0  ;;  %v14382_v39 = vpop.f32.mrf.mxu1 }
 0x3bd   : > { %v17882_v9 = vadd.f32 %v14426_v57, %v4890_v12  ;;  %v4894_v41 = vadd.f32 %v14382_v39, %v17787_v48 }
 0x3be   : > { %v5139_v3 = vpop.f32.mrf.mxu0  ;;  %v4849_v20 = vpop.f32.mrf.mxu1 }
 0x3bf   : > { %20602 = vst [vmem:[#allocation20_spill] sm:$0xff] %v17882_v9  ;;  %v17885_v10 = vadd.f32 %v5139_v3, %v4888_v55  ;;  %v4892_v50 = vadd.f32 %v4849_v20, %v17790_v25 }
 0x3c0   : > { %v14427_v40 = vpop.f32.mrf.mxu0  ;;  %v14383_v56 = vpop.f32.mrf.mxu1 }
 0x3c1   : > { %20603 = vst [vmem:[#allocation47_spill] sm:$0xff] %v17885_v10  ;;  %v17888_v28 = vadd.f32 %v14427_v40, %v4891_v62  ;;  %v4895_v6 = vadd.f32 %v14383_v56, %v17793_v51 }
 0x3c2   : > { %v17891_v53 = vpop.f32.mrf.mxu0  ;;  %v17893_v1 = vpop.f32.mrf.mxu1 }
 0x3c3   : > { %20604 = vst [vmem:[#allocation21_spill] sm:$0xff] %v17888_v28 }
 0x3c4   : > { %v14430_v12 = vpop.f32.mrf.mxu0  ;;  %v17895_v57 = vpop.f32.mrf.mxu1 }
 0x3c5   : > { %v17897_v48 = vadd.f32 %v14430_v12, %v4894_v41 }
 0x3c6   : > { %v5155_v39 = vpop.f32.mrf.mxu0  ;;  %v17899_v55 = vpop.f32.mrf.mxu1 }
 0x3c7   : > { %20605 = vst [vmem:[#allocation49_spill] sm:$0xff] %v17897_v48  ;;  %v17901_v3 = vadd.f32 %v5155_v39, %v4892_v50  ;;  %v17919_v48 = vld [vmem:[#allocation7 + $0x338] sm:$0xff]  }
 0x3c8   : > { %v14431_v25 = vpop.f32.mrf.mxu0  ;;  %v17903_v20 = vpop.f32.mrf.mxu1  ;;  %20608 = vst [vmem:[#allocation53_spill] sm:$0xff] %v17919_v48  ;;  %14768 = vmatprep.subr.bf16.mxu0 %v17919_v48 }
 0x3c9   : > { %20606 = vst [vmem:[#allocation22_spill] sm:$0xff] %v17901_v3  ;;  %v17905_v62 = vadd.f32 %v14431_v25, %v4895_v6 }
 0x3ca   : > { %v17907_v51 = vpop.f32.mrf.mxu0  ;;  %v17909_v40 = vpop.f32.mrf.mxu1 }
 0x3cb   : > { %20607 = vst [vmem:[#allocation51_spill] sm:$0xff] %v17905_v62 }
 0x3cc   : > { %v17911_v56 = vpop.f32.mrf.mxu0  ;;  %v17913_v28 = vpop.f32.mrf.mxu1 }
 0x3ce   : > { %v17915_v41 = vpop.f32.mrf.mxu0  ;;  %v17917_v12 = vpop.f32.mrf.mxu1 }
 0x3d0   : > { %v17921_v50 = vpop.f32.mrf.mxu0  ;;  %v17923_v39 = vpop.f32.mrf.mxu1 }
 0x3d2   : > { %v17926_v6 = vpop.f32.mrf.mxu0  ;;  %v17928_v25 = vpop.f32.mrf.mxu1 }
 0x3d4   : > { %v17930_v62 = vpop.f32.mrf.mxu0  ;;  %v17932_v3 = vpop.f32.mrf.mxu1 }
 0x3d5   : > { %20609 = vst [vmem:[#allocation23_spill] sm:$0xff] %v17932_v3 }
 0x3d6   : > { %v17934_v10 = vpop.f32.mrf.mxu0  ;;  %v17936_v9 = vpop.f32.mrf.mxu1 }
 0x3d7   : > { %20610 = vst [vmem:[#allocation55_spill] sm:$0xff] %v17936_v9 }
 0x3d8   : > { %v17938_v24 = vpop.f32.mrf.mxu0  ;;  %v17940_v45 = vpop.f32.mrf.mxu1 }
 0x3d9   : > { %20611 = vst [vmem:[#allocation24_spill] sm:$0xff] %v17938_v24  ;;  %20612 = vst [vmem:[#allocation57_spill] sm:$0xff] %v17940_v45 }
 0x3da   : > { %v17942_v44 = vpop.f32.mrf.mxu0  ;;  %v17944_v37 = vpop.f32.mrf.mxu1 }
 0x3db   : > { %20613 = vst [vmem:[#allocation48_spill] sm:$0xff] %v17942_v44  ;;  %20614 = vst [vmem:[#allocation50_spill] sm:$0xff] %v17944_v37 }
 0x3dc   : > { %v17946_v48 = vpop.f32.mrf.mxu0  ;;  %v17948_v38 = vpop.f32.mrf.mxu1 }
 0x3dd   : > { %20615 = vst [vmem:[#allocation52_spill] sm:$0xff] %v17946_v48  ;;  %20616 = vst [vmem:[#allocation25_spill] sm:$0xff] %v17948_v38 }
 0x3de   : > { %v17950_v2 = vpop.f32.mrf.mxu0  ;;  %v17952_v21 = vpop.f32.mrf.mxu1 }
 0x3df   : > { %20617 = vst [vmem:[#allocation54_spill] sm:$0xff] %v17950_v2  ;;  %20618 = vst [vmem:[#allocation56_spill] sm:$0xff] %v17952_v21 }
 0x3e0   : > { %v17954_v18 = vpop.f32.mrf.mxu0  ;;  %v17956_v3 = vpop.f32.mrf.mxu1 }
 0x3e1   : > { %20619 = vst [vmem:[#allocation58_spill] sm:$0xff] %v17954_v18  ;;  %20620 = vst [vmem:[#allocation26_spill] sm:$0xff] %v17956_v3 }
 0x3e2   : > { %v17958_v9 = vpop.f32.mrf.mxu0  ;;  %v17960_v24 = vpop.f32.mrf.mxu1 }
 0x3e3   : > { %20621 = vst [vmem:[#allocation59_spill] sm:$0xff] %v17958_v9  ;;  %20622 = vst [vmem:[#allocation61_spill] sm:$0xff] %v17960_v24 }
 0x3e4   : > { %v17962_v45 = vpop.f32.mrf.mxu0  ;;  %v17964_v44 = vpop.f32.mrf.mxu1 }
 0x3e5   : > { %20623 = vst [vmem:[#allocation60_spill] sm:$0xff] %v17962_v45  ;;  %20624 = vst [vmem:[#allocation62_spill] sm:$0xff] %v17964_v44 }
 0x3e6   : > { %v17966_v37 = vpop.f32.mrf.mxu0  ;;  %v17968_v48 = vpop.f32.mrf.mxu1 }
 0x3e7   : > { %20625 = vst [vmem:[#allocation28_spill] sm:$0xff] %v17966_v37  ;;  %20626 = vst [vmem:[#allocation63_spill] sm:$0xff] %v17968_v48 }
 0x3e8   : > { %v17970_v38 = vpop.f32.mrf.mxu0  ;;  %v17972_v2 = vpop.f32.mrf.mxu1 }
 0x3e9   : > { %20627 = vst [vmem:[#allocation27_spill] sm:$0xff] %v17970_v38  ;;  %20628 = vst [vmem:[#allocation29_spill] sm:$0xff] %v17972_v2 }
 0x3ea   : > { %v17974_v21 = vpop.f32.mrf.mxu0  ;;  %v17976_v18 = vpop.f32.mrf.mxu1 }
 0x3eb   : > { %20629 = vst [vmem:[#allocation65_spill] sm:$0xff] %v17974_v21  ;;  %20630 = vst [vmem:[#allocation30_spill] sm:$0xff] %v17976_v18 }
 0x3ec   : > { %v17978_v3 = vpop.f32.mrf.mxu0  ;;  %v17980_v9 = vpop.f32.mrf.mxu1 }
 0x3ed   : > { %20631 = vst [vmem:[#allocation67_spill] sm:$0xff] %v17978_v3  ;;  %20632 = vst [vmem:[#allocation69_spill] sm:$0xff] %v17980_v9  ;;  %v4269_v9 = vadd.f32 %v17744_v33, %v17663_v59  ;;  %v4865_v59 = vadd.f32 %v17798_v34, %v17708_v36 }
 0x3ee   : > { %v17982_v24 = vpop.f32.mrf.mxu0  ;;  %v17984_v45 = vpop.f32.mrf.mxu1 }
 0x3ef   : > { %20633 = vst [vmem:[#allocation31_spill] sm:$0xff] %v17984_v45  ;;  %v4273_v45 = vadd.f32 %v17759_v5, %v17675_v63  ;;  %v4869_v63 = vadd.f32 %v17811_v46, %v17720_v31 }
 0x3f0   : > { %v17986_v44 = vpop.f32.mrf.mxu0  ;;  %v17988_v37 = vpop.f32.mrf.mxu1 }
 0x3f1   : > { %20634 = vst [vmem:[#allocation64_spill] sm:$0xff] %v17986_v44  ;;  %20635 = vst [vmem:[#allocation66_spill] sm:$0xff] %v17988_v37  ;;  %v5175_v36 = vadd.f32 %v17822_v29, %v4869_v63  ;;  %v5479_v29 = vadd.f32 %v17895_v57, %v17800_v60 }
 0x3f2   : > { %v17990_v48 = vpop.f32.mrf.mxu0  ;;  %v17992_v38 = vpop.f32.mrf.mxu1 }
 0x3f3   : > { %20636 = vst [vmem:[#allocation68_spill] sm:$0xff] %v17992_v38  ;;  %v4277_v38 = vadd.f32 %v17772_v15, %v17685_v42  ;;  %v5785_v60 = vadd.f32 %v17911_v56, %v5479_v29  ;;  %v20647_v56 = vld [vmem:[#allocation57_spill] sm:$0xff]  ;;  %v20658_v29 = vld [vmem:[#allocation26_spill] sm:$0xff] }
 0x3f4   : > { %v17994_v2 = vpop.f32.mrf.mxu0  ;;  %v17996_v21 = vpop.f32.mrf.mxu1 }
 0x3f5   : > { %20637 = vst [vmem:[#allocation70_spill] sm:$0xff] %v17996_v21  ;;  %v4281_v21 = vadd.f32 %v17785_v0, %v17696_v19  ;;  %v4873_v19 = vadd.f32 %v17824_v17, %v17732_v27  ;;  %v5477_v17 = vadd.f32 %v17899_v55, %v17803_v52  ;;  %v5483_v52 = vadd.f32 %v17913_v28, %v17813_v54  ;;  %v20642_v28 = vld [vmem:[#allocation39_spill] sm:$0xff] }
 0x3f6   : > { %v17998_v18 = vpop.f32.mrf.mxu0  ;;  %v18000_v3 = vpop.f32.mrf.mxu1 }
 0x3f7   : > { %20638 = vst [vmem:[#allocation32_spill] sm:$0xff] %v17998_v18  ;;  %20639 = vst [vmem:[#allocation71_spill] sm:$0xff] %v18000_v3  ;;  %v4575_v18 = vadd.f32 %v17757_v30, %v4269_v9  ;;  %v4579_v3 = vadd.f32 %v17770_v43, %v4273_v45  ;;  %v4587_v42 = vadd.f32 %v17796_v26, %v4281_v21 }
 0x3f8   : > { %v18006_v44 = vpop.f32.mrf.mxu0  ;;  %v18008_v37 = vpop.f32.mrf.mxu1  ;;  %v4877_v30 = vadd.f32 %v17837_v14, %v17746_v58  ;;  %v5171_v43 = vadd.f32 %v17809_v49, %v4865_v59  ;;  %v5484_v45 = vadd.f32 %v17923_v39, %v17819_v16  ;;  %v20650_v39 = vld [vmem:[#allocation54_spill] sm:$0xff]  ;;  %v20652_v59 = vld [vmem:[#allocation25_spill] sm:$0xff] }
 0x3f9   : > { %20640 = vst [vmem:[#allocation33_spill] sm:$0xff] %v18008_v37  ;;  %v4583_v37 = vadd.f32 %v17783_v7, %v4277_v38  ;;  %v4881_v31 = vadd.f32 %v17850_v8, %v4575_v18  ;;  %v4885_v15 = vadd.f32 %v17867_v61, %v4579_v3  ;;  %v5179_v7 = vadd.f32 %v17835_v4, %v4873_v19  ;;  %v20654_v19 = vld [vmem:[#allocation56_spill] sm:$0xff] }
 0x3fa   : > { %v18020_v33 = vpop.f32.mrf.mxu0  ;;  %v18022_v5 = vpop.f32.mrf.mxu1  ;;  %v5183_v26 = vadd.f32 %v17848_v35, %v4877_v30  ;;  %v4893_v58 = vadd.f32 %v17893_v1, %v4587_v42  ;;  %v5480_v35 = vadd.f32 %v17903_v20, %v17806_v47  ;;  %v5478_v8 = vadd.f32 %v17909_v40, %v5171_v43  ;;  %v20644_v20 = vld [vmem:[#allocation24_spill] sm:$0xff]  ;;  %v20653_v42 = vld [vmem:[#allocation19_spill] sm:$0xff] }
 0x3fb   : > { %v4889_v27 = vadd.f32 %v17880_v23, %v4583_v37  ;;  %v5187_v49 = vadd.f32 %v17865_v32, %v4881_v31  ;;  %v5191_v46 = vadd.f32 %v17878_v11, %v4885_v15  ;;  %v5783_v38 = vadd.f32 %v17915_v41, %v5477_v17  ;;  %v20648_v41 = vld [vmem:[#allocation50_spill] sm:$0xff] }
 0x3fc   : > { %v18034_v0 = vpop.f32.mrf.mxu0  ;;  %v18036_v34 = vpop.f32.mrf.mxu1  ;;  %v18056_v14 = vadd.f32 %v17907_v51, %v4893_v58  ;;  %v5481_v37 = vadd.f32 %v17917_v12, %v17816_v13  ;;  %v5786_v61 = vadd.f32 %v17921_v50, %v5480_v35  ;;  %v5784_v47 = vadd.f32 %v17926_v6, %v5478_v8  ;;  %v20641_v13 = vld [vmem:[#allocation23_spill] sm:$0xff]  ;;  %v20645_v51 = vld [vmem:[#allocation48_spill] sm:$0xff]  ;;  %v20655_v31 = vld [vmem:[#allocation58_spill] sm:$0xff] }
 0x3fd   : > { %v18053_v4 = vadd.f32 %v17891_v53, %v4889_v27  ;;  %v5482_v1 = vadd.f32 %v17928_v25, %v5175_v36  ;;  %v18077_v11 = vadd.f32 %v17930_v62, %v5483_v52  ;;  %v5487_v23 = vadd.f32 %v20641_v13, %v17826_v22  ;;  %v20643_v53 = vld [vmem:[#allocation55_spill] sm:$0xff]  ;;  %v20646_v62 = vld [vmem:[#allocation18_spill] sm:$0xff]  ;;  %v20649_v50 = vld [vmem:[#allocation52_spill] sm:$0xff] }
 0x3fe   : > { %v18048_v18 = vpop.f32.mrf.mxu0  ;;  %v18050_v21 = vpop.f32.mrf.mxu1  ;;  %v18080_v54 = vadd.f32 %v17934_v10, %v5481_v37  ;;  %v5485_v57 = vadd.f32 %v20643_v53, %v20642_v28  ;;  %v18091_v16 = vadd.f32 %v20644_v20, %v5484_v45  ;;  %v5488_v10 = vadd.f32 %v20647_v56, %v20646_v62  ;;  %v20651_v25 = vld [vmem:[#allocation41_spill] sm:$0xff]  ;;  %v20656_v27 = vld [vmem:[#allocation59_spill] sm:$0xff]  ;;  %v20660_v52 = vld [vmem:[#allocation60_spill] sm:$0xff] }
 0x3ff   : > { %v18094_v40 = vadd.f32 %v20645_v51, %v5482_v1  ;;  %v5486_v12 = vadd.f32 %v20648_v41, %v5179_v7  ;;  %v18100_v22 = vadd.f32 %v20649_v50, %v5487_v23  ;;  %v5491_v63 = vadd.f32 %v20652_v59, %v20651_v25  ;;  %v20657_v58 = vld [vmem:[#allocation43_spill] sm:$0xff]  ;;  %v20659_v35 = vld [vmem:[#allocation61_spill] sm:$0xff]  ;;  %v20661_v45 = vld [vmem:[#allocation28_spill] sm:$0xff] }
 0x400   : > { %v18067_v9 = vpop.f32.mrf.mxu0  ;;  %v18069_v32 = vpop.f32.mrf.mxu1  ;;  %v18103_v6 = vadd.f32 %v20650_v39, %v5485_v57  ;;  %v5489_v30 = vadd.f32 %v20654_v19, %v20653_v42  ;;  %v18112_v15 = vadd.f32 %v20655_v31, %v5488_v10  ;;  %v5492_v17 = vadd.f32 %v20658_v29, %v20657_v58  ;;  %v20662_v13 = vld [vmem:[#allocation37_spill] sm:$0xff]  ;;  %v20663_v23 = vld [vmem:[#allocation62_spill] sm:$0xff]  ;;  %v20665_v57 = vld [vmem:[#allocation63_spill] sm:$0xff] }
 0x401   : > { %v18115_v7 = vadd.f32 %v20656_v27, %v5486_v12  ;;  %v5490_v8 = vadd.f32 %v20659_v35, %v5183_v26  ;;  %v18121_v37 = vadd.f32 %v20660_v52, %v5491_v63  ;;  %v5495_v28 = vadd.f32 %v20663_v23, %v20662_v13  ;;  %v20664_v53 = vld [vmem:[#allocation38_spill] sm:$0xff]  ;;  %v20666_v56 = vld [vmem:[#allocation27_spill] sm:$0xff]  ;;  %v20667_v41 = vld [vmem:[#allocation65_spill] sm:$0xff] }
 0x402   : > { %v18086_v55 = vpop.f32.mrf.mxu0  ;;  %v18088_v3 = vpop.f32.mrf.mxu1  ;;  %v18124_v1 = vadd.f32 %v20661_v45, %v5489_v30  ;;  %v5493_v20 = vadd.f32 %v20665_v57, %v20664_v53  ;;  %v18133_v10 = vadd.f32 %v20666_v56, %v5492_v17  ;;  %v20668_v12 = vld [vmem:[#allocation40_spill] sm:$0xff]  ;;  %v20669_v50 = vld [vmem:[#allocation29_spill] sm:$0xff]  ;;  %v20670_v59 = vld [vmem:[#allocation67_spill] sm:$0xff] }
 0x403   : > { %v18136_v26 = vadd.f32 %v20667_v41, %v5490_v8  ;;  %v5496_v39 = vadd.f32 %v20669_v50, %v20668_v12  ;;  %v18141_v63 = vadd.f32 %v20670_v59, %v5495_v28  ;;  %v20671_v19 = vld [vmem:[#allocation30_spill] sm:$0xff]  ;;  %v20673_v27 = vld [vmem:[#allocation69_spill] sm:$0xff]  ;;  %v20675_v8 = vld [vmem:[#allocation44_spill] sm:$0xff] }
 0x404   : > { %v18109_v43 = vpop.f32.mrf.mxu0  ;;  %v14546_v36 = vpop.f32.mrf.mxu1  ;;  %v18144_v42 = vadd.f32 %v17982_v24, %v5493_v20  ;;  %v5494_v30 = vadd.f32 %v20671_v19, %v5187_v49  ;;  %v20672_v31 = vld [vmem:[#allocation42_spill] sm:$0xff]  ;;  %v20676_v52 = vld [vmem:[#allocation31_spill] sm:$0xff]  ;;  %v20679_v57 = vld [vmem:[#allocation68_spill] sm:$0xff] }
 0x405   : > { %v6091_v25 = vadd.f32 %v14546_v36, %v5785_v60  ;;  %v5499_v58 = vadd.f32 %v20673_v27, %v20672_v31  ;;  %v18154_v17 = vld [vmem:[%s20434_s5] ss:$0 sm:$0xff]  ;;  %v20674_v60 = vld [vmem:[#allocation64_spill] sm:$0xff]  ;;  %v5497_v24 = vadd.f32 %v20676_v52, %v20675_v8  ;;  %v5498_v20 = vadd.f32 %v20679_v57, %v5191_v46  ;;  %v20683_v19 = vld [vmem:[#allocation47_spill] sm:$0xff] }
 0x406   : > { %v18130_v51 = vpop.f32.mrf.mxu0  ;;  %v5962_v62 = vpop.f32.mrf.mxu1  ;;  %v18157_v36 = vadd.f32 %v20674_v60, %v5496_v39  ;;  %v20677_v45 = vld [vmem:[#allocation46_spill] sm:$0xff]  ;;  %v18164_v28 = vadd.f32 %v17990_v48, %v5494_v30  ;;  %v20680_v39 = vld [vmem:[#allocation32_spill] sm:$0xff]  ;;  %v20687_v57 = vld [vmem:[#allocation49_spill] sm:$0xff] }
 0x407   : > { %v20678_v13 = vld [vmem:[#allocation66_spill] sm:$0xff]  ;;  %v6089_v23 = vadd.f32 %v5962_v62, %v5783_v38  ;;  %v18167_v53 = vadd.f32 %v17994_v2, %v5499_v58  ;;  %v18178_v59 = vadd.f32 %v20680_v39, %v5497_v24  ;;  %v20681_v38 = vld [vmem:[#allocation20_spill] sm:$0xff]  ;;  %v20684_v2 = vld [vmem:[#allocation71_spill] sm:$0xff]  ;;  %v6129_v46 = vmul.f32 %v18154_v17, %v6091_v25 }
 0x408   : > { %v18149_v29 = vpop.f32.mrf.mxu0  ;;  %v14547_v35 = vpop.f32.mrf.mxu1  ;;  %v5500_v49 = vadd.f32 %v20678_v13, %v20677_v45  ;;  %v18175_v41 = vld [vmem:[%s20437_s8] ss:$0 sm:$0xff]  ;;  %v5501_v30 = vadd.f32 %v20684_v2, %v20683_v19  ;;  %v18189_v27 = vadd.f32 %v18020_v33, %v5498_v20  ;;  %v20685_v58 = vld [vmem:[#allocation21_spill] sm:$0xff]  ;;  %v5502_v33 = vadd.f32 %v18022_v5, %v18053_v4 }
 0x409   : > { %v6092_v12 = vadd.f32 %v14547_v35, %v5786_v61  ;;  %v20682_v48 = vld [vmem:[#allocation70_spill] sm:$0xff]  ;;  %v20686_v61 = vld [vmem:[#allocation33_spill] sm:$0xff]  ;;  %v6127_v13 = vmul.f32 %v18154_v17, %v6089_v23  ;;  %v5507_v20 = vadd.f32 %v18036_v34, %v20687_v57  ;;  %v18244_v57 = vadd.f32 %v18088_v3, %v18056_v14 }
 0x40a   : > { %v18170_v56 = vpop.f32.mrf.mxu0  ;;  %v5965_v50 = vpop.f32.mrf.mxu1  ;;  %v5503_v62 = vadd.f32 %v20682_v48, %v20681_v38  ;;  %v18186_v31 = vadd.f32 %v18006_v44, %v5500_v49  ;;  %v5504_v35 = vadd.f32 %v20686_v61, %v20685_v58  ;;  %v18196_v60 = vld [vmem:[%s20435_s6] ss:$0 sm:$0xff]  ;;  %v18211_v49 = vadd.f32 %v18048_v18, %v5501_v30 }
 0x40b   : > { %v18201_v52 = vld [vmem:[%s20438_s9] ss:$0 sm:$0xff]  ;;  %v6090_v25 = vadd.f32 %v5965_v50, %v5784_v47  ;;  %v6130_v47 = vmul.f32 %v18154_v17, %v6092_v12  ;;  %v6167_v5 = vadd.f32 %v18196_v60, %v6129_v46  ;;  %v6165_v30 = vadd.f32 %v18196_v60, %v6127_v13 }
 0x40c   : > { %v14594_v8 = vpop.f32.mrf.mxu0  ;;  %v14550_v44 = vpop.f32.mrf.mxu1  ;;  %v18204_v24 = vadd.f32 %v18034_v0, %v5503_v62  ;;  %v20688_v38 = vld [vmem:[#allocation22_spill] sm:$0xff]  ;;  %v18223_v18 = vadd.f32 %v18067_v9, %v5504_v35  ;;  %v20689_v62 = vld [vmem:[#allocation51_spill] sm:$0xff]  ;;  %v18235_v9 = vadd.f32 %v18086_v55, %v5502_v33 }
 0x40d   : > { %v6479_v45 = vmul.f32 %v14594_v8, %v18175_v41  ;;  %v6095_v50 = vadd.f32 %v14550_v44, %v18077_v11  ;;  %v5505_v48 = vadd.f32 %v18050_v21, %v20688_v38  ;;  %v18227_v34 = vadd.f32 %v18069_v32, %v20689_v62 }
 0x40e   : > { %v6343_v39 = vpop.f32.mrf.mxu0  ;;  %v5978_v0 = vpop.f32.mrf.mxu1  ;;  %v6128_v11 = vmul.f32 %v18154_v17, %v6090_v25  ;;  %v6168_v61 = vadd.f32 %v18196_v60, %v6130_v47 }
 0x40f   : > { %v6518_v4 = vadd.f32 %v18201_v52, %v6479_v45  ;;  %v6477_v23 = vmul.f32 %v18175_v41, %v6343_v39  ;;  %v6093_v19 = vadd.f32 %v5978_v0, %v18080_v54  ;;  %v6133_v35 = vmul.f32 %v18154_v17, %v6095_v50 }
 0x410   : > { %v14595_v12 = vpop.f32.mrf.mxu0  ;;  %v14551_v2 = vpop.f32.mrf.mxu1  ;;  %v6166_v55 = vadd.f32 %v18196_v60, %v6128_v11 }
 0x411   : > { %v6550_v21 = vadd.f32 %v6518_v4, %v6167_v5  ;;  %v6516_v46 = vadd.f32 %v18201_v52, %v6477_v23  ;;  %v6480_v58 = vmul.f32 %v14595_v12, %v18175_v41  ;;  %v6096_v8 = vadd.f32 %v14551_v2, %v18091_v16 }
 0x412   : > { %v6346_v32 = vpop.f32.mrf.mxu0  ;;  %v5981_v25 = vpop.f32.mrf.mxu1  ;;  %v6131_v39 = vmul.f32 %v18154_v17, %v6093_v19  ;;  %v18252_v4 = vadd.f32 %v18109_v43, %v5507_v20  ;;  %v6171_v14 = vadd.f32 %v18196_v60, %v6133_v35 }
 0x413   : > { %v6582_v54 = vmax.f32 %v6550_v21, 0.0  ;;  %v6548_v44 = vadd.f32 %v6516_v46, %v6165_v30  ;;  %v6519_v45 = vadd.f32 %v18201_v52, %v6480_v58  ;;  %v6478_v13 = vmul.f32 %v18175_v41, %v6346_v32 }
 0x414   : > { %v14598_v33 = vpop.f32.mrf.mxu0  ;;  %v6094_v47 = vadd.f32 %v5981_v25, %v18094_v40  ;;  %v14554_v50 = vpop.f32.mrf.mxu1  ;;  %v6134_v23 = vmul.f32 %v18154_v17, %v6096_v8  ;;  %v18260_v21 = vadd.f32 %v18130_v51, %v5505_v48  ;;  %v6169_v43 = vadd.f32 %v18196_v60, %v6131_v39 }
 0x415   : > { %6614 = vst [vmem:[#allocation2 + $0x31] sm:$0xff] %v6582_v54  ;;  %v6580_v16 = vmax.f32 %v6548_v44, 0.0  ;;  %v6551_v0 = vadd.f32 %v6519_v45, %v6168_v61  ;;  %v6517_v38 = vadd.f32 %v18201_v52, %v6478_v13  ;;  %v6483_v5 = vmul.f32 %v14598_v33, %v18175_v41 }
 0x416   : > { %v6359_v3 = vpop.f32.mrf.mxu0  ;;  %v6099_v62 = vadd.f32 %v14554_v50, %v18100_v22  ;;  %v5994_v12 = vpop.f32.mrf.mxu1  ;;  %v6132_v30 = vmul.f32 %v18154_v17, %v6094_v47  ;;  %v6172_v8 = vadd.f32 %v18196_v60, %v6134_v23 }
 0x417   : > { %6612 = vst [vmem:[#allocation2 + $0x19] sm:$0xff] %v6580_v16  ;;  %v6583_v40 = vmax.f32 %v6551_v0, 0.0  ;;  %v6549_v11 = vadd.f32 %v6517_v38, %v6166_v55  ;;  %v6522_v19 = vadd.f32 %v18201_v52, %v6483_v5  ;;  %v6481_v2 = vmul.f32 %v18175_v41, %v6359_v3  ;;  %v15757_v5 = vld [vmem:[#allocation7 + $0x2f0] sm:$0xff]  }
 0x418   : > { %v14599_v20 = vpop.f32.mrf.mxu0  ;;  %v6097_v46 = vadd.f32 %v5994_v12, %v18103_v6  ;;  %v14555_v58 = vpop.f32.mrf.mxu1  ;;  %v6137_v48 = vmul.f32 %v18154_v17, %v6099_v62  ;;  %v6170_v39 = vadd.f32 %v18196_v60, %v6132_v30  ;;  %v20690_v30 = vld [vmem:[#allocation45_spill] sm:$0xff] }
 0x419   : > { %6615 = vst [vmem:[#allocation2 + $0x39] sm:$0xff] %v6583_v40  ;;  %v6581_v22 = vmax.f32 %v6549_v11, 0.0  ;;  %v18265_v61 = vadd.f32 %v6522_v19, %v6171_v14  ;;  %v6520_v32 = vadd.f32 %v18201_v52, %v6481_v2  ;;  %v6484_v35 = vmul.f32 %v14599_v20, %v18175_v41 }
 0x41a   : > { %v6362_v51 = vpop.f32.mrf.mxu0  ;;  %v6100_v25 = vadd.f32 %v14555_v58, %v18112_v15  ;;  %v5997_v44 = vpop.f32.mrf.mxu1  ;;  %v6747_v45 = vpack.c.bf16 %v6583_v40, %v6582_v54  ;;  %v6135_v50 = vmul.f32 %v18154_v17, %v6097_v46  ;;  %v6175_v62 = vadd.f32 %v18196_v60, %v6137_v48 }
 0x41b   : > { %6613 = vst [vmem:[#allocation2 + $0x21] sm:$0xff] %v6581_v22  ;;  %v6586_v6 = vmax.f32 %v18265_v61, 0.0  ;;  %v18273_v13 = vadd.f32 %v6520_v32, %v6169_v43  ;;  %v6523_v55 = vadd.f32 %v18201_v52, %v6484_v35  ;;  %v6482_v33 = vmul.f32 %v18175_v41, %v6362_v51 }
 0x41c   : > { %v14602_v47 = vpop.f32.mrf.mxu0  ;;  %v6098_v0 = vadd.f32 %v5997_v44, %v18115_v7  ;;  %v14558_v38 = vpop.f32.mrf.mxu1  ;;  %v6746_v15 = vpack.c.bf16 %v6581_v22, %v6580_v16  ;;  %v6138_v40 = vmul.f32 %v18154_v17, %v6100_v25  ;;  %v18299_v46 = vadd.f32 %v18149_v29, %v18227_v34 }
 0x41d   : > { %6618 = vst [vmem:[#allocation2 + $0x61] sm:$0xff] %v6586_v6  ;;  %v6584_v54 = vmax.f32 %v18273_v13, 0.0  ;;  %v18283_v14 = vadd.f32 %v6523_v55, %v6172_v8  ;;  %v6521_v3 = vadd.f32 %v18201_v52, %v6482_v33  ;;  %v6487_v23 = vmul.f32 %v14602_v47, %v18175_v41  ;;  %v15758_v8 = vld [vmem:[#allocation7 + $0x2e8] sm:$0xff]  }
 0x41e   : > { %v6375_v12 = vpop.f32.mrf.mxu0  ;;  %v6136_v7 = vmul.f32 %v18154_v17, %v6098_v0  ;;  %v6103_v16 = vadd.f32 %v14558_v38, %v18121_v37  ;;  %v6010_v11 = vpop.f32.mrf.mxu1  ;;  %14641 = vmatmul.mubr.bf16.vlgmr.msra.gmra.mxu1 %v6746_v15  ;;  %v6173_v37 = vadd.f32 %v18196_v60, %v6135_v50  ;;  %v6176_v44 = vadd.f32 %v18196_v60, %v6138_v40 }
 0x41f   : > { %6616 = vst [vmem:[#allocation2 + $0x49] sm:$0xff] %v6584_v54  ;;  %v6587_v19 = vmax.f32 %v18283_v14, 0.0  ;;  %v6553_v2 = vadd.f32 %v6521_v3, %v6170_v39  ;;  %v6526_v43 = vadd.f32 %v18201_v52, %v6487_v23  ;;  %v6485_v20 = vmul.f32 %v18175_v41, %v6375_v12  ;;  %14644 = vmatprep.mubr.bf16.mxu1 %v6747_v45  ;;  %v6650_v3 = vld [vmem:[#allocation2 + $0x18] sm:$0xff]  ;;  %v6652_v23 = vld [vmem:[#allocation2 + $0x30] sm:$0xff] }
 0x420   : > { %14721 = vmatpush3.bf16.msra.mxu1 %v20690_v30  ;;  %v14603_v58 = vpop.f32.mrf.mxu0  ;;  %v6141_v22 = vmul.f32 %v18154_v17, %v6103_v16  ;;  %v6101_v32 = vadd.f32 %v6010_v11, %v18124_v1  ;;  %v14559_v35 = vpop.f32.mrf.mxu1  ;;  %v6653_v34 = vld [vmem:[#allocation2 + $0x38] sm:$0xff]  ;;  %v6174_v45 = vadd.f32 %v18196_v60, %v6136_v7 }
 0x421   : > { %14722 = vmatprep.subr.bf16.mxu1 %v15757_v5  ;;  %6619 = vst [vmem:[#allocation2 + $0x69] sm:$0xff] %v6587_v19  ;;  %v6585_v51 = vmax.f32 %v6553_v2, 0.0  ;;  %v18306_v48 = vadd.f32 %v6526_v43, %v6175_v62  ;;  %v6524_v25 = vadd.f32 %v18201_v52, %v6485_v20  ;;  %v6488_v29 = vmul.f32 %v14603_v58, %v18175_v41  ;;  %v15759_v20 = vld [vmem:[#allocation7 + $0x2e0] sm:$0xff]  }
 0x422   : > { %v6378_v55 = vpop.f32.mrf.mxu0  ;;  %v6179_v1 = vadd.f32 %v18196_v60, %v6141_v22  ;;  %v6651_v33 = vld [vmem:[#allocation2 + $0x20] sm:$0xff]  ;;  %v6104_v39 = vadd.f32 %v14559_v35, %v18133_v10  ;;  %v6013_v47 = vpop.f32.mrf.mxu1  ;;  %v6139_v12 = vmul.f32 %v18154_v17, %v6101_v32  ;;  %v18322_v7 = vpack.c.bf16 %v6653_v34, %v6652_v23 }
 0x423   : > { %6617 = vst [vmem:[#allocation2 + $0x51] sm:$0xff] %v6585_v51  ;;  %v6590_v50 = vmax.f32 %v18306_v48, 0.0  ;;  %v18315_v0 = vadd.f32 %v6524_v25, %v6173_v37  ;;  %v6527_v38 = vadd.f32 %v18201_v52, %v6488_v29  ;;  %v6486_v15 = vmul.f32 %v18175_v41, %v6378_v55 }
 0x424   : > { %14723 = vmatpush3.bf16.msra.mxu1 %v15757_v5  ;;  %v14606_v62 = vpop.f32.mrf.mxu0  ;;  %v18320_v40 = vpack.c.bf16 %v6651_v33, %v6650_v3  ;;  %v6102_v10 = vadd.f32 %v6013_v47, %v18136_v26  ;;  %v14562_v16 = vpop.f32.mrf.mxu1  ;;  %v6142_v37 = vmul.f32 %v18154_v17, %v6104_v39  ;;  %v6748_v32 = vpack.c.bf16 %v6585_v51, %v6584_v54  ;;  %v15760_v33 = vld [vmem:[#allocation7 + $0x2d8] sm:$0xff]  }
 0x425   : > { %14724 = vmatprep.subr.bf16.mxu1 %v15758_v8  ;;  %6622 = vst [vmem:[#allocation2 + $0x91] sm:$0xff] %v6590_v50  ;;  %v6588_v11 = vmax.f32 %v18315_v0, 0.0  ;;  %v18328_v2 = vadd.f32 %v6527_v38, %v6176_v44  ;;  %v6525_v5 = vadd.f32 %v18201_v52, %v6486_v15  ;;  %v6491_v43 = vmul.f32 %v14606_v62, %v18175_v41  ;;  %v15762_v44 = vld [vmem:[#allocation7 + $0x330] sm:$0xff]  }
 0x426   : > { %v6391_v30 = vpop.f32.mrf.mxu0  ;;  %14689 = vmatmul.mubr.bf16.vlgmr.msra.gmra.mxu0 %v18320_v40  ;;  %v6140_v26 = vmul.f32 %v18154_v17, %v6102_v10  ;;  %v6107_v58 = vadd.f32 %v14562_v16, %v18141_v63  ;;  %v6026_v22 = vpop.f32.mrf.mxu1  ;;  %v6177_v63 = vadd.f32 %v18196_v60, %v6139_v12  ;;  %14645 = vmatmul.mubr.bf16.gmra.mxu1 %v6748_v32 }
 0x427   : > { %6620 = vst [vmem:[#allocation2 + $0x79] sm:$0xff] %v6588_v11  ;;  %v6591_v35 = vmax.f32 %v18328_v2, 0.0  ;;  %v6557_v25 = vadd.f32 %v6525_v5, %v6174_v45  ;;  %v6530_v29 = vadd.f32 %v18201_v52, %v6491_v43  ;;  %v6489_v34 = vmul.f32 %v18175_v41, %v6391_v30  ;;  %14692 = vmatprep.mubr.bf16.mxu0 %v18322_v7  ;;  %v6654_v5 = vld [vmem:[#allocation2 + $0x48] sm:$0xff]  ;;  %v6656_v43 = vld [vmem:[#allocation2 + $0x60] sm:$0xff] }
 0x428   : > { %14725 = vmatpush3.bf16.msra.mxu1 %v15758_v8  ;;  %v14607_v55 = vpop.f32.mrf.mxu0  ;;  %v6145_v13 = vmul.f32 %v18154_v17, %v6107_v58  ;;  %v6105_v54 = vadd.f32 %v6026_v22, %v18144_v42  ;;  %v14563_v51 = vpop.f32.mrf.mxu1  ;;  %v6749_v45 = vpack.c.bf16 %v6587_v19, %v6586_v6  ;;  %v6657_v15 = vld [vmem:[#allocation2 + $0x68] sm:$0xff]  ;;  %v20691_v42 = vld [vmem:[#allocation53_spill] sm:$0xff]  ;;  %v6180_v61 = vadd.f32 %v18196_v60, %v6142_v37 }
 0x429   : > { %6623 = vst [vmem:[#allocation2 + $0x99] sm:$0xff] %v6591_v35  ;;  %v6589_v8 = vmax.f32 %v6557_v25, 0.0  ;;  %v18353_v39 = vadd.f32 %v6530_v29, %v6179_v1  ;;  %v6528_v47 = vadd.f32 %v18201_v52, %v6489_v34  ;;  %v6492_v38 = vmul.f32 %v14607_v55, %v18175_v41  ;;  %14726 = vmatprep.subr.bf16.mxu1 %v15759_v20  ;;  %v15763_v34 = vld [vmem:[#allocation7 + $0x2d0] sm:$0xff]  }
 0x42a   : > { %14769 = vmatpush3.bf16.msra.mxu0 %v20691_v42  ;;  %v6178_v14 = vadd.f32 %v18196_v60, %v6140_v26  ;;  %v6394_v6 = vpop.f32.mrf.mxu0  ;;  %v6183_v19 = vadd.f32 %v18196_v60, %v6145_v13  ;;  %v6655_v3 = vld [vmem:[#allocation2 + $0x50] sm:$0xff]  ;;  %v6108_v23 = vadd.f32 %v14563_v51, %v18157_v36  ;;  %14648 = vmatprep.mubr.bf16.mxu1 %v6749_v45  ;;  %v6029_v1 = vpop.f32.mrf.mxu1 }
 0x42b   : > { %6621 = vst [vmem:[#allocation2 + $0x81] sm:$0xff] %v6589_v8  ;;  %v6594_v62 = vmax.f32 %v18353_v39, 0.0  ;;  %v18363_v12 = vadd.f32 %v6528_v47, %v6177_v63  ;;  %v6531_v10 = vadd.f32 %v18201_v52, %v6492_v38  ;;  %v6490_v16 = vmul.f32 %v18175_v41, %v6394_v6  ;;  %14770 = vmatprep.subr.bf16.mxu0 %v15762_v44  ;;  %v15764_v63 = vld [vmem:[#allocation7 + $0x328] sm:$0xff]  }
 0x42c   : > { %14727 = vmatpush3.bf16.msra.mxu1 %v15759_v20  ;;  %v14610_v30 = vpop.f32.mrf.mxu0  ;;  %v6143_v37 = vmul.f32 %v18154_v17, %v6105_v54  ;;  %v18368_v26 = vpack.c.bf16 %v6655_v3, %v6654_v5  ;;  %v18370_v36 = vpack.c.bf16 %v6657_v15, %v6656_v43  ;;  %v6106_v58 = vadd.f32 %v6029_v1, %v18164_v28  ;;  %v14566_v22 = vpop.f32.mrf.mxu1 }
 0x42d   : > { %14728 = vmatprep.subr.bf16.mxu1 %v15760_v33  ;;  %6626 = vst [vmem:[#allocation2 + $0xc1] sm:$0xff] %v6594_v62  ;;  %v6592_v32 = vmax.f32 %v18363_v12, 0.0  ;;  %v18376_v25 = vadd.f32 %v6531_v10, %v6180_v61  ;;  %v6529_v20 = vadd.f32 %v18201_v52, %v6490_v16  ;;  %v6495_v29 = vmul.f32 %v14610_v30, %v18175_v41 }
 0x42e   : > { %14771 = vmatpush3.bf16.msra.mxu0 %v15762_v44  ;;  %v6407_v55 = vpop.f32.mrf.mxu0  ;;  %v6146_v28 = vmul.f32 %v18154_v17, %v6108_v23  ;;  %v6144_v13 = vmul.f32 %v18154_v17, %v6106_v58  ;;  %v6111_v54 = vadd.f32 %v14566_v22, %v18167_v53  ;;  %v6042_v51 = vpop.f32.mrf.mxu1  ;;  %v6750_v45 = vpack.c.bf16 %v6589_v8, %v6588_v11  ;;  %v6658_v58 = vld [vmem:[#allocation2 + $0x78] sm:$0xff]  ;;  %v6660_v22 = vld [vmem:[#allocation2 + $0x90] sm:$0xff] }
 0x42f   : > { %14693 = vmatmul.mubr.bf16.gmra.mxu0 %v18368_v26  ;;  %6624 = vst [vmem:[#allocation2 + $0xa9] sm:$0xff] %v6592_v32  ;;  %v6595_v44 = vmax.f32 %v18376_v25, 0.0  ;;  %v6561_v47 = vadd.f32 %v6529_v20, %v6178_v14  ;;  %v6534_v38 = vadd.f32 %v18201_v52, %v6495_v29  ;;  %v6493_v15 = vmul.f32 %v18175_v41, %v6407_v55  ;;  %v15765_v14 = vld [vmem:[#allocation7 + $0x320] sm:$0xff]  }
 0x430   : > { %14696 = vmatprep.mubr.bf16.mxu0 %v18370_v36  ;;  %14729 = vmatpush3.bf16.msra.mxu1 %v15760_v33  ;;  %v6181_v42 = vadd.f32 %v18196_v60, %v6143_v37  ;;  %v14611_v53 = vpop.f32.mrf.mxu0  ;;  %v6149_v61 = vmul.f32 %v18154_v17, %v6111_v54  ;;  %v6109_v0 = vadd.f32 %v6042_v51, %v18178_v59  ;;  %v14567_v11 = vpop.f32.mrf.mxu1  ;;  %v6661_v1 = vld [vmem:[#allocation2 + $0x98] sm:$0xff]  ;;  %v15766_v59 = vld [vmem:[#allocation7 + $0x2c8] sm:$0xff]  }
 0x431   : > { %14649 = vmatmul.mubr.bf16.gmra.mxu1 %v6750_v45  ;;  %v6751_v8 = vpack.c.bf16 %v6591_v35, %v6590_v50  ;;  %6627 = vst [vmem:[#allocation2 + $0xc9] sm:$0xff] %v6595_v44  ;;  %v6593_v6 = vmax.f32 %v6561_v47, 0.0  ;;  %v18401_v33 = vadd.f32 %v6534_v38, %v6183_v19  ;;  %v6532_v3 = vadd.f32 %v18201_v52, %v6493_v15  ;;  %v15767_v45 = vld [vmem:[#allocation7 + $0x318] sm:$0xff]  }
 0x432   : > { %v6496_v23 = vmul.f32 %v14611_v53, %v18175_v41  ;;  %14730 = vmatprep.subr.bf16.mxu1 %v15763_v34  ;;  %14772 = vmatprep.subr.bf16.mxu0 %v15764_v63  ;;  %v6184_v48 = vadd.f32 %v18196_v60, %v6146_v28  ;;  %v6182_v2 = vadd.f32 %v18196_v60, %v6144_v13  ;;  %v6410_v50 = vpop.f32.mrf.mxu0  ;;  %v6659_v10 = vld [vmem:[#allocation2 + $0x80] sm:$0xff]  ;;  %v6045_v19 = vpop.f32.mrf.mxu1 }
 0x433   : > { %v6187_v35 = vadd.f32 %v18196_v60, %v6149_v61  ;;  %v6112_v16 = vadd.f32 %v14567_v11, %v18186_v31  ;;  %14652 = vmatprep.mubr.bf16.mxu1 %v6751_v8  ;;  %6625 = vst [vmem:[#allocation2 + $0xb1] sm:$0xff] %v6593_v6  ;;  %v6598_v5 = vmax.f32 %v18401_v33, 0.0  ;;  %v18410_v43 = vadd.f32 %v6532_v3, %v6181_v42  ;;  %v15769_v3 = vld [vmem:[#allocation7 + $0x2c0] sm:$0xff]  }
 0x434   : > { %v6535_v30 = vadd.f32 %v18201_v52, %v6496_v23  ;;  %v6494_v37 = vmul.f32 %v18175_v41, %v6410_v50  ;;  %14731 = vmatpush3.bf16.msra.mxu1 %v15763_v34  ;;  %14773 = vmatpush3.bf16.msra.mxu0 %v15764_v63  ;;  %v14614_v20 = vpop.f32.mrf.mxu0  ;;  %v6147_v29 = vmul.f32 %v18154_v17, %v6109_v0  ;;  %v14570_v13 = vpop.f32.mrf.mxu1 }
 0x435   : > { %v18415_v55 = vpack.c.bf16 %v6659_v10, %v6658_v58  ;;  %v18417_v31 = vpack.c.bf16 %v6661_v1, %v6660_v22  ;;  %v6110_v28 = vadd.f32 %v6045_v19, %v18189_v27  ;;  %14774 = vmatprep.subr.bf16.mxu0 %v15765_v14  ;;  %6630 = vst [vmem:[#allocation2 + $0xf1] sm:$0xff] %v6598_v5  ;;  %v6596_v54 = vmax.f32 %v18410_v43, 0.0 }
 0x436   : > { %v18423_v51 = vadd.f32 %v6535_v30, %v6184_v48  ;;  %v6533_v34 = vadd.f32 %v18201_v52, %v6494_v37  ;;  %v6499_v63 = vmul.f32 %v14614_v20, %v18175_v41  ;;  %14732 = vmatprep.subr.bf16.mxu1 %v15766_v59  ;;  %v6423_v47 = vpop.f32.mrf.mxu0  ;;  %v6150_v27 = vmul.f32 %v18154_v17, %v6112_v16  ;;  %v6058_v42 = vpop.f32.mrf.mxu1  ;;  %v15768_v48 = vld [vmem:[#allocation7 + $0x310] sm:$0xff]   ;;  %v6662_v22 = vld [vmem:[#allocation2 + $0xa8] sm:$0xff]  ;;  %v6664_v20 = vld [vmem:[#allocation2 + $0xc0] sm:$0xff] }
 0x437   : > { %14697 = vmatmul.mubr.bf16.gmra.mxu0 %v18415_v55  ;;  %v6148_v38 = vmul.f32 %v18154_v17, %v6110_v28  ;;  %v6115_v15 = vadd.f32 %v14570_v13, %v18204_v24  ;;  %v6752_v53 = vpack.c.bf16 %v6593_v6, %v6592_v32  ;;  %6628 = vst [vmem:[#allocation2 + $0xd9] sm:$0xff] %v6596_v54 }
 0x438   : > { %v6599_v61 = vmax.f32 %v18423_v51, 0.0  ;;  %v6565_v0 = vadd.f32 %v6533_v34, %v6182_v2  ;;  %v6538_v11 = vadd.f32 %v18201_v52, %v6499_v63  ;;  %v6497_v8 = vmul.f32 %v18175_v41, %v6423_v47  ;;  %14700 = vmatprep.mubr.bf16.mxu0 %v18417_v31  ;;  %14775 = vmatpush3.bf16.msra.mxu0 %v15765_v14  ;;  %v14615_v23 = vpop.f32.mrf.mxu0  ;;  %v14571_v6 = vpop.f32.mrf.mxu1  ;;  %v6665_v16 = vld [vmem:[#allocation2 + $0xc8] sm:$0xff] }
 0x439   : > { %v6185_v24 = vadd.f32 %v18196_v60, %v6147_v29  ;;  %v6153_v12 = vmul.f32 %v18154_v17, %v6115_v15  ;;  %v6113_v32 = vadd.f32 %v6058_v42, %v18211_v49  ;;  %14653 = vmatmul.mubr.bf16.gmra.mxu1 %v6752_v53  ;;  %v6753_v1 = vpack.c.bf16 %v6595_v44, %v6594_v62  ;;  %v15770_v15 = vld [vmem:[#allocation7 + $0x308] sm:$0xff]   ;;  %v18474_v42 = vld [vmem:[#allocation7 + $0x378] sm:$0xff]  }
 0x43a   : > { %6631 = vst [vmem:[#allocation2 + $0xf9] sm:$0xff] %v6599_v61  ;;  %v6597_v14 = vmax.f32 %v6565_v0, 0.0  ;;  %v18448_v2 = vadd.f32 %v6538_v11, %v6187_v35  ;;  %v6536_v50 = vadd.f32 %v18201_v52, %v6497_v8  ;;  %v6500_v10 = vmul.f32 %v14615_v23, %v18175_v41  ;;  %14776 = vmatprep.subr.bf16.mxu0 %v15767_v45  ;;  %v6426_v25 = vpop.f32.mrf.mxu0  ;;  %v6663_v44 = vld [vmem:[#allocation2 + $0xb0] sm:$0xff]  ;;  %v6061_v35 = vpop.f32.mrf.mxu1 }
 0x43b   : > { %14733 = vmatpush3.bf16.msra.mxu1 %v15766_v59  ;;  %v6188_v49 = vadd.f32 %v18196_v60, %v6150_v27  ;;  %v6186_v39 = vadd.f32 %v18196_v60, %v6148_v38  ;;  %v6191_v62 = vadd.f32 %v18196_v60, %v6153_v12  ;;  %v6116_v19 = vadd.f32 %v14571_v6, %v18223_v18 }
 0x43c   : > { %14656 = vmatprep.mubr.bf16.mxu1 %v6753_v1  ;;  %6629 = vst [vmem:[#allocation2 + $0xe1] sm:$0xff] %v6597_v14  ;;  %v6602_v30 = vmax.f32 %v18448_v2, 0.0  ;;  %v18457_v37 = vadd.f32 %v6536_v50, %v6185_v24  ;;  %v6539_v58 = vadd.f32 %v18201_v52, %v6500_v10  ;;  %v6498_v59 = vmul.f32 %v18175_v41, %v6426_v25  ;;  %v14618_v29 = vpop.f32.mrf.mxu0  ;;  %v14574_v63 = vpop.f32.mrf.mxu1  ;;  %v15771_v50 = vld [vmem:[#allocation7 + $0x300] sm:$0xff]  }
 0x43d   : > { %14777 = vmatpush3.bf16.msra.mxu0 %v15767_v45  ;;  %14734 = vmatprep.subr.bf16.mxu1 %v15769_v3  ;;  %v6151_v28 = vmul.f32 %v18154_v17, %v6113_v32  ;;  %v18462_v13 = vpack.c.bf16 %v6663_v44, %v6662_v22  ;;  %v18464_v18 = vpack.c.bf16 %v6665_v16, %v6664_v20 }
 0x43e   : > { %v6114_v34 = vadd.f32 %v6061_v35, %v18235_v9  ;;  %14778 = vmatprep.subr.bf16.mxu0 %v15768_v48  ;;  %6634 = vst [vmem:[#allocation2 + $0x121] sm:$0xff] %v6602_v30  ;;  %v6600_v47 = vmax.f32 %v18457_v37, 0.0  ;;  %v18470_v27 = vadd.f32 %v6539_v58, %v6188_v49  ;;  %v6537_v45 = vadd.f32 %v18201_v52, %v6498_v59  ;;  %v6439_v53 = vpop.f32.mrf.mxu0  ;;  %v6074_v8 = vpop.f32.mrf.mxu1  ;;  %v6666_v35 = vld [vmem:[#allocation2 + $0xd8] sm:$0xff]  ;;  %v6668_v58 = vld [vmem:[#allocation2 + $0xf0] sm:$0xff] }
 0x43f   : > { %v6503_v38 = vmul.f32 %v14618_v29, %v18175_v41  ;;  %14735 = vmatpush3.bf16.msra.mxu1 %v15769_v3  ;;  %14701 = vmatmul.mubr.bf16.gmra.mxu0 %v18462_v13  ;;  %v6154_v9 = vmul.f32 %v18154_v17, %v6116_v19  ;;  %v6119_v11 = vadd.f32 %v14574_v63, %v18252_v4 }
 0x440   : > { %v6152_v0 = vmul.f32 %v18154_v17, %v6114_v34  ;;  %v6754_v24 = vpack.c.bf16 %v6597_v14, %v6596_v54  ;;  %6632 = vst [vmem:[#allocation2 + $0x109] sm:$0xff] %v6600_v47  ;;  %v6603_v3 = vmax.f32 %v18470_v27, 0.0  ;;  %v6569_v23 = vadd.f32 %v6537_v45, %v6186_v39  ;;  %14704 = vmatprep.mubr.bf16.mxu0 %v18464_v18  ;;  %v14619_v43 = vpop.f32.mrf.mxu0  ;;  %v14575_v1 = vpop.f32.mrf.mxu1  ;;  %v18515_v45 = vld [vmem:[#allocation7 + $0x3b8] sm:$0xff]  }
 0x441   : > { %v6542_v12 = vadd.f32 %v18201_v52, %v6503_v38  ;;  %v6501_v32 = vmul.f32 %v18175_v41, %v6439_v53  ;;  %14779 = vmatpush3.bf16.msra.mxu0 %v15768_v48  ;;  %v5812_v4 = vadd.f32 %v18170_v56, %v18244_v57  ;;  %v6189_v6 = vadd.f32 %v18196_v60, %v6151_v28  ;;  %v6669_v57 = vld [vmem:[#allocation2 + $0xf8] sm:$0xff] }
 0x442   : > { %v6117_v54 = vadd.f32 %v6074_v8, %v18260_v21  ;;  %14657 = vmatmul.mubr.bf16.gmra.mxu1 %v6754_v24  ;;  %v6755_v14 = vpack.c.bf16 %v6599_v61, %v6598_v5  ;;  %6635 = vst [vmem:[#allocation2 + $0x129] sm:$0xff] %v6603_v3  ;;  %v6601_v10 = vmax.f32 %v6569_v23, 0.0  ;;  %v6504_v56 = vmul.f32 %v14619_v43, %v18175_v41  ;;  %v6442_v49 = vpop.f32.mrf.mxu0  ;;  %v6077_v39 = vpop.f32.mrf.mxu1 }
 0x443   : > { %v18496_v16 = vadd.f32 %v6542_v12, %v6191_v62  ;;  %v6540_v48 = vadd.f32 %v18201_v52, %v6501_v32  ;;  %14780 = vmatprep.subr.bf16.mxu0 %v15770_v15  ;;  %14816 = vmatprep.subr.bf16.mxu1 %v18474_v42  ;;  %v6192_v21 = vadd.f32 %v18196_v60, %v6154_v9  ;;  %v6667_v51 = vld [vmem:[#allocation2 + $0xe0] sm:$0xff] }
 0x444   : > { %v6190_v33 = vadd.f32 %v18196_v60, %v6152_v0  ;;  %v6157_v5 = vmul.f32 %v18154_v17, %v6119_v11  ;;  %v6120_v61 = vadd.f32 %v14575_v1, %v18299_v46  ;;  %14660 = vmatprep.mubr.bf16.mxu1 %v6755_v14  ;;  %6633 = vst [vmem:[#allocation2 + $0x111] sm:$0xff] %v6601_v10  ;;  %v14622_v59 = vpop.f32.mrf.mxu0 }
 0x445   : > { %v6606_v25 = vmax.f32 %v18496_v16, 0.0  ;;  %v6572_v62 = vadd.f32 %v6540_v48, %v6189_v6  ;;  %v6543_v44 = vadd.f32 %v18201_v52, %v6504_v56  ;;  %v6502_v19 = vmul.f32 %v18175_v41, %v6442_v49  ;;  %14781 = vmatpush3.bf16.msra.mxu0 %v15770_v15 }
 0x446   : > { %v6155_v22 = vmul.f32 %v18154_v17, %v6117_v54  ;;  %v18509_v20 = vpack.c.bf16 %v6667_v51, %v6666_v35  ;;  %v18511_v29 = vpack.c.bf16 %v6669_v57, %v6668_v58  ;;  %v6118_v46 = vadd.f32 %v6077_v39, %v5812_v4  ;;  %14782 = vmatprep.subr.bf16.mxu0 %v15771_v50  ;;  %v6455_v15 = vpop.f32.mrf.mxu0  ;;  %v6672_v57 = vld [vmem:[#allocation2 + $0x120] sm:$0xff] }
 0x447   : > { %6638 = vst [vmem:[#allocation2 + $0x151] sm:$0xff] %v6606_v25  ;;  %v6604_v28 = vmax.f32 %v6572_v62, 0.0  ;;  %v6575_v34 = vadd.f32 %v6543_v44, %v6192_v21  ;;  %v6541_v63 = vadd.f32 %v18201_v52, %v6502_v19  ;;  %v6507_v27 = vmul.f32 %v14622_v59, %v18175_v41  ;;  %v6670_v16 = vld [vmem:[#allocation2 + $0x108] sm:$0xff] }
 0x448   : > { %v6195_v38 = vadd.f32 %v18196_v60, %v6157_v5  ;;  %14705 = vmatmul.mubr.bf16.gmra.mxu0 %v18509_v20  ;;  %v6158_v53 = vmul.f32 %v18154_v17, %v6120_v61  ;;  %v6756_v9 = vpack.c.bf16 %v6601_v10, %v6600_v47  ;;  %v6757_v0 = vpack.c.bf16 %v6603_v3, %v6602_v30  ;;  %v14623_v32 = vpop.f32.mrf.mxu0  ;;  %v7196_v39 = vld [vmem:[#allocation2 + $0x2] sm:$0xff] }
 0x449   : > { %6636 = vst [vmem:[#allocation2 + $0x139] sm:$0xff] %v6604_v28  ;;  %v6607_v11 = vmax.f32 %v6575_v34, 0.0  ;;  %v6573_v8 = vadd.f32 %v6541_v63, %v6190_v33  ;;  %v6546_v24 = vadd.f32 %v18201_v52, %v6507_v27  ;;  %v6505_v23 = vmul.f32 %v18175_v41, %v6455_v15  ;;  %14708 = vmatprep.mubr.bf16.mxu0 %v18511_v29  ;;  %v6673_v54 = vld [vmem:[#allocation2 + $0x128] sm:$0xff]  ;;  %v7198_v63 = vld [vmem:[#allocation2 + $0x1a] sm:$0xff] }
 0x44a   : > { %14783 = vmatpush3.bf16.msra.mxu0 %v15771_v50  ;;  %v6193_v12 = vadd.f32 %v18196_v60, %v6155_v22  ;;  %v6156_v4 = vmul.f32 %v18154_v17, %v6118_v46  ;;  %14661 = vmatmul.mubr.bf16.gmra.mxu1 %v6756_v9  ;;  %v6508_v47 = vmul.f32 %v14623_v32, %v18175_v41  ;;  %v6458_v6 = vpop.f32.mrf.mxu0  ;;  %v7199_v27 = vld [vmem:[#allocation2 + $0x22] sm:$0xff]  ;;  %v7201_v15 = vld [vmem:[#allocation2 + $0x3a] sm:$0xff]  ;;  %v15773_v9 = vld [vmem:[#allocation7 + $0x370] sm:$0xff]  }
 0x44b   : > { %6639 = vst [vmem:[#allocation2 + $0x159] sm:$0xff] %v6607_v11  ;;  %v18529_v37 = vmax.f32 %v6573_v8, 0.0  ;;  %v6578_v2 = vadd.f32 %v6546_v24, %v6195_v38  ;;  %v6544_v30 = vadd.f32 %v18201_v52, %v6505_v23  ;;  %14664 = vmatprep.mubr.bf16.mxu1 %v6757_v0  ;;  %14864 = vmatprep.subr.bf16.mxu0 %v18515_v45  ;;  %v6671_v43 = vld [vmem:[#allocation2 + $0x110] sm:$0xff]  ;;  %v7204_v23 = vld [vmem:[#allocation2 + $0x62] sm:$0xff] }
 0x44c   : > { %v6196_v3 = vadd.f32 %v18196_v60, %v6158_v53  ;;  %v6759_v1 = vpack.c.bf16 %v6607_v11, %v6606_v25  ;;  %v6547_v50 = vadd.f32 %v18201_v52, %v6508_v47  ;;  %v6506_v10 = vmul.f32 %v18175_v41, %v6458_v6  ;;  %v7197_v25 = vld [vmem:[#allocation2 + $0xa] sm:$0xff]  ;;  %v7200_v38 = vld [vmem:[#allocation2 + $0x32] sm:$0xff]  ;;  %v7207_v47 = vld [vmem:[#allocation2 + $0x82] sm:$0xff] }
 0x44d   : > { %6637 = vst [vmem:[#allocation2 + $0x141] sm:$0xff] %v18529_v37  ;;  %v6610_v17 = vmax.f32 %v6578_v2, 0.0  ;;  %v6576_v14 = vadd.f32 %v6544_v30, %v6193_v12  ;;  %v6194_v48 = vadd.f32 %v18196_v60, %v6156_v4  ;;  %v18539_v56 = vpack.c.bf16 %v6671_v43, %v6670_v16  ;;  %v15774_v11 = vld [vmem:[#allocation7 + $0x368] sm:$0xff]   ;;  %v7203_v24 = vld [vmem:[#allocation2 + $0x52] sm:$0xff]  ;;  %v7209_v6 = vld [vmem:[#allocation2 + $0x9a] sm:$0xff] }
 0x44e   : > { %v6758_v21 = vpack.c.bf16 %v18529_v37, %v6604_v28  ;;  %v18542_v49 = vadd.f32 %v6547_v50, %v6196_v3  ;;  %v6545_v5 = vadd.f32 %v18201_v52, %v6506_v10  ;;  %v18545_v51 = vpack.c.bf16 %v6673_v54, %v6672_v57  ;;  %v6676_v58 = vld [vmem:[#allocation2 + $0x150] sm:$0xff]  ;;  %v15776_v30 = vld [vmem:[#allocation7 + $0x358] sm:$0xff]   ;;  %v7212_v50 = vld [vmem:[#allocation2 + $0xc2] sm:$0xff] }
 0x44f   : > { %6642 = vst [vmem:[#allocation2 + $0x181] sm:$0xff] %v6610_v17  ;;  %v6608_v33 = vmax.f32 %v6576_v14, 0.0  ;;  %v7228_v22 = vpack.c.bf16 %v7197_v25, %v7196_v39  ;;  %v18565_v53 = vpack.c.bf16 %v7199_v27, %v7198_v63  ;;  %v18568_v0 = vpack.c.bf16 %v7201_v15, %v7200_v38  ;;  %v7202_v8 = vld [vmem:[#allocation2 + $0x4a] sm:$0xff]  ;;  %v7208_v3 = vld [vmem:[#allocation2 + $0x92] sm:$0xff]  ;;  %v7217_v39 = vld [vmem:[#allocation2 + $0xfa] sm:$0xff] }
 0x450   : > { %14709 = vmatmul.mubr.bf16.gmra.mxu0 %v18539_v56  ;;  %v6611_v41 = vmax.f32 %v18542_v49, 0.0  ;;  %v6577_v61 = vadd.f32 %v6545_v5, %v6194_v48  ;;  %v6674_v52 = vld [vmem:[#allocation2 + $0x138] sm:$0xff]  ;;  %v7205_v12 = vld [vmem:[#allocation2 + $0x6a] sm:$0xff]  ;;  %v18574_v4 = vpack.c.bf16 %v7203_v24, %v7202_v8  ;;  %v18586_v54 = vpack.c.bf16 %v7209_v6, %v7208_v3  ;;  %v15785_v48 = vld [vmem:[#allocation7 + $0x340] sm:$0xff]  }
 0x451   : > { %6640 = vst [vmem:[#allocation2 + $0x169] sm:$0xff] %v6608_v33  ;;  %14712 = vmatprep.mubr.bf16.mxu0 %v18545_v51  ;;  %v15778_v32 = vld [vmem:[#allocation7 + $0x3b0] sm:$0xff]   ;;  %v18577_v2 = vpack.c.bf16 %v7205_v12, %v7204_v23  ;;  %v15782_v17 = vld [vmem:[#allocation7 + $0x348] sm:$0xff]   ;;  %v7808_v8 = vld [vmem:[#allocation2 + $0x19] sm:$0xff] }
 0x452   : > { %14665 = vmatmul.mubr.bf16.gmra.mxu1 %v6758_v21  ;;  %6643 = vst [vmem:[#allocation2 + $0x189] sm:$0xff] %v6611_v41  ;;  %v18552_v60 = vmax.f32 %v6577_v61, 0.0  ;;  %v6677_v44 = vld [vmem:[#allocation2 + $0x158] sm:$0xff]  ;;  %v15779_v43 = vld [vmem:[#allocation7 + $0x350] sm:$0xff]   ;;  %v15786_v21 = vld [vmem:[#allocation7 + $0x388] sm:$0xff]  }
 0x453   : > { %14668 = vmatprep.mubr.bf16.mxu1 %v6759_v1  ;;  %v18558_v59 = vpack.c.bf16 %v6677_v44, %v6676_v58  ;;  %v15783_v1 = vld [vmem:[#allocation7 + $0x398] sm:$0xff]   ;;  %v7210_v14 = vld [vmem:[#allocation2 + $0xaa] sm:$0xff]  ;;  %v7215_v5 = vld [vmem:[#allocation2 + $0xe2] sm:$0xff] }
 0x454   : > { %v6675_v62 = vld [vmem:[#allocation2 + $0x140] sm:$0xff]  ;;  %6641 = vst [vmem:[#allocation2 + $0x171] sm:$0xff] %v18552_v60  ;;  %v6760_v35 = vpack.c.bf16 %v18552_v60, %v6608_v33  ;;  %v7213_v10 = vld [vmem:[#allocation2 + $0xca] sm:$0xff]  ;;  %v18598_v33 = vld [vmem:[#allocation7 + $0x3f8] sm:$0xff]  }
 0x455   : > { %v18555_v19 = vpack.c.bf16 %v6675_v62, %v6674_v52  ;;  %v15784_v16 = vld [vmem:[#allocation7 + $0x390] sm:$0xff]   ;;  %v18594_v57 = vpack.c.bf16 %v7213_v10, %v7212_v50  ;;  %v18608_v62 = vld [vmem:[#allocation7 + $0x438] sm:$0xff]   ;;  %v7817_v3 = vld [vmem:[#allocation2 + $0x81] sm:$0xff] }
 0x456   : > { %v7216_v61 = vld [vmem:[#allocation2 + $0xf2] sm:$0xff]  ;;  %v7218_v44 = vld [vmem:[#allocation2 + $0x10a] sm:$0xff]  ;;  %v7225_v27 = vld [vmem:[#allocation2 + $0x15a] sm:$0xff] }
 0x457   : > { %v18605_v52 = vpack.c.bf16 %v7217_v39, %v7216_v61  ;;  %v7221_v58 = vld [vmem:[#allocation2 + $0x12a] sm:$0xff]  ;;  %v7224_v63 = vld [vmem:[#allocation2 + $0x152] sm:$0xff]  ;;  %v7532_v24 = vld [vmem:[#allocation2 + $0x180] sm:$0xff] }
 0x458   : > { %14713 = vmatmul.mubr.bf16.gmra.mxu0 %v18555_v19  ;;  %v6678_v46 = vld [vmem:[#allocation2 + $0x168] sm:$0xff]  ;;  %v7811_v23 = vld [vmem:[#allocation2 + $0x39] sm:$0xff]  ;;  %v15794_v6 = vld [vmem:[#allocation7 + $0x430] sm:$0xff]  }
 0x459   : > { %14716 = vmatprep.mubr.bf16.mxu0 %v18558_v59  ;;  %v7821_v50 = vld [vmem:[#allocation2 + $0xb1] sm:$0xff]  ;;  %v15797_v10 = vld [vmem:[#allocation7 + $0x420] sm:$0xff]  }
 0x45a   : > { %14669 = vmatmul.mubr.bf16.gmra.mxu1 %v6760_v35  ;;  %v7219_v35 = vld [vmem:[#allocation2 + $0x112] sm:$0xff]  ;;  %v7825_v61 = vld [vmem:[#allocation2 + $0xe1] sm:$0xff] }
 0x45b   : > { %14736 = vmatprep.mubr.bf16.mxu1 %v7228_v22  ;;  %v6679_v28 = vld [vmem:[#allocation2 + $0x170] sm:$0xff] }
 0x45c   : > { %v18562_v34 = vpack.c.bf16 %v6679_v28, %v6678_v46  ;;  %v7222_v46 = vld [vmem:[#allocation2 + $0x13a] sm:$0xff]  ;;  %v7223_v28 = vld [vmem:[#allocation2 + $0x142] sm:$0xff]  ;;  %v7227_v15 = vld [vmem:[#allocation2 + $0x172] sm:$0xff] }
 0x45d   : > { %v18621_v38 = vpack.c.bf16 %v7223_v28, %v7222_v46  ;;  %v15800_v39 = vld [vmem:[#allocation7 + $0x410] sm:$0xff]   ;;  %v15803_v28 = vld [vmem:[#allocation7 + $0x400] sm:$0xff]  }
 0x45e   : > { %v7829_v46 = vld [vmem:[#allocation2 + $0x111] sm:$0xff] }
 0x45f   : > { %v15805_v49 = vld [vmem:[#allocation7 + $0x470] sm:$0xff]  }
 0x460   : > { %14717 = vmatmul.mubr.bf16.gmra.mxu0 %v18562_v34 }
 0x461   : > { %14784 = vmatprep.mubr.bf16.mxu0 %v18320_v40  ;;  %v15775_v40 = vld [vmem:[#allocation7 + $0x360] sm:$0xff]  }
 0x462   : > { %14737 = vmatmul.mubr.bf16.vlgmr.msra.gmra.mxu1 %v18565_v53 }
 0x463   : > { %14740 = vmatprep.mubr.bf16.mxu1 %v18568_v0  ;;  %14817 = vmatpush3.bf16.msra.mxu1 %v18474_v42  ;;  %v15780_v42 = vld [vmem:[#allocation7 + $0x3a8] sm:$0xff]  }
 0x464   : > { %14818 = vmatprep.subr.bf16.mxu1 %v15773_v9 }
 0x467   : > { %14819 = vmatpush3.bf16.msra.mxu1 %v15773_v9  ;;  %v7809_v9 = vld [vmem:[#allocation2 + $0x21] sm:$0xff] }
 0x468   : > { %14785 = vmatmul.mubr.bf16.vlgmr.msra.gmra.mxu0 %v18322_v7  ;;  %14820 = vmatprep.subr.bf16.mxu1 %v15774_v11  ;;  %v7206_v7 = vld [vmem:[#allocation2 + $0x7a] sm:$0xff] }
 0x469   : > { %14788 = vmatprep.mubr.bf16.mxu0 %v18368_v26  ;;  %14865 = vmatpush3.bf16.msra.mxu0 %v18515_v45  ;;  %v15781_v26 = vld [vmem:[#allocation7 + $0x3a0] sm:$0xff]   ;;  %v18583_v45 = vpack.c.bf16 %v7207_v47, %v7206_v7  ;;  %v15790_v7 = vld [vmem:[#allocation7 + $0x3e8] sm:$0xff]  }
 0x46a   : > { %14741 = vmatmul.mubr.bf16.gmra.mxu1 %v18574_v4  ;;  %14866 = vmatprep.subr.bf16.mxu0 %v15778_v32  ;;  %v7815_v47 = vld [vmem:[#allocation2 + $0x69] sm:$0xff] }
 0x46b   : > { %14744 = vmatprep.mubr.bf16.mxu1 %v18577_v2  ;;  %14821 = vmatpush3.bf16.msra.mxu1 %v15774_v11 }
 0x46c   : > { %14822 = vmatprep.subr.bf16.mxu1 %v15775_v40 }
 0x46d   : > { %14867 = vmatpush3.bf16.msra.mxu0 %v15778_v32  ;;  %v7813_v32 = vld [vmem:[#allocation2 + $0x51] sm:$0xff] }
 0x46e   : > { %14868 = vmatprep.subr.bf16.mxu0 %v15780_v42 }
 0x46f   : > { %14823 = vmatpush3.bf16.msra.mxu1 %v15775_v40  ;;  %v7810_v40 = vld [vmem:[#allocation2 + $0x31] sm:$0xff] }
 0x470   : > { %14789 = vmatmul.mubr.bf16.gmra.mxu0 %v18370_v36  ;;  %14824 = vmatprep.subr.bf16.mxu1 %v15776_v30  ;;  %v7211_v36 = vld [vmem:[#allocation2 + $0xb2] sm:$0xff] }
 0x471   : > { %14792 = vmatprep.mubr.bf16.mxu0 %v18415_v55  ;;  %14869 = vmatpush3.bf16.msra.mxu0 %v15780_v42  ;;  %v18591_v55 = vpack.c.bf16 %v7211_v36, %v7210_v14  ;;  %v18636_v42 = vpack.c.bf16 %v7811_v23, %v7810_v40  ;;  %v15796_v14 = vld [vmem:[#allocation7 + $0x428] sm:$0xff]   ;;  %v7819_v36 = vld [vmem:[#allocation2 + $0x99] sm:$0xff] }
 0x472   : > { %14745 = vmatmul.mubr.bf16.gmra.mxu1 %v18583_v45  ;;  %14870 = vmatprep.subr.bf16.mxu0 %v15781_v26 }
 0x473   : > { %14748 = vmatprep.mubr.bf16.mxu1 %v18586_v54  ;;  %14825 = vmatpush3.bf16.msra.mxu1 %v15776_v30  ;;  %v15789_v30 = vld [vmem:[#allocation7 + $0x3f0] sm:$0xff]  }
 0x474   : > { %14826 = vmatprep.subr.bf16.mxu1 %v15779_v43 }
 0x475   : > { %14871 = vmatpush3.bf16.msra.mxu0 %v15781_v26  ;;  %v7814_v26 = vld [vmem:[#allocation2 + $0x61] sm:$0xff] }
 0x476   : > { %14872 = vmatprep.subr.bf16.mxu0 %v15783_v1 }
 0x477   : > { %14827 = vmatpush3.bf16.msra.mxu1 %v15779_v43  ;;  %v18645_v43 = vpack.c.bf16 %v7815_v47, %v7814_v26  ;;  %v8422_v47 = vld [vmem:[#allocation2 + $0x48] sm:$0xff] }
 0x478   : > { %14793 = vmatmul.mubr.bf16.gmra.mxu0 %v18417_v31  ;;  %14828 = vmatprep.subr.bf16.mxu1 %v15782_v17  ;;  %v7214_v31 = vld [vmem:[#allocation2 + $0xda] sm:$0xff] }
 0x479   : > { %14796 = vmatprep.mubr.bf16.mxu0 %v18462_v13  ;;  %14873 = vmatpush3.bf16.msra.mxu0 %v15783_v1  ;;  %v15787_v13 = vld [vmem:[#allocation7 + $0x380] sm:$0xff]   ;;  %v18601_v25 = vpack.c.bf16 %v7215_v5, %v7214_v31  ;;  %v15799_v31 = vld [vmem:[#allocation7 + $0x418] sm:$0xff]   ;;  %v15798_v5 = vld [vmem:[#allocation7 + $0x3c8] sm:$0xff]  }
 0x47a   : > { %14749 = vmatmul.mubr.bf16.gmra.mxu1 %v18591_v55  ;;  %14874 = vmatprep.subr.bf16.mxu0 %v15784_v16  ;;  %v15791_v1 = vld [vmem:[#allocation7 + $0x3e0] sm:$0xff]  }
 0x47b   : > { %14752 = vmatprep.mubr.bf16.mxu1 %v18594_v57  ;;  %14829 = vmatpush3.bf16.msra.mxu1 %v15782_v17 }
 0x47c   : > { %14830 = vmatprep.subr.bf16.mxu1 %v15785_v48 }
 0x47d   : > { %14875 = vmatpush3.bf16.msra.mxu0 %v15784_v16  ;;  %v7818_v16 = vld [vmem:[#allocation2 + $0x91] sm:$0xff] }
 0x47e   : > { %14876 = vmatprep.subr.bf16.mxu0 %v15786_v21 }
 0x47f   : > { %14831 = vmatpush3.bf16.msra.mxu1 %v15785_v48  ;;  %v7820_v48 = vld [vmem:[#allocation2 + $0xa9] sm:$0xff] }
 0x480   : > { %14797 = vmatmul.mubr.bf16.gmra.mxu0 %v18464_v18  ;;  %14912 = vmatprep.subr.bf16.mxu1 %v18598_v33  ;;  %v7220_v18 = vld [vmem:[#allocation2 + $0x122] sm:$0xff] }
 0x481   : > { %14800 = vmatprep.mubr.bf16.mxu0 %v18509_v20  ;;  %14877 = vmatpush3.bf16.msra.mxu0 %v15786_v21  ;;  %v18613_v20 = vpack.c.bf16 %v7219_v35, %v7218_v44  ;;  %v18616_v22 = vpack.c.bf16 %v7221_v58, %v7220_v18  ;;  %v15795_v21 = vld [vmem:[#allocation7 + $0x3d0] sm:$0xff]   ;;  %v15801_v44 = vld [vmem:[#allocation7 + $0x3c0] sm:$0xff]   ;;  %v15802_v18 = vld [vmem:[#allocation7 + $0x408] sm:$0xff]  }
 0x482   : > { %14753 = vmatmul.mubr.bf16.gmra.mxu1 %v18601_v25  ;;  %14878 = vmatprep.subr.bf16.mxu0 %v15787_v13  ;;  %v15804_v58 = vld [vmem:[#allocation7 + $0x478] sm:$0xff]  }
 0x483   : > { %14756 = vmatprep.mubr.bf16.mxu1 %v18605_v52 }
 0x485   : > { %14879 = vmatpush3.bf16.msra.mxu0 %v15787_v13  ;;  %v7822_v13 = vld [vmem:[#allocation2 + $0xc1] sm:$0xff] }
 0x486   : > { %14960 = vmatprep.subr.bf16.mxu0 %v18608_v62 }
 0x488   : > { %14801 = vmatmul.mubr.bf16.gmra.mxu0 %v18511_v29  ;;  %v18624_v29 = vpack.c.bf16 %v7225_v27, %v7224_v63  ;;  %v7826_v63 = vld [vmem:[#allocation2 + $0xf1] sm:$0xff]  ;;  %v7828_v27 = vld [vmem:[#allocation2 + $0x109] sm:$0xff] }
 0x489   : > { %14804 = vmatprep.mubr.bf16.mxu0 %v18539_v56  ;;  %v7226_v56 = vld [vmem:[#allocation2 + $0x16a] sm:$0xff] }
 0x48a   : > { %14757 = vmatmul.mubr.bf16.gmra.mxu1 %v18613_v20  ;;  %v18629_v11 = vpack.c.bf16 %v7227_v15, %v7226_v56  ;;  %v18673_v56 = vpack.c.bf16 %v7829_v46, %v7828_v27  ;;  %v7831_v15 = vld [vmem:[#allocation2 + $0x129] sm:$0xff]  ;;  %v8432_v27 = vld [vmem:[#allocation2 + $0xc0] sm:$0xff] }
 0x48b   : > { %14760 = vmatprep.mubr.bf16.mxu1 %v18616_v22 }
 0x490   : > { %14805 = vmatmul.mubr.bf16.gmra.mxu0 %v18545_v51  ;;  %v7840_v51 = vpack.c.bf16 %v7809_v9, %v7808_v8  ;;  %v18677_v9 = vld [vmem:[#allocation2 + $0x139] sm:$0xff]  ;;  %v7830_v8 = vld [vmem:[#allocation2 + $0x121] sm:$0xff] }
 0x491   : > { %14808 = vmatprep.mubr.bf16.mxu0 %v18555_v19  ;;  %v7533_v19 = vld [vmem:[#allocation2 + $0x188] sm:$0xff] }
 0x492   : > { %14761 = vmatmul.mubr.bf16.gmra.mxu1 %v18621_v38  ;;  %v18633_v12 = vpack.c.bf16 %v7533_v19, %v7532_v24  ;;  %v18686_v19 = vld [vmem:[#allocation2 + $0x169] sm:$0xff]  ;;  %v7834_v24 = vld [vmem:[#allocation2 + $0x151] sm:$0xff] }
 0x493   : > { %14764 = vmatprep.mubr.bf16.mxu1 %v18624_v29 }
 0x498   : > { %14809 = vmatmul.mubr.bf16.gmra.mxu0 %v18558_v59  ;;  %v7812_v59 = vld [vmem:[#allocation2 + $0x49] sm:$0xff] }
 0x499   : > { %14812 = vmatprep.mubr.bf16.mxu0 %v18562_v34  ;;  %v18639_v34 = vpack.c.bf16 %v7813_v32, %v7812_v59  ;;  %v8145_v59 = vld [vmem:[#allocation2 + $0x18a] sm:$0xff] }
 0x49a   : > { %14765 = vmatmul.mubr.bf16.gmra.mxu1 %v18629_v11 }
 0x49b   : > { %14832 = vmatprep.mubr.bf16.mxu1 %v7840_v51  ;;  %v7835_v51 = vld [vmem:[#allocation2 + $0x159] sm:$0xff] }
 0x49c   : > { %v18689_v23 = vpack.c.bf16 %v7835_v51, %v7834_v24 }
 0x4a0   : > { %14813 = vmatmul.mubr.bf16.gmra.mxu0 %v18633_v12 }
 0x4a1   : > { %14880 = vmatprep.mubr.bf16.mxu0 %v18565_v53  ;;  %v7816_v53 = vld [vmem:[#allocation2 + $0x79] sm:$0xff] }
 0x4a2   : > { %14833 = vmatmul.mubr.bf16.vlgmr.msra.gmra.mxu1 %v18636_v42  ;;  %v18648_v17 = vpack.c.bf16 %v7817_v3, %v7816_v53  ;;  %v15806_v53 = vld [vmem:[#allocation7 + $0x468] sm:$0xff]  }
 0x4a3   : > { %14836 = vmatprep.mubr.bf16.mxu1 %v18639_v34  ;;  %14913 = vmatpush3.bf16.msra.mxu1 %v18598_v33  ;;  %v18657_v33 = vpack.c.bf16 %v7821_v50, %v7820_v48 }
 0x4a4   : > { %14914 = vmatprep.subr.bf16.mxu1 %v15789_v30 }
 0x4a7   : > { %14915 = vmatpush3.bf16.msra.mxu1 %v15789_v30 }
 0x4a8   : > { %14881 = vmatmul.mubr.bf16.vlgmr.msra.gmra.mxu0 %v18568_v0  ;;  %14916 = vmatprep.subr.bf16.mxu1 %v15790_v7  ;;  %v15792_v0 = vld [vmem:[#allocation7 + $0x3d8] sm:$0xff]  }
 0x4a9   : > { %14884 = vmatprep.mubr.bf16.mxu0 %v18574_v4  ;;  %14961 = vmatpush3.bf16.msra.mxu0 %v18608_v62  ;;  %v18654_v4 = vpack.c.bf16 %v7819_v36, %v7818_v16  ;;  %v7824_v62 = vld [vmem:[#allocation2 + $0xd9] sm:$0xff]  ;;  %v8428_v16 = vld [vmem:[#allocation2 + $0x90] sm:$0xff] }
 0x4aa   : > { %14837 = vmatmul.mubr.bf16.gmra.mxu1 %v18645_v43  ;;  %14962 = vmatprep.subr.bf16.mxu0 %v15794_v6  ;;  %v18665_v35 = vpack.c.bf16 %v7825_v61, %v7824_v62  ;;  %v8426_v36 = vld [vmem:[#allocation2 + $0x78] sm:$0xff]  ;;  %v8431_v62 = vld [vmem:[#allocation2 + $0xb0] sm:$0xff] }
 0x4ab   : > { %14840 = vmatprep.mubr.bf16.mxu1 %v18648_v17  ;;  %14917 = vmatpush3.bf16.msra.mxu1 %v15790_v7  ;;  %v8425_v7 = vld [vmem:[#allocation2 + $0x68] sm:$0xff] }
 0x4ac   : > { %14918 = vmatprep.subr.bf16.mxu1 %v15791_v1 }
 0x4ad   : > { %14963 = vmatpush3.bf16.msra.mxu0 %v15794_v6  ;;  %v8424_v6 = vld [vmem:[#allocation2 + $0x60] sm:$0xff] }
 0x4ae   : > { %14964 = vmatprep.subr.bf16.mxu0 %v15796_v14 }
 0x4af   : > { %14919 = vmatpush3.bf16.msra.mxu1 %v15791_v1  ;;  %v8427_v1 = vld [vmem:[#allocation2 + $0x80] sm:$0xff] }
 0x4b0   : > { %14885 = vmatmul.mubr.bf16.gmra.mxu0 %v18577_v2  ;;  %14920 = vmatprep.subr.bf16.mxu1 %v15792_v0  ;;  %v7823_v2 = vld [vmem:[#allocation2 + $0xc9] sm:$0xff] }
 0x4b1   : > { %14888 = vmatprep.mubr.bf16.mxu0 %v18583_v45  ;;  %14965 = vmatpush3.bf16.msra.mxu0 %v15796_v14  ;;  %v18662_v45 = vpack.c.bf16 %v7823_v2, %v7822_v13 }
 0x4b2   : > { %14841 = vmatmul.mubr.bf16.gmra.mxu1 %v18654_v4  ;;  %14966 = vmatprep.subr.bf16.mxu0 %v15797_v10 }
 0x4b3   : > { %14844 = vmatprep.mubr.bf16.mxu1 %v18657_v33  ;;  %14921 = vmatpush3.bf16.msra.mxu1 %v15792_v0  ;;  %v8429_v0 = vld [vmem:[#allocation2 + $0x98] sm:$0xff] }
 0x4b4   : > { %14922 = vmatprep.subr.bf16.mxu1 %v15795_v21 }
 0x4b5   : > { %14967 = vmatpush3.bf16.msra.mxu0 %v15797_v10  ;;  %v8455_v10 = vpack.c.bf16 %v8427_v1, %v8426_v36  ;;  %v8439_v36 = vld [vmem:[#allocation2 + $0x110] sm:$0xff] }
 0x4b6   : > { %14968 = vmatprep.subr.bf16.mxu0 %v15799_v31 }
 0x4b7   : > { %14923 = vmatpush3.bf16.msra.mxu1 %v15795_v21  ;;  %v8456_v21 = vpack.c.bf16 %v8429_v0, %v8428_v16  ;;  %v8441_v16 = vld [vmem:[#allocation2 + $0x128] sm:$0xff] }
 0x4b8   : > { %14889 = vmatmul.mubr.bf16.gmra.mxu0 %v18586_v54  ;;  %14924 = vmatprep.subr.bf16.mxu1 %v15798_v5  ;;  %v7827_v54 = vld [vmem:[#allocation2 + $0xf9] sm:$0xff] }
 0x4b9   : > { %14892 = vmatprep.mubr.bf16.mxu0 %v18591_v55  ;;  %14969 = vmatpush3.bf16.msra.mxu0 %v15799_v31  ;;  %v18670_v55 = vpack.c.bf16 %v7827_v54, %v7826_v63 }
 0x4ba   : > { %14845 = vmatmul.mubr.bf16.gmra.mxu1 %v18662_v45  ;;  %14970 = vmatprep.subr.bf16.mxu0 %v15800_v39 }
 0x4bb   : > { %14848 = vmatprep.mubr.bf16.mxu1 %v18665_v35  ;;  %14925 = vmatpush3.bf16.msra.mxu1 %v15798_v5 }
 0x4bc   : > { %14926 = vmatprep.subr.bf16.mxu1 %v15801_v44 }
 0x4bd   : > { %14971 = vmatpush3.bf16.msra.mxu0 %v15800_v39 }
 0x4be   : > { %14972 = vmatprep.subr.bf16.mxu0 %v15802_v18 }
 0x4bf   : > { %14927 = vmatpush3.bf16.msra.mxu1 %v15801_v44 }
 0x4c0   : > { %14893 = vmatmul.mubr.bf16.gmra.mxu0 %v18594_v57  ;;  %15008 = vmatprep.subr.bf16.mxu1 %v15804_v58  ;;  %v18680_v57 = vpack.c.bf16 %v7831_v15, %v7830_v8  ;;  %v15809_v15 = vld [vmem:[#allocation7 + $0x450] sm:$0xff]  }
 0x4c1   : > { %14896 = vmatprep.mubr.bf16.mxu0 %v18601_v25  ;;  %14973 = vmatpush3.bf16.msra.mxu0 %v15802_v18  ;;  %v7852_v25 = vpack.c.bf16 %v18529_v37, %v18677_v9  ;;  %v18695_v37 = vld [vmem:[#allocation2 + $0x181] sm:$0xff] }
 0x4c2   : > { %14849 = vmatmul.mubr.bf16.gmra.mxu1 %v18670_v55  ;;  %14974 = vmatprep.subr.bf16.mxu0 %v15803_v28  ;;  %v7855_v32 = vpack.c.bf16 %v6611_v41, %v18695_v37  ;;  %v8454_v41 = vpack.c.bf16 %v8425_v7, %v8424_v6  ;;  %v8436_v6 = vld [vmem:[#allocation2 + $0xf0] sm:$0xff] }
 0x4c3   : > { %14852 = vmatprep.mubr.bf16.mxu1 %v18673_v56 }
 0x4c5   : > { %14975 = vmatpush3.bf16.msra.mxu0 %v15803_v28 }
 0x4c8   : > { %14897 = vmatmul.mubr.bf16.gmra.mxu0 %v18605_v52  ;;  %v7854_v52 = vpack.c.bf16 %v18552_v60, %v18686_v19  ;;  %v8423_v60 = vld [vmem:[#allocation2 + $0x50] sm:$0xff] }
 0x4c9   : > { %14900 = vmatprep.mubr.bf16.mxu0 %v18613_v20  ;;  %v8421_v20 = vld [vmem:[#allocation2 + $0x38] sm:$0xff]  ;;  %v8453_v3 = vpack.c.bf16 %v8423_v60, %v8422_v47 }
 0x4ca   : > { %14853 = vmatmul.mubr.bf16.gmra.mxu1 %v18680_v57  ;;  %v8437_v60 = vld [vmem:[#allocation2 + $0xf8] sm:$0xff] }
 0x4cb   : > { %14856 = vmatprep.mubr.bf16.mxu1 %v7852_v25 }
 0x4d0   : > { %14901 = vmatmul.mubr.bf16.gmra.mxu0 %v18616_v22  ;;  %v8420_v22 = vld [vmem:[#allocation2 + $0x30] sm:$0xff] }
 0x4d1   : > { %14904 = vmatprep.mubr.bf16.mxu0 %v18621_v38  ;;  %v8452_v40 = vpack.c.bf16 %v8421_v20, %v8420_v22  ;;  %v8144_v38 = vld [vmem:[#allocation2 + $0x182] sm:$0xff] }
 0x4d2   : > { %14857 = vmatmul.mubr.bf16.gmra.mxu1 %v18689_v23  ;;  %v18702_v30 = vpack.c.bf16 %v8145_v59, %v8144_v38 }
 0x4d3   : > { %14860 = vmatprep.mubr.bf16.mxu1 %v7854_v52 }
 0x4d8   : > { %14905 = vmatmul.mubr.bf16.gmra.mxu0 %v18624_v29 }
 0x4d9   : > { %14908 = vmatprep.mubr.bf16.mxu0 %v18629_v11 }
 0x4da   : > { %14861 = vmatmul.mubr.bf16.gmra.mxu1 %v7855_v32 }
 0x4db   : > { %14928 = vmatprep.mubr.bf16.mxu1 %v8452_v40  ;;  %v8435_v40 = vld [vmem:[#allocation2 + $0xe0] sm:$0xff] }
 0x4de   : > { %v14642_v29 = vpop.f32.mrf.mxu1 }
 0x4e0   : > { %14909 = vmatmul.mubr.bf16.gmra.mxu0 %v18702_v30  ;;  %v6860_v11 = vpop.f32.mrf.mxu1 }
 0x4e1   : > { %14976 = vmatprep.mubr.bf16.mxu0 %v18636_v42  ;;  %v15807_v42 = vld [vmem:[#allocation7 + $0x460] sm:$0xff]  }
 0x4e2   : > { %14929 = vmatmul.mubr.bf16.vlgmr.msra.gmra.mxu1 %v8453_v3  ;;  %v14643_v26 = vpop.f32.mrf.mxu1 }
 0x4e3   : > { %14932 = vmatprep.mubr.bf16.mxu1 %v8454_v41  ;;  %15009 = vmatpush3.bf16.msra.mxu1 %v15804_v58  ;;  %v8433_v58 = vld [vmem:[#allocation2 + $0xc8] sm:$0xff] }
 0x4e4   : > { %15010 = vmatprep.subr.bf16.mxu1 %v15805_v49  ;;  %v6863_v14 = vpop.f32.mrf.mxu1  ;;  %v8458_v25 = vpack.c.bf16 %v8433_v58, %v8432_v27  ;;  %v8445_v27 = vld [vmem:[#allocation2 + $0x158] sm:$0xff] }
 0x4e6   : > { %v14690_v50 = vpop.f32.mrf.mxu0  ;;  %v14646_v5 = vpop.f32.mrf.mxu1 }
 0x4e7   : > { %15011 = vmatpush3.bf16.msra.mxu1 %v15805_v49  ;;  %v18707_v48 = vadd.f32 %v14690_v50, %v14642_v29  ;;  %v15811_v49 = vld [vmem:[#allocation7 + $0x440] sm:$0xff]  }
 0x4e8   : > { %14977 = vmatmul.mubr.bf16.vlgmr.msra.gmra.mxu0 %v18639_v34  ;;  %15012 = vmatprep.subr.bf16.mxu1 %v15806_v53  ;;  %v7069_v31 = vpop.f32.mrf.mxu0  ;;  %v6876_v39 = vpop.f32.mrf.mxu1  ;;  %v15808_v34 = vld [vmem:[#allocation7 + $0x458] sm:$0xff]  }
 0x4e9   : > { %14980 = vmatprep.mubr.bf16.mxu0 %v18645_v43  ;;  %v18710_v2 = vadd.f32 %v7069_v31, %v6860_v11  ;;  %v8430_v43 = vld [vmem:[#allocation2 + $0xa8] sm:$0xff]  ;;  %v8460_v11 = vpack.c.bf16 %v8437_v60, %v8436_v6 }
 0x4ea   : > { %14933 = vmatmul.mubr.bf16.gmra.mxu1 %v8455_v10  ;;  %v14691_v61 = vpop.f32.mrf.mxu0  ;;  %v14647_v18 = vpop.f32.mrf.mxu1  ;;  %v8457_v63 = vpack.c.bf16 %v8431_v62, %v8430_v43  ;;  %v8749_v60 = vld [vmem:[#allocation2 + $0x141] sm:$0xff] }
 0x4eb   : > { %14936 = vmatprep.mubr.bf16.mxu1 %v8456_v21  ;;  %15013 = vmatpush3.bf16.msra.mxu1 %v15806_v53  ;;  %v18712_v13 = vadd.f32 %v14691_v61, %v14643_v26  ;;  %v8440_v61 = vld [vmem:[#allocation2 + $0x120] sm:$0xff]  ;;  %v8769_v6 = vpack.c.bf16 %v8749_v60, %v18677_v9 }
 0x4ec   : > { %15014 = vmatprep.subr.bf16.mxu1 %v15807_v42  ;;  %v7072_v44 = vpop.f32.mrf.mxu0  ;;  %v6879_v28 = vpop.f32.mrf.mxu1 }
 0x4ed   : > { %v18714_v54 = vadd.f32 %v7072_v44, %v6863_v14 }
 0x4ef   : > { %15015 = vmatpush3.bf16.msra.mxu1 %v15807_v42  ;;  %v14694_v46 = vpop.f32.mrf.mxu0 }
 0x4f0   : > { %14981 = vmatmul.mubr.bf16.gmra.mxu0 %v18648_v17  ;;  %15016 = vmatprep.subr.bf16.mxu1 %v15808_v34  ;;  %v18717_v8 = vadd.f32 %v14694_v46, %v14646_v5  ;;  %v15810_v17 = vld [vmem:[#allocation7 + $0x448] sm:$0xff]  }
 0x4f1   : > { %14984 = vmatprep.mubr.bf16.mxu0 %v18654_v4  ;;  %v7085_v51 = vpop.f32.mrf.mxu0  ;;  %v14650_v24 = vpop.f32.mrf.mxu1  ;;  %v8434_v4 = vld [vmem:[#allocation2 + $0xd8] sm:$0xff] }
 0x4f2   : > { %14937 = vmatmul.mubr.bf16.gmra.mxu1 %v8457_v63  ;;  %v18720_v52 = vadd.f32 %v7085_v51, %v6876_v39  ;;  %v8459_v3 = vpack.c.bf16 %v8435_v40, %v8434_v4 }
 0x4f3   : > { %14940 = vmatprep.mubr.bf16.mxu1 %v8458_v25  ;;  %15017 = vmatpush3.bf16.msra.mxu1 %v15808_v34  ;;  %v14695_v20 = vpop.f32.mrf.mxu0  ;;  %v6892_v32 = vpop.f32.mrf.mxu1  ;;  %v8462_v34 = vpack.c.bf16 %v8441_v16, %v8440_v61  ;;  %v8442_v25 = vld [vmem:[#allocation2 + $0x138] sm:$0xff]  ;;  %v8755_v16 = vld [vmem:[#allocation2 + $0x189] sm:$0xff] }
 0x4f4   : > { %15018 = vmatprep.subr.bf16.mxu1 %v15809_v15  ;;  %v18722_v22 = vadd.f32 %v14695_v20, %v14647_v18  ;;  %v8444_v20 = vld [vmem:[#allocation2 + $0x150] sm:$0xff] }
 0x4f5   : > { %v7088_v38 = vpop.f32.mrf.mxu0  ;;  %v14651_v59 = vpop.f32.mrf.mxu1 }
 0x4f6   : > { %v18724_v7 = vadd.f32 %v7088_v38, %v6879_v28  ;;  %v8443_v28 = vld [vmem:[#allocation2 + $0x140] sm:$0xff] }
 0x4f7   : > { %15019 = vmatpush3.bf16.msra.mxu1 %v15809_v15  ;;  %v14698_v47 = vpop.f32.mrf.mxu0  ;;  %v6895_v29 = vpop.f32.mrf.mxu1 }
 0x4f8   : > { %14985 = vmatmul.mubr.bf16.gmra.mxu0 %v18657_v33  ;;  %15020 = vmatprep.subr.bf16.mxu1 %v15810_v17  ;;  %v18727_v41 = vadd.f32 %v14698_v47, %v14650_v24  ;;  %v8463_v24 = vpack.c.bf16 %v8443_v28, %v8442_v25 }
 0x4f9   : > { %14988 = vmatprep.mubr.bf16.mxu0 %v18662_v45  ;;  %v7101_v26 = vpop.f32.mrf.mxu0  ;;  %v14654_v53 = vpop.f32.mrf.mxu1  ;;  %v8438_v45 = vld [vmem:[#allocation2 + $0x108] sm:$0xff] }
 0x4fa   : > { %14941 = vmatmul.mubr.bf16.gmra.mxu1 %v8459_v3  ;;  %v18730_v1 = vadd.f32 %v7101_v26, %v6892_v32  ;;  %v8461_v5 = vpack.c.bf16 %v8439_v36, %v8438_v45 }
 0x4fb   : > { %14944 = vmatprep.mubr.bf16.mxu1 %v8460_v11  ;;  %15021 = vmatpush3.bf16.msra.mxu1 %v15810_v17  ;;  %v14699_v14 = vpop.f32.mrf.mxu0  ;;  %v6908_v0 = vpop.f32.mrf.mxu1  ;;  %v8464_v17 = vpack.c.bf16 %v8445_v27, %v8444_v20  ;;  %v8446_v11 = vld [vmem:[#allocation2 + $0x168] sm:$0xff] }
 0x4fc   : > { %15022 = vmatprep.subr.bf16.mxu1 %v15811_v49  ;;  %v18732_v33 = vadd.f32 %v14699_v14, %v14651_v59  ;;  %v8757_v27 = vld [vmem:[#allocation2 + $0x1a1] sm:$0xff] }
 0x4fd   : > { %v7104_v50 = vpop.f32.mrf.mxu0  ;;  %v14655_v10 = vpop.f32.mrf.mxu1 }
 0x4fe   : > { %v18734_v42 = vadd.f32 %v7104_v50, %v6895_v29 }
 0x4ff   : > { %15023 = vmatpush3.bf16.msra.mxu1 %v15811_v49  ;;  %v14702_v21 = vpop.f32.mrf.mxu0  ;;  %v6911_v31 = vpop.f32.mrf.mxu1 }
 0x500   : > { %14989 = vmatmul.mubr.bf16.gmra.mxu0 %v18665_v35  ;;  %v18737_v39 = vadd.f32 %v14702_v21, %v14654_v53 }
 0x501   : > { %14992 = vmatprep.mubr.bf16.mxu0 %v18670_v55  ;;  %v7117_v62 = vpop.f32.mrf.mxu0 }
 0x502   : > { %v14658_v44 = vpop.f32.mrf.mxu1  ;;  %14945 = vmatmul.mubr.bf16.gmra.mxu1 %v8461_v5  ;;  %v18740_v18 = vadd.f32 %v7117_v62, %v6908_v0  ;;  %v9032_v62 = vld [vmem:[#allocation2 + $0x32] sm:$0xff] }
 0x503   : > { %14948 = vmatprep.mubr.bf16.mxu1 %v8462_v34  ;;  %v14703_v58 = vpop.f32.mrf.mxu0  ;;  %v15886_v34 = vld [vmem:[#allocation2] sm:$0xff] }
 0x504   : > { %v6924_v43 = vpop.f32.mrf.mxu1  ;;  %v18742_v46 = vadd.f32 %v14703_v58, %v14655_v10  ;;  %v8753_v10 = vld [vmem:[#allocation2 + $0x171] sm:$0xff]  ;;  %v8772_v58 = vpack.c.bf16 %v8755_v16, %v18695_v37 }
 0x505   : > { %v7120_v35 = vpop.f32.mrf.mxu0  ;;  %v8771_v5 = vpack.c.bf16 %v8753_v10, %v18686_v19 }
 0x506   : > { %v14659_v63 = vpop.f32.mrf.mxu1  ;;  %v18744_v15 = vadd.f32 %v7120_v35, %v6911_v31 }
 0x508   : > { %v14706_v51 = vpop.f32.mrf.mxu0  ;;  %14993 = vmatmul.mubr.bf16.gmra.mxu0 %v18673_v56  ;;  %v18747_v55 = vpop.f32.mrf.mxu1  ;;  %v8447_v56 = vld [vmem:[#allocation2 + $0x170] sm:$0xff] }
 0x509   : > { %v18749_v32 = vadd.f32 %v14706_v51, %v14658_v44  ;;  %14996 = vmatprep.mubr.bf16.mxu0 %v18680_v57  ;;  %v8465_v53 = vpack.c.bf16 %v8447_v56, %v8446_v11  ;;  %v9033_v44 = vld [vmem:[#allocation2 + $0x3a] sm:$0xff]  ;;  %v9037_v56 = vld [vmem:[#allocation2 + $0x6a] sm:$0xff] }
 0x50a   : > { %v7133_v40 = vpop.f32.mrf.mxu0  ;;  %v14662_v38 = vpop.f32.mrf.mxu1  ;;  %14949 = vmatmul.mubr.bf16.gmra.mxu1 %v8463_v24  ;;  %v9064_v35 = vpack.c.bf16 %v9033_v44, %v9032_v62  ;;  %v9039_v62 = vld [vmem:[#allocation2 + $0x82] sm:$0xff] }
 0x50b   : > { %v18752_v59 = vadd.f32 %v7133_v40, %v6924_v43  ;;  %14952 = vmatprep.mubr.bf16.mxu1 %v8464_v17  ;;  %v9034_v40 = vld [vmem:[#allocation2 + $0x4a] sm:$0xff] }
 0x50c   : > { %v14707_v4 = vpop.f32.mrf.mxu0  ;;  %v6940_v47 = vpop.f32.mrf.mxu1 }
 0x50d   : > { %v18754_v29 = vadd.f32 %v14707_v4, %v14659_v63  ;;  %v8756_v63 = vld [vmem:[#allocation2 + $0x199] sm:$0xff] }
 0x50e   : > { %v18756_v3 = vpop.f32.mrf.mxu0  ;;  %v14663_v49 = vpop.f32.mrf.mxu1  ;;  %v8773_v37 = vpack.c.bf16 %v8757_v27, %v8756_v63 }
 0x510   : > { %v14710_v57 = vpop.f32.mrf.mxu0  ;;  %14997 = vmatmul.mubr.bf16.gmra.mxu0 %v8769_v6  ;;  %v18759_v26 = vpop.f32.mrf.mxu1 }
 0x511   : > { %v18761_v14 = vadd.f32 %v14710_v57, %v14662_v38  ;;  %15000 = vmatprep.mubr.bf16.mxu0 %v18689_v23  ;;  %v18772_v23 = vpack.c.bf16 %v15886_v34, %v15886_v34  ;;  %v9035_v38 = vld [vmem:[#allocation2 + $0x52] sm:$0xff]  ;;  %v9038_v34 = vld [vmem:[#allocation2 + $0x7a] sm:$0xff] }
 0x512   : > { %v7149_v0 = vpop.f32.mrf.mxu0  ;;  %v14666_v36 = vpop.f32.mrf.mxu1  ;;  %14953 = vmatmul.mubr.bf16.gmra.mxu1 %v8465_v53  ;;  %v9065_v11 = vpack.c.bf16 %v9035_v38, %v9034_v40 }
 0x513   : > { %v18764_v50 = vadd.f32 %v7149_v0, %v6940_v47  ;;  %14956 = vmatprep.mubr.bf16.mxu1 %v18633_v12  ;;  %v9036_v47 = vld [vmem:[#allocation2 + $0x62] sm:$0xff] }
 0x514   : > { %v14711_v9 = vpop.f32.mrf.mxu0  ;;  %v6956_v45 = vpop.f32.mrf.mxu1  ;;  %v9066_v53 = vpack.c.bf16 %v9037_v56, %v9036_v47 }
 0x515   : > { %v18767_v21 = vadd.f32 %v14711_v9, %v14663_v49 }
 0x516   : > { %v18769_v31 = vpop.f32.mrf.mxu0  ;;  %v14667_v61 = vpop.f32.mrf.mxu1 }
 0x518   : > { %v14714_v43 = vpop.f32.mrf.mxu0  ;;  %15001 = vmatmul.mubr.bf16.gmra.mxu0 %v8771_v5  ;;  %v18775_v12 = vpop.f32.mrf.mxu1 }
 0x519   : > { %v18777_v28 = vadd.f32 %v14714_v43, %v14666_v36  ;;  %15004 = vmatprep.mubr.bf16.mxu0 %v8772_v58  ;;  %v9040_v43 = vld [vmem:[#allocation2 + $0x92] sm:$0xff] }
 0x51a   : > { %v7165_v25 = vpop.f32.mrf.mxu0  ;;  %v14670_v19 = vpop.f32.mrf.mxu1  ;;  %14957 = vmatmul.mubr.bf16.gmra.mxu1 %v18772_v23 }
 0x51b   : > { %v18780_v51 = vadd.f32 %v7165_v25, %v6956_v45  ;;  %15024 = vmatprep.mubr.bf16.mxu1 %v9064_v35  ;;  %v9041_v35 = vld [vmem:[#allocation2 + $0x9a] sm:$0xff] }
 0x51c   : > { %v14715_v24 = vpop.f32.mrf.mxu0  ;;  %v6972_v20 = vpop.f32.mrf.mxu1 }
 0x51d   : > { %v18782_v17 = vadd.f32 %v14715_v24, %v14667_v61 }
 0x51e   : > { %v18784_v60 = vpop.f32.mrf.mxu0  ;;  %v14671_v4 = vpop.f32.mrf.mxu1 }
 0x520   : > { %v14718_v6 = vpop.f32.mrf.mxu0  ;;  %15005 = vmatmul.mubr.bf16.gmra.mxu0 %v8773_v37  ;;  %v18786_v49 = vpop.f32.mrf.mxu1 }
 0x521   : > { %v18788_v57 = vadd.f32 %v14718_v6, %v14670_v19  ;;  %v9067_v19 = vpack.c.bf16 %v9039_v62, %v9038_v34  ;;  %v9042_v6 = vld [vmem:[#allocation2 + $0xaa] sm:$0xff] }
 0x522   : > { %v7181_v0 = vpop.f32.mrf.mxu0  ;;  %v14738_v36 = vpop.f32.mrf.mxu1  ;;  %15025 = vmatmul.mubr.bf16.vlgmr.msra.gmra.mxu1 %v9065_v11  ;;  %v9043_v11 = vld [vmem:[#allocation2 + $0xb2] sm:$0xff] }
 0x523   : > { %v18790_v10 = vadd.f32 %v7181_v0, %v6972_v20  ;;  %v7472_v9 = vadd.f32 %v14738_v36, %v18707_v48  ;;  %15028 = vmatprep.mubr.bf16.mxu1 %v9066_v53  ;;  %v9068_v20 = vpack.c.bf16 %v9041_v35, %v9040_v43  ;;  %v9044_v0 = vld [vmem:[#allocation2 + $0xc2] sm:$0xff]  ;;  %v9045_v36 = vld [vmem:[#allocation2 + $0xca] sm:$0xff] }
 0x524   : > { %v14719_v16 = vpop.f32.mrf.mxu0  ;;  %v7343_v45 = vpop.f32.mrf.mxu1  ;;  %v9070_v62 = vpack.c.bf16 %v9045_v36, %v9044_v0 }
 0x525   : > { %v18793_v5 = vadd.f32 %v14719_v16, %v14671_v4  ;;  %v7470_v61 = vadd.f32 %v7343_v45, %v18710_v2 }
 0x526   : > { %v18796_v44 = vpop.f32.mrf.mxu0  ;;  %v14739_v58 = vpop.f32.mrf.mxu1 }
 0x527   : > { %v7473_v63 = vadd.f32 %v14739_v58, %v18712_v13 }
 0x528   : > { %v14786_v27 = vpop.f32.mrf.mxu0  ;;  %v7346_v25 = vpop.f32.mrf.mxu1 }
 0x529   : > { %v18799_v48 = vadd.f32 %v14786_v27, %v7472_v9  ;;  %v18802_v24 = vadd.f32 %v7346_v25, %v18714_v54 }
 0x52a   : > { %v7649_v37 = vpop.f32.mrf.mxu0  ;;  %v14742_v2 = vpop.f32.mrf.mxu1  ;;  %15029 = vmatmul.mubr.bf16.gmra.mxu1 %v9067_v19  ;;  %v9046_v19 = vld [vmem:[#allocation2 + $0xda] sm:$0xff] }
 0x52b   : > { %v18804_v40 = vadd.f32 %v7649_v37, %v7470_v61  ;;  %v7476_v38 = vadd.f32 %v14742_v2, %v18717_v8  ;;  %15032 = vmatprep.mubr.bf16.mxu1 %v9068_v20  ;;  %v9069_v61 = vpack.c.bf16 %v9043_v11, %v9042_v6  ;;  %v9047_v20 = vld [vmem:[#allocation2 + $0xe2] sm:$0xff]  ;;  %v9048_v2 = vld [vmem:[#allocation2 + $0xf2] sm:$0xff] }
 0x52c   : > { %v14787_v4 = vpop.f32.mrf.mxu0  ;;  %v7359_v47 = vpop.f32.mrf.mxu1  ;;  %v9071_v6 = vpack.c.bf16 %v9047_v20, %v9046_v19 }
 0x52d   : > { %v18807_v13 = vadd.f32 %v14787_v4, %v7473_v63  ;;  %v7474_v56 = vadd.f32 %v7359_v47, %v18720_v52 }
 0x52e   : > { %v18810_v53 = vpop.f32.mrf.mxu0  ;;  %v14743_v54 = vpop.f32.mrf.mxu1 }
 0x52f   : > { %v7477_v9 = vadd.f32 %v14743_v54, %v18722_v22 }
 0x530   : > { %v14790_v16 = vpop.f32.mrf.mxu0  ;;  %v7362_v45 = vpop.f32.mrf.mxu1 }
 0x531   : > { %v18813_v8 = vadd.f32 %v14790_v16, %v7476_v38  ;;  %v18816_v34 = vadd.f32 %v7362_v45, %v18724_v7  ;;  %v9049_v38 = vld [vmem:[#allocation2 + $0xfa] sm:$0xff] }
 0x532   : > { %v7665_v58 = vpop.f32.mrf.mxu0  ;;  %v14746_v52 = vpop.f32.mrf.mxu1  ;;  %15033 = vmatmul.mubr.bf16.gmra.mxu1 %v9069_v61  ;;  %v9072_v54 = vpack.c.bf16 %v9049_v38, %v9048_v2  ;;  %v15812_v38 = vld [vmem:[#allocation9 + $0x2b8] sm:$0xff]  }
 0x533   : > { %v18818_v43 = vadd.f32 %v7665_v58, %v7474_v56  ;;  %v7480_v35 = vadd.f32 %v14746_v52, %v18727_v41  ;;  %15036 = vmatprep.mubr.bf16.mxu1 %v9070_v62  ;;  %v9050_v62 = vld [vmem:[#allocation2 + $0x10a] sm:$0xff]  ;;  %v9051_v58 = vld [vmem:[#allocation2 + $0x112] sm:$0xff]  ;;  %15056 = vmatprep.subr.bf16.mxu0 %v15812_v38 }
 0x534   : > { %v14791_v63 = vpop.f32.mrf.mxu0  ;;  %v7375_v27 = vpop.f32.mrf.mxu1  ;;  %v9073_v20 = vpack.c.bf16 %v9051_v58, %v9050_v62  ;;  %15057 = vmatpush3.bf16.msra.mxu0 %v15812_v38  ;;  %v9057_v62 = vld [vmem:[#allocation2 + $0x15a] sm:$0xff] }
 0x535   : > { %v18821_v22 = vadd.f32 %v14791_v63, %v7477_v9  ;;  %v7478_v25 = vadd.f32 %v7375_v27, %v18730_v1  ;;  %v9053_v63 = vld [vmem:[#allocation2 + $0x12a] sm:$0xff] }
 0x536   : > { %v18824_v37 = vpop.f32.mrf.mxu0  ;;  %v14747_v7 = vpop.f32.mrf.mxu1 }
 0x537   : > { %v7481_v4 = vadd.f32 %v14747_v7, %v18732_v33 }
 0x538   : > { %v14794_v47 = vpop.f32.mrf.mxu0  ;;  %v7378_v56 = vpop.f32.mrf.mxu1 }
 0x539   : > { %v18827_v41 = vadd.f32 %v14794_v47, %v7480_v35  ;;  %v18830_v11 = vadd.f32 %v7378_v56, %v18734_v42  ;;  %v9052_v35 = vld [vmem:[#allocation2 + $0x122] sm:$0xff] }
 0x53a   : > { %v7681_v0 = vpop.f32.mrf.mxu0  ;;  %v14750_v1 = vpop.f32.mrf.mxu1  ;;  %15037 = vmatmul.mubr.bf16.gmra.mxu1 %v9071_v6  ;;  %v9074_v2 = vpack.c.bf16 %v9053_v63, %v9052_v35 }
 0x53b   : > { %v18832_v36 = vadd.f32 %v7681_v0, %v7478_v25  ;;  %v7484_v9 = vadd.f32 %v14750_v1, %v18737_v39  ;;  %15040 = vmatprep.mubr.bf16.mxu1 %v9072_v54  ;;  %v9055_v1 = vld [vmem:[#allocation2 + $0x142] sm:$0xff] }
 0x53c   : > { %v14795_v16 = vpop.f32.mrf.mxu0  ;;  %v7391_v45 = vpop.f32.mrf.mxu1 }
 0x53d   : > { %v18835_v33 = vadd.f32 %v14795_v16, %v7481_v4  ;;  %v7482_v61 = vadd.f32 %v7391_v45, %v18740_v18  ;;  %v9056_v45 = vld [vmem:[#allocation2 + $0x152] sm:$0xff] }
 0x53e   : > { %v18838_v52 = vpop.f32.mrf.mxu0  ;;  %v14751_v42 = vpop.f32.mrf.mxu1  ;;  %v9076_v63 = vpack.c.bf16 %v9057_v62, %v9056_v45  ;;  %v15814_v45 = vld [vmem:[#allocation9 + $0x2a8] sm:$0xff]  }
 0x53f   : > { %v7485_v27 = vadd.f32 %v14751_v42, %v18742_v46 }
 0x540   : > { %v14798_v25 = vpop.f32.mrf.mxu0  ;;  %v7394_v19 = vpop.f32.mrf.mxu1 }
 0x541   : > { %v18841_v39 = vadd.f32 %v14798_v25, %v7484_v9  ;;  %v18844_v7 = vadd.f32 %v7394_v19, %v18744_v15  ;;  %v9054_v15 = vld [vmem:[#allocation2 + $0x13a] sm:$0xff] }
 0x542   : > { %v7697_v18 = vpop.f32.mrf.mxu0  ;;  %v14754_v4 = vpop.f32.mrf.mxu1  ;;  %15041 = vmatmul.mubr.bf16.gmra.mxu1 %v9073_v20  ;;  %v9075_v42 = vpack.c.bf16 %v9055_v1, %v9054_v15 }
 0x543   : > { %v18846_v47 = vadd.f32 %v7697_v18, %v7482_v61  ;;  %v7488_v56 = vadd.f32 %v14754_v4, %v18749_v32  ;;  %15044 = vmatprep.mubr.bf16.mxu1 %v9074_v2  ;;  %v9058_v4 = vld [vmem:[#allocation2 + $0x16a] sm:$0xff] }
 0x544   : > { %v14799_v46 = vpop.f32.mrf.mxu0  ;;  %v7407_v6 = vpop.f32.mrf.mxu1 }
 0x545   : > { %v18849_v54 = vadd.f32 %v14799_v46, %v7485_v27  ;;  %v7486_v0 = vadd.f32 %v7407_v6, %v18752_v59  ;;  %v15813_v27 = vld [vmem:[#allocation9 + $0x2b0] sm:$0xff]  }
 0x546   : > { %v18852_v9 = vpop.f32.mrf.mxu0  ;;  %v14755_v16 = vpop.f32.mrf.mxu1  ;;  %15058 = vmatprep.subr.bf16.mxu0 %v15813_v27 }
 0x547   : > { %v7489_v61 = vadd.f32 %v14755_v16, %v18754_v29  ;;  %15059 = vmatpush3.bf16.msra.mxu0 %v15813_v27 }
 0x548   : > { %v14802_v58 = vpop.f32.mrf.mxu0  ;;  %v18855_v32 = vpop.f32.mrf.mxu1  ;;  %15060 = vmatprep.subr.bf16.mxu0 %v15814_v45 }
 0x549   : > { %v18857_v35 = vadd.f32 %v14802_v58, %v7488_v56  ;;  %v9059_v56 = vld [vmem:[#allocation2 + $0x172] sm:$0xff] }
 0x54a   : > { %v7713_v25 = vpop.f32.mrf.mxu0  ;;  %v14758_v19 = vpop.f32.mrf.mxu1  ;;  %15045 = vmatmul.mubr.bf16.gmra.mxu1 %v9075_v42  ;;  %v9062_v42 = vld [vmem:[#allocation2 + $0x19a] sm:$0xff] }
 0x54b   : > { %v18859_v59 = vadd.f32 %v7713_v25, %v7486_v0  ;;  %v7492_v20 = vadd.f32 %v14758_v19, %v18761_v14  ;;  %15048 = vmatprep.mubr.bf16.mxu1 %v9076_v63  ;;  %v9077_v14 = vpack.c.bf16 %v9059_v56, %v9058_v4  ;;  %v9063_v63 = vld [vmem:[#allocation2 + $0x1a2] sm:$0xff]  ;;  %15061 = vmatpush3.bf16.msra.mxu0 %v15814_v45 }
 0x54c   : > { %v14803_v2 = vpop.f32.mrf.mxu0  ;;  %v7423_v38 = vpop.f32.mrf.mxu1  ;;  %v15815_v56 = vld [vmem:[#allocation9 + $0x2a0] sm:$0xff]  }
 0x54d   : > { %v18862_v29 = vadd.f32 %v14803_v2, %v7489_v61  ;;  %v7490_v18 = vadd.f32 %v7423_v38, %v18764_v50  ;;  %v9079_v38 = vpack.c.bf16 %v9063_v63, %v9062_v42  ;;  %15062 = vmatprep.subr.bf16.mxu0 %v15815_v56  ;;  %v15816_v63 = vld [vmem:[#allocation9 + $0x298] sm:$0xff]  }
 0x54e   : > { %v18865_v46 = vpop.f32.mrf.mxu0  ;;  %v14759_v6 = vpop.f32.mrf.mxu1 }
 0x54f   : > { %v7493_v15 = vadd.f32 %v14759_v6, %v18767_v21  ;;  %15063 = vmatpush3.bf16.msra.mxu0 %v15815_v56 }
 0x550   : > { %v14806_v0 = vpop.f32.mrf.mxu0  ;;  %v18868_v1 = vpop.f32.mrf.mxu1  ;;  %15064 = vmatprep.subr.bf16.mxu0 %v15816_v63 }
 0x551   : > { %v18870_v16 = vadd.f32 %v14806_v0, %v7492_v20 }
 0x552   : > { %v7729_v62 = vpop.f32.mrf.mxu0  ;;  %v14762_v58 = vpop.f32.mrf.mxu1  ;;  %15049 = vmatmul.mubr.bf16.gmra.mxu1 %v9077_v14 }
 0x553   : > { %v18872_v61 = vadd.f32 %v7729_v62, %v7490_v18  ;;  %v7496_v50 = vadd.f32 %v14762_v58, %v18777_v28  ;;  %15052 = vmatprep.mubr.bf16.mxu1 %v18702_v30  ;;  %15065 = vmatpush3.bf16.msra.mxu0 %v15816_v63 }
 0x554   : > { %v14807_v21 = vpop.f32.mrf.mxu0  ;;  %v7439_v27 = vpop.f32.mrf.mxu1 }
 0x555   : > { %v18876_v25 = vadd.f32 %v14807_v21, %v7493_v15  ;;  %v7494_v19 = vadd.f32 %v7439_v27, %v18780_v51  ;;  %v15817_v21 = vld [vmem:[#allocation9 + $0x278] sm:$0xff]  }
 0x556   : > { %v18879_v20 = vpop.f32.mrf.mxu0  ;;  %v14763_v2 = vpop.f32.mrf.mxu1  ;;  %15104 = vmatprep.subr.bf16.mxu1 %v15817_v21 }
 0x557   : > { %v7497_v18 = vadd.f32 %v14763_v2, %v18782_v17  ;;  %15105 = vmatpush3.bf16.msra.mxu1 %v15817_v21  ;;  %v15820_v21 = vld [vmem:[#allocation9 + $0x268] sm:$0xff]  }
 0x558   : > { %v14810_v4 = vpop.f32.mrf.mxu0  ;;  %v18882_v28 = vpop.f32.mrf.mxu1 }
 0x559   : > { %v18884_v30 = vadd.f32 %v14810_v4, %v7496_v50  ;;  %v15818_v4 = vld [vmem:[#allocation9 + $0x270] sm:$0xff]  }
 0x55a   : > { %v7745_v6 = vpop.f32.mrf.mxu0  ;;  %v14766_v0 = vpop.f32.mrf.mxu1  ;;  %15053 = vmatmul.mubr.bf16.gmra.mxu1 %v9079_v38  ;;  %15106 = vmatprep.subr.bf16.mxu1 %v15818_v4 }
 0x55b   : > { %v18886_v14 = vadd.f32 %v7745_v6, %v7494_v19  ;;  %v7500_v15 = vadd.f32 %v14766_v0, %v18788_v57  ;;  %15107 = vmatpush3.bf16.msra.mxu1 %v15818_v4  ;;  %15120 = vmatprep.mubr.bf16.mxu1 %v18772_v23 }
 0x55c   : > { %v14811_v51 = vpop.f32.mrf.mxu0  ;;  %v7455_v45 = vpop.f32.mrf.mxu1  ;;  %15108 = vmatprep.subr.bf16.mxu1 %v15820_v21 }
 0x55d   : > { %v18889_v62 = vadd.f32 %v14811_v51, %v7497_v18  ;;  %v7498_v17 = vadd.f32 %v7455_v45, %v18790_v10 }
 0x55e   : > { %v18892_v58 = vpop.f32.mrf.mxu0  ;;  %v14767_v50 = vpop.f32.mrf.mxu1 }
 0x55f   : > { %v7501_v42 = vadd.f32 %v14767_v50, %v18793_v5  ;;  %15109 = vmatpush3.bf16.msra.mxu1 %v15820_v21 }
 0x560   : > { %v14814_v27 = vpop.f32.mrf.mxu0  ;;  %v18895_v19 = vpop.f32.mrf.mxu1 }
 0x561   : > { %v18897_v2 = vadd.f32 %v14814_v27, %v7500_v15 }
 0x562   : > { %v7761_v57 = vpop.f32.mrf.mxu0  ;;  %v14834_v38 = vpop.f32.mrf.mxu1 }
 0x563   : > { %v18899_v18 = vadd.f32 %v7761_v57, %v7498_v17  ;;  %v18902_v10 = vadd.f32 %v14834_v38, %v18799_v48 }
 0x564   : > { %v14815_v5 = vpop.f32.mrf.mxu0  ;;  %v7955_v56 = vpop.f32.mrf.mxu1 }
 0x565   : > { %v18904_v6 = vadd.f32 %v14815_v5, %v7501_v42  ;;  %v18907_v0 = vadd.f32 %v7955_v56, %v18804_v40  ;;  %v15819_v40 = vld [vmem:[#allocation9 + $0x290] sm:$0xff]  }
 0x566   : > { %v18909_v15 = vpop.f32.mrf.mxu0  ;;  %v14835_v51 = vpop.f32.mrf.mxu1  ;;  %15066 = vmatprep.subr.bf16.mxu0 %v15819_v40 }
 0x567   : > { %v18912_v45 = vadd.f32 %v14835_v51, %v18807_v13  ;;  %15067 = vmatpush3.bf16.msra.mxu0 %v15819_v40 }
 0x568   : > { %v18914_v17 = vpop.f32.mrf.mxu0  ;;  %v18916_v48 = vpop.f32.mrf.mxu1 }
 0x56a   : > { %v18918_v50 = vpop.f32.mrf.mxu0  ;;  %v14838_v63 = vpop.f32.mrf.mxu1 }
 0x56b   : > { %v18921_v42 = vadd.f32 %v14838_v63, %v18813_v8  ;;  %v15821_v8 = vld [vmem:[#allocation9 + $0x260] sm:$0xff]  }
 0x56c   : > { %v18923_v27 = vpop.f32.mrf.mxu0  ;;  %v7971_v57 = vpop.f32.mrf.mxu1  ;;  %15110 = vmatprep.subr.bf16.mxu1 %v15821_v8 }
 0x56d   : > { %20692 = vst [vmem:[#allocation73_spill] sm:$0xff] %v18921_v42  ;;  %v18926_v38 = vadd.f32 %v7971_v57, %v18818_v43  ;;  %15111 = vmatpush3.bf16.msra.mxu1 %v15821_v8  ;;  %v15823_v42 = vld [vmem:[#allocation9 + $0x258] sm:$0xff]  }
 0x56e   : > { %v18928_v13 = vpop.f32.mrf.mxu0  ;;  %v14839_v4 = vpop.f32.mrf.mxu1  ;;  %15112 = vmatprep.subr.bf16.mxu1 %v15823_v42 }
 0x56f   : > { %20693 = vst [vmem:[#allocation72_spill] sm:$0xff] %v18926_v38  ;;  %v18931_v5 = vadd.f32 %v14839_v4, %v18821_v22  ;;  %v15822_v38 = vld [vmem:[#allocation9 + $0x288] sm:$0xff]  }
 0x570   : > { %v18933_v56 = vpop.f32.mrf.mxu0  ;;  %v18935_v51 = vpop.f32.mrf.mxu1  ;;  %15068 = vmatprep.subr.bf16.mxu0 %v15822_v38 }
 0x571   : > { %20694 = vst [vmem:[#allocation74_spill] sm:$0xff] %v18931_v5  ;;  %15069 = vmatpush3.bf16.msra.mxu0 %v15822_v38  ;;  %15113 = vmatpush3.bf16.msra.mxu1 %v15823_v42 }
 0x572   : > { %v18937_v63 = vpop.f32.mrf.mxu0  ;;  %v14842_v43 = vpop.f32.mrf.mxu1 }
 0x573   : > { %v18940_v57 = vadd.f32 %v14842_v43, %v18827_v41  ;;  %v15824_v41 = vld [vmem:[#allocation9 + $0x250] sm:$0xff]  }
 0x574   : > { %v18942_v40 = vpop.f32.mrf.mxu0  ;;  %v7987_v21 = vpop.f32.mrf.mxu1  ;;  %15114 = vmatprep.subr.bf16.mxu1 %v15824_v41 }
 0x575   : > { %20695 = vst [vmem:[#allocation34_spill] sm:$0xff] %v18940_v57  ;;  %20696 = vst [vmem:[#allocation76_spill] sm:$0xff] %v18942_v40  ;;  %v18945_v22 = vadd.f32 %v7987_v21, %v18832_v36  ;;  %15115 = vmatpush3.bf16.msra.mxu1 %v15824_v41 }
 0x576   : > { %v18947_v4 = vpop.f32.mrf.mxu0  ;;  %v14843_v5 = vpop.f32.mrf.mxu1 }
 0x577   : > { %20697 = vst [vmem:[#allocation35_spill] sm:$0xff] %v18945_v22  ;;  %20698 = vst [vmem:[#allocation75_spill] sm:$0xff] %v18947_v4  ;;  %v18950_v8 = vadd.f32 %v14843_v5, %v18835_v33  ;;  %v15825_v22 = vld [vmem:[#allocation9 + $0x280] sm:$0xff]   ;;  %v15826_v4 = vld [vmem:[#allocation9 + $0x248] sm:$0xff]  }
 0x578   : > { %v18952_v43 = vpop.f32.mrf.mxu0  ;;  %v18954_v57 = vpop.f32.mrf.mxu1  ;;  %15070 = vmatprep.subr.bf16.mxu0 %v15825_v22  ;;  %15116 = vmatprep.subr.bf16.mxu1 %v15826_v4 }
 0x579   : > { %20699 = vst [vmem:[#allocation36_spill] sm:$0xff] %v18950_v8  ;;  %15071 = vmatpush3.bf16.msra.mxu0 %v15825_v22  ;;  %15117 = vmatpush3.bf16.msra.mxu1 %v15826_v4  ;;  %v18980_v22 = vld [vmem:[#allocation9 + $0x2f8] sm:$0xff]  }
 0x57a   : > { %v18956_v40 = vpop.f32.mrf.mxu0  ;;  %v14846_v36 = vpop.f32.mrf.mxu1  ;;  %20707 = vst [vmem:[#allocation57_spill] sm:$0xff] %v18980_v22  ;;  %15152 = vmatprep.subr.bf16.mxu0 %v18980_v22 }
 0x57b   : > { %v18959_v21 = vadd.f32 %v14846_v36, %v18841_v39  ;;  %v15827_v39 = vld [vmem:[#allocation9 + $0x240] sm:$0xff]  }
 0x57c   : > { %v18961_v38 = vpop.f32.mrf.mxu0  ;;  %v8003_v42 = vpop.f32.mrf.mxu1  ;;  %15118 = vmatprep.subr.bf16.mxu1 %v15827_v39 }
 0x57d   : > { %20700 = vst [vmem:[#allocation77_spill] sm:$0xff] %v18959_v21  ;;  %20701 = vst [vmem:[#allocation23_spill] sm:$0xff] %v18961_v38  ;;  %v18964_v33 = vadd.f32 %v8003_v42, %v18846_v47  ;;  %15119 = vmatpush3.bf16.msra.mxu1 %v15827_v39 }
 0x57e   : > { %v18966_v5 = vpop.f32.mrf.mxu0  ;;  %v14847_v8 = vpop.f32.mrf.mxu1 }
 0x57f   : > { %20702 = vst [vmem:[#allocation39_spill] sm:$0xff] %v18964_v33  ;;  %20703 = vst [vmem:[#allocation55_spill] sm:$0xff] %v18966_v5  ;;  %v18969_v41 = vadd.f32 %v14847_v8, %v18849_v54  ;;  %v9547_v33 = vld [vmem:[#allocation3 + $0x1] sm:$0xff]  ;;  %v9548_v5 = vld [vmem:[#allocation3 + $0x9] sm:$0xff] }
 0x580   : > { %v18971_v36 = vpop.f32.mrf.mxu0  ;;  %v18973_v21 = vpop.f32.mrf.mxu1  ;;  %v9579_v8 = vpack.c.bf16 %v9548_v5, %v9547_v33 }
 0x581   : > { %20704 = vst [vmem:[#allocation24_spill] sm:$0xff] %v18969_v41 }
 0x582   : > { %v18975_v38 = vpop.f32.mrf.mxu0  ;;  %v14850_v47 = vpop.f32.mrf.mxu1  ;;  %15072 = vmatprep.mubr.bf16.mxu0 %v9579_v8 }
 0x583   : > { %20705 = vst [vmem:[#allocation48_spill] sm:$0xff] %v18975_v38  ;;  %v18978_v42 = vadd.f32 %v14850_v47, %v18857_v35 }
 0x584   : > { %v18982_v4 = vpop.f32.mrf.mxu0  ;;  %v8019_v54 = vpop.f32.mrf.mxu1 }
 0x585   : > { %20706 = vst [vmem:[#allocation18_spill] sm:$0xff] %v18978_v42  ;;  %20708 = vst [vmem:[#allocation50_spill] sm:$0xff] %v18982_v4  ;;  %v18985_v41 = vadd.f32 %v8019_v54, %v18859_v59 }
 0x586   : > { %v18989_v38 = vpop.f32.mrf.mxu0  ;;  %v14851_v39 = vpop.f32.mrf.mxu1 }
 0x587   : > { %20709 = vst [vmem:[#allocation52_spill] sm:$0xff] %v18985_v41  ;;  %v18992_v35 = vadd.f32 %v14851_v39, %v18862_v29 }
 0x588   : > { %v18994_v47 = vpop.f32.mrf.mxu0  ;;  %v18996_v42 = vpop.f32.mrf.mxu1 }
 0x589   : > { %20710 = vst [vmem:[#allocation54_spill] sm:$0xff] %v18992_v35 }
 0x58a   : > { %v18998_v4 = vpop.f32.mrf.mxu0  ;;  %v14854_v33 = vpop.f32.mrf.mxu1 }
 0x58b   : > { %20711 = vst [vmem:[#allocation41_spill] sm:$0xff] %v18998_v4  ;;  %v19001_v59 = vadd.f32 %v14854_v33, %v18870_v16 }
 0x58c   : > { %v19003_v23 = vpop.f32.mrf.mxu0  ;;  %v8035_v5 = vpop.f32.mrf.mxu1 }
 0x58d   : > { %20712 = vst [vmem:[#allocation25_spill] sm:$0xff] %v19001_v59  ;;  %20713 = vst [vmem:[#allocation19_spill] sm:$0xff] %v19003_v23  ;;  %v19006_v54 = vadd.f32 %v8035_v5, %v18872_v61 }
 0x58e   : > { %v19008_v8 = vpop.f32.mrf.mxu0  ;;  %v14855_v29 = vpop.f32.mrf.mxu1 }
 0x58f   : > { %20714 = vst [vmem:[#allocation56_spill] sm:$0xff] %v19006_v54  ;;  %20715 = vst [vmem:[#allocation58_spill] sm:$0xff] %v19008_v8  ;;  %v19011_v39 = vadd.f32 %v14855_v29, %v18876_v25 }
 0x590   : > { %v19013_v22 = vpop.f32.mrf.mxu0  ;;  %v19015_v35 = vpop.f32.mrf.mxu1 }
 0x591   : > { %20716 = vst [vmem:[#allocation59_spill] sm:$0xff] %v19011_v39  ;;  %20717 = vst [vmem:[#allocation43_spill] sm:$0xff] %v19013_v22 }
 0x592   : > { %20718 = vst [vmem:[#allocation26_spill] sm:$0xff] %v19015_v35  ;;  %v19017_v4 = vpop.f32.mrf.mxu0  ;;  %v14858_v16 = vpop.f32.mrf.mxu1 }
 0x593   : > { %20719 = vst [vmem:[#allocation61_spill] sm:$0xff] %v19017_v4  ;;  %v19020_v33 = vadd.f32 %v14858_v16, %v18884_v30 }
 0x594   : > { %v19022_v59 = vpop.f32.mrf.mxu0  ;;  %v8051_v61 = vpop.f32.mrf.mxu1 }
 0x595   : > { %20720 = vst [vmem:[#allocation60_spill] sm:$0xff] %v19020_v33  ;;  %20721 = vst [vmem:[#allocation28_spill] sm:$0xff] %v19022_v59  ;;  %v19025_v5 = vadd.f32 %v8051_v61, %v18886_v14 }
 0x596   : > { %v19027_v54 = vpop.f32.mrf.mxu0  ;;  %v14859_v25 = vpop.f32.mrf.mxu1 }
 0x597   : > { %20722 = vst [vmem:[#allocation37_spill] sm:$0xff] %v19025_v5  ;;  %20723 = vst [vmem:[#allocation62_spill] sm:$0xff] %v19027_v54  ;;  %v19030_v29 = vadd.f32 %v14859_v25, %v18889_v62 }
 0x598   : > { %v19032_v39 = vpop.f32.mrf.mxu0  ;;  %v19034_v35 = vpop.f32.mrf.mxu1 }
 0x599   : > { %20724 = vst [vmem:[#allocation38_spill] sm:$0xff] %v19030_v29  ;;  %20725 = vst [vmem:[#allocation63_spill] sm:$0xff] %v19032_v39 }
 0x59a   : > { %20726 = vst [vmem:[#allocation27_spill] sm:$0xff] %v19034_v35  ;;  %v19036_v4 = vpop.f32.mrf.mxu0  ;;  %v14862_v30 = vpop.f32.mrf.mxu1 }
 0x59b   : > { %20727 = vst [vmem:[#allocation65_spill] sm:$0xff] %v19036_v4  ;;  %v19039_v16 = vadd.f32 %v14862_v30, %v18897_v2  ;;  %v19059_v30 = vld [vmem:[#allocation9 + $0x338] sm:$0xff]  }
 0x59c   : > { %v19041_v33 = vpop.f32.mrf.mxu0  ;;  %v8067_v14 = vpop.f32.mrf.mxu1  ;;  %20736 = vst [vmem:[#allocation31_spill] sm:$0xff] %v19059_v30  ;;  %15200 = vmatprep.subr.bf16.mxu1 %v19059_v30 }
 0x59d   : > { %20728 = vst [vmem:[#allocation40_spill] sm:$0xff] %v19039_v16  ;;  %20729 = vst [vmem:[#allocation29_spill] sm:$0xff] %v19041_v33  ;;  %v19044_v61 = vadd.f32 %v8067_v14, %v18899_v18 }
 0x59e   : > { %v19046_v5 = vpop.f32.mrf.mxu0  ;;  %v14863_v62 = vpop.f32.mrf.mxu1 }
 0x59f   : > { %20730 = vst [vmem:[#allocation67_spill] sm:$0xff] %v19044_v61  ;;  %20731 = vst [vmem:[#allocation30_spill] sm:$0xff] %v19046_v5  ;;  %v19049_v25 = vadd.f32 %v14863_v62, %v18904_v6 }
 0x5a0   : > { %v19051_v29 = vpop.f32.mrf.mxu0  ;;  %v19053_v35 = vpop.f32.mrf.mxu1 }
 0x5a1   : > { %20732 = vst [vmem:[#allocation42_spill] sm:$0xff] %v19049_v25  ;;  %20733 = vst [vmem:[#allocation69_spill] sm:$0xff] %v19051_v29 }
 0x5a2   : > { %20734 = vst [vmem:[#allocation64_spill] sm:$0xff] %v19053_v35  ;;  %v19055_v4 = vpop.f32.mrf.mxu0  ;;  %v19057_v2 = vpop.f32.mrf.mxu1 }
 0x5a3   : > { %20735 = vst [vmem:[#allocation44_spill] sm:$0xff] %v19055_v4 }
 0x5a4   : > { %v19061_v16 = vpop.f32.mrf.mxu0  ;;  %v19063_v18 = vpop.f32.mrf.mxu1 }
 0x5a5   : > { %20737 = vst [vmem:[#allocation46_spill] sm:$0xff] %v19061_v16 }
 0x5a6   : > { %v19066_v14 = vpop.f32.mrf.mxu0  ;;  %v19068_v6 = vpop.f32.mrf.mxu1 }
 0x5a7   : > { %20738 = vst [vmem:[#allocation66_spill] sm:$0xff] %v19066_v14 }
 0x5a8   : > { %v19070_v62 = vpop.f32.mrf.mxu0  ;;  %v19072_v25 = vpop.f32.mrf.mxu1 }
 0x5aa   : > { %v19074_v61 = vpop.f32.mrf.mxu0  ;;  %v19076_v4 = vpop.f32.mrf.mxu1 }
 0x5ac   : > { %v19078_v35 = vpop.f32.mrf.mxu0  ;;  %v19080_v29 = vpop.f32.mrf.mxu1 }
 0x5ad   : > { %20739 = vst [vmem:[#allocation68_spill] sm:$0xff] %v19080_v29 }
 0x5ae   : > { %v19082_v16 = vpop.f32.mrf.mxu0  ;;  %v19084_v5 = vpop.f32.mrf.mxu1 }
 0x5af   : > { %20740 = vst [vmem:[#allocation32_spill] sm:$0xff] %v19084_v5 }
 0x5b0   : > { %v19086_v30 = vpop.f32.mrf.mxu0  ;;  %v19088_v14 = vpop.f32.mrf.mxu1 }
 0x5b1   : > { %20741 = vst [vmem:[#allocation20_spill] sm:$0xff] %v19088_v14 }
 0x5b2   : > { %v19090_v33 = vpop.f32.mrf.mxu1  ;;  %v19092_v39 = vpop.f32.mrf.mxu0 }
 0x5b3   : > { %20742 = vst [vmem:[#allocation70_spill] sm:$0xff] %v19090_v33  ;;  %20743 = vst [vmem:[#allocation47_spill] sm:$0xff] %v19092_v39 }
 0x5b4   : > { %v19094_v54 = vpop.f32.mrf.mxu1  ;;  %v19098_v22 = vpop.f32.mrf.mxu0 }
 0x5b5   : > { %20744 = vst [vmem:[#allocation71_spill] sm:$0xff] %v19094_v54  ;;  %20746 = vst [vmem:[#allocation33_spill] sm:$0xff] %v19098_v22 }
 0x5b6   : > { %v19096_v59 = vpop.f32.mrf.mxu1  ;;  %v19104_v41 = vpop.f32.mrf.mxu0 }
 0x5b7   : > { %20745 = vst [vmem:[#allocation21_spill] sm:$0xff] %v19096_v59  ;;  %20749 = vst [vmem:[#allocation51_spill] sm:$0xff] %v19104_v41 }
 0x5b8   : > { %v19100_v8 = vpop.f32.mrf.mxu1  ;;  %v19110_v14 = vpop.f32.mrf.mxu0 }
 0x5b9   : > { %20747 = vst [vmem:[#allocation49_spill] sm:$0xff] %v19100_v8  ;;  %20752 = vst [vmem:[#allocation78_spill] sm:$0xff] %v19110_v14 }
 0x5ba   : > { %v19102_v23 = vpop.f32.mrf.mxu1  ;;  %v19116_v54 = vpop.f32.mrf.mxu0 }
 0x5bb   : > { %20748 = vst [vmem:[#allocation22_spill] sm:$0xff] %v19102_v23  ;;  %20755 = vst [vmem:[#allocation81_spill] sm:$0xff] %v19116_v54 }
 0x5bc   : > { %v19106_v5 = vpop.f32.mrf.mxu1  ;;  %v19122_v8 = vpop.f32.mrf.mxu0 }
 0x5bd   : > { %20750 = vst [vmem:[#allocation45_spill] sm:$0xff] %v19106_v5  ;;  %20758 = vst [vmem:[#allocation84_spill] sm:$0xff] %v19122_v8 }
 0x5be   : > { %v19108_v29 = vpop.f32.mrf.mxu1  ;;  %v19128_v5 = vpop.f32.mrf.mxu0 }
 0x5bf   : > { %20751 = vst [vmem:[#allocation53_spill] sm:$0xff] %v19108_v29 }
 0x5c0   : > { %v19112_v33 = vpop.f32.mrf.mxu1 }
 0x5c1   : > { %20753 = vst [vmem:[#allocation79_spill] sm:$0xff] %v19112_v33  ;;  %v19134_v33 = vpop.f32.mrf.mxu0 }
 0x5c2   : > { %v19114_v39 = vpop.f32.mrf.mxu1 }
 0x5c3   : > { %20754 = vst [vmem:[#allocation80_spill] sm:$0xff] %v19114_v39 }
 0x5c4   : > { %v19118_v59 = vpop.f32.mrf.mxu1 }
 0x5c5   : > { %20756 = vst [vmem:[#allocation82_spill] sm:$0xff] %v19118_v59  ;;  %v19140_v59 = vpop.f32.mrf.mxu0 }
 0x5c6   : > { %v19120_v22 = vpop.f32.mrf.mxu1  ;;  %20765 = vst [vmem:[#allocation91_spill] sm:$0xff] %v19140_v59 }
 0x5c7   : > { %20757 = vst [vmem:[#allocation83_spill] sm:$0xff] %v19120_v22 }
 0x5c8   : > { %v19124_v23 = vpop.f32.mrf.mxu1 }
 0x5c9   : > { %20759 = vst [vmem:[#allocation85_spill] sm:$0xff] %v19124_v23  ;;  %v19146_v23 = vpop.f32.mrf.mxu0 }
 0x5ca   : > { %v19126_v41 = vpop.f32.mrf.mxu1 }
 0x5cb   : > { %20760 = vst [vmem:[#allocation86_spill] sm:$0xff] %v19126_v41  ;;  %v19158_v59 = vpop.f32.mrf.mxu0 }
 0x5cc   : > { %v19130_v29 = vpop.f32.mrf.mxu1 }
 0x5cd   : > { %20761 = vst [vmem:[#allocation87_spill] sm:$0xff] %v19130_v29  ;;  %v7137_v29 = vadd.f32 %v18756_v3, %v18747_v55 }
 0x5ce   : > { %v19132_v14 = vpop.f32.mrf.mxu1 }
 0x5cf   : > { %20762 = vst [vmem:[#allocation88_spill] sm:$0xff] %v19132_v14  ;;  %v7487_v55 = vadd.f32 %v18855_v32, %v7137_v29 }
 0x5d0   : > { %v19136_v39 = vpop.f32.mrf.mxu1 }
 0x5d1   : > { %20763 = vst [vmem:[#allocation89_spill] sm:$0xff] %v19136_v39  ;;  %v7153_v39 = vadd.f32 %v18769_v31, %v18759_v26  ;;  %v7785_v26 = vadd.f32 %v18838_v52, %v18830_v11  ;;  %v8388_v52 = vadd.f32 %v18918_v50, %v18907_v0  ;;  %v20772_v50 = vld [vmem:[#allocation76_spill] sm:$0xff] }
 0x5d2   : > { %v19138_v54 = vpop.f32.mrf.mxu1 }
 0x5d3   : > { %20764 = vst [vmem:[#allocation90_spill] sm:$0xff] %v19138_v54  ;;  %v7169_v54 = vadd.f32 %v18784_v60, %v18775_v12  ;;  %v7491_v31 = vadd.f32 %v18868_v1, %v7153_v39  ;;  %v8390_v60 = vadd.f32 %v18914_v17, %v18902_v10  ;;  %v20770_v10 = vld [vmem:[#allocation72_spill] sm:$0xff] }
 0x5d4   : > { %v19142_v22 = vpop.f32.mrf.mxu1  ;;  %v8392_v0 = vadd.f32 %v18937_v63, %v20770_v10 }
 0x5d5   : > { %20766 = vst [vmem:[#allocation92_spill] sm:$0xff] %v19142_v22  ;;  %v7777_v22 = vadd.f32 %v18810_v53, %v18802_v24  ;;  %v7495_v12 = vadd.f32 %v18882_v28, %v7169_v54  ;;  %v8696_v32 = vadd.f32 %v19057_v2, %v8390_v60  ;;  %v20775_v54 = vld [vmem:[#allocation35_spill] sm:$0xff] }
 0x5d6   : > { %v19144_v8 = vpop.f32.mrf.mxu1 }
 0x5d7   : > { %20767 = vst [vmem:[#allocation93_spill] sm:$0xff] %v19144_v8  ;;  %v7185_v8 = vadd.f32 %v18796_v44, %v18786_v49  ;;  %v7789_v49 = vadd.f32 %v18852_v9, %v18844_v7  ;;  %v7793_v44 = vadd.f32 %v18865_v46, %v7487_v55  ;;  %v8083_v53 = vadd.f32 %v18916_v48, %v7777_v22  ;;  %v19191_v7 = vpop.f32.mrf.mxu0  ;;  %v20771_v48 = vld [vmem:[#allocation74_spill] sm:$0xff]  ;;  %v20778_v55 = vld [vmem:[#allocation55_spill] sm:$0xff] }
 0x5d8   : > { %v19148_v41 = vpop.f32.mrf.mxu1  ;;  %v19186_v11 = vadd.f32 %v18892_v58, %v7495_v12  ;;  %v8391_v46 = vadd.f32 %v18923_v27, %v18912_v45  ;;  %v20769_v58 = vld [vmem:[#allocation73_spill] sm:$0xff]  ;;  %v9002_v17 = vadd.f32 %v19070_v62, %v8696_v32  ;;  %v8395_v22 = vadd.f32 %v20772_v50, %v20771_v48  ;;  %v20773_v45 = vld [vmem:[#allocation75_spill] sm:$0xff]  ;;  %v20784_v50 = vld [vmem:[#allocation18_spill] sm:$0xff] }
 0x5d9   : > { %20768 = vst [vmem:[#allocation94_spill] sm:$0xff] %v19148_v41  ;;  %v7781_v41 = vadd.f32 %v18824_v37, %v18816_v34  ;;  %v7499_v24 = vadd.f32 %v18895_v19, %v7185_v8  ;;  %v19183_v37 = vadd.f32 %v18879_v20, %v7491_v31  ;;  %v8389_v1 = vadd.f32 %v18928_v13, %v8083_v53  ;;  %v20774_v13 = vld [vmem:[#allocation34_spill] sm:$0xff]  ;;  %v19225_v2 = vpop.f32.mrf.mxu0  ;;  %v20777_v62 = vld [vmem:[#allocation23_spill] sm:$0xff]  ;;  %v20779_v31 = vld [vmem:[#allocation77_spill] sm:$0xff] }
 0x5da   : > { %v19152_v14 = vpop.f32.mrf.mxu1  ;;  %v8394_v19 = vadd.f32 %v18933_v56, %v20769_v58  ;;  %v19217_v56 = vld [vmem:[%s20431_s2 + $0x1] ss:$0 sm:$0xff]  ;;  %v19221_v8 = vadd.f32 %v18956_v40, %v20775_v54  ;;  %v8697_v29 = vadd.f32 %v19068_v6, %v8391_v46  ;;  %v19236_v12 = vadd.f32 %v18971_v36, %v20779_v31  ;;  %v20780_v32 = vld [vmem:[#allocation39_spill] sm:$0xff]  ;;  %v20781_v46 = vld [vmem:[#allocation48_spill] sm:$0xff] }
 0x5db   : > { %v19194_v9 = vadd.f32 %v18909_v15, %v7499_v24  ;;  %v8087_v20 = vadd.f32 %v18935_v51, %v7781_v41  ;;  %v8694_v15 = vadd.f32 %v19063_v18, %v8388_v52  ;;  %v8398_v51 = vadd.f32 %v18952_v43, %v20774_v13  ;;  %v20776_v43 = vld [vmem:[#allocation36_spill] sm:$0xff]  ;;  %v20783_v58 = vld [vmem:[#allocation50_spill] sm:$0xff] }
 0x5dc   : > { %v19167_v3 = vpop.f32.mrf.mxu1  ;;  %v8091_v41 = vadd.f32 %v18954_v57, %v7785_v26  ;;  %v19229_v57 = vadd.f32 %v20777_v62, %v20776_v43  ;;  %v8095_v40 = vadd.f32 %v18973_v21, %v7789_v49  ;;  %v9003_v60 = vadd.f32 %v19078_v35, %v8697_v29  ;;  %v20782_v36 = vld [vmem:[#allocation24_spill] sm:$0xff]  ;;  %v20788_v62 = vld [vmem:[#allocation54_spill] sm:$0xff] }
 0x5dd   : > { %v8393_v27 = vadd.f32 %v20773_v45, %v8087_v20  ;;  %v9000_v39 = vadd.f32 %v19074_v61, %v8694_v15  ;;  %v19242_v61 = vld [vmem:[%s20432_s3 + $0x1] ss:$0 sm:$0xff]  ;;  %v8695_v24 = vadd.f32 %v19072_v25, %v8389_v1  ;;  %v19249_v20 = vadd.f32 %v20781_v46, %v20780_v32  ;;  %v19260_v25 = vpop.f32.mrf.mxu0  ;;  %v20786_v29 = vld [vmem:[#allocation52_spill] sm:$0xff]  ;;  %v20793_v46 = vld [vmem:[#allocation25_spill] sm:$0xff] }
 0x5de   : > { %v19180_v34 = vpop.f32.mrf.mxu1  ;;  %v19232_v26 = vadd.f32 %v20778_v55, %v8091_v41  ;;  %v19253_v21 = vadd.f32 %v20783_v58, %v20782_v36  ;;  %v19256_v49 = vadd.f32 %v18989_v38, %v8095_v40  ;;  %v8700_v10 = vadd.f32 %v19076_v4, %v8394_v19  ;;  %v20785_v41 = vld [vmem:[#allocation68_spill] sm:$0xff]  ;;  %v20794_v36 = vld [vmem:[#allocation43_spill] sm:$0xff] }
 0x5df   : > { %v9001_v35 = vadd.f32 %v19082_v16, %v8695_v24  ;;  %v19266_v45 = vadd.f32 %v18994_v47, %v20784_v50  ;;  %v8099_v13 = vadd.f32 %v18996_v42, %v7793_v44  ;;  %v8698_v4 = vadd.f32 %v20785_v41, %v8392_v0  ;;  %v20789_v47 = vld [vmem:[#allocation19_spill] sm:$0xff]  ;;  %v19283_v40 = vpop.f32.mrf.mxu0 }
 0x5e0   : > { %v19200_v28 = vpop.f32.mrf.mxu1  ;;  %v9006_v38 = vadd.f32 %v19086_v30, %v8700_v10  ;;  %v19279_v55 = vadd.f32 %v20789_v47, %v20788_v62  ;;  %v20790_v42 = vld [vmem:[#allocation47_spill] sm:$0xff]  ;;  %v20791_v30 = vld [vmem:[#allocation32_spill] sm:$0xff]  ;;  %v19292_v58 = vadd.f32 %v20794_v36, %v20793_v46  ;;  %v20795_v10 = vld [vmem:[#allocation33_spill] sm:$0xff] }
 0x5e1   : > { %v9004_v44 = vadd.f32 %v20790_v42, %v8698_v4  ;;  %v8701_v31 = vadd.f32 %v20791_v30, %v8395_v22  ;;  %v20796_v22 = vld [vmem:[#allocation20_spill] sm:$0xff]  ;;  %v20798_v4 = vld [vmem:[#allocation61_spill] sm:$0xff]  ;;  %v19306_v62 = vpop.f32.mrf.mxu0 }
 0x5e2   : > { %v15026_v63 = vpop.f32.mrf.mxu1 }
 0x5e3   : > { %v9308_v18 = vadd.f32 %v15026_v63, %v9002_v17 }
 0x5e4   : > { %v9179_v6 = vpop.f32.mrf.mxu1 }
 0x5e5   : > { %v9346_v53 = vmul.f32 %v19217_v56, %v9308_v18  ;;  %v9306_v52 = vadd.f32 %v9179_v6, %v9000_v39  ;;  %v20787_v18 = vld [vmem:[#allocation41_spill] sm:$0xff] }
 0x5e6   : > { %v15027_v17 = vpop.f32.mrf.mxu1  ;;  %v19275_v43 = vadd.f32 %v20787_v18, %v20786_v29  ;;  %v20801_v29 = vld [vmem:[#allocation70_spill] sm:$0xff] }
 0x5e7   : > { %v9384_v1 = vadd.f32 %v19242_v61, %v9346_v53  ;;  %v9344_v15 = vmul.f32 %v19217_v56, %v9306_v52  ;;  %v9309_v48 = vadd.f32 %v15027_v17, %v9003_v60  ;;  %v20792_v52 = vld [vmem:[#allocation58_spill] sm:$0xff]  ;;  %v9007_v17 = vadd.f32 %v20795_v10, %v8701_v31  ;;  %v20802_v31 = vld [vmem:[#allocation59_spill] sm:$0xff] }
 0x5e8   : > { %v9182_v19 = vpop.f32.mrf.mxu1  ;;  %v19288_v32 = vadd.f32 %v20792_v52, %v8099_v13  ;;  %v8704_v18 = vadd.f32 %v20801_v29, %v8398_v51 }
 0x5e9   : > { %v9416_v63 = vmax.f32 %v9384_v1, 0.0  ;;  %v9382_v16 = vadd.f32 %v19242_v61, %v9344_v15  ;;  %v9347_v54 = vmul.f32 %v19217_v56, %v9309_v48  ;;  %v9307_v39 = vadd.f32 %v9182_v19, %v9001_v35  ;;  %v20799_v19 = vld [vmem:[#allocation26_spill] sm:$0xff] }
 0x5ea   : > { %v15030_v0 = vpop.f32.mrf.mxu1  ;;  %v8699_v35 = vadd.f32 %v20796_v22, %v8393_v27 }
 0x5eb   : > { %9448 = vst [vmem:[#allocation3 + $0x31] sm:$0xff] %v9416_v63  ;;  %v9414_v6 = vmax.f32 %v9382_v16, 0.0  ;;  %v9385_v60 = vadd.f32 %v19242_v61, %v9347_v54  ;;  %v9345_v24 = vmul.f32 %v19217_v56, %v9307_v39  ;;  %v9312_v53 = vadd.f32 %v15030_v0, %v9006_v38  ;;  %v20797_v38 = vld [vmem:[#allocation56_spill] sm:$0xff]  ;;  %v20800_v54 = vld [vmem:[#allocation51_spill] sm:$0xff] }
 0x5ec   : > { %v9195_v1 = vpop.f32.mrf.mxu1  ;;  %v19300_v13 = vadd.f32 %v20798_v4, %v20797_v38  ;;  %v8103_v16 = vadd.f32 %v20799_v19, %v19183_v37  ;;  %v9005_v39 = vadd.f32 %v20800_v54, %v8699_v35  ;;  %v20803_v0 = vld [vmem:[#allocation28_spill] sm:$0xff]  ;;  %v19325_v54 = vpop.f32.mrf.mxu0 }
 0x5ed   : > { %9446 = vst [vmem:[#allocation3 + $0x19] sm:$0xff] %v9414_v6  ;;  %v9417_v15 = vmax.f32 %v9385_v60, 0.0  ;;  %v9383_v48 = vadd.f32 %v19242_v61, %v9345_v24  ;;  %v9350_v50 = vmul.f32 %v19217_v56, %v9312_v53  ;;  %v9310_v41 = vadd.f32 %v9195_v1, %v9004_v44  ;;  %v20804_v24 = vld [vmem:[#allocation78_spill] sm:$0xff]  ;;  %v20805_v53 = vld [vmem:[#allocation71_spill] sm:$0xff] }
 0x5ee   : > { %v15031_v27 = vpop.f32.mrf.mxu1  ;;  %v19312_v60 = vadd.f32 %v20803_v0, %v20802_v31  ;;  %v9010_v37 = vadd.f32 %v20804_v24, %v8704_v18  ;;  %v8702_v52 = vadd.f32 %v20805_v53, %v19221_v8  ;;  %v20806_v1 = vld [vmem:[#allocation62_spill] sm:$0xff]  ;;  %v15829_v8 = vld [vmem:[#allocation9 + $0x2f0] sm:$0xff]  }
 0x5ef   : > { %9449 = vst [vmem:[#allocation3 + $0x39] sm:$0xff] %v9417_v15  ;;  %v9415_v47 = vmax.f32 %v9383_v48, 0.0  ;;  %v9388_v42 = vadd.f32 %v19242_v61, %v9350_v50  ;;  %v9348_v44 = vmul.f32 %v19217_v56, %v9310_v41  ;;  %v9313_v30 = vadd.f32 %v15031_v27, %v9007_v17  ;;  %v20807_v48 = vld [vmem:[#allocation81_spill] sm:$0xff]  ;;  %v20809_v18 = vld [vmem:[#allocation60_spill] sm:$0xff] }
 0x5f0   : > { %v9198_v51 = vpop.f32.mrf.mxu1  ;;  %v9581_v46 = vpack.c.bf16 %v9417_v15, %v9416_v63  ;;  %v19320_v17 = vadd.f32 %v20806_v1, %v8103_v16  ;;  %v9008_v50 = vadd.f32 %v20807_v48, %v8702_v52  ;;  %v20808_v41 = vld [vmem:[#allocation21_spill] sm:$0xff]  ;;  %v20810_v16 = vld [vmem:[#allocation63_spill] sm:$0xff]  ;;  %v20819_v48 = vld [vmem:[#allocation22_spill] sm:$0xff] }
 0x5f1   : > { %9447 = vst [vmem:[#allocation3 + $0x21] sm:$0xff] %v9415_v47  ;;  %v9420_v36 = vmax.f32 %v9388_v42, 0.0  ;;  %v9386_v10 = vadd.f32 %v19242_v61, %v9348_v44  ;;  %v9351_v22 = vmul.f32 %v19217_v56, %v9313_v30  ;;  %v9311_v35 = vadd.f32 %v9198_v51, %v9005_v39  ;;  %v20811_v42 = vld [vmem:[#allocation27_spill] sm:$0xff]  ;;  %v20814_v52 = vld [vmem:[#allocation57_spill] sm:$0xff] }
 0x5f2   : > { %v8705_v38 = vadd.f32 %v20808_v41, %v19229_v57  ;;  %v15034_v4 = vpop.f32.mrf.mxu1  ;;  %v9580_v19 = vpack.c.bf16 %v9415_v47, %v9414_v6  ;;  %v19331_v27 = vadd.f32 %v20810_v16, %v20809_v18  ;;  %v8107_v44 = vadd.f32 %v20811_v42, %v19186_v11  ;;  %v20812_v57 = vld [vmem:[#allocation84_spill] sm:$0xff]  ;;  %v20813_v6 = vld [vmem:[#allocation49_spill] sm:$0xff] }
 0x5f3   : > { %9452 = vst [vmem:[#allocation3 + $0x61] sm:$0xff] %v9420_v36  ;;  %v9418_v63 = vmax.f32 %v9386_v10, 0.0  ;;  %v9389_v15 = vadd.f32 %v19242_v61, %v9351_v22  ;;  %v9349_v29 = vmul.f32 %v19217_v56, %v9311_v35  ;;  %v9316_v39 = vadd.f32 %v15034_v4, %v9010_v37  ;;  %v20815_v51 = vld [vmem:[#allocation37_spill] sm:$0xff]  ;;  %v20817_v22 = vld [vmem:[#allocation38_spill] sm:$0xff]  ;;  %v15830_v4 = vld [vmem:[#allocation9 + $0x2e8] sm:$0xff]  }
 0x5f4   : > { %v9011_v30 = vadd.f32 %v20812_v57, %v8705_v38  ;;  %v8703_v47 = vadd.f32 %v20813_v6, %v19232_v26  ;;  %v9211_v31 = vpop.f32.mrf.mxu1  ;;  %15073 = vmatmul.mubr.bf16.vlgmr.msra.gmra.mxu0 %v9580_v19  ;;  %v20816_v10 = vld [vmem:[#allocation65_spill] sm:$0xff]  ;;  %v8708_v41 = vadd.f32 %v20819_v48, %v19236_v12 }
 0x5f5   : > { %9450 = vst [vmem:[#allocation3 + $0x49] sm:$0xff] %v9418_v63  ;;  %v9421_v0 = vmax.f32 %v9389_v15, 0.0  ;;  %v9387_v24 = vadd.f32 %v19242_v61, %v9349_v29  ;;  %v9354_v37 = vmul.f32 %v19217_v56, %v9316_v39  ;;  %v9314_v53 = vadd.f32 %v9211_v31, %v9008_v50  ;;  %15076 = vmatprep.mubr.bf16.mxu0 %v9581_v46  ;;  %v20818_v35 = vld [vmem:[#allocation29_spill] sm:$0xff]  ;;  %v19352_v50 = vpop.f32.mrf.mxu0 }
 0x5f6   : > { %15153 = vmatpush3.bf16.msra.mxu0 %v20814_v52  ;;  %v19343_v11 = vadd.f32 %v20816_v10, %v20815_v51  ;;  %v19347_v1 = vadd.f32 %v20818_v35, %v20817_v22  ;;  %v9009_v26 = vadd.f32 %v19128_v5, %v8703_v47  ;;  %v15035_v38 = vpop.f32.mrf.mxu1  ;;  %v9487_v39 = vld [vmem:[#allocation3 + $0x38] sm:$0xff]  ;;  %v9014_v18 = vadd.f32 %v19134_v33, %v8708_v41  ;;  %v20820_v5 = vld [vmem:[#allocation45_spill] sm:$0xff]  ;;  %v9486_v33 = vld [vmem:[#allocation3 + $0x30] sm:$0xff] }
 0x5f7   : > { %15154 = vmatprep.subr.bf16.mxu0 %v15829_v8  ;;  %9453 = vst [vmem:[#allocation3 + $0x69] sm:$0xff] %v9421_v0  ;;  %v9419_v46 = vmax.f32 %v9387_v24, 0.0  ;;  %v19355_v19 = vadd.f32 %v19242_v61, %v9354_v37  ;;  %v9352_v15 = vmul.f32 %v19217_v56, %v9314_v53  ;;  %v9317_v29 = vadd.f32 %v15035_v38, %v9011_v30  ;;  %v20821_v12 = vld [vmem:[#allocation53_spill] sm:$0xff]  ;;  %v9484_v53 = vld [vmem:[#allocation3 + $0x18] sm:$0xff]  ;;  %v15834_v41 = vld [vmem:[#allocation9 + $0x330] sm:$0xff]  }
 0x5f8   : > { %v8706_v16 = vadd.f32 %v20820_v5, %v19249_v20  ;;  %v8709_v42 = vadd.f32 %v20821_v12, %v19253_v21  ;;  %v9214_v57 = vpop.f32.mrf.mxu1  ;;  %v9485_v6 = vld [vmem:[#allocation3 + $0x20] sm:$0xff]  ;;  %v9583_v47 = vpack.c.bf16 %v9421_v0, %v9420_v36  ;;  %v20822_v52 = vld [vmem:[#allocation91_spill] sm:$0xff]  ;;  %v19371_v21 = vpack.c.bf16 %v9487_v39, %v9486_v33  ;;  %v19373_v0 = vpop.f32.mrf.mxu0  ;;  %v20823_v38 = vld [vmem:[#allocation30_spill] sm:$0xff] }
 0x5f9   : > { %9451 = vst [vmem:[#allocation3 + $0x51] sm:$0xff] %v9419_v46  ;;  %v9424_v31 = vmax.f32 %v19355_v19, 0.0  ;;  %v19365_v24 = vadd.f32 %v19242_v61, %v9352_v15  ;;  %v9355_v30 = vmul.f32 %v19217_v56, %v9317_v29  ;;  %v9315_v37 = vadd.f32 %v9214_v57, %v9009_v26  ;;  %v15836_v33 = vld [vmem:[#allocation9 + $0x328] sm:$0xff]  }
 0x5fa   : > { %15155 = vmatpush3.bf16.msra.mxu0 %v15829_v8  ;;  %v9012_v20 = vadd.f32 %v20822_v52, %v8706_v16  ;;  %v15038_v51 = vpop.f32.mrf.mxu1  ;;  %v19369_v10 = vpack.c.bf16 %v9485_v6, %v9484_v53  ;;  %v9582_v36 = vpack.c.bf16 %v9419_v46, %v9418_v63  ;;  %v15831_v8 = vld [vmem:[#allocation9 + $0x2e0] sm:$0xff]   ;;  %v19379_v19 = vadd.f32 %v20823_v38, %v8107_v44  ;;  %v20824_v63 = vld [vmem:[#allocation79_spill] sm:$0xff] }
 0x5fb   : > { %15156 = vmatprep.subr.bf16.mxu0 %v15830_v4  ;;  %9456 = vst [vmem:[#allocation3 + $0x91] sm:$0xff] %v9424_v31  ;;  %v9422_v22 = vmax.f32 %v19365_v24, 0.0  ;;  %v9393_v35 = vadd.f32 %v19242_v61, %v9355_v30  ;;  %v9353_v26 = vmul.f32 %v19217_v56, %v9315_v37  ;;  %v9320_v48 = vadd.f32 %v15038_v51, %v9014_v18  ;;  %v20827_v6 = vld [vmem:[#allocation31_spill] sm:$0xff]  ;;  %v19394_v24 = vpop.f32.mrf.mxu0 }
 0x5fc   : > { %v9015_v15 = vadd.f32 %v19146_v23, %v8709_v42  ;;  %v8707_v46 = vadd.f32 %v20824_v63, %v19256_v49  ;;  %15121 = vmatmul.mubr.bf16.vlgmr.msra.gmra.mxu1 %v19369_v10  ;;  %v9227_v29 = vpop.f32.mrf.mxu1  ;;  %15077 = vmatmul.mubr.bf16.gmra.mxu0 %v9582_v36  ;;  %v20825_v23 = vld [vmem:[#allocation80_spill] sm:$0xff]  ;;  %v20826_v49 = vld [vmem:[#allocation82_spill] sm:$0xff]  ;;  %v20828_v52 = vld [vmem:[#allocation83_spill] sm:$0xff] }
 0x5fd   : > { %9454 = vst [vmem:[#allocation3 + $0x79] sm:$0xff] %v9422_v22  ;;  %v9425_v39 = vmax.f32 %v9393_v35, 0.0  ;;  %v9391_v5 = vadd.f32 %v19242_v61, %v9353_v26  ;;  %v9358_v18 = vmul.f32 %v19217_v56, %v9320_v48  ;;  %v9318_v16 = vadd.f32 %v9227_v29, %v9012_v20  ;;  %15124 = vmatprep.mubr.bf16.mxu1 %v19371_v21  ;;  %v9488_v63 = vld [vmem:[#allocation3 + $0x48] sm:$0xff] }
 0x5fe   : > { %15080 = vmatprep.mubr.bf16.mxu0 %v9583_v47  ;;  %v9013_v44 = vadd.f32 %v19158_v59, %v8707_v46  ;;  %v8712_v12 = vadd.f32 %v20825_v23, %v19266_v45  ;;  %v8710_v42 = vadd.f32 %v20826_v49, %v19275_v43  ;;  %v15039_v57 = vpop.f32.mrf.mxu1  ;;  %15157 = vmatpush3.bf16.msra.mxu0 %v15830_v4  ;;  %v9491_v53 = vld [vmem:[#allocation3 + $0x68] sm:$0xff]  ;;  %v9490_v46 = vld [vmem:[#allocation3 + $0x60] sm:$0xff]  ;;  %v15837_v23 = vld [vmem:[#allocation9 + $0x320] sm:$0xff]  }
 0x5ff   : > { %15201 = vmatpush3.bf16.msra.mxu1 %v20827_v6  ;;  %9457 = vst [vmem:[#allocation3 + $0x99] sm:$0xff] %v9425_v39  ;;  %v9423_v30 = vmax.f32 %v9391_v5, 0.0  ;;  %v19397_v37 = vadd.f32 %v19242_v61, %v9358_v18  ;;  %v9356_v47 = vmul.f32 %v19217_v56, %v9318_v16  ;;  %v9321_v59 = vadd.f32 %v15039_v57, %v9015_v15  ;;  %v15832_v45 = vld [vmem:[#allocation9 + $0x2d8] sm:$0xff]  }
 0x600   : > { %15158 = vmatprep.subr.bf16.mxu0 %v15831_v8  ;;  %15202 = vmatprep.subr.bf16.mxu1 %v15834_v41  ;;  %v9018_v43 = vadd.f32 %v19191_v7, %v8712_v12  ;;  %v9016_v4 = vadd.f32 %v19225_v2, %v8710_v42  ;;  %v8713_v20 = vadd.f32 %v20828_v52, %v19279_v55  ;;  %v9230_v51 = vpop.f32.mrf.mxu1  ;;  %v9489_v36 = vld [vmem:[#allocation3 + $0x50] sm:$0xff]  ;;  %v20829_v12 = vld [vmem:[#allocation40_spill] sm:$0xff]  ;;  %v20830_v49 = vld [vmem:[#allocation69_spill] sm:$0xff] }
 0x601   : > { %v9585_v35 = vpack.c.bf16 %v9425_v39, %v9424_v31  ;;  %9455 = vst [vmem:[#allocation3 + $0x81] sm:$0xff] %v9423_v30  ;;  %v9428_v26 = vmax.f32 %v19397_v37, 0.0  ;;  %v19406_v48 = vadd.f32 %v19242_v61, %v9356_v47  ;;  %v9359_v38 = vmul.f32 %v19217_v56, %v9321_v59  ;;  %v19413_v31 = vpop.f32.mrf.mxu0 }
 0x602   : > { %v9319_v15 = vadd.f32 %v9230_v51, %v9013_v44  ;;  %v15042_v7 = vpop.f32.mrf.mxu1  ;;  %v19409_v29 = vpack.c.bf16 %v9489_v36, %v9488_v63  ;;  %v19411_v2 = vpack.c.bf16 %v9491_v53, %v9490_v46  ;;  %v9584_v55 = vpack.c.bf16 %v9423_v30, %v9422_v22  ;;  %15159 = vmatpush3.bf16.msra.mxu0 %v15831_v8  ;;  %v15835_v44 = vld [vmem:[#allocation9 + $0x2d0] sm:$0xff]   ;;  %v20831_v8 = vld [vmem:[#allocation85_spill] sm:$0xff] }
 0x603   : > { %15203 = vmatpush3.bf16.msra.mxu1 %v15834_v41  ;;  %9460 = vst [vmem:[#allocation3 + $0xc1] sm:$0xff] %v9428_v26  ;;  %v9426_v39 = vmax.f32 %v19406_v48, 0.0  ;;  %v9397_v5 = vadd.f32 %v19242_v61, %v9359_v38  ;;  %v9324_v16 = vadd.f32 %v15042_v7, %v9018_v43  ;;  %15160 = vmatprep.subr.bf16.mxu0 %v15832_v45  ;;  %v15839_v48 = vld [vmem:[#allocation9 + $0x318] sm:$0xff]  }
 0x604   : > { %v9357_v18 = vmul.f32 %v19217_v56, %v9319_v15  ;;  %15204 = vmatprep.subr.bf16.mxu1 %v15836_v33  ;;  %v19420_v42 = vadd.f32 %v20830_v49, %v20829_v12  ;;  %v9019_v22 = vadd.f32 %v19260_v25, %v8713_v20  ;;  %v8711_v41 = vadd.f32 %v20831_v8, %v19288_v32  ;;  %v9243_v57 = vpop.f32.mrf.mxu1  ;;  %v20832_v25 = vld [vmem:[#allocation86_spill] sm:$0xff]  ;;  %v20833_v32 = vld [vmem:[#allocation87_spill] sm:$0xff]  ;;  %v19434_v20 = vpop.f32.mrf.mxu0 }
 0x605   : > { %15125 = vmatmul.mubr.bf16.gmra.mxu1 %v19409_v29  ;;  %15081 = vmatmul.mubr.bf16.gmra.mxu0 %v9584_v55  ;;  %9458 = vst [vmem:[#allocation3 + $0xa9] sm:$0xff] %v9426_v39  ;;  %v9429_v6 = vmax.f32 %v9397_v5, 0.0  ;;  %v9362_v37 = vmul.f32 %v19217_v56, %v9324_v16  ;;  %v9322_v47 = vadd.f32 %v9243_v57, %v9016_v4  ;;  %v9492_v16 = vld [vmem:[#allocation3 + $0x78] sm:$0xff]  ;;  %v9494_v12 = vld [vmem:[#allocation3 + $0x90] sm:$0xff] }
 0x606   : > { %v9395_v30 = vadd.f32 %v19242_v61, %v9357_v18  ;;  %15128 = vmatprep.mubr.bf16.mxu1 %v19411_v2  ;;  %15084 = vmatprep.mubr.bf16.mxu0 %v9585_v35  ;;  %v9017_v59 = vadd.f32 %v19283_v40, %v8711_v41  ;;  %v8716_v53 = vadd.f32 %v20832_v25, %v19292_v58  ;;  %v15043_v52 = vpop.f32.mrf.mxu1  ;;  %v9495_v40 = vld [vmem:[#allocation3 + $0x98] sm:$0xff] }
 0x607   : > { %v8714_v43 = vadd.f32 %v20833_v32, %v19300_v13  ;;  %15161 = vmatpush3.bf16.msra.mxu0 %v15832_v45  ;;  %15205 = vmatpush3.bf16.msra.mxu1 %v15836_v33  ;;  %9461 = vst [vmem:[#allocation3 + $0xc9] sm:$0xff] %v9429_v6  ;;  %v19437_v4 = vadd.f32 %v19242_v61, %v9362_v37  ;;  %v15838_v58 = vld [vmem:[#allocation9 + $0x2c8] sm:$0xff]   ;;  %v20834_v33 = vld [vmem:[#allocation88_spill] sm:$0xff] }
 0x608   : > { %v9427_v51 = vmax.f32 %v9395_v30, 0.0  ;;  %v9360_v36 = vmul.f32 %v19217_v56, %v9322_v47  ;;  %v9325_v35 = vadd.f32 %v15043_v52, %v9019_v22  ;;  %15162 = vmatprep.subr.bf16.mxu0 %v15835_v44  ;;  %15206 = vmatprep.subr.bf16.mxu1 %v15837_v23  ;;  %v9022_v13 = vadd.f32 %v19306_v62, %v8716_v53  ;;  %v9246_v15 = vpop.f32.mrf.mxu1  ;;  %v9493_v63 = vld [vmem:[#allocation3 + $0x80] sm:$0xff]  ;;  %v15841_v30 = vld [vmem:[#allocation9 + $0x2c0] sm:$0xff]  }
 0x609   : > { %v9020_v45 = vadd.f32 %v19325_v54, %v8714_v43  ;;  %v8717_v38 = vadd.f32 %v20834_v33, %v19312_v60  ;;  %v9587_v46 = vpack.c.bf16 %v9429_v6, %v9428_v26  ;;  %v9432_v7 = vmax.f32 %v19437_v4, 0.0  ;;  %v19453_v26 = vpop.f32.mrf.mxu0  ;;  %v15840_v6 = vld [vmem:[#allocation9 + $0x310] sm:$0xff]   ;;  %v19480_v33 = vld [vmem:[#allocation9 + $0x378] sm:$0xff]  }
 0x60a   : > { %9459 = vst [vmem:[#allocation3 + $0xb1] sm:$0xff] %v9427_v51  ;;  %v19446_v55 = vadd.f32 %v19242_v61, %v9360_v36  ;;  %v9363_v5 = vmul.f32 %v19217_v56, %v9325_v35  ;;  %v9323_v18 = vadd.f32 %v9246_v15, %v9017_v59  ;;  %v15046_v62 = vpop.f32.mrf.mxu1  ;;  %v19449_v49 = vpack.c.bf16 %v9493_v63, %v9492_v16  ;;  %v20835_v37 = vld [vmem:[#allocation64_spill] sm:$0xff] }
 0x60b   : > { %v19451_v54 = vpack.c.bf16 %v9495_v40, %v9494_v12  ;;  %v9586_v60 = vpack.c.bf16 %v9427_v51, %v9426_v39  ;;  %15163 = vmatpush3.bf16.msra.mxu0 %v15835_v44  ;;  %15207 = vmatpush3.bf16.msra.mxu1 %v15837_v23  ;;  %9464 = vst [vmem:[#allocation3 + $0xf1] sm:$0xff] %v9432_v7  ;;  %v20836_v44 = vld [vmem:[#allocation89_spill] sm:$0xff]  ;;  %v19474_v36 = vpop.f32.mrf.mxu0 }
 0x60c   : > { %v9430_v22 = vmax.f32 %v19446_v55, 0.0  ;;  %v9401_v8 = vadd.f32 %v19242_v61, %v9363_v5  ;;  %v9361_v41 = vmul.f32 %v19217_v56, %v9323_v18  ;;  %v9328_v57 = vadd.f32 %v15046_v62, %v9022_v13  ;;  %15164 = vmatprep.subr.bf16.mxu0 %v15838_v58  ;;  %15208 = vmatprep.subr.bf16.mxu1 %v15839_v48  ;;  %v9259_v59 = vpop.f32.mrf.mxu1  ;;  %v9496_v12 = vld [vmem:[#allocation3 + $0xa8] sm:$0xff]  ;;  %v9498_v62 = vld [vmem:[#allocation3 + $0xc0] sm:$0xff] }
 0x60d   : > { %v19460_v47 = vadd.f32 %v20835_v37, %v19194_v9  ;;  %v9023_v39 = vadd.f32 %v19352_v50, %v8717_v38  ;;  %v8715_v23 = vadd.f32 %v20836_v44, %v19320_v17  ;;  %15129 = vmatmul.mubr.bf16.gmra.mxu1 %v19449_v49  ;;  %15085 = vmatmul.mubr.bf16.gmra.mxu0 %v9586_v60  ;;  %v20837_v50 = vld [vmem:[#allocation90_spill] sm:$0xff]  ;;  %v20838_v17 = vld [vmem:[#allocation92_spill] sm:$0xff]  ;;  %v20840_v44 = vld [vmem:[#allocation67_spill] sm:$0xff] }
 0x60e   : > { %9462 = vst [vmem:[#allocation3 + $0xd9] sm:$0xff] %v9430_v22  ;;  %v9433_v25 = vmax.f32 %v9401_v8, 0.0  ;;  %v9399_v53 = vadd.f32 %v19242_v61, %v9361_v41  ;;  %v9366_v32 = vmul.f32 %v19217_v56, %v9328_v57  ;;  %v9326_v43 = vadd.f32 %v9259_v59, %v9020_v45  ;;  %15132 = vmatprep.mubr.bf16.mxu1 %v19451_v54  ;;  %v15047_v4 = vpop.f32.mrf.mxu1 }
 0x60f   : > { %15088 = vmatprep.mubr.bf16.mxu0 %v9587_v46  ;;  %v9021_v9 = vadd.f32 %v19373_v0, %v8715_v23  ;;  %v8720_v52 = vadd.f32 %v20837_v50, %v19331_v27  ;;  %v8718_v51 = vadd.f32 %v20838_v17, %v19343_v11  ;;  %15165 = vmatpush3.bf16.msra.mxu0 %v15838_v58  ;;  %v9499_v0 = vld [vmem:[#allocation3 + $0xc8] sm:$0xff]  ;;  %v15842_v27 = vld [vmem:[#allocation9 + $0x308] sm:$0xff]   ;;  %v20841_v23 = vld [vmem:[#allocation44_spill] sm:$0xff] }
 0x610   : > { %15209 = vmatpush3.bf16.msra.mxu1 %v15839_v48  ;;  %9465 = vst [vmem:[#allocation3 + $0xf9] sm:$0xff] %v9433_v25  ;;  %v9431_v35 = vmax.f32 %v9399_v53, 0.0  ;;  %v19477_v40 = vadd.f32 %v19242_v61, %v9366_v32  ;;  %v9364_v13 = vmul.f32 %v19217_v56, %v9326_v43  ;;  %v9329_v45 = vadd.f32 %v15047_v4, %v9023_v39  ;;  %v20839_v48 = vld [vmem:[#allocation93_spill] sm:$0xff]  ;;  %v9262_v15 = vpop.f32.mrf.mxu1  ;;  %v15843_v39 = vld [vmem:[#allocation9 + $0x300] sm:$0xff]  }
 0x611   : > { %15210 = vmatprep.subr.bf16.mxu1 %v15840_v6  ;;  %15166 = vmatprep.subr.bf16.mxu0 %v15841_v30  ;;  %v9026_v11 = vadd.f32 %v19394_v24, %v8720_v52  ;;  %v9024_v58 = vadd.f32 %v19413_v31, %v8718_v51  ;;  %v8721_v38 = vadd.f32 %v20839_v48, %v19347_v1  ;;  %v9497_v63 = vld [vmem:[#allocation3 + $0xb0] sm:$0xff]  ;;  %v19519_v48 = vld [vmem:[#allocation9 + $0x3b8] sm:$0xff]  }
 0x612   : > { %v9589_v46 = vpack.c.bf16 %v9433_v25, %v9432_v7  ;;  %9463 = vst [vmem:[#allocation3 + $0xe1] sm:$0xff] %v9431_v35  ;;  %v9436_v55 = vmax.f32 %v19477_v40, 0.0  ;;  %v19488_v5 = vadd.f32 %v19242_v61, %v9364_v13  ;;  %v9367_v18 = vmul.f32 %v19217_v56, %v9329_v45  ;;  %v15050_v24 = vpop.f32.mrf.mxu1  ;;  %v8985_v7 = vpop.f32.mrf.mxu0  ;;  %v20843_v50 = vld [vmem:[#allocation42_spill] sm:$0xff] }
 0x613   : > { %v9327_v16 = vadd.f32 %v9262_v15, %v9021_v9  ;;  %v19491_v60 = vpack.c.bf16 %v9497_v63, %v9496_v12  ;;  %v19493_v31 = vpack.c.bf16 %v9499_v0, %v9498_v62  ;;  %v9588_v1 = vpack.c.bf16 %v9431_v35, %v9430_v22  ;;  %15167 = vmatpush3.bf16.msra.mxu0 %v15841_v30  ;;  %v20844_v52 = vld [vmem:[#allocation46_spill] sm:$0xff] }
 0x614   : > { %15211 = vmatpush3.bf16.msra.mxu1 %v15840_v6  ;;  %9468 = vst [vmem:[#allocation3 + $0x121] sm:$0xff] %v9436_v55  ;;  %v9434_v8 = vmax.f32 %v19488_v5, 0.0  ;;  %v9405_v41 = vadd.f32 %v19242_v61, %v9367_v18  ;;  %v9332_v37 = vadd.f32 %v15050_v24, %v9026_v11  ;;  %15248 = vmatprep.subr.bf16.mxu0 %v19480_v33  ;;  %v20842_v6 = vld [vmem:[#allocation94_spill] sm:$0xff]  ;;  %v9275_v25 = vpop.f32.mrf.mxu1  ;;  %v15007_v40 = vpop.f32.mrf.mxu0 }
 0x615   : > { %v9365_v57 = vmul.f32 %v19217_v56, %v9327_v16  ;;  %15212 = vmatprep.subr.bf16.mxu1 %v15842_v27  ;;  %v8416_v59 = vadd.f32 %v20841_v23, %v20840_v44  ;;  %v9027_v22 = vadd.f32 %v19434_v20, %v8721_v38  ;;  %v8719_v30 = vadd.f32 %v20842_v6, %v19379_v19  ;;  %v20845_v17 = vld [vmem:[#allocation66_spill] sm:$0xff]  ;;  %v9500_v18 = vld [vmem:[#allocation3 + $0xd8] sm:$0xff] }
 0x616   : > { %15133 = vmatmul.mubr.bf16.gmra.mxu1 %v19491_v60  ;;  %15089 = vmatmul.mubr.bf16.gmra.mxu0 %v9588_v1  ;;  %9466 = vst [vmem:[#allocation3 + $0x109] sm:$0xff] %v9434_v8  ;;  %v9437_v53 = vmax.f32 %v9405_v41, 0.0  ;;  %v9370_v43 = vmul.f32 %v19217_v56, %v9332_v37  ;;  %v9330_v9 = vadd.f32 %v9275_v25, %v9024_v58  ;;  %v15051_v35 = vpop.f32.mrf.mxu1  ;;  %v9502_v16 = vld [vmem:[#allocation3 + $0xf0] sm:$0xff] }
 0x617   : > { %v9403_v32 = vadd.f32 %v19242_v61, %v9365_v57  ;;  %15136 = vmatprep.mubr.bf16.mxu1 %v19493_v31  ;;  %15092 = vmatprep.mubr.bf16.mxu0 %v9589_v46  ;;  %v8419_v20 = vadd.f32 %v20844_v52, %v20843_v50  ;;  %v8417_v19 = vadd.f32 %v20845_v17, %v19460_v47  ;;  %v9503_v58 = vld [vmem:[#allocation3 + $0xf8] sm:$0xff] }
 0x618   : > { %v9025_v51 = vadd.f32 %v19453_v26, %v8719_v30  ;;  %v8724_v4 = vadd.f32 %v19152_v14, %v19420_v42  ;;  %15213 = vmatpush3.bf16.msra.mxu1 %v15842_v27  ;;  %9469 = vst [vmem:[#allocation3 + $0x129] sm:$0xff] %v9437_v53  ;;  %v9408_v45 = vadd.f32 %v19242_v61, %v9370_v43  ;;  %v9278_v42 = vpop.f32.mrf.mxu1 }
 0x619   : > { %v19515_v13 = vmax.f32 %v9403_v32, 0.0  ;;  %v9368_v0 = vmul.f32 %v19217_v56, %v9330_v9  ;;  %v9333_v11 = vadd.f32 %v15051_v35, %v9027_v22  ;;  %15214 = vmatprep.subr.bf16.mxu1 %v15843_v39  ;;  %v8722_v26 = vadd.f32 %v19167_v3, %v8416_v59  ;;  %v9501_v27 = vld [vmem:[#allocation3 + $0xe0] sm:$0xff] }
 0x61a   : > { %v9030_v47 = vadd.f32 %v19474_v36, %v8724_v4  ;;  %v8725_v14 = vadd.f32 %v19180_v34, %v8419_v20  ;;  %v9591_v38 = vpack.c.bf16 %v9437_v53, %v9436_v55  ;;  %v9440_v15 = vmax.f32 %v9408_v45, 0.0  ;;  %v15054_v62 = vpop.f32.mrf.mxu1  ;;  %v8988_v55 = vpop.f32.mrf.mxu0 }
 0x61b   : > { %9467 = vst [vmem:[#allocation3 + $0x111] sm:$0xff] %v19515_v13  ;;  %v9406_v63 = vadd.f32 %v19242_v61, %v9368_v0  ;;  %v9371_v46 = vmul.f32 %v19217_v56, %v9333_v11  ;;  %v9331_v5 = vadd.f32 %v9278_v42, %v9025_v51  ;;  %v9028_v12 = vadd.f32 %v8985_v7, %v8722_v26  ;;  %v9506_v35 = vld [vmem:[#allocation3 + $0x120] sm:$0xff]  ;;  %v10031_v42 = vld [vmem:[#allocation3 + $0xa] sm:$0xff] }
 0x61c   : > { %v19527_v3 = vpack.c.bf16 %v9501_v27, %v9500_v18  ;;  %v19529_v36 = vpack.c.bf16 %v9503_v58, %v9502_v16  ;;  %v9590_v34 = vpack.c.bf16 %v19515_v13, %v9434_v8  ;;  %15215 = vmatpush3.bf16.msra.mxu1 %v15843_v39  ;;  %9472 = vst [vmem:[#allocation3 + $0x151] sm:$0xff] %v9440_v15  ;;  %v9291_v44 = vpop.f32.mrf.mxu1  ;;  %v10032_v16 = vld [vmem:[#allocation3 + $0x1a] sm:$0xff] }
 0x61d   : > { %v9438_v24 = vmax.f32 %v9406_v63, 0.0  ;;  %v9409_v1 = vadd.f32 %v19242_v61, %v9371_v46  ;;  %v9369_v41 = vmul.f32 %v19217_v56, %v9331_v5  ;;  %v9336_v57 = vadd.f32 %v15054_v62, %v9030_v47  ;;  %15296 = vmatprep.subr.bf16.mxu1 %v19519_v48  ;;  %v9504_v51 = vld [vmem:[#allocation3 + $0x108] sm:$0xff]  ;;  %v10034_v62 = vld [vmem:[#allocation3 + $0x32] sm:$0xff] }
 0x61e   : > { %v8723_v7 = vadd.f32 %v19200_v28, %v8417_v19  ;;  %v9031_v37 = vadd.f32 %v15007_v40, %v8725_v14  ;;  %15137 = vmatmul.mubr.bf16.gmra.mxu1 %v19527_v3  ;;  %15093 = vmatmul.mubr.bf16.gmra.mxu0 %v9590_v34  ;;  %v9334_v59 = vadd.f32 %v9291_v44, %v9028_v12  ;;  %v15055_v6 = vpop.f32.mrf.mxu1  ;;  %v10030_v14 = vld [vmem:[#allocation3 + $0x2] sm:$0xff]  ;;  %v10037_v44 = vld [vmem:[#allocation3 + $0x52] sm:$0xff] }
 0x61f   : > { %9470 = vst [vmem:[#allocation3 + $0x139] sm:$0xff] %v9438_v24  ;;  %v19537_v8 = vmax.f32 %v9409_v1, 0.0  ;;  %v9407_v39 = vadd.f32 %v19242_v61, %v9369_v41  ;;  %v9374_v23 = vmul.f32 %v19217_v56, %v9336_v57  ;;  %15140 = vmatprep.mubr.bf16.mxu1 %v19529_v36  ;;  %15096 = vmatprep.mubr.bf16.mxu0 %v9591_v38  ;;  %v9507_v9 = vld [vmem:[#allocation3 + $0x128] sm:$0xff] }
 0x620   : > { %v9029_v22 = vadd.f32 %v8988_v55, %v8723_v7  ;;  %v9372_v25 = vmul.f32 %v19217_v56, %v9334_v59  ;;  %v9337_v53 = vadd.f32 %v15055_v6, %v9031_v37  ;;  %v9294_v32 = vpop.f32.mrf.mxu1  ;;  %v19556_v58 = vpack.c.bf16 %v9507_v9, %v9506_v35  ;;  %v10033_v12 = vld [vmem:[#allocation3 + $0x22] sm:$0xff]  ;;  %v10036_v37 = vld [vmem:[#allocation3 + $0x4a] sm:$0xff] }
 0x621   : > { %9473 = vst [vmem:[#allocation3 + $0x159] sm:$0xff] %v19537_v8  ;;  %v9439_v28 = vmax.f32 %v9407_v39, 0.0  ;;  %v9412_v30 = vadd.f32 %v19242_v61, %v9374_v23  ;;  %v9593_v50 = vpack.c.bf16 %v19537_v8, %v9440_v15  ;;  %v10062_v5 = vpack.c.bf16 %v10031_v42, %v10030_v14  ;;  %v15845_v7 = vld [vmem:[#allocation9 + $0x370] sm:$0xff]   ;;  %v15846_v39 = vld [vmem:[#allocation9 + $0x368] sm:$0xff]   ;;  %v10039_v59 = vld [vmem:[#allocation3 + $0x6a] sm:$0xff] }
 0x622   : > { %v9505_v43 = vld [vmem:[#allocation3 + $0x110] sm:$0xff]  ;;  %v9410_v20 = vadd.f32 %v19242_v61, %v9372_v25  ;;  %v9375_v17 = vmul.f32 %v19217_v56, %v9337_v53  ;;  %v9335_v19 = vadd.f32 %v9294_v32, %v9029_v22  ;;  %v19576_v41 = vpack.c.bf16 %v10033_v12, %v10032_v16  ;;  %v10038_v23 = vld [vmem:[#allocation3 + $0x62] sm:$0xff]  ;;  %v15852_v53 = vld [vmem:[#allocation9 + $0x3a8] sm:$0xff]  }
 0x623   : > { %9471 = vst [vmem:[#allocation3 + $0x141] sm:$0xff] %v9439_v28  ;;  %v9444_v52 = vmax.f32 %v9412_v30, 0.0  ;;  %v19548_v4 = vpack.c.bf16 %v9505_v43, %v9504_v51  ;;  %v19550_v40 = vpack.c.bf16 %v9439_v28, %v9438_v24  ;;  %v9510_v18 = vld [vmem:[#allocation3 + $0x150] sm:$0xff]  ;;  %v10035_v24 = vld [vmem:[#allocation3 + $0x3a] sm:$0xff]  ;;  %v19585_v22 = vpack.c.bf16 %v10037_v44, %v10036_v37  ;;  %v10041_v25 = vld [vmem:[#allocation3 + $0x82] sm:$0xff] }
 0x624   : > { %v9442_v45 = vmax.f32 %v9410_v20, 0.0  ;;  %v19553_v0 = vadd.f32 %v19242_v61, %v9375_v17  ;;  %v9373_v11 = vmul.f32 %v19217_v56, %v9335_v19  ;;  %v19578_v57 = vpack.c.bf16 %v10035_v24, %v10034_v62  ;;  %v15847_v28 = vld [vmem:[#allocation9 + $0x360] sm:$0xff]   ;;  %v15850_v30 = vld [vmem:[#allocation9 + $0x3b0] sm:$0xff]   ;;  %v15855_v17 = vld [vmem:[#allocation9 + $0x398] sm:$0xff]  }
 0x625   : > { %9476 = vst [vmem:[#allocation3 + $0x181] sm:$0xff] %v9444_v52  ;;  %v19587_v6 = vpack.c.bf16 %v10039_v59, %v10038_v23  ;;  %v10042_v32 = vld [vmem:[#allocation3 + $0x92] sm:$0xff]  ;;  %v10043_v43 = vld [vmem:[#allocation3 + $0x9a] sm:$0xff]  ;;  %v10044_v52 = vld [vmem:[#allocation3 + $0xaa] sm:$0xff] }
 0x626   : > { %15141 = vmatmul.mubr.bf16.gmra.mxu1 %v19548_v4  ;;  %15097 = vmatmul.mubr.bf16.gmra.mxu0 %v19550_v40  ;;  %9474 = vst [vmem:[#allocation3 + $0x169] sm:$0xff] %v9442_v45  ;;  %v9445_v26 = vmax.f32 %v19553_v0, 0.0  ;;  %v9411_v47 = vadd.f32 %v19242_v61, %v9373_v11  ;;  %v9508_v27 = vld [vmem:[#allocation3 + $0x138] sm:$0xff]  ;;  %v10046_v19 = vld [vmem:[#allocation3 + $0xc2] sm:$0xff]  ;;  %v10047_v51 = vld [vmem:[#allocation3 + $0xca] sm:$0xff] }
 0x627   : > { %15144 = vmatprep.mubr.bf16.mxu1 %v19556_v58  ;;  %15100 = vmatprep.mubr.bf16.mxu0 %v9593_v50  ;;  %v15853_v50 = vld [vmem:[#allocation9 + $0x3a0] sm:$0xff]   ;;  %v15858_v11 = vld [vmem:[#allocation9 + $0x388] sm:$0xff]   ;;  %v10049_v14 = vld [vmem:[#allocation3 + $0xe2] sm:$0xff] }
 0x628   : > { %9477 = vst [vmem:[#allocation3 + $0x189] sm:$0xff] %v9445_v26  ;;  %v9443_v56 = vmax.f32 %v9411_v47, 0.0  ;;  %v9511_v15 = vld [vmem:[#allocation3 + $0x158] sm:$0xff]  ;;  %v15860_v42 = vld [vmem:[#allocation9 + $0x3f8] sm:$0xff]   ;;  %v15877_v0 = vld [vmem:[#allocation9 + $0x470] sm:$0xff]  }
 0x629   : > { %v19569_v61 = vpack.c.bf16 %v9511_v15, %v9510_v18  ;;  %v10045_v20 = vld [vmem:[#allocation3 + $0xb2] sm:$0xff]  ;;  %v10048_v47 = vld [vmem:[#allocation3 + $0xda] sm:$0xff]  ;;  %v10052_v15 = vld [vmem:[#allocation3 + $0x10a] sm:$0xff] }
 0x62a   : > { %v9509_v38 = vld [vmem:[#allocation3 + $0x140] sm:$0xff]  ;;  %9475 = vst [vmem:[#allocation3 + $0x171] sm:$0xff] %v9443_v56  ;;  %v19567_v46 = vpack.c.bf16 %v9443_v56, %v9442_v45  ;;  %v19602_v35 = vpack.c.bf16 %v10045_v20, %v10044_v52  ;;  %v15857_v45 = vld [vmem:[#allocation9 + $0x340] sm:$0xff]   ;;  %v15865_v18 = vld [vmem:[#allocation9 + $0x438] sm:$0xff]  }
 0x62b   : > { %v19565_v63 = vpack.c.bf16 %v9509_v38, %v9508_v27  ;;  %v10050_v56 = vld [vmem:[#allocation3 + $0xf2] sm:$0xff]  ;;  %v10051_v27 = vld [vmem:[#allocation3 + $0xfa] sm:$0xff]  ;;  %v19610_v38 = vpack.c.bf16 %v10049_v14, %v10048_v47  ;;  %v10054_v16 = vld [vmem:[#allocation3 + $0x122] sm:$0xff] }
 0x62c   : > { %v10055_v12 = vld [vmem:[#allocation3 + $0x12a] sm:$0xff]  ;;  %v10059_v24 = vld [vmem:[#allocation3 + $0x15a] sm:$0xff] }
 0x62d   : > { %v9512_v34 = vld [vmem:[#allocation3 + $0x168] sm:$0xff]  ;;  %v10642_v23 = vld [vmem:[#allocation3 + $0x19] sm:$0xff] }
 0x62e   : > { %15145 = vmatmul.mubr.bf16.gmra.mxu1 %v19565_v63  ;;  %15101 = vmatmul.mubr.bf16.gmra.mxu0 %v19567_v46  ;;  %v10643_v44 = vld [vmem:[#allocation3 + $0x21] sm:$0xff]  ;;  %v10650_v52 = vld [vmem:[#allocation3 + $0x79] sm:$0xff]  ;;  %v10654_v14 = vld [vmem:[#allocation3 + $0xa9] sm:$0xff] }
 0x62f   : > { %15148 = vmatprep.mubr.bf16.mxu1 %v19569_v61  ;;  %15168 = vmatprep.mubr.bf16.mxu0 %v10062_v5  ;;  %v10053_v5 = vld [vmem:[#allocation3 + $0x112] sm:$0xff]  ;;  %v10674_v59 = vpack.c.bf16 %v10643_v44, %v10642_v23  ;;  %v10665_v44 = vld [vmem:[#allocation3 + $0x129] sm:$0xff]  ;;  %v10664_v23 = vld [vmem:[#allocation3 + $0x121] sm:$0xff] }
 0x630   : > { %v19618_v62 = vpack.c.bf16 %v10053_v5, %v10052_v15  ;;  %v10659_v15 = vld [vmem:[#allocation3 + $0xe1] sm:$0xff] }
 0x631   : > { %v9513_v55 = vld [vmem:[#allocation3 + $0x170] sm:$0xff]  ;;  %v10656_v5 = vld [vmem:[#allocation3 + $0xc1] sm:$0xff] }
 0x632   : > { %v19574_v1 = vpack.c.bf16 %v9513_v55, %v9512_v34  ;;  %v19620_v34 = vpack.c.bf16 %v10055_v12, %v10054_v16  ;;  %v10058_v55 = vld [vmem:[#allocation3 + $0x152] sm:$0xff] }
 0x633   : > { %v19628_v37 = vpack.c.bf16 %v10059_v24, %v10058_v55  ;;  %v10658_v16 = vld [vmem:[#allocation3 + $0xd9] sm:$0xff]  ;;  %v15873_v12 = vld [vmem:[#allocation9 + $0x3c0] sm:$0xff]   ;;  %v15876_v55 = vld [vmem:[#allocation9 + $0x478] sm:$0xff]  }
 0x634   : > { %v19673_v24 = vld [vmem:[#allocation3 + $0x109] sm:$0xff] }
 0x636   : > { %15149 = vmatmul.mubr.bf16.gmra.mxu1 %v19574_v1  ;;  %15169 = vmatmul.mubr.bf16.vlgmr.msra.gmra.mxu0 %v19576_v41 }
 0x637   : > { %15216 = vmatprep.mubr.bf16.mxu1 %v19369_v10  ;;  %15172 = vmatprep.mubr.bf16.mxu0 %v19578_v57  ;;  %v15848_v10 = vld [vmem:[#allocation9 + $0x358] sm:$0xff]  }
 0x638   : > { %15249 = vmatpush3.bf16.msra.mxu0 %v19480_v33  ;;  %v10040_v33 = vld [vmem:[#allocation3 + $0x7a] sm:$0xff] }
 0x639   : > { %15250 = vmatprep.subr.bf16.mxu0 %v15845_v7  ;;  %v19594_v9 = vpack.c.bf16 %v10041_v25, %v10040_v33 }
 0x63c   : > { %15251 = vmatpush3.bf16.msra.mxu0 %v15845_v7 }
 0x63d   : > { %15252 = vmatprep.subr.bf16.mxu0 %v15846_v39 }
 0x63e   : > { %15217 = vmatmul.mubr.bf16.vlgmr.msra.gmra.mxu1 %v19371_v21  ;;  %15173 = vmatmul.mubr.bf16.gmra.mxu0 %v19585_v22  ;;  %v19596_v21 = vpack.c.bf16 %v10043_v43, %v10042_v32  ;;  %v15861_v43 = vld [vmem:[#allocation9 + $0x3f0] sm:$0xff]  }
 0x63f   : > { %15220 = vmatprep.mubr.bf16.mxu1 %v19409_v29  ;;  %15176 = vmatprep.mubr.bf16.mxu0 %v19587_v6  ;;  %v15851_v29 = vld [vmem:[#allocation9 + $0x350] sm:$0xff]  }
 0x640   : > { %15253 = vmatpush3.bf16.msra.mxu0 %v15846_v39  ;;  %15297 = vmatpush3.bf16.msra.mxu1 %v19519_v48  ;;  %v15854_v48 = vld [vmem:[#allocation9 + $0x348] sm:$0xff]  }
 0x641   : > { %15254 = vmatprep.subr.bf16.mxu0 %v15847_v28  ;;  %15298 = vmatprep.subr.bf16.mxu1 %v15850_v30 }
 0x644   : > { %15255 = vmatpush3.bf16.msra.mxu0 %v15847_v28  ;;  %15299 = vmatpush3.bf16.msra.mxu1 %v15850_v30  ;;  %v10645_v28 = vld [vmem:[#allocation3 + $0x39] sm:$0xff]  ;;  %v10647_v30 = vld [vmem:[#allocation3 + $0x51] sm:$0xff] }
 0x645   : > { %15256 = vmatprep.subr.bf16.mxu0 %v15848_v10  ;;  %15300 = vmatprep.subr.bf16.mxu1 %v15852_v53 }
 0x646   : > { %15221 = vmatmul.mubr.bf16.gmra.mxu1 %v19411_v2  ;;  %15177 = vmatmul.mubr.bf16.gmra.mxu0 %v19594_v9  ;;  %v19604_v2 = vpack.c.bf16 %v10047_v51, %v10046_v19  ;;  %v15866_v19 = vld [vmem:[#allocation9 + $0x430] sm:$0xff]   ;;  %v15864_v51 = vld [vmem:[#allocation9 + $0x3d8] sm:$0xff]  }
 0x647   : > { %15224 = vmatprep.mubr.bf16.mxu1 %v19449_v49  ;;  %15180 = vmatprep.mubr.bf16.mxu0 %v19596_v21  ;;  %v15856_v49 = vld [vmem:[#allocation9 + $0x390] sm:$0xff]  }
 0x648   : > { %15257 = vmatpush3.bf16.msra.mxu0 %v15848_v10  ;;  %15301 = vmatpush3.bf16.msra.mxu1 %v15852_v53  ;;  %v10644_v10 = vld [vmem:[#allocation3 + $0x31] sm:$0xff]  ;;  %v10646_v53 = vld [vmem:[#allocation3 + $0x49] sm:$0xff] }
 0x649   : > { %15258 = vmatprep.subr.bf16.mxu0 %v15851_v29  ;;  %15302 = vmatprep.subr.bf16.mxu1 %v15853_v50  ;;  %v19641_v25 = vpack.c.bf16 %v10645_v28, %v10644_v10  ;;  %v19643_v32 = vpack.c.bf16 %v10647_v30, %v10646_v53  ;;  %v11259_v28 = vld [vmem:[#allocation3 + $0x68] sm:$0xff]  ;;  %v11258_v10 = vld [vmem:[#allocation3 + $0x60] sm:$0xff] }
 0x64a   : > { %v11288_v53 = vpack.c.bf16 %v11259_v28, %v11258_v10  ;;  %v15883_v10 = vld [vmem:[#allocation9 + $0x440] sm:$0xff]  }
 0x64c   : > { %15259 = vmatpush3.bf16.msra.mxu0 %v15851_v29  ;;  %15303 = vmatpush3.bf16.msra.mxu1 %v15853_v50  ;;  %v10651_v29 = vld [vmem:[#allocation3 + $0x81] sm:$0xff] }
 0x64d   : > { %15260 = vmatprep.subr.bf16.mxu0 %v15854_v48  ;;  %15304 = vmatprep.subr.bf16.mxu1 %v15855_v17  ;;  %v10648_v50 = vld [vmem:[#allocation3 + $0x61] sm:$0xff]  ;;  %v19651_v20 = vpack.c.bf16 %v10651_v29, %v10650_v52  ;;  %v11260_v29 = vld [vmem:[#allocation3 + $0x78] sm:$0xff] }
 0x64e   : > { %15225 = vmatmul.mubr.bf16.gmra.mxu1 %v19451_v54  ;;  %15181 = vmatmul.mubr.bf16.gmra.mxu0 %v19602_v35  ;;  %v19612_v54 = vpack.c.bf16 %v10051_v27, %v10050_v56  ;;  %v10657_v56 = vld [vmem:[#allocation3 + $0xc9] sm:$0xff]  ;;  %v15870_v27 = vld [vmem:[#allocation9 + $0x3c8] sm:$0xff]  }
 0x64f   : > { %15228 = vmatprep.mubr.bf16.mxu1 %v19491_v60  ;;  %15184 = vmatprep.mubr.bf16.mxu0 %v19604_v2  ;;  %v15859_v60 = vld [vmem:[#allocation9 + $0x380] sm:$0xff]  }
 0x650   : > { %15261 = vmatpush3.bf16.msra.mxu0 %v15854_v48  ;;  %15305 = vmatpush3.bf16.msra.mxu1 %v15855_v17  ;;  %v15863_v17 = vld [vmem:[#allocation9 + $0x3e0] sm:$0xff]  }
 0x651   : > { %15306 = vmatprep.subr.bf16.mxu1 %v15856_v49  ;;  %15262 = vmatprep.subr.bf16.mxu0 %v15857_v45 }
 0x654   : > { %15307 = vmatpush3.bf16.msra.mxu1 %v15856_v49  ;;  %15263 = vmatpush3.bf16.msra.mxu0 %v15857_v45  ;;  %v15868_v49 = vld [vmem:[#allocation9 + $0x428] sm:$0xff]  }
 0x655   : > { %15308 = vmatprep.subr.bf16.mxu1 %v15858_v11  ;;  %15344 = vmatprep.subr.bf16.mxu0 %v15860_v42  ;;  %v10655_v45 = vld [vmem:[#allocation3 + $0xb1] sm:$0xff] }
 0x656   : > { %15229 = vmatmul.mubr.bf16.gmra.mxu1 %v19493_v31  ;;  %15185 = vmatmul.mubr.bf16.gmra.mxu0 %v19610_v38  ;;  %v10056_v31 = vld [vmem:[#allocation3 + $0x13a] sm:$0xff] }
 0x657   : > { %15232 = vmatprep.mubr.bf16.mxu1 %v19527_v3  ;;  %15188 = vmatprep.mubr.bf16.mxu0 %v19612_v54  ;;  %v10057_v3 = vld [vmem:[#allocation3 + $0x142] sm:$0xff] }
 0x658   : > { %15309 = vmatpush3.bf16.msra.mxu1 %v15858_v11  ;;  %v19626_v7 = vpack.c.bf16 %v10057_v3, %v10056_v31  ;;  %v10652_v11 = vld [vmem:[#allocation3 + $0x91] sm:$0xff]  ;;  %v10661_v31 = vld [vmem:[#allocation3 + $0xf9] sm:$0xff] }
 0x659   : > { %15310 = vmatprep.subr.bf16.mxu1 %v15859_v60  ;;  %v15874_v3 = vld [vmem:[#allocation9 + $0x408] sm:$0xff]  }
 0x65c   : > { %15311 = vmatpush3.bf16.msra.mxu1 %v15859_v60  ;;  %v15871_v60 = vld [vmem:[#allocation9 + $0x418] sm:$0xff]  }
 0x65d   : > { %15392 = vmatprep.subr.bf16.mxu1 %v15865_v18 }
 0x65e   : > { %15233 = vmatmul.mubr.bf16.gmra.mxu1 %v19529_v36  ;;  %15189 = vmatmul.mubr.bf16.gmra.mxu0 %v19618_v62  ;;  %v10060_v36 = vld [vmem:[#allocation3 + $0x16a] sm:$0xff] }
 0x65f   : > { %15236 = vmatprep.mubr.bf16.mxu1 %v19548_v4  ;;  %15192 = vmatprep.mubr.bf16.mxu0 %v19620_v34  ;;  %v10061_v4 = vld [vmem:[#allocation3 + $0x172] sm:$0xff] }
 0x660   : > { %v19634_v39 = vpack.c.bf16 %v10061_v4, %v10060_v36  ;;  %v10660_v36 = vld [vmem:[#allocation3 + $0xf1] sm:$0xff] }
 0x661   : > { %v19675_v4 = vpack.c.bf16 %v10661_v31, %v10660_v36 }
 0x666   : > { %15237 = vmatmul.mubr.bf16.gmra.mxu1 %v19556_v58  ;;  %15193 = vmatmul.mubr.bf16.gmra.mxu0 %v19626_v7  ;;  %v10367_v58 = vld [vmem:[#allocation3 + $0x188] sm:$0xff] }
 0x667   : > { %15240 = vmatprep.mubr.bf16.mxu1 %v19565_v63  ;;  %15196 = vmatprep.mubr.bf16.mxu0 %v19628_v37  ;;  %v10366_v63 = vld [vmem:[#allocation3 + $0x180] sm:$0xff] }
 0x668   : > { %v19639_v33 = vpack.c.bf16 %v10367_v58, %v10366_v63 }
 0x66e   : > { %15241 = vmatmul.mubr.bf16.gmra.mxu1 %v19569_v61  ;;  %15197 = vmatmul.mubr.bf16.gmra.mxu0 %v19634_v39  ;;  %v10649_v61 = vld [vmem:[#allocation3 + $0x69] sm:$0xff] }
 0x66f   : > { %15244 = vmatprep.mubr.bf16.mxu1 %v19574_v1  ;;  %15264 = vmatprep.mubr.bf16.mxu0 %v10674_v59  ;;  %v15862_v1 = vld [vmem:[#allocation9 + $0x3e8] sm:$0xff]   ;;  %v19649_v48 = vpack.c.bf16 %v10649_v61, %v10648_v50  ;;  %v19682_v59 = vpack.c.bf16 %v10665_v44, %v10664_v23 }
 0x676   : > { %15245 = vmatmul.mubr.bf16.gmra.mxu1 %v19639_v33  ;;  %15265 = vmatmul.mubr.bf16.vlgmr.msra.gmra.mxu0 %v19641_v25 }
 0x677   : > { %15312 = vmatprep.mubr.bf16.mxu1 %v19576_v41  ;;  %15268 = vmatprep.mubr.bf16.mxu0 %v19643_v32  ;;  %v10653_v41 = vld [vmem:[#allocation3 + $0x99] sm:$0xff] }
 0x678   : > { %15345 = vmatpush3.bf16.msra.mxu0 %v15860_v42  ;;  %v19657_v47 = vpack.c.bf16 %v10653_v41, %v10652_v11  ;;  %v15869_v42 = vld [vmem:[#allocation9 + $0x420] sm:$0xff]  }
 0x679   : > { %15346 = vmatprep.subr.bf16.mxu0 %v15861_v43  ;;  %v15879_v41 = vld [vmem:[#allocation9 + $0x460] sm:$0xff]  }
 0x67c   : > { %15347 = vmatpush3.bf16.msra.mxu0 %v15861_v43  ;;  %v15878_v43 = vld [vmem:[#allocation9 + $0x468] sm:$0xff]  }
 0x67d   : > { %15348 = vmatprep.subr.bf16.mxu0 %v15862_v1 }
 0x67e   : > { %15313 = vmatmul.mubr.bf16.vlgmr.msra.gmra.mxu1 %v19578_v57  ;;  %15269 = vmatmul.mubr.bf16.gmra.mxu0 %v19649_v48  ;;  %v19659_v57 = vpack.c.bf16 %v10655_v45, %v10654_v14 }
 0x67f   : > { %15316 = vmatprep.mubr.bf16.mxu1 %v19585_v22  ;;  %15272 = vmatprep.mubr.bf16.mxu0 %v19651_v20  ;;  %v15867_v22 = vld [vmem:[#allocation9 + $0x3d0] sm:$0xff]  }
 0x680   : > { %15349 = vmatpush3.bf16.msra.mxu0 %v15862_v1  ;;  %15393 = vmatpush3.bf16.msra.mxu1 %v15865_v18  ;;  %v19665_v18 = vpack.c.bf16 %v10657_v56, %v10656_v5  ;;  %v11263_v1 = vld [vmem:[#allocation3 + $0x98] sm:$0xff] }
 0x681   : > { %15350 = vmatprep.subr.bf16.mxu0 %v15863_v17  ;;  %15394 = vmatprep.subr.bf16.mxu1 %v15866_v19 }
 0x684   : > { %15351 = vmatpush3.bf16.msra.mxu0 %v15863_v17  ;;  %15395 = vmatpush3.bf16.msra.mxu1 %v15866_v19  ;;  %v11262_v17 = vld [vmem:[#allocation3 + $0x90] sm:$0xff] }
 0x685   : > { %15352 = vmatprep.subr.bf16.mxu0 %v15864_v51  ;;  %15396 = vmatprep.subr.bf16.mxu1 %v15868_v49  ;;  %v11290_v19 = vpack.c.bf16 %v11263_v1, %v11262_v17 }
 0x686   : > { %15317 = vmatmul.mubr.bf16.gmra.mxu1 %v19587_v6  ;;  %15273 = vmatmul.mubr.bf16.gmra.mxu0 %v19657_v47  ;;  %v19667_v6 = vpack.c.bf16 %v10659_v15, %v10658_v16 }
 0x687   : > { %15320 = vmatprep.mubr.bf16.mxu1 %v19594_v9  ;;  %15276 = vmatprep.mubr.bf16.mxu0 %v19659_v57  ;;  %v15872_v9 = vld [vmem:[#allocation9 + $0x410] sm:$0xff]  }
 0x688   : > { %15353 = vmatpush3.bf16.msra.mxu0 %v15864_v51  ;;  %15397 = vmatpush3.bf16.msra.mxu1 %v15868_v49 }
 0x689   : > { %15354 = vmatprep.subr.bf16.mxu0 %v15867_v22  ;;  %15398 = vmatprep.subr.bf16.mxu1 %v15869_v42 }
 0x68c   : > { %15355 = vmatpush3.bf16.msra.mxu0 %v15867_v22  ;;  %15399 = vmatpush3.bf16.msra.mxu1 %v15869_v42  ;;  %v11265_v22 = vld [vmem:[#allocation3 + $0xb0] sm:$0xff]  ;;  %v15880_v42 = vld [vmem:[#allocation9 + $0x458] sm:$0xff]  }
 0x68d   : > { %15356 = vmatprep.subr.bf16.mxu0 %v15870_v27  ;;  %15400 = vmatprep.subr.bf16.mxu1 %v15871_v60 }
 0x68e   : > { %15321 = vmatmul.mubr.bf16.gmra.mxu1 %v19596_v21  ;;  %15277 = vmatmul.mubr.bf16.gmra.mxu0 %v19665_v18  ;;  %v10684_v21 = vpack.c.bf16 %v19515_v13, %v19673_v24  ;;  %v19688_v13 = vld [vmem:[#allocation3 + $0x151] sm:$0xff] }
 0x68f   : > { %15324 = vmatprep.mubr.bf16.mxu1 %v19602_v35  ;;  %15280 = vmatprep.mubr.bf16.mxu0 %v19667_v6  ;;  %v15875_v35 = vld [vmem:[#allocation9 + $0x400] sm:$0xff]  }
 0x690   : > { %15357 = vmatpush3.bf16.msra.mxu0 %v15870_v27  ;;  %15401 = vmatpush3.bf16.msra.mxu1 %v15871_v60  ;;  %v11267_v60 = vld [vmem:[#allocation3 + $0xc8] sm:$0xff] }
 0x691   : > { %15402 = vmatprep.subr.bf16.mxu1 %v15872_v9  ;;  %15358 = vmatprep.subr.bf16.mxu0 %v15873_v12 }
 0x694   : > { %15403 = vmatpush3.bf16.msra.mxu1 %v15872_v9  ;;  %15359 = vmatpush3.bf16.msra.mxu0 %v15873_v12  ;;  %v11266_v12 = vld [vmem:[#allocation3 + $0xc0] sm:$0xff] }
 0x695   : > { %15404 = vmatprep.subr.bf16.mxu1 %v15874_v3  ;;  %15440 = vmatprep.subr.bf16.mxu0 %v15876_v55  ;;  %v11292_v31 = vpack.c.bf16 %v11267_v60, %v11266_v12  ;;  %v11579_v60 = vld [vmem:[#allocation3 + $0x111] sm:$0xff] }
 0x696   : > { %15325 = vmatmul.mubr.bf16.gmra.mxu1 %v19604_v2  ;;  %15281 = vmatmul.mubr.bf16.gmra.mxu0 %v19675_v4  ;;  %v10687_v2 = vpack.c.bf16 %v19537_v8, %v19688_v13  ;;  %v10978_v8 = vld [vmem:[#allocation3 + $0x182] sm:$0xff] }
 0x697   : > { %15328 = vmatprep.mubr.bf16.mxu1 %v19610_v38  ;;  %15284 = vmatprep.mubr.bf16.mxu0 %v10684_v21  ;;  %v19695_v38 = vld [vmem:[#allocation3 + $0x181] sm:$0xff] }
 0x698   : > { %15405 = vmatpush3.bf16.msra.mxu1 %v15874_v3  ;;  %v15881_v3 = vld [vmem:[#allocation9 + $0x450] sm:$0xff]  }
 0x699   : > { %15406 = vmatprep.subr.bf16.mxu1 %v15875_v35 }
 0x69c   : > { %15407 = vmatpush3.bf16.msra.mxu1 %v15875_v35 }
 0x69e   : > { %15329 = vmatmul.mubr.bf16.gmra.mxu1 %v19612_v54  ;;  %15285 = vmatmul.mubr.bf16.gmra.mxu0 %v19682_v59  ;;  %v11255_v54 = vld [vmem:[#allocation3 + $0x38] sm:$0xff] }
 0x69f   : > { %15332 = vmatprep.mubr.bf16.mxu1 %v19618_v62  ;;  %15288 = vmatprep.mubr.bf16.mxu0 %v19550_v40  ;;  %v10689_v62 = vpack.c.bf16 %v9445_v26, %v19695_v38  ;;  %v11254_v40 = vld [vmem:[#allocation3 + $0x30] sm:$0xff] }
 0x6a0   : > { %v11286_v58 = vpack.c.bf16 %v11255_v54, %v11254_v40  ;;  %v15882_v54 = vld [vmem:[#allocation9 + $0x448] sm:$0xff]  }
 0x6a6   : > { %15333 = vmatmul.mubr.bf16.gmra.mxu1 %v19620_v34  ;;  %15289 = vmatmul.mubr.bf16.gmra.mxu0 %v10687_v2  ;;  %v10979_v34 = vld [vmem:[#allocation3 + $0x18a] sm:$0xff]  ;;  %v11269_v2 = vld [vmem:[#allocation3 + $0xe0] sm:$0xff] }
 0x6a7   : > { %15336 = vmatprep.mubr.bf16.mxu1 %v19626_v7  ;;  %15292 = vmatprep.mubr.bf16.mxu0 %v19567_v46  ;;  %v11257_v7 = vld [vmem:[#allocation3 + $0x50] sm:$0xff]  ;;  %v11256_v46 = vld [vmem:[#allocation3 + $0x48] sm:$0xff]  ;;  %v19702_v30 = vpack.c.bf16 %v10979_v34, %v10978_v8 }
 0x6a8   : > { %v11287_v63 = vpack.c.bf16 %v11257_v7, %v11256_v46  ;;  %v11270_v46 = vld [vmem:[#allocation3 + $0xf0] sm:$0xff] }
 0x6ae   : > { %15337 = vmatmul.mubr.bf16.gmra.mxu1 %v19628_v37  ;;  %15293 = vmatmul.mubr.bf16.gmra.mxu0 %v10689_v62 }
 0x6af   : > { %15340 = vmatprep.mubr.bf16.mxu1 %v19634_v39  ;;  %15360 = vmatprep.mubr.bf16.mxu0 %v11286_v58  ;;  %v11261_v39 = vld [vmem:[#allocation3 + $0x80] sm:$0xff]  ;;  %v11271_v58 = vld [vmem:[#allocation3 + $0xf8] sm:$0xff] }
 0x6b0   : > { %v11289_v52 = vpack.c.bf16 %v11261_v39, %v11260_v29 }
 0x6b4   : > { %v15074_v26 = vpop.f32.mrf.mxu0 }
 0x6b6   : > { %15341 = vmatmul.mubr.bf16.gmra.mxu1 %v19702_v30  ;;  %15361 = vmatmul.mubr.bf16.vlgmr.msra.gmra.mxu0 %v11287_v63  ;;  %v9694_v37 = vpop.f32.mrf.mxu0  ;;  %v11294_v63 = vpack.c.bf16 %v11271_v58, %v11270_v46 }
 0x6b7   : > { %15408 = vmatprep.mubr.bf16.mxu1 %v19641_v25  ;;  %15364 = vmatprep.mubr.bf16.mxu0 %v11288_v53 }
 0x6b8   : > { %15441 = vmatpush3.bf16.msra.mxu0 %v15876_v55  ;;  %v15075_v61 = vpop.f32.mrf.mxu0 }
 0x6b9   : > { %15442 = vmatprep.subr.bf16.mxu0 %v15877_v0 }
 0x6ba   : > { %v9697_v50 = vpop.f32.mrf.mxu0 }
 0x6bc   : > { %15443 = vmatpush3.bf16.msra.mxu0 %v15877_v0  ;;  %v15122_v51 = vpop.f32.mrf.mxu1  ;;  %v15078_v25 = vpop.f32.mrf.mxu0 }
 0x6bd   : > { %15444 = vmatprep.subr.bf16.mxu0 %v15878_v43  ;;  %v19707_v49 = vadd.f32 %v15122_v51, %v15074_v26  ;;  %v11274_v51 = vld [vmem:[#allocation3 + $0x120] sm:$0xff] }
 0x6be   : > { %15409 = vmatmul.mubr.bf16.vlgmr.msra.gmra.mxu1 %v19643_v32  ;;  %15365 = vmatmul.mubr.bf16.gmra.mxu0 %v11289_v52  ;;  %v9903_v45 = vpop.f32.mrf.mxu1  ;;  %v9710_v11 = vpop.f32.mrf.mxu0  ;;  %v11264_v32 = vld [vmem:[#allocation3 + $0xa8] sm:$0xff] }
 0x6bf   : > { %15412 = vmatprep.mubr.bf16.mxu1 %v19649_v48  ;;  %15368 = vmatprep.mubr.bf16.mxu0 %v11290_v19  ;;  %v19710_v14 = vadd.f32 %v9903_v45, %v9694_v37  ;;  %v11291_v9 = vpack.c.bf16 %v11265_v22, %v11264_v32  ;;  %v11277_v32 = vld [vmem:[#allocation3 + $0x140] sm:$0xff] }
 0x6c0   : > { %15445 = vmatpush3.bf16.msra.mxu0 %v15878_v43  ;;  %v15123_v56 = vpop.f32.mrf.mxu1  ;;  %v15079_v27 = vpop.f32.mrf.mxu0 }
 0x6c1   : > { %15446 = vmatprep.subr.bf16.mxu0 %v15879_v41  ;;  %v19712_v15 = vadd.f32 %v15123_v56, %v15075_v61  ;;  %v11273_v61 = vld [vmem:[#allocation3 + $0x110] sm:$0xff] }
 0x6c2   : > { %v9906_v5 = vpop.f32.mrf.mxu1  ;;  %v9713_v16 = vpop.f32.mrf.mxu0 }
 0x6c3   : > { %v19714_v48 = vadd.f32 %v9906_v5, %v9697_v50  ;;  %v11275_v50 = vld [vmem:[#allocation3 + $0x128] sm:$0xff] }
 0x6c4   : > { %15447 = vmatpush3.bf16.msra.mxu0 %v15879_v41 }
 0x6c5   : > { %15448 = vmatprep.subr.bf16.mxu0 %v15880_v42  ;;  %v15126_v55 = vpop.f32.mrf.mxu1  ;;  %v15082_v36 = vpop.f32.mrf.mxu0 }
 0x6c6   : > { %15413 = vmatmul.mubr.bf16.gmra.mxu1 %v19651_v20  ;;  %15369 = vmatmul.mubr.bf16.gmra.mxu0 %v11291_v9  ;;  %v19717_v21 = vadd.f32 %v15126_v55, %v15078_v25  ;;  %v11268_v20 = vld [vmem:[#allocation3 + $0xd8] sm:$0xff]  ;;  %v11296_v25 = vpack.c.bf16 %v11275_v50, %v11274_v51 }
 0x6c7   : > { %15416 = vmatprep.mubr.bf16.mxu1 %v19657_v47  ;;  %15372 = vmatprep.mubr.bf16.mxu0 %v11292_v31  ;;  %v9919_v35 = vpop.f32.mrf.mxu1  ;;  %v9726_v44 = vpop.f32.mrf.mxu0  ;;  %v11293_v28 = vpack.c.bf16 %v11269_v2, %v11268_v20  ;;  %v11279_v9 = vld [vmem:[#allocation3 + $0x158] sm:$0xff] }
 0x6c8   : > { %15449 = vmatpush3.bf16.msra.mxu0 %v15880_v42  ;;  %v19720_v23 = vadd.f32 %v9919_v35, %v9710_v11  ;;  %v11276_v31 = vld [vmem:[#allocation3 + $0x138] sm:$0xff]  ;;  %v11278_v35 = vld [vmem:[#allocation3 + $0x150] sm:$0xff] }
 0x6c9   : > { %15450 = vmatprep.subr.bf16.mxu0 %v15881_v3  ;;  %v15127_v62 = vpop.f32.mrf.mxu1  ;;  %v15083_v40 = vpop.f32.mrf.mxu0  ;;  %v11587_v51 = vld [vmem:[#allocation3 + $0x171] sm:$0xff] }
 0x6ca   : > { %v19722_v8 = vadd.f32 %v15127_v62, %v15079_v27 }
 0x6cb   : > { %v9922_v34 = vpop.f32.mrf.mxu1  ;;  %v9729_v7 = vpop.f32.mrf.mxu0 }
 0x6cc   : > { %15451 = vmatpush3.bf16.msra.mxu0 %v15881_v3  ;;  %v19724_v47 = vadd.f32 %v9922_v34, %v9713_v16  ;;  %v11601_v3 = vpack.c.bf16 %v11579_v60, %v19673_v24  ;;  %v11583_v24 = vld [vmem:[#allocation3 + $0x141] sm:$0xff]  ;;  %v11281_v34 = vld [vmem:[#allocation3 + $0x170] sm:$0xff] }
 0x6cd   : > { %15452 = vmatprep.subr.bf16.mxu0 %v15882_v54  ;;  %v15130_v53 = vpop.f32.mrf.mxu1  ;;  %v15086_v0 = vpop.f32.mrf.mxu0  ;;  %v11867_v60 = vld [vmem:[#allocation3 + $0x3a] sm:$0xff] }
 0x6ce   : > { %15417 = vmatmul.mubr.bf16.gmra.mxu1 %v19659_v57  ;;  %15373 = vmatmul.mubr.bf16.gmra.mxu0 %v11293_v28  ;;  %v19727_v26 = vadd.f32 %v15130_v53, %v15082_v36  ;;  %v11272_v57 = vld [vmem:[#allocation3 + $0x108] sm:$0xff]  ;;  %v11297_v36 = vpack.c.bf16 %v11277_v32, %v11276_v31  ;;  %v11585_v28 = vld [vmem:[#allocation3 + $0x159] sm:$0xff] }
 0x6cf   : > { %15420 = vmatprep.mubr.bf16.mxu1 %v19665_v18  ;;  %15376 = vmatprep.mubr.bf16.mxu0 %v11294_v63  ;;  %v9935_v37 = vpop.f32.mrf.mxu1  ;;  %v9742_v39 = vpop.f32.mrf.mxu0  ;;  %v11295_v41 = vpack.c.bf16 %v11273_v61, %v11272_v57  ;;  %v11280_v53 = vld [vmem:[#allocation3 + $0x168] sm:$0xff] }
 0x6d0   : > { %15453 = vmatpush3.bf16.msra.mxu0 %v15882_v54  ;;  %v19730_v43 = vadd.f32 %v9935_v37, %v9726_v44  ;;  %v11298_v44 = vpack.c.bf16 %v11279_v9, %v11278_v35  ;;  %v11299_v61 = vpack.c.bf16 %v11281_v34, %v11280_v53  ;;  %v11869_v34 = vld [vmem:[#allocation3 + $0x52] sm:$0xff] }
 0x6d1   : > { %15454 = vmatprep.subr.bf16.mxu0 %v15883_v10  ;;  %v15131_v1 = vpop.f32.mrf.mxu1  ;;  %v15087_v29 = vpop.f32.mrf.mxu0 }
 0x6d2   : > { %v19732_v52 = vadd.f32 %v15131_v1, %v15083_v40 }
 0x6d3   : > { %v9938_v17 = vpop.f32.mrf.mxu1  ;;  %v9745_v19 = vpop.f32.mrf.mxu0 }
 0x6d4   : > { %15455 = vmatpush3.bf16.msra.mxu0 %v15883_v10  ;;  %v19734_v18 = vadd.f32 %v9938_v17, %v9729_v7  ;;  %v11582_v10 = vld [vmem:[#allocation3 + $0x139] sm:$0xff] }
 0x6d5   : > { %v11603_v37 = vpack.c.bf16 %v11583_v24, %v11582_v10  ;;  %v11868_v24 = vld [vmem:[#allocation3 + $0x4a] sm:$0xff] }
 0x6d6   : > { %v15134_v45 = vpop.f32.mrf.mxu1  ;;  %15421 = vmatmul.mubr.bf16.gmra.mxu1 %v19667_v6  ;;  %v15090_v11 = vpop.f32.mrf.mxu0  ;;  %15377 = vmatmul.mubr.bf16.gmra.mxu0 %v11295_v41  ;;  %v11871_v10 = vld [vmem:[#allocation3 + $0x6a] sm:$0xff] }
 0x6d7   : > { %v19737_v22 = vadd.f32 %v15134_v45, %v15086_v0  ;;  %15424 = vmatprep.mubr.bf16.mxu1 %v19675_v4  ;;  %15380 = vmatprep.mubr.bf16.mxu0 %v11296_v25  ;;  %v11589_v45 = vld [vmem:[#allocation3 + $0x189] sm:$0xff] }
 0x6d8   : > { %v9951_v42 = vpop.f32.mrf.mxu1  ;;  %v9758_v56 = vpop.f32.mrf.mxu0 }
 0x6d9   : > { %v19740_v27 = vadd.f32 %v9951_v42, %v9742_v39  ;;  %v15887_v42 = vld [vmem:[#allocation2] sm:$0xff] }
 0x6da   : > { %v15135_v5 = vpop.f32.mrf.mxu1  ;;  %v15091_v16 = vpop.f32.mrf.mxu0 }
 0x6db   : > { %v19742_v12 = vadd.f32 %v15135_v5, %v15087_v29  ;;  %v11586_v5 = vld [vmem:[#allocation3 + $0x169] sm:$0xff] }
 0x6dc   : > { %v9954_v6 = vpop.f32.mrf.mxu1  ;;  %v9761_v55 = vpop.f32.mrf.mxu0  ;;  %v11605_v9 = vpack.c.bf16 %v11587_v51, %v11586_v5  ;;  %v11874_v5 = vld [vmem:[#allocation3 + $0x92] sm:$0xff] }
 0x6dd   : > { %v19745_v4 = vadd.f32 %v9954_v6, %v9745_v19 }
 0x6de   : > { %v15138_v2 = vpop.f32.mrf.mxu1  ;;  %15425 = vmatmul.mubr.bf16.gmra.mxu1 %v11601_v3  ;;  %v15094_v54 = vpop.f32.mrf.mxu0  ;;  %15381 = vmatmul.mubr.bf16.gmra.mxu0 %v11297_v36 }
 0x6df   : > { %v19747_v62 = vadd.f32 %v15138_v2, %v15090_v11  ;;  %15428 = vmatprep.mubr.bf16.mxu1 %v19682_v59  ;;  %15384 = vmatprep.mubr.bf16.mxu0 %v11298_v44  ;;  %v11604_v59 = vpack.c.bf16 %v11585_v28, %v19688_v13  ;;  %v11866_v13 = vld [vmem:[#allocation3 + $0x32] sm:$0xff]  ;;  %v11591_v2 = vld [vmem:[#allocation3 + $0x1a1] sm:$0xff] }
 0x6e0   : > { %v9967_v40 = vpop.f32.mrf.mxu1  ;;  %v9774_v58 = vpop.f32.mrf.mxu0  ;;  %v11898_v3 = vpack.c.bf16 %v11867_v60, %v11866_v13  ;;  %v11590_v44 = vld [vmem:[#allocation3 + $0x199] sm:$0xff] }
 0x6e1   : > { %v19750_v20 = vadd.f32 %v9967_v40, %v9758_v56  ;;  %v11301_v56 = vpack.c.bf16 %v15887_v42, %v15887_v42  ;;  %v11607_v28 = vpack.c.bf16 %v11591_v2, %v11590_v44  ;;  %v11872_v42 = vld [vmem:[#allocation3 + $0x7a] sm:$0xff] }
 0x6e2   : > { %v15139_v7 = vpop.f32.mrf.mxu1  ;;  %v15095_v46 = vpop.f32.mrf.mxu0 }
 0x6e3   : > { %v19752_v63 = vadd.f32 %v15139_v7, %v15091_v16 }
 0x6e4   : > { %v9970_v0 = vpop.f32.mrf.mxu1  ;;  %v9777_v39 = vpop.f32.mrf.mxu0 }
 0x6e5   : > { %v19754_v1 = vadd.f32 %v9970_v0, %v9761_v55 }
 0x6e6   : > { %v15142_v29 = vpop.f32.mrf.mxu1  ;;  %15429 = vmatmul.mubr.bf16.gmra.mxu1 %v11603_v37  ;;  %v15098_v50 = vpop.f32.mrf.mxu0  ;;  %15385 = vmatmul.mubr.bf16.gmra.mxu0 %v11299_v61 }
 0x6e7   : > { %v19757_v57 = vadd.f32 %v15142_v29, %v15094_v54  ;;  %15432 = vmatprep.mubr.bf16.mxu1 %v11604_v59  ;;  %15388 = vmatprep.mubr.bf16.mxu0 %v19639_v33  ;;  %v11606_v33 = vpack.c.bf16 %v11589_v45, %v19695_v38 }
 0x6e8   : > { %v9983_v17 = vpop.f32.mrf.mxu1  ;;  %v9790_v19 = vpop.f32.mrf.mxu0 }
 0x6e9   : > { %v19760_v41 = vadd.f32 %v9983_v17, %v9774_v58 }
 0x6ea   : > { %v15143_v25 = vpop.f32.mrf.mxu1  ;;  %v15099_v11 = vpop.f32.mrf.mxu0 }
 0x6eb   : > { %v19762_v32 = vadd.f32 %v15143_v25, %v15095_v46  ;;  %v11870_v46 = vld [vmem:[#allocation3 + $0x62] sm:$0xff] }
 0x6ec   : > { %v9986_v16 = vpop.f32.mrf.mxu1  ;;  %v9793_v31 = vpop.f32.mrf.mxu0  ;;  %v11900_v59 = vpack.c.bf16 %v11871_v10, %v11870_v46 }
 0x6ed   : > { %v19764_v6 = vadd.f32 %v9986_v16, %v9777_v39  ;;  %v11899_v39 = vpack.c.bf16 %v11869_v34, %v11868_v24  ;;  %v11875_v16 = vld [vmem:[#allocation3 + $0x9a] sm:$0xff] }
 0x6ee   : > { %v15146_v55 = vpop.f32.mrf.mxu1  ;;  %15433 = vmatmul.mubr.bf16.gmra.mxu1 %v11605_v9  ;;  %v15102_v36 = vpop.f32.mrf.mxu0  ;;  %15389 = vmatmul.mubr.bf16.gmra.mxu0 %v11301_v56  ;;  %v11873_v56 = vld [vmem:[#allocation3 + $0x82] sm:$0xff]  ;;  %v11902_v44 = vpack.c.bf16 %v11875_v16, %v11874_v5  ;;  %v11880_v5 = vld [vmem:[#allocation3 + $0xda] sm:$0xff] }
 0x6ef   : > { %v19767_v35 = vadd.f32 %v15146_v55, %v15098_v50  ;;  %15436 = vmatprep.mubr.bf16.mxu1 %v11606_v33  ;;  %15456 = vmatprep.mubr.bf16.mxu0 %v11898_v3  ;;  %v11881_v16 = vld [vmem:[#allocation3 + $0xe2] sm:$0xff] }
 0x6f0   : > { %v9999_v54 = vpop.f32.mrf.mxu1  ;;  %v9806_v40 = vpop.f32.mrf.mxu0 }
 0x6f1   : > { %v19769_v58 = vadd.f32 %v9999_v54, %v9790_v19 }
 0x6f2   : > { %v15147_v7 = vpop.f32.mrf.mxu1  ;;  %v15103_v38 = vpop.f32.mrf.mxu0 }
 0x6f3   : > { %v19771_v53 = vadd.f32 %v15147_v7, %v15099_v11 }
 0x6f4   : > { %v10002_v0 = vpop.f32.mrf.mxu1  ;;  %v9809_v37 = vpop.f32.mrf.mxu0 }
 0x6f5   : > { %v19773_v61 = vadd.f32 %v10002_v0, %v9793_v31  ;;  %v11879_v0 = vld [vmem:[#allocation3 + $0xca] sm:$0xff] }
 0x6f6   : > { %v15150_v29 = vpop.f32.mrf.mxu1  ;;  %15437 = vmatmul.mubr.bf16.gmra.mxu1 %v11607_v28  ;;  %v15170_v50 = vpop.f32.mrf.mxu0  ;;  %15457 = vmatmul.mubr.bf16.vlgmr.msra.gmra.mxu0 %v11899_v39  ;;  %v11876_v28 = vld [vmem:[#allocation3 + $0xaa] sm:$0xff] }
 0x6f7   : > { %v19775_v17 = vadd.f32 %v15150_v29, %v15102_v36  ;;  %v10306_v19 = vadd.f32 %v15170_v50, %v19707_v49  ;;  %15460 = vmatprep.mubr.bf16.mxu0 %v11900_v59  ;;  %v11901_v49 = vpack.c.bf16 %v11873_v56, %v11872_v42 }
 0x6f8   : > { %v10015_v51 = vpop.f32.mrf.mxu1  ;;  %v10177_v25 = vpop.f32.mrf.mxu0 }
 0x6f9   : > { %v19778_v45 = vadd.f32 %v10015_v51, %v9806_v40  ;;  %v10304_v11 = vadd.f32 %v10177_v25, %v19710_v14 }
 0x6fa   : > { %v15151_v13 = vpop.f32.mrf.mxu1  ;;  %v15171_v60 = vpop.f32.mrf.mxu0 }
 0x6fb   : > { %v19781_v9 = vadd.f32 %v15151_v13, %v15103_v38  ;;  %v10307_v31 = vadd.f32 %v15171_v60, %v19712_v15  ;;  %v11877_v38 = vld [vmem:[#allocation3 + $0xb2] sm:$0xff] }
 0x6fc   : > { %v10018_v33 = vpop.f32.mrf.mxu1  ;;  %v10180_v3 = vpop.f32.mrf.mxu0 }
 0x6fd   : > { %v19784_v55 = vadd.f32 %v10018_v33, %v9809_v37  ;;  %v10305_v36 = vadd.f32 %v10180_v3, %v19714_v48  ;;  %v11878_v48 = vld [vmem:[#allocation3 + $0xc2] sm:$0xff]  ;;  %v11883_v3 = vld [vmem:[#allocation3 + $0xfa] sm:$0xff] }
 0x6fe   : > { %v15218_v2 = vpop.f32.mrf.mxu1  ;;  %v15174_v14 = vpop.f32.mrf.mxu0  ;;  %15461 = vmatmul.mubr.bf16.gmra.mxu0 %v11901_v49  ;;  %v11904_v51 = vpack.c.bf16 %v11879_v0, %v11878_v48  ;;  %v11884_v48 = vld [vmem:[#allocation3 + $0x10a] sm:$0xff]  ;;  %v11885_v0 = vld [vmem:[#allocation3 + $0x112] sm:$0xff] }
 0x6ff   : > { %v19787_v54 = vadd.f32 %v15218_v2, %v10306_v19  ;;  %v10310_v40 = vadd.f32 %v15174_v14, %v19717_v21  ;;  %15464 = vmatprep.mubr.bf16.mxu0 %v11902_v44  ;;  %v11903_v21 = vpack.c.bf16 %v11877_v38, %v11876_v28 }
 0x700   : > { %v10483_v24 = vpop.f32.mrf.mxu1  ;;  %v10193_v34 = vpop.f32.mrf.mxu0 }
 0x701   : > { %v19790_v7 = vadd.f32 %v10483_v24, %v10304_v11  ;;  %v10308_v15 = vadd.f32 %v10193_v34, %v19720_v23 }
 0x702   : > { %v15219_v46 = vpop.f32.mrf.mxu1  ;;  %v15175_v10 = vpop.f32.mrf.mxu0 }
 0x703   : > { %v19793_v37 = vadd.f32 %v15219_v46, %v10307_v31  ;;  %v10311_v39 = vadd.f32 %v15175_v10, %v19722_v8 }
 0x704   : > { %v10486_v59 = vpop.f32.mrf.mxu1  ;;  %v10196_v29 = vpop.f32.mrf.mxu0 }
 0x705   : > { %v19796_v50 = vadd.f32 %v10486_v59, %v10305_v36  ;;  %v10309_v19 = vadd.f32 %v10196_v29, %v19724_v47  ;;  %v11882_v47 = vld [vmem:[#allocation3 + $0xf2] sm:$0xff]  ;;  %v11887_v29 = vld [vmem:[#allocation3 + $0x12a] sm:$0xff] }
 0x706   : > { %v15222_v25 = vpop.f32.mrf.mxu1  ;;  %v15178_v23 = vpop.f32.mrf.mxu0  ;;  %15465 = vmatmul.mubr.bf16.gmra.mxu0 %v11903_v21  ;;  %v11906_v24 = vpack.c.bf16 %v11883_v3, %v11882_v47  ;;  %v11888_v47 = vld [vmem:[#allocation3 + $0x13a] sm:$0xff]  ;;  %v11889_v3 = vld [vmem:[#allocation3 + $0x142] sm:$0xff] }
 0x707   : > { %v19799_v11 = vadd.f32 %v15222_v25, %v10310_v40  ;;  %v10314_v42 = vadd.f32 %v15178_v23, %v19727_v26  ;;  %15468 = vmatprep.mubr.bf16.mxu0 %v11904_v51  ;;  %v11905_v26 = vpack.c.bf16 %v11881_v16, %v11880_v5 }
 0x708   : > { %v10499_v56 = vpop.f32.mrf.mxu1  ;;  %v10209_v13 = vpop.f32.mrf.mxu0 }
 0x709   : > { %v19802_v60 = vadd.f32 %v10499_v56, %v10308_v15  ;;  %v10312_v8 = vadd.f32 %v10209_v13, %v19730_v43 }
 0x70a   : > { %v15223_v31 = vpop.f32.mrf.mxu1  ;;  %v15179_v33 = vpop.f32.mrf.mxu0 }
 0x70b   : > { %v19805_v49 = vadd.f32 %v15223_v31, %v10311_v39  ;;  %v10315_v36 = vadd.f32 %v15179_v33, %v19732_v52 }
 0x70c   : > { %v10502_v44 = vpop.f32.mrf.mxu1  ;;  %v10212_v2 = vpop.f32.mrf.mxu0 }
 0x70d   : > { %v19808_v14 = vadd.f32 %v10502_v44, %v10309_v19  ;;  %v10313_v40 = vadd.f32 %v10212_v2, %v19734_v18  ;;  %v11886_v18 = vld [vmem:[#allocation3 + $0x122] sm:$0xff]  ;;  %v11891_v2 = vld [vmem:[#allocation3 + $0x15a] sm:$0xff] }
 0x70e   : > { %v15226_v34 = vpop.f32.mrf.mxu1  ;;  %v15182_v43 = vpop.f32.mrf.mxu0  ;;  %15469 = vmatmul.mubr.bf16.gmra.mxu0 %v11905_v26  ;;  %v11908_v56 = vpack.c.bf16 %v11887_v29, %v11886_v18  ;;  %v11892_v18 = vld [vmem:[#allocation3 + $0x16a] sm:$0xff]  ;;  %v11893_v29 = vld [vmem:[#allocation3 + $0x172] sm:$0xff] }
 0x70f   : > { %v19811_v15 = vadd.f32 %v15226_v34, %v10314_v42  ;;  %v10318_v28 = vadd.f32 %v15182_v43, %v19737_v22  ;;  %15472 = vmatprep.mubr.bf16.mxu0 %v11906_v24  ;;  %v11907_v22 = vpack.c.bf16 %v11885_v0, %v11884_v48 }
 0x710   : > { %v10515_v38 = vpop.f32.mrf.mxu1  ;;  %v10225_v46 = vpop.f32.mrf.mxu0 }
 0x711   : > { %v19814_v10 = vadd.f32 %v10515_v38, %v10312_v8  ;;  %v10316_v52 = vadd.f32 %v10225_v46, %v19740_v27 }
 0x712   : > { %v15227_v39 = vpop.f32.mrf.mxu1  ;;  %v15183_v59 = vpop.f32.mrf.mxu0 }
 0x713   : > { %v19817_v21 = vadd.f32 %v15227_v39, %v10315_v36  ;;  %v10319_v19 = vadd.f32 %v15183_v59, %v19742_v12 }
 0x714   : > { %v10518_v51 = vpop.f32.mrf.mxu1  ;;  %v10228_v25 = vpop.f32.mrf.mxu0 }
 0x715   : > { %v19820_v23 = vadd.f32 %v10518_v51, %v10313_v40  ;;  %v10317_v42 = vadd.f32 %v10228_v25, %v19745_v4  ;;  %v11890_v4 = vld [vmem:[#allocation3 + $0x152] sm:$0xff] }
 0x716   : > { %v15230_v13 = vpop.f32.mrf.mxu1  ;;  %v15186_v27 = vpop.f32.mrf.mxu0  ;;  %15473 = vmatmul.mubr.bf16.gmra.mxu0 %v11907_v22  ;;  %v11910_v38 = vpack.c.bf16 %v11891_v2, %v11890_v4 }
 0x717   : > { %v19823_v8 = vadd.f32 %v15230_v13, %v10318_v28  ;;  %v10322_v5 = vadd.f32 %v15186_v27, %v19747_v62  ;;  %15476 = vmatprep.mubr.bf16.mxu0 %v11908_v56  ;;  %v11909_v62 = vpack.c.bf16 %v11889_v3, %v11888_v47  ;;  %v11911_v56 = vpack.c.bf16 %v11893_v29, %v11892_v18 }
 0x718   : > { %v10531_v16 = vpop.f32.mrf.mxu1  ;;  %v10241_v31 = vpop.f32.mrf.mxu0 }
 0x719   : > { %v19826_v33 = vadd.f32 %v10531_v16, %v10316_v52  ;;  %v10320_v12 = vadd.f32 %v10241_v31, %v19750_v20  ;;  %v11896_v31 = vld [vmem:[#allocation3 + $0x19a] sm:$0xff] }
 0x71a   : > { %v15231_v36 = vpop.f32.mrf.mxu1  ;;  %v15187_v44 = vpop.f32.mrf.mxu0 }
 0x71b   : > { %v19829_v26 = vadd.f32 %v15231_v36, %v10319_v19  ;;  %v10323_v40 = vadd.f32 %v15187_v44, %v19752_v63 }
 0x71c   : > { %v10534_v24 = vpop.f32.mrf.mxu1  ;;  %v10244_v34 = vpop.f32.mrf.mxu0 }
 0x71d   : > { %v19832_v43 = vadd.f32 %v10534_v24, %v10317_v42  ;;  %v10321_v28 = vadd.f32 %v10244_v34, %v19754_v1 }
 0x71e   : > { %v15234_v46 = vpop.f32.mrf.mxu1  ;;  %v15190_v20 = vpop.f32.mrf.mxu0  ;;  %15477 = vmatmul.mubr.bf16.gmra.mxu0 %v11909_v62 }
 0x71f   : > { %v19835_v52 = vadd.f32 %v15234_v46, %v10322_v5  ;;  %v10326_v48 = vadd.f32 %v15190_v20, %v19757_v57  ;;  %15480 = vmatprep.mubr.bf16.mxu0 %v11910_v38 }
 0x720   : > { %v10547_v0 = vpop.f32.mrf.mxu1  ;;  %v10257_v39 = vpop.f32.mrf.mxu0 }
 0x721   : > { %v19838_v59 = vadd.f32 %v10547_v0, %v10320_v12  ;;  %v10324_v63 = vadd.f32 %v10257_v39, %v19760_v41  ;;  %v11897_v12 = vld [vmem:[#allocation3 + $0x1a2] sm:$0xff] }
 0x722   : > { %v15235_v19 = vpop.f32.mrf.mxu1  ;;  %v15191_v51 = vpop.f32.mrf.mxu0 }
 0x723   : > { %v19841_v1 = vadd.f32 %v15235_v19, %v10323_v40  ;;  %v10327_v25 = vadd.f32 %v15191_v51, %v19762_v32 }
 0x724   : > { %v10550_v22 = vpop.f32.mrf.mxu1  ;;  %v10260_v42 = vpop.f32.mrf.mxu0 }
 0x725   : > { %v19844_v13 = vadd.f32 %v10550_v22, %v10321_v28  ;;  %v10325_v57 = vadd.f32 %v10260_v42, %v19764_v6  ;;  %v11913_v6 = vpack.c.bf16 %v11897_v12, %v11896_v31 }
 0x726   : > { %v15238_v27 = vpop.f32.mrf.mxu1  ;;  %v15194_v5 = vpop.f32.mrf.mxu0  ;;  %15481 = vmatmul.mubr.bf16.gmra.mxu0 %v11911_v56 }
 0x727   : > { %v19847_v16 = vadd.f32 %v15238_v27, %v10326_v48  ;;  %v10330_v41 = vadd.f32 %v15194_v5, %v19767_v35  ;;  %15484 = vmatprep.mubr.bf16.mxu0 %v19702_v30 }
 0x728   : > { %v10563_v47 = vpop.f32.mrf.mxu1  ;;  %v10273_v32 = vpop.f32.mrf.mxu0 }
 0x729   : > { %v19851_v3 = vadd.f32 %v10563_v47, %v10324_v63  ;;  %v10328_v36 = vadd.f32 %v10273_v32, %v19769_v58 }
 0x72a   : > { %v15239_v44 = vpop.f32.mrf.mxu1  ;;  %v15195_v4 = vpop.f32.mrf.mxu0 }
 0x72b   : > { %v19854_v2 = vadd.f32 %v15239_v44, %v10327_v25  ;;  %v10331_v40 = vadd.f32 %v15195_v4, %v19771_v53 }
 0x72c   : > { %v10566_v24 = vpop.f32.mrf.mxu1  ;;  %v10276_v34 = vpop.f32.mrf.mxu0 }
 0x72d   : > { %v19857_v35 = vadd.f32 %v10566_v24, %v10325_v57  ;;  %v10329_v30 = vadd.f32 %v10276_v34, %v19773_v61 }
 0x72e   : > { %v15242_v62 = vpop.f32.mrf.mxu1  ;;  %v15198_v28 = vpop.f32.mrf.mxu0  ;;  %15485 = vmatmul.mubr.bf16.gmra.mxu0 %v11913_v6 }
 0x72f   : > { %v19860_v38 = vadd.f32 %v15242_v62, %v10330_v41  ;;  %v10334_v58 = vadd.f32 %v15198_v28, %v19775_v17 }
 0x730   : > { %v10579_v46 = vpop.f32.mrf.mxu1  ;;  %v10289_v20 = vpop.f32.mrf.mxu0 }
 0x731   : > { %v19863_v48 = vadd.f32 %v10579_v46, %v10328_v36  ;;  %v10332_v0 = vadd.f32 %v10289_v20, %v19778_v45 }
 0x732   : > { %v15243_v53 = vpop.f32.mrf.mxu1  ;;  %v15199_v39 = vpop.f32.mrf.mxu0 }
 0x733   : > { %v19866_v63 = vadd.f32 %v15243_v53, %v10331_v40  ;;  %v10335_v18 = vadd.f32 %v15199_v39, %v19781_v9 }
 0x734   : > { %v10582_v61 = vpop.f32.mrf.mxu1  ;;  %v10292_v29 = vpop.f32.mrf.mxu0 }
 0x735   : > { %v19869_v19 = vadd.f32 %v10582_v61, %v10329_v30  ;;  %v10333_v51 = vadd.f32 %v10292_v29, %v19784_v55 }
 0x736   : > { %v15246_v25 = vpop.f32.mrf.mxu1  ;;  %v15266_v17 = vpop.f32.mrf.mxu0 }
 0x737   : > { %v19872_v22 = vadd.f32 %v15246_v25, %v10334_v58  ;;  %v19875_v42 = vadd.f32 %v15266_v17, %v19787_v54 }
 0x738   : > { %v10595_v45 = vpop.f32.mrf.mxu1  ;;  %v10789_v56 = vpop.f32.mrf.mxu0 }
 0x739   : > { %v19877_v57 = vadd.f32 %v10595_v45, %v10332_v0  ;;  %v19880_v27 = vadd.f32 %v10789_v56, %v19790_v7 }
 0x73a   : > { %v15247_v9 = vpop.f32.mrf.mxu1  ;;  %v15267_v5 = vpop.f32.mrf.mxu0 }
 0x73b   : > { %v19882_v41 = vadd.f32 %v15247_v9, %v10335_v18  ;;  %v19885_v55 = vadd.f32 %v15267_v5, %v19793_v37 }
 0x73c   : > { %v10598_v31 = vpop.f32.mrf.mxu1  ;;  %v10792_v12 = vpop.f32.mrf.mxu0 }
 0x73d   : > { %v19887_v47 = vadd.f32 %v10598_v31, %v10333_v51  ;;  %v19890_v54 = vadd.f32 %v10792_v12, %v19796_v50 }
 0x73e   : > { %v19892_v32 = vpop.f32.mrf.mxu1  ;;  %v15270_v36 = vpop.f32.mrf.mxu0 }
 0x73f   : > { %v19895_v7 = vadd.f32 %v15270_v36, %v19799_v11 }
 0x740   : > { %v19897_v44 = vpop.f32.mrf.mxu1  ;;  %v10805_v4 = vpop.f32.mrf.mxu0 }
 0x741   : > { %v19900_v6 = vadd.f32 %v10805_v4, %v19802_v60 }
 0x742   : > { %v19902_v37 = vpop.f32.mrf.mxu1  ;;  %v15271_v40 = vpop.f32.mrf.mxu0 }
 0x743   : > { %v19905_v24 = vadd.f32 %v15271_v40, %v19805_v49 }
 0x744   : > { %v19907_v50 = vpop.f32.mrf.mxu1  ;;  %v10808_v34 = vpop.f32.mrf.mxu0 }
 0x745   : > { %v19910_v30 = vadd.f32 %v10808_v34, %v19808_v14 }
 0x746   : > { %v19912_v11 = vpop.f32.mrf.mxu1  ;;  %v15274_v62 = vpop.f32.mrf.mxu0 }
 0x747   : > { %v19915_v28 = vadd.f32 %v15274_v62, %v19811_v15 }
 0x748   : > { %v19917_v60 = vpop.f32.mrf.mxu1  ;;  %v10821_v58 = vpop.f32.mrf.mxu0 }
 0x749   : > { %v19920_v46 = vadd.f32 %v10821_v58, %v19814_v10 }
 0x74a   : > { %v19922_v49 = vpop.f32.mrf.mxu1  ;;  %v15275_v20 = vpop.f32.mrf.mxu0 }
 0x74b   : > { %v19925_v0 = vadd.f32 %v15275_v20, %v19817_v21 }
 0x74c   : > { %v19927_v14 = vpop.f32.mrf.mxu1  ;;  %v10824_v53 = vpop.f32.mrf.mxu0 }
 0x74d   : > { %v19930_v39 = vadd.f32 %v10824_v53, %v19820_v23 }
 0x74e   : > { %v19932_v15 = vpop.f32.mrf.mxu1  ;;  %v15278_v18 = vpop.f32.mrf.mxu0 }
 0x74f   : > { %v19935_v61 = vadd.f32 %v15278_v18, %v19823_v8 }
 0x750   : > { %v19937_v10 = vpop.f32.mrf.mxu1  ;;  %v10837_v29 = vpop.f32.mrf.mxu0 }
 0x751   : > { %v19940_v51 = vadd.f32 %v10837_v29, %v19826_v33 }
 0x752   : > { %v19942_v21 = vpop.f32.mrf.mxu1  ;;  %v15279_v25 = vpop.f32.mrf.mxu0 }
 0x753   : > { %v19945_v17 = vadd.f32 %v15279_v25, %v19829_v26 }
 0x754   : > { %v19947_v23 = vpop.f32.mrf.mxu1  ;;  %v10840_v45 = vpop.f32.mrf.mxu0 }
 0x755   : > { %20846 = vst [vmem:[#allocation73_spill] sm:$0xff] %v19945_v17  ;;  %v19950_v56 = vadd.f32 %v10840_v45, %v19832_v43 }
 0x756   : > { %v19952_v8 = vpop.f32.mrf.mxu1  ;;  %v15282_v9 = vpop.f32.mrf.mxu0 }
 0x757   : > { %20847 = vst [vmem:[#allocation72_spill] sm:$0xff] %v19950_v56  ;;  %v19955_v5 = vadd.f32 %v15282_v9, %v19835_v52 }
 0x758   : > { %v19957_v33 = vpop.f32.mrf.mxu1  ;;  %v10853_v31 = vpop.f32.mrf.mxu0 }
 0x759   : > { %20848 = vst [vmem:[#allocation74_spill] sm:$0xff] %v19955_v5  ;;  %v19960_v12 = vadd.f32 %v10853_v31, %v19838_v59 }
 0x75a   : > { %v19962_v26 = vpop.f32.mrf.mxu1  ;;  %v15283_v36 = vpop.f32.mrf.mxu0 }
 0x75b   : > { %20849 = vst [vmem:[#allocation76_spill] sm:$0xff] %v19960_v12  ;;  %20850 = vst [vmem:[#allocation75_spill] sm:$0xff] %v19962_v26  ;;  %v19965_v4 = vadd.f32 %v15283_v36, %v19841_v1 }
 0x75c   : > { %v19967_v43 = vpop.f32.mrf.mxu1  ;;  %v10856_v40 = vpop.f32.mrf.mxu0 }
 0x75d   : > { %20851 = vst [vmem:[#allocation34_spill] sm:$0xff] %v19965_v4  ;;  %20852 = vst [vmem:[#allocation35_spill] sm:$0xff] %v19967_v43  ;;  %v19970_v34 = vadd.f32 %v10856_v40, %v19844_v13 }
 0x75e   : > { %v19972_v52 = vpop.f32.mrf.mxu1  ;;  %v15286_v62 = vpop.f32.mrf.mxu0 }
 0x75f   : > { %20853 = vst [vmem:[#allocation36_spill] sm:$0xff] %v19970_v34  ;;  %20854 = vst [vmem:[#allocation23_spill] sm:$0xff] %v19972_v52  ;;  %v19975_v58 = vadd.f32 %v15286_v62, %v19847_v16 }
 0x760   : > { %v19977_v59 = vpop.f32.mrf.mxu1  ;;  %v10869_v20 = vpop.f32.mrf.mxu0 }
 0x761   : > { %20855 = vst [vmem:[#allocation55_spill] sm:$0xff] %v19975_v58  ;;  %20856 = vst [vmem:[#allocation77_spill] sm:$0xff] %v19977_v59  ;;  %v19980_v53 = vadd.f32 %v10869_v20, %v19851_v3 }
 0x762   : > { %v19982_v1 = vpop.f32.mrf.mxu1  ;;  %v15287_v18 = vpop.f32.mrf.mxu0 }
 0x763   : > { %20857 = vst [vmem:[#allocation39_spill] sm:$0xff] %v19980_v53  ;;  %20858 = vst [vmem:[#allocation48_spill] sm:$0xff] %v19982_v1  ;;  %v19985_v29 = vadd.f32 %v15287_v18, %v19854_v2 }
 0x764   : > { %v19987_v13 = vpop.f32.mrf.mxu1  ;;  %v10872_v25 = vpop.f32.mrf.mxu0 }
 0x765   : > { %20859 = vst [vmem:[#allocation24_spill] sm:$0xff] %v19985_v29  ;;  %20860 = vst [vmem:[#allocation50_spill] sm:$0xff] %v19987_v13  ;;  %v19990_v45 = vadd.f32 %v10872_v25, %v19857_v35 }
 0x766   : > { %v19992_v16 = vpop.f32.mrf.mxu1  ;;  %v15290_v9 = vpop.f32.mrf.mxu0 }
 0x767   : > { %20861 = vst [vmem:[#allocation18_spill] sm:$0xff] %v19990_v45  ;;  %20862 = vst [vmem:[#allocation68_spill] sm:$0xff] %v19992_v16  ;;  %v19995_v31 = vadd.f32 %v15290_v9, %v19860_v38 }
 0x768   : > { %v19997_v3 = vpop.f32.mrf.mxu1  ;;  %v10885_v36 = vpop.f32.mrf.mxu0 }
 0x769   : > { %20863 = vst [vmem:[#allocation52_spill] sm:$0xff] %v19995_v31  ;;  %20864 = vst [vmem:[#allocation41_spill] sm:$0xff] %v19997_v3  ;;  %v20000_v40 = vadd.f32 %v10885_v36, %v19863_v48 }
 0x76a   : > { %v20002_v2 = vpop.f32.mrf.mxu1  ;;  %v15291_v62 = vpop.f32.mrf.mxu0 }
 0x76b   : > { %20865 = vst [vmem:[#allocation54_spill] sm:$0xff] %v20000_v40  ;;  %20866 = vst [vmem:[#allocation19_spill] sm:$0xff] %v20002_v2  ;;  %v20005_v20 = vadd.f32 %v15291_v62, %v19866_v63 }
 0x76c   : > { %v20007_v35 = vpop.f32.mrf.mxu1  ;;  %v10888_v18 = vpop.f32.mrf.mxu0 }
 0x76d   : > { %20867 = vst [vmem:[#allocation47_spill] sm:$0xff] %v20005_v20  ;;  %20868 = vst [vmem:[#allocation32_spill] sm:$0xff] %v20007_v35  ;;  %v20010_v25 = vadd.f32 %v10888_v18, %v19869_v19 }
 0x76e   : > { %v20012_v38 = vpop.f32.mrf.mxu1  ;;  %v15294_v9 = vpop.f32.mrf.mxu0 }
 0x76f   : > { %20869 = vst [vmem:[#allocation58_spill] sm:$0xff] %v20010_v25  ;;  %20870 = vst [vmem:[#allocation25_spill] sm:$0xff] %v20012_v38  ;;  %v20015_v31 = vadd.f32 %v15294_v9, %v19872_v22 }
 0x770   : > { %v20017_v48 = vpop.f32.mrf.mxu1  ;;  %v10901_v36 = vpop.f32.mrf.mxu0 }
 0x771   : > { %20871 = vst [vmem:[#allocation43_spill] sm:$0xff] %v20015_v31  ;;  %20872 = vst [vmem:[#allocation33_spill] sm:$0xff] %v20017_v48  ;;  %v20020_v40 = vadd.f32 %v10901_v36, %v19877_v57 }
 0x772   : > { %v20022_v63 = vpop.f32.mrf.mxu1  ;;  %v15295_v62 = vpop.f32.mrf.mxu0 }
 0x773   : > { %20873 = vst [vmem:[#allocation20_spill] sm:$0xff] %v20020_v40  ;;  %20874 = vst [vmem:[#allocation56_spill] sm:$0xff] %v20022_v63  ;;  %v20025_v20 = vadd.f32 %v15295_v62, %v19882_v41 }
 0x774   : > { %v20027_v19 = vpop.f32.mrf.mxu1  ;;  %v10904_v18 = vpop.f32.mrf.mxu0 }
 0x775   : > { %20875 = vst [vmem:[#allocation61_spill] sm:$0xff] %v20025_v20  ;;  %20876 = vst [vmem:[#allocation26_spill] sm:$0xff] %v20027_v19  ;;  %v20030_v25 = vadd.f32 %v10904_v18, %v19887_v47 }
 0x776   : > { %v20032_v22 = vpop.f32.mrf.mxu1  ;;  %v15362_v9 = vpop.f32.mrf.mxu0 }
 0x777   : > { %20877 = vst [vmem:[#allocation51_spill] sm:$0xff] %v20030_v25  ;;  %20878 = vst [vmem:[#allocation70_spill] sm:$0xff] %v20032_v22 }
 0x778   : > { %v20034_v31 = vpop.f32.mrf.mxu1  ;;  %v11401_v48 = vpop.f32.mrf.mxu0 }
 0x779   : > { %20879 = vst [vmem:[#allocation59_spill] sm:$0xff] %v20034_v31 }
 0x77a   : > { %v20036_v57 = vpop.f32.mrf.mxu1  ;;  %v15363_v36 = vpop.f32.mrf.mxu0 }
 0x77b   : > { %20880 = vst [vmem:[#allocation28_spill] sm:$0xff] %v20036_v57 }
 0x77c   : > { %v20038_v40 = vpop.f32.mrf.mxu1  ;;  %v20040_v63 = vpop.f32.mrf.mxu0 }
 0x77d   : > { %20881 = vst [vmem:[#allocation78_spill] sm:$0xff] %v20038_v40 }
 0x77e   : > { %v15410_v41 = vpop.f32.mrf.mxu1  ;;  %v20042_v62 = vpop.f32.mrf.mxu0 }
 0x780   : > { %v11707_v20 = vpop.f32.mrf.mxu1  ;;  %v20044_v19 = vpop.f32.mrf.mxu0 }
 0x782   : > { %v15411_v47 = vpop.f32.mrf.mxu1  ;;  %v20046_v18 = vpop.f32.mrf.mxu0 }
 0x784   : > { %v20048_v25 = vpop.f32.mrf.mxu1  ;;  %v20050_v31 = vpop.f32.mrf.mxu0 }
 0x786   : > { %v20052_v22 = vpop.f32.mrf.mxu1  ;;  %v20054_v57 = vpop.f32.mrf.mxu0 }
 0x788   : > { %v20056_v40 = vpop.f32.mrf.mxu1  ;;  %v20058_v38 = vpop.f32.mrf.mxu0 }
 0x78a   : > { %v20060_v35 = vpop.f32.mrf.mxu0  ;;  %v20062_v45 = vpop.f32.mrf.mxu1 }
 0x78c   : > { %v20064_v2 = vpop.f32.mrf.mxu0  ;;  %v20068_v3 = vpop.f32.mrf.mxu1 }
 0x78e   : > { %v20066_v29 = vpop.f32.mrf.mxu0  ;;  %v20074_v58 = vpop.f32.mrf.mxu1 }
 0x790   : > { %v20070_v53 = vpop.f32.mrf.mxu0  ;;  %v20080_v1 = vpop.f32.mrf.mxu1 }
 0x791   : > { %20882 = vst [vmem:[#allocation71_spill] sm:$0xff] %v20070_v53 }
 0x792   : > { %v20072_v16 = vpop.f32.mrf.mxu0  ;;  %v20086_v12 = vpop.f32.mrf.mxu1 }
 0x793   : > { %20883 = vst [vmem:[#allocation62_spill] sm:$0xff] %v20072_v16 }
 0x794   : > { %v20076_v13 = vpop.f32.mrf.mxu0  ;;  %v20092_v53 = vpop.f32.mrf.mxu1 }
 0x795   : > { %20884 = vst [vmem:[#allocation81_spill] sm:$0xff] %v20076_v13 }
 0x796   : > { %v20078_v34 = vpop.f32.mrf.mxu0  ;;  %v20098_v13 = vpop.f32.mrf.mxu1 }
 0x797   : > { %20885 = vst [vmem:[#allocation21_spill] sm:$0xff] %v20078_v34  ;;  %20892 = vst [vmem:[#allocation37_spill] sm:$0xff] %v20098_v13 }
 0x798   : > { %v20082_v4 = vpop.f32.mrf.mxu0 }
 0x799   : > { %20886 = vst [vmem:[#allocation60_spill] sm:$0xff] %v20082_v4  ;;  %v20104_v4 = vpop.f32.mrf.mxu1 }
 0x79a   : > { %v20084_v59 = vpop.f32.mrf.mxu0  ;;  %20895 = vst [vmem:[#allocation29_spill] sm:$0xff] %v20104_v4 }
 0x79b   : > { %20887 = vst [vmem:[#allocation63_spill] sm:$0xff] %v20084_v59 }
 0x79c   : > { %v20088_v52 = vpop.f32.mrf.mxu0 }
 0x79d   : > { %20888 = vst [vmem:[#allocation27_spill] sm:$0xff] %v20088_v52  ;;  %v20110_v52 = vpop.f32.mrf.mxu1 }
 0x79e   : > { %v20090_v5 = vpop.f32.mrf.mxu0  ;;  %20898 = vst [vmem:[#allocation53_spill] sm:$0xff] %v20110_v52 }
 0x79f   : > { %20889 = vst [vmem:[#allocation84_spill] sm:$0xff] %v20090_v5 }
 0x7a0   : > { %v20094_v16 = vpop.f32.mrf.mxu0 }
 0x7a1   : > { %20890 = vst [vmem:[#allocation49_spill] sm:$0xff] %v20094_v16  ;;  %v20116_v16 = vpop.f32.mrf.mxu1 }
 0x7a2   : > { %v20096_v43 = vpop.f32.mrf.mxu0  ;;  %20901 = vst [vmem:[#allocation79_spill] sm:$0xff] %v20116_v16 }
 0x7a3   : > { %20891 = vst [vmem:[#allocation57_spill] sm:$0xff] %v20096_v43 }
 0x7a4   : > { %v20100_v34 = vpop.f32.mrf.mxu0 }
 0x7a5   : > { %20893 = vst [vmem:[#allocation65_spill] sm:$0xff] %v20100_v34  ;;  %v11224_v34 = vadd.f32 %v19892_v32, %v19875_v42 }
 0x7a6   : > { %v20102_v56 = vpop.f32.mrf.mxu0 }
 0x7a7   : > { %20894 = vst [vmem:[#allocation38_spill] sm:$0xff] %v20102_v56  ;;  %v11530_v4 = vadd.f32 %v15362_v9, %v11224_v34 }
 0x7a8   : > { %v20106_v59 = vpop.f32.mrf.mxu0 }
 0x7a9   : > { %20896 = vst [vmem:[#allocation22_spill] sm:$0xff] %v20106_v59  ;;  %v11222_v59 = vadd.f32 %v19897_v44, %v19880_v27  ;;  %v11223_v44 = vadd.f32 %v19907_v50, %v19890_v54 }
 0x7aa   : > { %v20108_v26 = vpop.f32.mrf.mxu0 }
 0x7ab   : > { %20897 = vst [vmem:[#allocation45_spill] sm:$0xff] %v20108_v26  ;;  %v20126_v26 = vpop.f32.mrf.mxu1  ;;  %v11528_v16 = vadd.f32 %v11401_v48, %v11222_v59 }
 0x7ac   : > { %v20112_v5 = vpop.f32.mrf.mxu0 }
 0x7ad   : > { %20899 = vst [vmem:[#allocation91_spill] sm:$0xff] %v20112_v5  ;;  %v11836_v5 = vadd.f32 %v15410_v41, %v11530_v4  ;;  %v11834_v32 = vadd.f32 %v11707_v20, %v11528_v16  ;;  %v20137_v13 = vpop.f32.mrf.mxu1  ;;  %v11228_v4 = vadd.f32 %v19912_v11, %v19895_v7  ;;  %v11229_v7 = vadd.f32 %v19922_v49, %v19905_v24  ;;  %v12248_v49 = vld [vmem:[#allocation2 + $0x19] sm:$0xff] }
 0x7ae   : > { %v20114_v17 = vpop.f32.mrf.mxu0 }
 0x7af   : > { %20900 = vst [vmem:[#allocation30_spill] sm:$0xff] %v20114_v17  ;;  %v11225_v17 = vadd.f32 %v19902_v37, %v19885_v55  ;;  %v20144_v55 = vld [vmem:[%s20435_s6 + $0x1] ss:$0 sm:$0xff]  ;;  %v11534_v54 = vadd.f32 %v20042_v62, %v11228_v4  ;;  %v20153_v50 = vpop.f32.mrf.mxu1  ;;  %v11535_v24 = vadd.f32 %v20046_v18, %v11229_v7 }
 0x7b0   : > { %v20118_v43 = vpop.f32.mrf.mxu0 }
 0x7b1   : > { %20902 = vst [vmem:[#allocation80_spill] sm:$0xff] %v20118_v43  ;;  %v20135_v43 = vld [vmem:[%s20434_s5 + $0x1] ss:$0 sm:$0xff] }
 0x7b2   : > { %v20122_v56 = vpop.f32.mrf.mxu0 }
 0x7b3   : > { %20903 = vst [vmem:[#allocation82_spill] sm:$0xff] %v20122_v56  ;;  %v11531_v56 = vadd.f32 %v15363_v36, %v11225_v17  ;;  %v11226_v17 = vadd.f32 %v19917_v60, %v19900_v6  ;;  %v12250_v6 = vld [vmem:[#allocation2 + $0x31] sm:$0xff] }
 0x7b4   : > { %v20128_v52 = vpop.f32.mrf.mxu0 }
 0x7b5   : > { %v11837_v34 = vadd.f32 %v15411_v47, %v11531_v56  ;;  %v11532_v56 = vadd.f32 %v20044_v19, %v11226_v17 }
 0x7b6   : > { %v15458_v42 = vpop.f32.mrf.mxu0 }
 0x7b7   : > { %v12142_v27 = vadd.f32 %v15458_v42, %v11836_v5  ;;  %v11529_v5 = vadd.f32 %v20040_v63, %v11223_v44  ;;  %v11840_v63 = vadd.f32 %v20052_v22, %v11534_v54  ;;  %v11227_v42 = vadd.f32 %v19927_v14, %v19910_v30 }
 0x7b8   : > { %v12013_v37 = vpop.f32.mrf.mxu0  ;;  %v11841_v30 = vadd.f32 %v20062_v45, %v11535_v24 }
 0x7b9   : > { %v12180_v59 = vmul.f32 %v20135_v43, %v12142_v27  ;;  %v12140_v16 = vadd.f32 %v12013_v37, %v11834_v32  ;;  %v11835_v11 = vadd.f32 %v20048_v25, %v11529_v5  ;;  %v11838_v32 = vadd.f32 %v20056_v40, %v11532_v56  ;;  %v20168_v27 = vpop.f32.mrf.mxu1  ;;  %v12251_v40 = vld [vmem:[#allocation2 + $0x39] sm:$0xff] }
 0x7ba   : > { %v15459_v20 = vpop.f32.mrf.mxu0  ;;  %v11533_v14 = vadd.f32 %v20050_v31, %v11227_v42 }
 0x7bb   : > { %v12218_v48 = vadd.f32 %v20144_v55, %v12180_v59  ;;  %v12178_v9 = vmul.f32 %v20135_v43, %v12140_v16  ;;  %v12143_v36 = vadd.f32 %v15459_v20, %v11837_v34  ;;  %v11232_v34 = vadd.f32 %v19932_v15, %v19915_v28 }
 0x7bc   : > { %v12016_v60 = vpop.f32.mrf.mxu0  ;;  %v11230_v28 = vadd.f32 %v19937_v10, %v19920_v46  ;;  %v11233_v15 = vadd.f32 %v19942_v21, %v19925_v0  ;;  %v11839_v45 = vadd.f32 %v20068_v3, %v11533_v14  ;;  %v11231_v46 = vadd.f32 %v19947_v23, %v19930_v39  ;;  %v12254_v3 = vld [vmem:[#allocation2 + $0x61] sm:$0xff] }
 0x7bd   : > { %v12282_v41 = vadd.f32 %v12250_v6, %v12218_v48  ;;  %v12216_v62 = vadd.f32 %v20144_v55, %v12178_v9  ;;  %v12181_v47 = vmul.f32 %v20135_v43, %v12143_v36  ;;  %v12141_v25 = vadd.f32 %v12016_v60, %v11835_v11  ;;  %v20188_v48 = vpop.f32.mrf.mxu1  ;;  %v12249_v36 = vld [vmem:[#allocation2 + $0x21] sm:$0xff] }
 0x7be   : > { %v15462_v19 = vpop.f32.mrf.mxu0  ;;  %v11538_v0 = vadd.f32 %v20054_v57, %v11232_v34  ;;  %v11536_v10 = vadd.f32 %v20058_v38, %v11230_v28  ;;  %v11539_v39 = vadd.f32 %v20060_v35, %v11233_v15  ;;  %v12252_v38 = vld [vmem:[#allocation2 + $0x49] sm:$0xff]  ;;  %v20904_v28 = vld [vmem:[#allocation73_spill] sm:$0xff] }
 0x7bf   : > { %v12314_v44 = vmax.f32 %v12282_v41, 0.0  ;;  %v12280_v22 = vadd.f32 %v12248_v49, %v12216_v62  ;;  %v12219_v37 = vadd.f32 %v20144_v55, %v12181_v47  ;;  %v12146_v4 = vadd.f32 %v15462_v19, %v11840_v63  ;;  %v12255_v35 = vld [vmem:[#allocation2 + $0x69] sm:$0xff] }
 0x7c0   : > { %v12179_v18 = vmul.f32 %v20135_v43, %v12141_v25  ;;  %v12029_v59 = vpop.f32.mrf.mxu0  ;;  %v11844_v47 = vadd.f32 %v20074_v58, %v11538_v0  ;;  %v11842_v42 = vadd.f32 %v20080_v1, %v11536_v10  ;;  %v11845_v58 = vadd.f32 %v20086_v12, %v11539_v39  ;;  %v12253_v12 = vld [vmem:[#allocation2 + $0x51] sm:$0xff]  ;;  %v20905_v15 = vld [vmem:[#allocation75_spill] sm:$0xff]  ;;  %v20909_v0 = vld [vmem:[#allocation74_spill] sm:$0xff] }
 0x7c1   : > { %12346 = vst [vmem:[%s20178_s27 + $0x10] sm:$0xff] %v12314_v44  ;;  %v12312_v16 = vmax.f32 %v12280_v22, 0.0  ;;  %v12283_v17 = vadd.f32 %v12251_v40, %v12219_v37  ;;  %v12184_v5 = vmul.f32 %v20135_v43, %v12146_v4  ;;  %v12144_v20 = vadd.f32 %v12029_v59, %v11838_v32  ;;  %v20203_v32 = vpop.f32.mrf.mxu1  ;;  %v20910_v10 = vld [vmem:[#allocation23_spill] sm:$0xff] }
 0x7c2   : > { %v12217_v31 = vadd.f32 %v20144_v55, %v12179_v18  ;;  %v15463_v54 = vpop.f32.mrf.mxu0  ;;  %v11236_v44 = vadd.f32 %v19952_v8, %v19935_v61  ;;  %v11537_v1 = vadd.f32 %v20064_v2, %v11231_v46  ;;  %v11234_v40 = vadd.f32 %v19957_v33, %v19940_v51  ;;  %v20906_v33 = vld [vmem:[#allocation72_spill] sm:$0xff] }
 0x7c3   : > { %12344 = vst [vmem:[%s20178_s27] sm:$0xff] %v12312_v16  ;;  %v12315_v9 = vmax.f32 %v12283_v17, 0.0  ;;  %v12222_v7 = vadd.f32 %v20144_v55, %v12184_v5  ;;  %v12182_v11 = vmul.f32 %v20135_v43, %v12144_v20  ;;  %v12147_v56 = vadd.f32 %v15463_v54, %v11841_v30  ;;  %v20219_v59 = vpop.f32.mrf.mxu1 }
 0x7c4   : > { %v12281_v21 = vadd.f32 %v12249_v36, %v12217_v31  ;;  %v12032_v6 = vpop.f32.mrf.mxu0  ;;  %v11843_v61 = vadd.f32 %v20092_v53, %v11537_v1  ;;  %v11542_v8 = vadd.f32 %v20066_v29, %v11236_v44  ;;  %v11237_v51 = vadd.f32 %v20905_v15, %v20904_v28  ;;  %v20907_v53 = vld [vmem:[#allocation35_spill] sm:$0xff]  ;;  %v20908_v31 = vld [vmem:[#allocation37_spill] sm:$0xff] }
 0x7c5   : > { %12347 = vst [vmem:[%s20178_s27 + $0x18] sm:$0xff] %v12315_v9  ;;  %v12286_v60 = vadd.f32 %v12254_v3, %v12222_v7  ;;  %v12220_v63 = vadd.f32 %v20144_v55, %v12182_v11  ;;  %v12185_v41 = vmul.f32 %v20135_v43, %v12147_v56  ;;  %v12145_v62 = vadd.f32 %v12032_v6, %v11839_v45  ;;  %v12258_v7 = vld [vmem:[#allocation2 + $0x91] sm:$0xff]  ;;  %v20911_v3 = vld [vmem:[#allocation71_spill] sm:$0xff] }
 0x7c6   : > { %v12313_v23 = vmax.f32 %v12281_v21, 0.0  ;;  %v15466_v57 = vpop.f32.mrf.mxu0  ;;  %v11235_v45 = vadd.f32 %v20907_v53, %v20906_v33  ;;  %v11848_v29 = vadd.f32 %v20908_v31, %v11542_v8  ;;  %v11240_v21 = vadd.f32 %v20910_v10, %v20909_v0  ;;  %v20915_v44 = vld [vmem:[#allocation81_spill] sm:$0xff]  ;;  %v20918_v8 = vld [vmem:[#allocation79_spill] sm:$0xff]  ;;  %v20920_v53 = vld [vmem:[#allocation34_spill] sm:$0xff] }
 0x7c7   : > { %v12318_v24 = vmax.f32 %v12286_v60, 0.0  ;;  %v12284_v49 = vadd.f32 %v12252_v38, %v12220_v63  ;;  %v12223_v25 = vadd.f32 %v20144_v55, %v12185_v41  ;;  %v12183_v19 = vmul.f32 %v20135_v43, %v12145_v62  ;;  %v20912_v60 = vld [vmem:[#allocation62_spill] sm:$0xff] }
 0x7c8   : > { %12345 = vst [vmem:[%s20178_s27 + $0x8] sm:$0xff] %v12313_v23  ;;  %v12150_v22 = vadd.f32 %v15466_v57, %v11844_v47  ;;  %v12045_v37 = vpop.f32.mrf.mxu0  ;;  %v11540_v6 = vadd.f32 %v20911_v3, %v11234_v40  ;;  %v11543_v63 = vadd.f32 %v20912_v60, %v11237_v51  ;;  %v12256_v62 = vld [vmem:[#allocation2 + $0x79] sm:$0xff]  ;;  %v20925_v60 = vld [vmem:[#allocation55_spill] sm:$0xff] }
 0x7c9   : > { %12350 = vst [vmem:[%s20178_s27 + $0x30] sm:$0xff] %v12318_v24  ;;  %v12316_v4 = vmax.f32 %v12284_v49, 0.0  ;;  %v12287_v34 = vadd.f32 %v12255_v35, %v12223_v25  ;;  %v12221_v30 = vadd.f32 %v20144_v55, %v12183_v19  ;;  %v12148_v14 = vadd.f32 %v12045_v37, %v11842_v42  ;;  %v20236_v42 = vpop.f32.mrf.mxu1  ;;  %v20913_v24 = vld [vmem:[#allocation29_spill] sm:$0xff]  ;;  %v20924_v3 = vld [vmem:[#allocation50_spill] sm:$0xff] }
 0x7ca   : > { %v12188_v2 = vmul.f32 %v20135_v43, %v12150_v22  ;;  %v15467_v18 = vpop.f32.mrf.mxu0  ;;  %v11846_v49 = vadd.f32 %v20913_v24, %v11540_v6  ;;  %v20914_v25 = vld [vmem:[#allocation53_spill] sm:$0xff] }
 0x7cb   : > { %12348 = vst [vmem:[%s20178_s27 + $0x20] sm:$0xff] %v12316_v4  ;;  %v12319_v16 = vmax.f32 %v12287_v34, 0.0  ;;  %v12285_v17 = vadd.f32 %v12253_v12, %v12221_v30  ;;  %v12186_v5 = vmul.f32 %v20135_v43, %v12148_v14  ;;  %v12151_v20 = vadd.f32 %v15467_v18, %v11845_v58  ;;  %v12259_v35 = vld [vmem:[#allocation2 + $0x99] sm:$0xff]  ;;  %v20916_v14 = vld [vmem:[#allocation76_spill] sm:$0xff] }
 0x7cc   : > { %v12226_v54 = vadd.f32 %v20144_v55, %v12188_v2  ;;  %v12048_v9 = vpop.f32.mrf.mxu0  ;;  %v11849_v19 = vadd.f32 %v20914_v25, %v11543_v63  ;;  %v11541_v58 = vadd.f32 %v20915_v44, %v11235_v45  ;;  %v20917_v40 = vld [vmem:[#allocation77_spill] sm:$0xff]  ;;  %v20921_v45 = vld [vmem:[#allocation48_spill] sm:$0xff]  ;;  %v20927_v25 = vld [vmem:[#allocation39_spill] sm:$0xff] }
 0x7cd   : > { %12351 = vst [vmem:[%s20178_s27 + $0x38] sm:$0xff] %v12319_v16  ;;  %v12317_v36 = vmax.f32 %v12285_v17, 0.0  ;;  %v12224_v11 = vadd.f32 %v20144_v55, %v12186_v5  ;;  %v12189_v56 = vmul.f32 %v20135_v43, %v12151_v20  ;;  %v12149_v46 = vadd.f32 %v12048_v9, %v11843_v61  ;;  %v20919_v2 = vld [vmem:[#allocation21_spill] sm:$0xff]  ;;  %v12257_v16 = vld [vmem:[#allocation2 + $0x81] sm:$0xff]  ;;  %v20251_v20 = vpop.f32.mrf.mxu1  ;;  %v20926_v63 = vld [vmem:[#allocation68_spill] sm:$0xff] }
 0x7ce   : > { %v12290_v41 = vadd.f32 %v12258_v7, %v12226_v54  ;;  %v15470_v47 = vpop.f32.mrf.mxu0  ;;  %v11238_v61 = vadd.f32 %v20917_v40, %v20916_v14  ;;  %v11847_v12 = vadd.f32 %v20918_v8, %v11541_v58  ;;  %v11546_v18 = vadd.f32 %v20919_v2, %v11240_v21  ;;  %v20922_v54 = vld [vmem:[#allocation60_spill] sm:$0xff]  ;;  %v20929_v58 = vld [vmem:[#allocation63_spill] sm:$0xff] }
 0x7cf   : > { %12349 = vst [vmem:[%s20178_s27 + $0x28] sm:$0xff] %v12317_v36  ;;  %v12288_v39 = vadd.f32 %v12256_v62, %v12224_v11  ;;  %v12227_v23 = vadd.f32 %v20144_v55, %v12189_v56  ;;  %v12187_v38 = vmul.f32 %v20135_v43, %v12149_v46  ;;  %v12154_v57 = vadd.f32 %v15470_v47, %v11848_v29  ;;  %v12262_v36 = vld [vmem:[#allocation2 + $0xc1] sm:$0xff]  ;;  %v20923_v21 = vld [vmem:[#allocation36_spill] sm:$0xff] }
 0x7d0   : > { %v12322_v1 = vmax.f32 %v12290_v41, 0.0  ;;  %v12061_v22 = vpop.f32.mrf.mxu0  ;;  %v11241_v31 = vadd.f32 %v20921_v45, %v20920_v53  ;;  %v11852_v29 = vadd.f32 %v20126_v26, %v11546_v18  ;;  %v11544_v9 = vadd.f32 %v20922_v54, %v11238_v61  ;;  %v20932_v53 = vld [vmem:[#allocation24_spill] sm:$0xff]  ;;  %v20933_v45 = vld [vmem:[#allocation19_spill] sm:$0xff] }
 0x7d1   : > { %v12320_v37 = vmax.f32 %v12288_v39, 0.0  ;;  %v12291_v4 = vadd.f32 %v12259_v35, %v12227_v23  ;;  %v12225_v34 = vadd.f32 %v20144_v55, %v12187_v38  ;;  %v12192_v30 = vmul.f32 %v20135_v43, %v12154_v57  ;;  %v20268_v39 = vpop.f32.mrf.mxu1  ;;  %v12260_v38 = vld [vmem:[#allocation2 + $0xa9] sm:$0xff]  ;;  %v12266_v54 = vld [vmem:[#allocation2 + $0xf1] sm:$0xff] }
 0x7d2   : > { %12354 = vst [vmem:[%s20178_s27 + $0x50] sm:$0xff] %v12322_v1  ;;  %v12152_v17 = vadd.f32 %v12061_v22, %v11846_v49  ;;  %v15471_v5 = vpop.f32.mrf.mxu0  ;;  %v11239_v6 = vadd.f32 %v20924_v3, %v20923_v21  ;;  %v11244_v41 = vadd.f32 %v20926_v63, %v20925_v60  ;;  %v11850_v26 = vadd.f32 %v20137_v13, %v11544_v9  ;;  %v20930_v13 = vld [vmem:[#allocation27_spill] sm:$0xff]  ;;  %v12264_v60 = vld [vmem:[#allocation2 + $0xd9] sm:$0xff] }
 0x7d3   : > { %12352 = vst [vmem:[%s20178_s27 + $0x40] sm:$0xff] %v12320_v37  ;;  %v12323_v28 = vmax.f32 %v12291_v4, 0.0  ;;  %v12289_v15 = vadd.f32 %v12257_v16, %v12225_v34  ;;  %v12230_v51 = vadd.f32 %v20144_v55, %v12192_v30  ;;  %v12155_v33 = vadd.f32 %v15471_v5, %v11849_v19  ;;  %v20928_v19 = vld [vmem:[#allocation41_spill] sm:$0xff]  ;;  %v12263_v37 = vld [vmem:[#allocation2 + $0xc9] sm:$0xff]  ;;  %v20283_v5 = vpop.f32.mrf.mxu1 }
 0x7d4   : > { %v12190_v7 = vmul.f32 %v20135_v43, %v12152_v17  ;;  %v12064_v11 = vpop.f32.mrf.mxu0  ;;  %v11242_v44 = vadd.f32 %v20928_v19, %v20927_v25  ;;  %v11547_v1 = vadd.f32 %v20929_v58, %v11241_v31  ;;  %v11545_v35 = vadd.f32 %v20930_v13, %v11239_v6  ;;  %v12261_v16 = vld [vmem:[#allocation2 + $0xb1] sm:$0xff]  ;;  %v20940_v25 = vld [vmem:[#allocation54_spill] sm:$0xff] }
 0x7d5   : > { %12355 = vst [vmem:[%s20178_s27 + $0x58] sm:$0xff] %v12323_v28  ;;  %v12321_v56 = vmax.f32 %v12289_v15, 0.0  ;;  %v12294_v46 = vadd.f32 %v12262_v36, %v12230_v51  ;;  %v12193_v0 = vmul.f32 %v20135_v43, %v12155_v33  ;;  %v12153_v10 = vadd.f32 %v12064_v11, %v11847_v12  ;;  %v20931_v12 = vld [vmem:[#allocation84_spill] sm:$0xff]  ;;  %v20937_v6 = vld [vmem:[#allocation57_spill] sm:$0xff] }
 0x7d6   : > { %v12228_v62 = vadd.f32 %v20144_v55, %v12190_v7  ;;  %v15474_v47 = vpop.f32.mrf.mxu0  ;;  %v11853_v61 = vadd.f32 %v20153_v50, %v11547_v1  ;;  %v11851_v8 = vadd.f32 %v20168_v27, %v11545_v35  ;;  %v11550_v2 = vadd.f32 %v20931_v12, %v11244_v41  ;;  %v20934_v27 = vld [vmem:[#allocation49_spill] sm:$0xff] }
 0x7d7   : > { %12353 = vst [vmem:[%s20178_s27 + $0x48] sm:$0xff] %v12321_v56  ;;  %v12326_v23 = vmax.f32 %v12294_v46, 0.0  ;;  %v12231_v57 = vadd.f32 %v20144_v55, %v12193_v0  ;;  %v12191_v24 = vmul.f32 %v20135_v43, %v12153_v10  ;;  %v12158_v49 = vadd.f32 %v15474_v47, %v11852_v29  ;;  %v20935_v0 = vld [vmem:[#allocation18_spill] sm:$0xff]  ;;  %v20936_v10 = vld [vmem:[#allocation32_spill] sm:$0xff] }
 0x7d8   : > { %v12292_v22 = vadd.f32 %v12260_v38, %v12228_v62  ;;  %v12077_v4 = vpop.f32.mrf.mxu0  ;;  %v11245_v31 = vadd.f32 %v20933_v45, %v20932_v53  ;;  %v11856_v50 = vadd.f32 %v20188_v48, %v11550_v2  ;;  %v11548_v29 = vadd.f32 %v20934_v27, %v11242_v44  ;;  %v12267_v35 = vld [vmem:[#allocation2 + $0xf9] sm:$0xff]  ;;  %v12265_v2 = vld [vmem:[#allocation2 + $0xe1] sm:$0xff] }
 0x7d9   : > { %12358 = vst [vmem:[%s20178_s27 + $0x70] sm:$0xff] %v12326_v23  ;;  %v12295_v34 = vadd.f32 %v12263_v37, %v12231_v57  ;;  %v12229_v30 = vadd.f32 %v20144_v55, %v12191_v24  ;;  %v12196_v14 = vmul.f32 %v20135_v43, %v12158_v49  ;;  %v12156_v40 = vadd.f32 %v12077_v4, %v11850_v26  ;;  %v20299_v26 = vpop.f32.mrf.mxu1  ;;  %v20938_v57 = vld [vmem:[#allocation52_spill] sm:$0xff]  ;;  %v20939_v24 = vld [vmem:[#allocation25_spill] sm:$0xff]  ;;  %v20946_v45 = vld [vmem:[#allocation22_spill] sm:$0xff] }
 0x7da   : > { %v12324_v18 = vmax.f32 %v12292_v22, 0.0  ;;  %v15475_v17 = vpop.f32.mrf.mxu0  ;;  %v11243_v21 = vadd.f32 %v20936_v10, %v20935_v0  ;;  %v11854_v3 = vadd.f32 %v20203_v32, %v11548_v29  ;;  %v11551_v48 = vadd.f32 %v20937_v6, %v11245_v31  ;;  %v20941_v32 = vld [vmem:[#allocation33_spill] sm:$0xff]  ;;  %v12270_v27 = vld [vmem:[#allocation2 + $0x121] sm:$0xff] }
 0x7db   : > { %v12327_v28 = vmax.f32 %v12295_v34, 0.0  ;;  %v12293_v15 = vadd.f32 %v12261_v16, %v12229_v30  ;;  %v12234_v51 = vadd.f32 %v20144_v55, %v12196_v14  ;;  %v12194_v33 = vmul.f32 %v20135_v43, %v12156_v40  ;;  %v20942_v34 = vld [vmem:[#allocation47_spill] sm:$0xff]  ;;  %v20943_v30 = vld [vmem:[#allocation56_spill] sm:$0xff]  ;;  %v20944_v40 = vld [vmem:[#allocation65_spill] sm:$0xff]  ;;  %v20316_v16 = vpop.f32.mrf.mxu1 }
 0x7dc   : > { %12356 = vst [vmem:[%s20178_s27 + $0x60] sm:$0xff] %v12324_v18  ;;  %v12159_v9 = vadd.f32 %v15475_v17, %v11853_v61  ;;  %v12080_v36 = vpop.f32.mrf.mxu0  ;;  %v11248_v49 = vadd.f32 %v20939_v24, %v20938_v57  ;;  %v11246_v19 = vadd.f32 %v20941_v32, %v20940_v25  ;;  %v11857_v44 = vadd.f32 %v20219_v59, %v11551_v48  ;;  %v12271_v24 = vld [vmem:[#allocation2 + $0x129] sm:$0xff] }
 0x7dd   : > { %12359 = vst [vmem:[%s20178_s27 + $0x78] sm:$0xff] %v12327_v28  ;;  %v12325_v7 = vmax.f32 %v12293_v15, 0.0  ;;  %v12298_v11 = vadd.f32 %v12266_v54, %v12234_v51  ;;  %v12232_v56 = vadd.f32 %v20144_v55, %v12194_v33  ;;  %v12157_v46 = vadd.f32 %v12080_v36, %v11851_v8  ;;  %v20945_v8 = vld [vmem:[#allocation38_spill] sm:$0xff]  ;;  %v11819_v6 = vpop.f32.mrf.mxu1 }
 0x7de   : > { %v12197_v63 = vmul.f32 %v20135_v43, %v12159_v9  ;;  %v15478_v41 = vpop.f32.mrf.mxu0  ;;  %v11249_v14 = vadd.f32 %v20943_v30, %v20942_v34  ;;  %v11549_v61 = vadd.f32 %v20944_v40, %v11243_v21  ;;  %v11554_v12 = vadd.f32 %v20945_v8, %v11248_v49 }
 0x7df   : > { %12357 = vst [vmem:[%s20178_s27 + $0x68] sm:$0xff] %v12325_v7  ;;  %v12330_v62 = vmax.f32 %v12298_v11, 0.0  ;;  %v12296_v47 = vadd.f32 %v12264_v60, %v12232_v56  ;;  %v12195_v23 = vmul.f32 %v20135_v43, %v12157_v46  ;;  %v12162_v38 = vadd.f32 %v15478_v41, %v11856_v50  ;;  %v20947_v11 = vld [vmem:[#allocation58_spill] sm:$0xff] }
 0x7e0   : > { %v12235_v58 = vadd.f32 %v20144_v55, %v12197_v63  ;;  %v12093_v1 = vpop.f32.mrf.mxu0  ;;  %v11855_v33 = vadd.f32 %v20236_v42, %v11549_v61  ;;  %v11860_v53 = vadd.f32 %v20251_v20, %v11554_v12  ;;  %v11552_v31 = vadd.f32 %v20946_v45, %v11246_v19  ;;  %v20948_v56 = vld [vmem:[#allocation26_spill] sm:$0xff]  ;;  %v20949_v42 = vld [vmem:[#allocation45_spill] sm:$0xff]  ;;  %v12268_v20 = vld [vmem:[#allocation2 + $0x109] sm:$0xff] }
 0x7e1   : > { %12362 = vst [vmem:[%s20178_s27 + $0x90] sm:$0xff] %v12330_v62  ;;  %v12328_v13 = vmax.f32 %v12296_v47, 0.0  ;;  %v12233_v22 = vadd.f32 %v20144_v55, %v12195_v23  ;;  %v12200_v37 = vmul.f32 %v20135_v43, %v12162_v38  ;;  %v12160_v4 = vadd.f32 %v12093_v1, %v11854_v3  ;;  %v20950_v62 = vld [vmem:[#allocation43_spill] sm:$0xff]  ;;  %v20951_v47 = vld [vmem:[#allocation70_spill] sm:$0xff]  ;;  %v20953_v1 = vld [vmem:[#allocation20_spill] sm:$0xff] }
 0x7e2   : > { %v12299_v59 = vadd.f32 %v12267_v35, %v12235_v58  ;;  %v15479_v18 = vpop.f32.mrf.mxu0  ;;  %v11247_v46 = vadd.f32 %v20948_v56, %v20947_v11  ;;  %v11858_v0 = vadd.f32 %v20268_v39, %v11552_v31  ;;  %v11555_v10 = vadd.f32 %v20949_v42, %v11249_v14  ;;  %v20952_v39 = vld [vmem:[#allocation91_spill] sm:$0xff]  ;;  %v15439_v14 = vpop.f32.mrf.mxu1  ;;  %v12269_v61 = vld [vmem:[#allocation2 + $0x111] sm:$0xff]  ;;  %v12272_v56 = vld [vmem:[#allocation2 + $0x139] sm:$0xff] }
 0x7e3   : > { %12360 = vst [vmem:[%s20178_s27 + $0x80] sm:$0xff] %v12328_v13  ;;  %v12297_v17 = vadd.f32 %v12265_v2, %v12233_v22  ;;  %v12238_v28 = vadd.f32 %v20144_v55, %v12200_v37  ;;  %v12198_v15 = vmul.f32 %v20135_v43, %v12160_v4  ;;  %v12163_v51 = vadd.f32 %v15479_v18, %v11857_v44  ;;  %v20954_v13 = vld [vmem:[#allocation59_spill] sm:$0xff]  ;;  %v20955_v22 = vld [vmem:[#allocation61_spill] sm:$0xff]  ;;  %v20956_v37 = vld [vmem:[#allocation28_spill] sm:$0xff] }
 0x7e4   : > { %v12331_v50 = vmax.f32 %v12299_v59, 0.0  ;;  %v12096_v29 = vpop.f32.mrf.mxu0  ;;  %v11252_v23 = vadd.f32 %v20951_v47, %v20950_v62  ;;  %v11861_v38 = vadd.f32 %v20283_v5, %v11555_v10  ;;  %v11553_v57 = vadd.f32 %v20952_v39, %v11247_v46  ;;  %v20957_v2 = vld [vmem:[#allocation51_spill] sm:$0xff]  ;;  %v20958_v18 = vld [vmem:[#allocation78_spill] sm:$0xff] }
 0x7e5   : > { %v12329_v54 = vmax.f32 %v12297_v17, 0.0  ;;  %v12302_v9 = vadd.f32 %v12270_v27, %v12238_v28  ;;  %v12236_v36 = vadd.f32 %v20144_v55, %v12198_v15  ;;  %v12201_v7 = vmul.f32 %v20135_v43, %v12163_v51  ;;  %v20959_v28 = vld [vmem:[#allocation30_spill] sm:$0xff]  ;;  %v20960_v51 = vld [vmem:[#allocation80_spill] sm:$0xff] }
 0x7e6   : > { %12363 = vst [vmem:[%s20178_s27 + $0x98] sm:$0xff] %v12331_v50  ;;  %v12161_v21 = vadd.f32 %v12096_v29, %v11855_v33  ;;  %v15482_v3 = vpop.f32.mrf.mxu0  ;;  %v11250_v35 = vadd.f32 %v20954_v13, %v20953_v1  ;;  %v11253_v4 = vadd.f32 %v20956_v37, %v20955_v22  ;;  %v11859_v5 = vadd.f32 %v20299_v26, %v11553_v57  ;;  %v12276_v37 = vld [vmem:[#allocation2 + $0x169] sm:$0xff] }
 0x7e7   : > { %12361 = vst [vmem:[%s20178_s27 + $0x88] sm:$0xff] %v12329_v54  ;;  %v12334_v48 = vmax.f32 %v12302_v9, 0.0  ;;  %v12300_v60 = vadd.f32 %v12268_v20, %v12236_v36  ;;  %v12239_v63 = vadd.f32 %v20144_v55, %v12201_v7  ;;  %v12166_v41 = vadd.f32 %v15482_v3, %v11860_v53  ;;  %v12274_v53 = vld [vmem:[#allocation2 + $0x151] sm:$0xff]  ;;  %v20961_v9 = vld [vmem:[#allocation82_spill] sm:$0xff] }
 0x7e8   : > { %v12199_v49 = vmul.f32 %v20135_v43, %v12161_v21  ;;  %v12109_v25 = vpop.f32.mrf.mxu0  ;;  %v11251_v17 = vadd.f32 %v20958_v18, %v20957_v2  ;;  %v11558_v15 = vadd.f32 %v20959_v28, %v11252_v23  ;;  %v11556_v26 = vadd.f32 %v20960_v51, %v11250_v35 }
 0x7e9   : > { %12366 = vst [vmem:[%s20178_s27 + $0xb0] sm:$0xff] %v12334_v48  ;;  %v12332_v32 = vmax.f32 %v12300_v60, 0.0  ;;  %v12303_v19 = vadd.f32 %v12271_v24, %v12239_v63  ;;  %v12204_v44 = vmul.f32 %v20135_v43, %v12166_v41  ;;  %v12164_v58 = vadd.f32 %v12109_v25, %v11858_v0  ;;  %v11822_v0 = vpop.f32.mrf.mxu1 }
 0x7ea   : > { %v12237_v34 = vadd.f32 %v20144_v55, %v12199_v49  ;;  %v15483_v30 = vpop.f32.mrf.mxu0  ;;  %v11864_v54 = vadd.f32 %v20316_v16, %v11558_v15  ;;  %v11559_v36 = vadd.f32 %v20961_v9, %v11253_v4  ;;  %v11862_v7 = vadd.f32 %v11819_v6, %v11556_v26  ;;  %v12275_v16 = vld [vmem:[#allocation2 + $0x159] sm:$0xff] }
 0x7eb   : > { %12364 = vst [vmem:[%s20178_s27 + $0xa0] sm:$0xff] %v12332_v32  ;;  %v12335_v40 = vmax.f32 %v12303_v19, 0.0  ;;  %v12242_v8 = vadd.f32 %v20144_v55, %v12204_v44  ;;  %v12202_v12 = vmul.f32 %v20135_v43, %v12164_v58  ;;  %v12167_v59 = vadd.f32 %v15483_v30, %v11861_v38  ;;  %v12273_v38 = vld [vmem:[#allocation2 + $0x141] sm:$0xff] }
 0x7ec   : > { %v12301_v33 = vadd.f32 %v12269_v61, %v12237_v34  ;;  %v12112_v45 = vpop.f32.mrf.mxu0  ;;  %v11557_v3 = vadd.f32 %v20128_v52, %v11251_v17  ;;  %v11865_v48 = vadd.f32 %v15439_v14, %v11559_v36  ;;  %v12278_v58 = vld [vmem:[#allocation2 + $0x181] sm:$0xff]  ;;  %v12279_v14 = vld [vmem:[#allocation2 + $0x189] sm:$0xff] }
 0x7ed   : > { %12367 = vst [vmem:[%s20178_s27 + $0xb8] sm:$0xff] %v12335_v40  ;;  %v12306_v31 = vadd.f32 %v12274_v53, %v12242_v8  ;;  %v12240_v50 = vadd.f32 %v20144_v55, %v12202_v12  ;;  %v12205_v27 = vmul.f32 %v20135_v43, %v12167_v59  ;;  %v12165_v29 = vadd.f32 %v12112_v45, %v11859_v5  ;;  %v12277_v12 = vld [vmem:[#allocation2 + $0x171] sm:$0xff] }
 0x7ee   : > { %v12333_v11 = vmax.f32 %v12301_v33, 0.0  ;;  %v15486_v46 = vpop.f32.mrf.mxu0  ;;  %v11863_v23 = vadd.f32 %v11822_v0, %v11557_v3 }
 0x7ef   : > { %v12338_v42 = vmax.f32 %v12306_v31, 0.0  ;;  %v12304_v10 = vadd.f32 %v12272_v56, %v12240_v50  ;;  %v12243_v20 = vadd.f32 %v20144_v55, %v12205_v27  ;;  %v12203_v21 = vmul.f32 %v20135_v43, %v12165_v29 }
 0x7f0   : > { %12365 = vst [vmem:[%s20178_s27 + $0xa8] sm:$0xff] %v12333_v11  ;;  %v12170_v60 = vadd.f32 %v15486_v46, %v11864_v54  ;;  %v12125_v63 = vpop.f32.mrf.mxu0 }
 0x7f1   : > { %12370 = vst [vmem:[%s20178_s27 + $0xd0] sm:$0xff] %v12338_v42  ;;  %v12336_v6 = vmax.f32 %v12304_v10, 0.0  ;;  %v12307_v41 = vadd.f32 %v12275_v16, %v12243_v20  ;;  %v12241_v62 = vadd.f32 %v20144_v55, %v12203_v21  ;;  %v12168_v47 = vadd.f32 %v12125_v63, %v11862_v7 }
 0x7f2   : > { %v12208_v39 = vmul.f32 %v20135_v43, %v12170_v60  ;;  %v15487_v57 = vpop.f32.mrf.mxu0 }
 0x7f3   : > { %12368 = vst [vmem:[%s20178_s27 + $0xc0] sm:$0xff] %v12336_v6  ;;  %v12339_v52 = vmax.f32 %v12307_v41, 0.0  ;;  %v12305_v24 = vadd.f32 %v12273_v38, %v12241_v62  ;;  %v12206_v49 = vmul.f32 %v20135_v43, %v12168_v47  ;;  %v12171_v25 = vadd.f32 %v15487_v57, %v11865_v48 }
 0x7f4   : > { %v12246_v32 = vadd.f32 %v20144_v55, %v12208_v39  ;;  %v12128_v19 = vpop.f32.mrf.mxu0 }
 0x7f5   : > { %12371 = vst [vmem:[%s20178_s27 + $0xd8] sm:$0xff] %v12339_v52  ;;  %v12337_v44 = vmax.f32 %v12305_v24, 0.0  ;;  %v12244_v1 = vadd.f32 %v20144_v55, %v12206_v49  ;;  %v12209_v13 = vmul.f32 %v20135_v43, %v12171_v25  ;;  %v12169_v35 = vadd.f32 %v12128_v19, %v11863_v23 }
 0x7f6   : > { %v12310_v22 = vadd.f32 %v12278_v58, %v12246_v32 }
 0x7f7   : > { %12369 = vst [vmem:[%s20178_s27 + $0xc8] sm:$0xff] %v12337_v44  ;;  %v12308_v4 = vadd.f32 %v12276_v37, %v12244_v1  ;;  %v12247_v5 = vadd.f32 %v20144_v55, %v12209_v13  ;;  %v12207_v34 = vmul.f32 %v20135_v43, %v12169_v35 }
 0x7f8   : > { %v12342_v30 = vmax.f32 %v12310_v22, 0.0 }
 0x7f9   : > { %v12340_v40 = vmax.f32 %v12308_v4, 0.0  ;;  %v12311_v61 = vadd.f32 %v12279_v14, %v12247_v5  ;;  %v12245_v8 = vadd.f32 %v20144_v55, %v12207_v34 }
 0x7fa   : > { %12374 = vst [vmem:[%s20178_s27 + $0xf0] sm:$0xff] %v12342_v30 }
 0x7fb   : > { %12372 = vst [vmem:[%s20178_s27 + $0xe0] sm:$0xff] %v12340_v40  ;;  %v12343_v59 = vmax.f32 %v12311_v61, 0.0  ;;  %v12309_v2 = vadd.f32 %v12277_v12, %v12245_v8 }
 0x7fd   : > { %12375 = vst [vmem:[%s20178_s27 + $0xf8] sm:$0xff] %v12343_v59  ;;  %v12341_v43 = vmax.f32 %v12309_v2, 0.0 }
 0x7ff   : > { %12373 = vst [vmem:[%s20178_s27 + $0xe8] sm:$0xff] %v12341_v43 }
 0x800   : > { %16007 = shalt.err (!%p16004_p9)
}
 0x801   : > { %s16008_s29 = scalar_lea.hbm %s20382_s28, 4096  ;;  %s16012_s12 = scalar_lea.hbm %s20439_s10, 8192 }
 0x802   : > { %p16009_p1 = scmp.ne.s32.totalorder %s20382_s28, %s16008_s29  ;;  %p16013_p11 = scmp.lt.s32.totalorder %s20382_s28, %s20439_s10 }
 0x803   : > { %p16014_p13 = scmp.lt.s32.totalorder %s16012_s12, %s16008_s29 }
 0x804   : > { %p16010_p8 = pnand %p16009_p1, %p20962_p6 }
 0x805   : > { %p16015_p2 = por %p16014_p13, %p16013_p11 }
 0x806   : > { %p16011_p10 = pneg %p16010_p8 }
 0x808   : > { %p16016_p4 = pnand %p16015_p2, %p16011_p10 }
 0x80a   : > { %16019 = shalt.err (!%p16016_p4)
}
 0x80b   : > { %s16079_s4 = smov 128   ;;  %s16080_s30 = smov 8  }
 0x80c   : > { %15518 = dma.vmem_to_hbm [thread:$0]  (%p20962_p6), %s20384_s23, 4096, %s20382_s28, %s12377_s17, %s16079_s4, %s16079_s4, %s16080_s30  }
 0x80d PF: > { %s12405_s11 = sand.u32 1, %s16054_s13   ;;  %p20963_p12 = scmp.ne.s32.totalorder %s20454_s20, 0 }
 0x80e   : > { %p20964_p0 = scmp.ge.s32.totalorder %s16066_s16, 2  ;;  %s12406_s1 = scalar_lea.sflag [#allocation6], %s12405_s11 }
 0x810   : > { %p15535_p5 = pnand %p20964_p0, %p20963_p12 }
 0x812   : > { %p15536_p3 = pneg %p15535_p5 }
 0x814   : > { %16049 = dma.done.wait (%p15536_p3), %s12406_s1, 4096  }
 0x815   : > { %16051 = vsyncadd (%p15536_p3), %s12406_s1, 4294963200  ;;  %s20965_s19 = sld [smem:[#allocation17_spill]]  ;;  %p25_p7 = scmp.ge.s32.totalorder %s16216_s26, 4  }
 0x816   : > { %s20966_s13 = smov %s16058_s14  ;;  %s20967_s14 = smov %s16062_s15 }
 0x817   : > { %s20969_s16 = smov %s16216_s26  ;;  %27 = sbr.rel (!%p25_p7) target bundleno = 11 (0xb), region = 159 }
 0x81b   : > { %s20968_s15 = smov %s20965_s19 }
 0x81c   :  { %12411 = vsyncpa [#allocation5], 1 }
 0x81d   :  { %12413 = vsyncpa [#allocation5 + $0x1], 1 }
 0x81e   :  { %12414 = vsyncpa [#allocation8], 1 }
 0x81f   :  { %12415 = vsyncpa [#allocation11], 1 }
 0x820   :  { %12416 = vsyncpa [#allocation6], 1 }
 0x821   :  { %12418 = vsyncpa [#allocation6 + $0x1], 1 }

</bundles_post_ra>
